<compile_context>
chip_gen: v7x
topology: tpu7x:2x2x1
jax: 0.10.0
libtpu: 0.0.40
codegen_flags: <defaults>
</compile_context>

<pallas_src>
import functools

import jax
import jax.numpy as jnp
from jax import lax
from jax.experimental import pallas as pl
from jax.experimental.pallas import tpu as pltpu


# ------------------------------- helpers ------------------------------------

def _round_up(x, m):
    return (x + m - 1) // m * m


def _pick_time_block(seq_len, max_blk=32):
    """Largest time block <= max_blk that evenly divides the sequence."""
    if seq_len <= max_blk:
        return seq_len
    for t in range(max_blk, 0, -1):
        if seq_len % t == 0:
            return t
    return 1


def _pad_gatewise(w, h, h_pad):
    """Pad the 4*h gate axis to 4*h_pad, zero-padding each gate block."""
    lead = w.shape[:-1]
    w = w.reshape(lead + (4, h))
    pad = [(0, 0)] * len(lead) + [(0, 0), (0, h_pad - h)]
    w = jnp.pad(w, pad)
    return w.reshape(lead + (4 * h_pad,))


# ------------------------------- kernel -------------------------------------

def _make_encoder_kernel(n_layers, t_blk, h_pad):
    def kernel(*refs):
        # refs = [x_blk, w_ih_0.., w_hh_0.., b_0.., h_out, c_out]
        x_ref = refs[0]
        w_ih_refs = refs[1:1 + n_layers]
        w_hh_refs = refs[1 + n_layers:1 + 2 * n_layers]
        b_refs = refs[1 + 2 * n_layers:1 + 3 * n_layers]
        h_ref = refs[1 + 3 * n_layers]
        c_ref = refs[2 + 3 * n_layers]

        cdt = x_ref.dtype                       # bf16 matmul operand dtype
        b_blk = h_ref.shape[1]
        tb = pl.program_id(1)                   # trailing "arbitrary" time axis

        # PyTorch nn.LSTM starts from zero state when none is provided.
        @pl.when(tb == 0)
        def _():
            h_ref[...] = jnp.zeros_like(h_ref)
            c_ref[...] = jnp.zeros_like(c_ref)

        # Hoist the (1,4H)->(B,4H) bias broadcast out of the unrolled loop
        # (JAX does not CSE broadcast_in_dim inside the loop body).
        biases = [jnp.broadcast_to(b_refs[l][...], (b_blk, 4 * h_pad))
                  for l in range(n_layers)]

        # Carry h/c in vregs across the time block; touch VMEM only at the
        # block boundaries.
        h0 = [h_ref[l] for l in range(n_layers)]
        c0 = [c_ref[l] for l in range(n_layers)]

        def step(t, carry):
            hs, cs = carry
            x = x_ref[t]                        # (B_blk, E_pad), bf16
            new_hs, new_cs = [], []
            for l in range(n_layers):
                # Two register-fed MXU dots, f32 accumulation; PyTorch gate
                # order [i, f, g, o].
                gates = (
                    jnp.dot(x, w_ih_refs[l][...],
                            preferred_element_type=jnp.float32)
                    + jnp.dot(hs[l].astype(cdt), w_hh_refs[l][...],
                              preferred_element_type=jnp.float32)
                    + biases[l]
                )                               # (B_blk, 4*H_pad) f32
                i_g = jax.nn.sigmoid(gates[:, 0 * h_pad:1 * h_pad])
                f_g = jax.nn.sigmoid(gates[:, 1 * h_pad:2 * h_pad])
                g_g = jnp.tanh(gates[:, 2 * h_pad:3 * h_pad])
                o_g = jax.nn.sigmoid(gates[:, 3 * h_pad:4 * h_pad])

                c_new = f_g * cs[l] + i_g * g_g     # f32 cell state
                h_new = o_g * jnp.tanh(c_new)       # f32 hidden state

                new_hs.append(h_new)
                new_cs.append(c_new)
                x = h_new.astype(cdt)           # inter-layer dropout = identity
            return new_hs, new_cs

        hs, cs = lax.fori_loop(0, t_blk, step, (h0, c0), unroll=True)

        for l in range(n_layers):
            h_ref[l] = hs[l]
            c_ref[l] = cs[l]

    return kernel


# ------------------------------- wrapper -------------------------------------

def init_encoder_params(key, input_dim, embedding_dim, hidden_dim, n_layers):
    """Raw (unpadded, f32, PyTorch-layout-transposed) parameters."""
    params = {}
    keys = jax.random.split(key, 1 + 4 * n_layers)
    k = iter(keys)
    scale = 0.1
    params["embedding"] = scale * jax.random.normal(
        next(k), (input_dim, embedding_dim), jnp.float32)
    for layer in range(n_layers):
        in_dim = embedding_dim if layer == 0 else hidden_dim
        params[f"w_ih_{layer}"] = scale * jax.random.normal(
            next(k), (in_dim, 4 * hidden_dim), jnp.float32)
        params[f"w_hh_{layer}"] = scale * jax.random.normal(
            next(k), (hidden_dim, 4 * hidden_dim), jnp.float32)
        params[f"b_ih_{layer}"] = scale * jax.random.normal(
            next(k), (4 * hidden_dim,), jnp.float32)
        params[f"b_hh_{layer}"] = scale * jax.random.normal(
            next(k), (4 * hidden_dim,), jnp.float32)
    return params


def encoder_forward(params, src, *, n_layers, hidden_dim):
    """Mirrors Encoder.forward.

    src: (src_len, B) int32 token ids.
    Returns (hidden, cell), each (n_layers, B, hidden_dim), f32.
    """
    S, B = src.shape
    E = params["embedding"].shape[1]
    H = hidden_dim

    LANE = 128
    H_pad = _round_up(H, LANE)
    E_pad = _round_up(E, LANE)
    B_pad = _round_up(B, 16)            # bf16 activations -> 16-row sublane tile
    T_blk = _pick_time_block(S)

    # v7x megacore: shard the batch axis across TensorCores when it is big
    # enough; time stays the trailing "arbitrary" (sequential carry) axis.
    if B_pad >= 32 and (B_pad // 2) % 16 == 0:
        B_blk = B_pad // 2
    else:
        B_blk = B_pad
    n_b = B_pad // B_blk
    n_t = S // T_blk

    cdt = jnp.bfloat16

    # Embedding gather (single XLA op feeding the fused kernel); dropout on
    # the embedding is identity in eval mode.
    embedded = jnp.take(params["embedding"], src, axis=0)          # (S,B,E) f32
    embedded = jnp.pad(embedded, ((0, 0), (0, B_pad - B), (0, E_pad - E)))
    embedded = embedded.astype(cdt)

    # Pad weights to hardware tiles (zero rows on the contraction dim, per-gate
    # zero columns on the 4H axis) and cast matmul operands to bf16.
    w_ih, w_hh, biases = [], [], []
    for l in range(n_layers):
        in_dim = E if l == 0 else H
        in_pad = E_pad if l == 0 else H_pad
        wi = _pad_gatewise(params[f"w_ih_{l}"], H, H_pad)
        wi = jnp.pad(wi, ((0, in_pad - in_dim), (0, 0))).astype(cdt)
        wh = _pad_gatewise(params[f"w_hh_{l}"], H, H_pad)
        wh = jnp.pad(wh, ((0, H_pad - H), (0, 0))).astype(cdt)
        b = _pad_gatewise(params[f"b_ih_{l}"] + params[f"b_hh_{l}"], H, H_pad)
        w_ih.append(wi)
        w_hh.append(wh)
        biases.append(b.reshape(1, 4 * H_pad).astype(jnp.float32))

    const_map = lambda bi, tb: (0, 0)
    in_specs = (
        [pl.BlockSpec((T_blk, B_blk, E_pad), lambda bi, tb: (tb, bi, 0))]
        + [pl.BlockSpec(w.shape, const_map) for w in w_ih]
        + [pl.BlockSpec(w.shape, const_map) for w in w_hh]
        + [pl.BlockSpec(b.shape, const_map) for b in biases]
    )
    out_specs = (
        pl.BlockSpec((n_layers, B_blk, H_pad), lambda bi, tb: (0, bi, 0)),
        pl.BlockSpec((n_layers, B_blk, H_pad), lambda bi, tb: (0, bi, 0)),
    )

    # Explicit scoped-VMEM budget: weights + biases + x block + h/c state,
    # assume double-buffering, plus headroom; clamped to the v7x-safe cap.
    bytes_needed = 2 * (
        sum(int(w.size) * 2 for w in w_ih + w_hh)
        + sum(int(b.size) * 4 for b in biases)
        + T_blk * B_blk * E_pad * 2
        + 2 * n_layers * B_blk * H_pad * 4
    )
    vmem_limit = int(min(max(bytes_needed + (4 << 20), 16 << 20), 56 << 20))

    hidden, cell = pl.pallas_call(
        _make_encoder_kernel(n_layers, T_blk, H_pad),
        out_shape=(
            jax.ShapeDtypeStruct((n_layers, B_pad, H_pad), jnp.float32),
            jax.ShapeDtypeStruct((n_layers, B_pad, H_pad), jnp.float32),
        ),
        grid_spec=pltpu.PrefetchScalarGridSpec(
            num_scalar_prefetch=0,
            grid=(n_b, n_t),
            in_specs=in_specs,
            out_specs=out_specs,
        ),
        compiler_params=pltpu.CompilerParams(
            dimension_semantics=("parallel", "arbitrary"),
            vmem_limit_bytes=vmem_limit),
    )(embedded, *w_ih, *w_hh, *biases)

    return hidden[:, :B, :H], cell[:, :B, :H]


# --------------------------- pure-JAX reference ------------------------------

def encoder_reference(params, src, *, n_layers, hidden_dim):
    H = hidden_dim
    emb = jnp.take(params["embedding"], src, axis=0)               # (S,B,E)
    B = emb.shape[1]

    def cell_step(carry, x_t):
        hs, cs = carry
        inp = x_t
        new_hs, new_cs = [], []
        for l in range(n_layers):
            gates = (inp @ params[f"w_ih_{l}"] + hs[l] @ params[f"w_hh_{l}"]
                     + params[f"b_ih_{l}"] + params[f"b_hh_{l}"])
            i = jax.nn.sigmoid(gates[:, 0 * H:1 * H])
            f = jax.nn.sigmoid(gates[:, 1 * H:2 * H])
            g = jnp.tanh(gates[:, 2 * H:3 * H])
            o = jax.nn.sigmoid(gates[:, 3 * H:4 * H])
            c = f * cs[l] + i * g
            h = o * jnp.tanh(c)
            new_hs.append(h)
            new_cs.append(c)
            inp = h
        return (new_hs, new_cs), None

    init = ([jnp.zeros((B, H), jnp.float32) for _ in range(n_layers)],
            [jnp.zeros((B, H), jnp.float32) for _ in range(n_layers)])
    (hs, cs), _ = lax.scan(cell_step, init, emb)
    return jnp.stack(hs), jnp.stack(cs)


# --------------------------------- main --------------------------------------

if __name__ == "__main__":
    INPUT_DIM = 64       # source vocab size
    EMBEDDING_DIM = 16
    HIDDEN_DIM = 32
    N_LAYERS = 2
    SRC_LEN = 8
    BATCH = 4

    key = jax.random.PRNGKey(0)
    k_params, k_src = jax.random.split(key, 2)

    params = init_encoder_params(k_params, INPUT_DIM, EMBEDDING_DIM,
                                 HIDDEN_DIM, N_LAYERS)
    src = jax.random.randint(k_src, (SRC_LEN, BATCH), 0, INPUT_DIM,
                             dtype=jnp.int32)

    fwd = jax.jit(functools.partial(encoder_forward,
                                    n_layers=N_LAYERS, hidden_dim=HIDDEN_DIM))
    hidden, cell = fwd(params, src)
    jax.block_until_ready((hidden, cell))

    assert hidden.shape == (N_LAYERS, BATCH, HIDDEN_DIM)
    assert cell.shape == (N_LAYERS, BATCH, HIDDEN_DIM)
    assert bool(jnp.all(jnp.isfinite(hidden)))
    assert bool(jnp.all(jnp.isfinite(cell)))

    # Correctness vs. pure-JAX f32 reference (bf16 matmul operands => loose tol).
    h_ref, c_ref = encoder_reference(params, src, n_layers=N_LAYERS,
                                     hidden_dim=HIDDEN_DIM)
    max_err = float(jnp.max(jnp.abs(hidden - h_ref)) +
                    jnp.max(jnp.abs(cell - c_ref)))
    assert max_err < 5e-2, f"mismatch vs reference: {max_err}"

    print("KERNEL_OK")
</pallas_src>

<mosaic_0001>
module attributes {stable_mosaic.version = 11 : i64} {
  func.func @kernel(%arg0: i32, %arg1: i32, %arg2: memref<8x16x128xbf16, #tpu.memory_space<vmem>>, %arg3: memref<128x512xbf16, #tpu.memory_space<vmem>>, %arg4: memref<128x512xbf16, #tpu.memory_space<vmem>>, %arg5: memref<128x512xbf16, #tpu.memory_space<vmem>>, %arg6: memref<128x512xbf16, #tpu.memory_space<vmem>>, %arg7: memref<1x512xf32, #tpu.memory_space<vmem>>, %arg8: memref<1x512xf32, #tpu.memory_space<vmem>>, %arg9: memref<2x16x128xf32, #tpu.memory_space<vmem>>, %arg10: memref<2x16x128xf32, #tpu.memory_space<vmem>>) attributes {dimension_semantics = [#tpu.dimension_semantics<parallel>, #tpu.dimension_semantics<arbitrary>], iteration_bounds = array<i64: 1, 1>, scalar_prefetch = 0 : i64, scratch_operands = 0 : i64, tpu.core_type = #tpu.core_type<tc>, window_params = [{transform_indices = @transform_0, window_bounds = array<i64: 8, 16, 128>}, {pipeline_mode = #tpu.pipeline_mode<synchronous>, transform_indices = @transform_1, window_bounds = array<i64: 128, 512>}, {pipeline_mode = #tpu.pipeline_mode<synchronous>, transform_indices = @transform_2, window_bounds = array<i64: 128, 512>}, {pipeline_mode = #tpu.pipeline_mode<synchronous>, transform_indices = @transform_3, window_bounds = array<i64: 128, 512>}, {pipeline_mode = #tpu.pipeline_mode<synchronous>, transform_indices = @transform_4, window_bounds = array<i64: 128, 512>}, {pipeline_mode = #tpu.pipeline_mode<synchronous>, transform_indices = @transform_5, window_bounds = array<i64: 1, 512>}, {pipeline_mode = #tpu.pipeline_mode<synchronous>, transform_indices = @transform_6, window_bounds = array<i64: 1, 512>}, {transform_indices = @transform_7, window_bounds = array<i64: 2, 16, 128>}, {transform_indices = @transform_8, window_bounds = array<i64: 2, 16, 128>}]} {
    %c0_i32 = arith.constant 0 : i32
    %0 = arith.cmpi eq, %arg1, %c0_i32 : i32
    %1 = arith.extui %0 : i1 to i32
    %c0_i32_0 = arith.constant 0 : i32
    %2 = arith.cmpi ne, %1, %c0_i32_0 : i32
    scf.if %2 {
      %cst_187 = arith.constant 0.000000e+00 : f32
      %573 = vector.broadcast %cst_187 : f32 to vector<2x16x128xf32>
      %c0_188 = arith.constant 0 : index
      %c0_189 = arith.constant 0 : index
      %c0_190 = arith.constant 0 : index
      %574 = vector.load %arg9[%c0_188, %c0_189, %c0_190] : memref<2x16x128xf32, #tpu.memory_space<vmem>>, vector<2x16x128xf32>
      tpu.vector_store %arg9[%c0_188, %c0_189, %c0_190], %573 {strides = array<i32>} : memref<2x16x128xf32, #tpu.memory_space<vmem>>, vector<2x16x128xf32>,
      %cst_191 = arith.constant 0.000000e+00 : f32
      %575 = vector.broadcast %cst_191 : f32 to vector<2x16x128xf32>
      %c0_192 = arith.constant 0 : index
      %c0_193 = arith.constant 0 : index
      %c0_194 = arith.constant 0 : index
      %576 = vector.load %arg10[%c0_192, %c0_193, %c0_194] : memref<2x16x128xf32, #tpu.memory_space<vmem>>, vector<2x16x128xf32>
      tpu.vector_store %arg10[%c0_192, %c0_193, %c0_194], %575 {strides = array<i32>} : memref<2x16x128xf32, #tpu.memory_space<vmem>>, vector<2x16x128xf32>,
    } else {
    }
    %c0 = arith.constant 0 : index
    %c0_1 = arith.constant 0 : index
    %3 = vector.load %arg7[%c0, %c0_1] : memref<1x512xf32, #tpu.memory_space<vmem>>, vector<1x512xf32>
    %4 = vector.shape_cast %3 : vector<1x512xf32> to vector<1x512xf32>
    %5 = vector.broadcast %4 : vector<1x512xf32> to vector<16x512xf32>
    %c0_2 = arith.constant 0 : index
    %c0_3 = arith.constant 0 : index
    %6 = vector.load %arg8[%c0_2, %c0_3] : memref<1x512xf32, #tpu.memory_space<vmem>>, vector<1x512xf32>
    %7 = vector.shape_cast %6 : vector<1x512xf32> to vector<1x512xf32>
    %8 = vector.broadcast %7 : vector<1x512xf32> to vector<16x512xf32>
    %c0_4 = arith.constant 0 : index
    %c0_5 = arith.constant 0 : index
    %c0_6 = arith.constant 0 : index
    %9 = vector.load %arg9[%c0_4, %c0_5, %c0_6] : memref<2x16x128xf32, #tpu.memory_space<vmem>>, vector<1x16x128xf32>
    %10 = vector.shape_cast %9 : vector<1x16x128xf32> to vector<16x128xf32>
    %c1 = arith.constant 1 : index
    %c0_7 = arith.constant 0 : index
    %c0_8 = arith.constant 0 : index
    %11 = vector.load %arg9[%c1, %c0_7, %c0_8] : memref<2x16x128xf32, #tpu.memory_space<vmem>>, vector<1x16x128xf32>
    %12 = vector.shape_cast %11 : vector<1x16x128xf32> to vector<16x128xf32>
    %c0_9 = arith.constant 0 : index
    %c0_10 = arith.constant 0 : index
    %c0_11 = arith.constant 0 : index
    %13 = vector.load %arg10[%c0_9, %c0_10, %c0_11] : memref<2x16x128xf32, #tpu.memory_space<vmem>>, vector<1x16x128xf32>
    %14 = vector.shape_cast %13 : vector<1x16x128xf32> to vector<16x128xf32>
    %c1_12 = arith.constant 1 : index
    %c0_13 = arith.constant 0 : index
    %c0_14 = arith.constant 0 : index
    %15 = vector.load %arg10[%c1_12, %c0_13, %c0_14] : memref<2x16x128xf32, #tpu.memory_space<vmem>>, vector<1x16x128xf32>
    %16 = vector.shape_cast %15 : vector<1x16x128xf32> to vector<16x128xf32>
    %c0_i32_15 = arith.constant 0 : i32
    %17 = arith.index_cast %c0_i32_15 : i32 to index
    %c0_16 = arith.constant 0 : index
    %c0_17 = arith.constant 0 : index
    %18 = vector.load %arg2[%17, %c0_16, %c0_17] : memref<8x16x128xbf16, #tpu.memory_space<vmem>>, vector<1x16x128xbf16>
    %19 = vector.shape_cast %18 : vector<1x16x128xbf16> to vector<16x128xbf16>
    %c0_18 = arith.constant 0 : index
    %c0_19 = arith.constant 0 : index
    %20 = vector.load %arg3[%c0_18, %c0_19] : memref<128x512xbf16, #tpu.memory_space<vmem>>, vector<128x512xbf16>
    %cst = arith.constant dense<0.000000e+00> : vector<16x512xf32>
    %21 = tpu.matmul %19, %20, %cst {dimension_numbers = #tpu.dot_dimension_numbers<[1], [0], [0], [1], [0, 0, 1, 1], [], []>} : vector<16x128xbf16>, vector<128x512xbf16>, vector<16x512xf32> -> vector<16x512xf32>
    %22 = arith.truncf %10 : vector<16x128xf32> to vector<16x128xbf16>
    %c0_20 = arith.constant 0 : index
    %c0_21 = arith.constant 0 : index
    %23 = vector.load %arg5[%c0_20, %c0_21] : memref<128x512xbf16, #tpu.memory_space<vmem>>, vector<128x512xbf16>
    %cst_22 = arith.constant dense<0.000000e+00> : vector<16x512xf32>
    %24 = tpu.matmul %22, %23, %cst_22 {dimension_numbers = #tpu.dot_dimension_numbers<[1], [0], [0], [1], [0, 0, 1, 1], [], []>} : vector<16x128xbf16>, vector<128x512xbf16>, vector<16x512xf32> -> vector<16x512xf32>
    %25 = arith.addf %21, %24 : vector<16x512xf32>
    %26 = arith.addf %25, %5 : vector<16x512xf32>
    %27 = vector.extract_strided_slice %26 {offsets = [0, 0], sizes = [16, 128], strides = [1, 1]} : vector<16x512xf32> to vector<16x128xf32>
    %28 = arith.negf %27 : vector<16x128xf32>
    %29 = math.exp %28 : vector<16x128xf32>
    %cst_23 = arith.constant 1.000000e+00 : f32
    %30 = vector.broadcast %cst_23 : f32 to vector<16x128xf32>
    %31 = arith.addf %30, %29 : vector<16x128xf32>
    %32 = arith.divf %30, %31 : vector<16x128xf32>
    %33 = vector.extract_strided_slice %26 {offsets = [0, 128], sizes = [16, 128], strides = [1, 1]} : vector<16x512xf32> to vector<16x128xf32>
    %34 = arith.negf %33 : vector<16x128xf32>
    %35 = math.exp %34 : vector<16x128xf32>
    %cst_24 = arith.constant 1.000000e+00 : f32
    %36 = vector.broadcast %cst_24 : f32 to vector<16x128xf32>
    %37 = arith.addf %36, %35 : vector<16x128xf32>
    %38 = arith.divf %36, %37 : vector<16x128xf32>
    %39 = vector.extract_strided_slice %26 {offsets = [0, 256], sizes = [16, 128], strides = [1, 1]} : vector<16x512xf32> to vector<16x128xf32>
    %40 = math.tanh %39 : vector<16x128xf32>
    %41 = vector.extract_strided_slice %26 {offsets = [0, 384], sizes = [16, 128], strides = [1, 1]} : vector<16x512xf32> to vector<16x128xf32>
    %42 = arith.negf %41 : vector<16x128xf32>
    %43 = math.exp %42 : vector<16x128xf32>
    %cst_25 = arith.constant 1.000000e+00 : f32
    %44 = vector.broadcast %cst_25 : f32 to vector<16x128xf32>
    %45 = arith.addf %44, %43 : vector<16x128xf32>
    %46 = arith.divf %44, %45 : vector<16x128xf32>
    %47 = arith.mulf %38, %14 : vector<16x128xf32>
    %48 = arith.mulf %32, %40 : vector<16x128xf32>
    %49 = arith.addf %47, %48 : vector<16x128xf32>
    %50 = math.tanh %49 : vector<16x128xf32>
    %51 = arith.mulf %46, %50 : vector<16x128xf32>
    %52 = arith.truncf %51 : vector<16x128xf32> to vector<16x128xbf16>
    %c0_26 = arith.constant 0 : index
    %c0_27 = arith.constant 0 : index
    %53 = vector.load %arg4[%c0_26, %c0_27] : memref<128x512xbf16, #tpu.memory_space<vmem>>, vector<128x512xbf16>
    %cst_28 = arith.constant dense<0.000000e+00> : vector<16x512xf32>
    %54 = tpu.matmul %52, %53, %cst_28 {dimension_numbers = #tpu.dot_dimension_numbers<[1], [0], [0], [1], [0, 0, 1, 1], [], []>} : vector<16x128xbf16>, vector<128x512xbf16>, vector<16x512xf32> -> vector<16x512xf32>
    %55 = arith.truncf %12 : vector<16x128xf32> to vector<16x128xbf16>
    %c0_29 = arith.constant 0 : index
    %c0_30 = arith.constant 0 : index
    %56 = vector.load %arg6[%c0_29, %c0_30] : memref<128x512xbf16, #tpu.memory_space<vmem>>, vector<128x512xbf16>
    %cst_31 = arith.constant dense<0.000000e+00> : vector<16x512xf32>
    %57 = tpu.matmul %55, %56, %cst_31 {dimension_numbers = #tpu.dot_dimension_numbers<[1], [0], [0], [1], [0, 0, 1, 1], [], []>} : vector<16x128xbf16>, vector<128x512xbf16>, vector<16x512xf32> -> vector<16x512xf32>
    %58 = arith.addf %54, %57 : vector<16x512xf32>
    %59 = arith.addf %58, %8 : vector<16x512xf32>
    %60 = vector.extract_strided_slice %59 {offsets = [0, 0], sizes = [16, 128], strides = [1, 1]} : vector<16x512xf32> to vector<16x128xf32>
    %61 = arith.negf %60 : vector<16x128xf32>
    %62 = math.exp %61 : vector<16x128xf32>
    %cst_32 = arith.constant 1.000000e+00 : f32
    %63 = vector.broadcast %cst_32 : f32 to vector<16x128xf32>
    %64 = arith.addf %63, %62 : vector<16x128xf32>
    %65 = arith.divf %63, %64 : vector<16x128xf32>
    %66 = vector.extract_strided_slice %59 {offsets = [0, 128], sizes = [16, 128], strides = [1, 1]} : vector<16x512xf32> to vector<16x128xf32>
    %67 = arith.negf %66 : vector<16x128xf32>
    %68 = math.exp %67 : vector<16x128xf32>
    %cst_33 = arith.constant 1.000000e+00 : f32
    %69 = vector.broadcast %cst_33 : f32 to vector<16x128xf32>
    %70 = arith.addf %69, %68 : vector<16x128xf32>
    %71 = arith.divf %69, %70 : vector<16x128xf32>
    %72 = vector.extract_strided_slice %59 {offsets = [0, 256], sizes = [16, 128], strides = [1, 1]} : vector<16x512xf32> to vector<16x128xf32>
    %73 = math.tanh %72 : vector<16x128xf32>
    %74 = vector.extract_strided_slice %59 {offsets = [0, 384], sizes = [16, 128], strides = [1, 1]} : vector<16x512xf32> to vector<16x128xf32>
    %75 = arith.negf %74 : vector<16x128xf32>
    %76 = math.exp %75 : vector<16x128xf32>
    %cst_34 = arith.constant 1.000000e+00 : f32
    %77 = vector.broadcast %cst_34 : f32 to vector<16x128xf32>
    %78 = arith.addf %77, %76 : vector<16x128xf32>
    %79 = arith.divf %77, %78 : vector<16x128xf32>
    %80 = arith.mulf %71, %16 : vector<16x128xf32>
    %81 = arith.mulf %65, %73 : vector<16x128xf32>
    %82 = arith.addf %80, %81 : vector<16x128xf32>
    %83 = math.tanh %82 : vector<16x128xf32>
    %84 = arith.mulf %79, %83 : vector<16x128xf32>
    %c1_i32 = arith.constant 1 : i32
    %85 = arith.index_cast %c1_i32 : i32 to index
    %c0_35 = arith.constant 0 : index
    %c0_36 = arith.constant 0 : index
    %86 = vector.load %arg2[%85, %c0_35, %c0_36] : memref<8x16x128xbf16, #tpu.memory_space<vmem>>, vector<1x16x128xbf16>
    %87 = vector.shape_cast %86 : vector<1x16x128xbf16> to vector<16x128xbf16>
    %c0_37 = arith.constant 0 : index
    %c0_38 = arith.constant 0 : index
    %88 = vector.load %arg3[%c0_37, %c0_38] : memref<128x512xbf16, #tpu.memory_space<vmem>>, vector<128x512xbf16>
    %cst_39 = arith.constant dense<0.000000e+00> : vector<16x512xf32>
    %89 = tpu.matmul %87, %88, %cst_39 {dimension_numbers = #tpu.dot_dimension_numbers<[1], [0], [0], [1], [0, 0, 1, 1], [], []>} : vector<16x128xbf16>, vector<128x512xbf16>, vector<16x512xf32> -> vector<16x512xf32>
    %90 = arith.truncf %51 : vector<16x128xf32> to vector<16x128xbf16>
    %c0_40 = arith.constant 0 : index
    %c0_41 = arith.constant 0 : index
    %91 = vector.load %arg5[%c0_40, %c0_41] : memref<128x512xbf16, #tpu.memory_space<vmem>>, vector<128x512xbf16>
    %cst_42 = arith.constant dense<0.000000e+00> : vector<16x512xf32>
    %92 = tpu.matmul %90, %91, %cst_42 {dimension_numbers = #tpu.dot_dimension_numbers<[1], [0], [0], [1], [0, 0, 1, 1], [], []>} : vector<16x128xbf16>, vector<128x512xbf16>, vector<16x512xf32> -> vector<16x512xf32>
    %93 = arith.addf %89, %92 : vector<16x512xf32>
    %94 = arith.addf %93, %5 : vector<16x512xf32>
    %95 = vector.extract_strided_slice %94 {offsets = [0, 0], sizes = [16, 128], strides = [1, 1]} : vector<16x512xf32> to vector<16x128xf32>
    %96 = arith.negf %95 : vector<16x128xf32>
    %97 = math.exp %96 : vector<16x128xf32>
    %cst_43 = arith.constant 1.000000e+00 : f32
    %98 = vector.broadcast %cst_43 : f32 to vector<16x128xf32>
    %99 = arith.addf %98, %97 : vector<16x128xf32>
    %100 = arith.divf %98, %99 : vector<16x128xf32>
    %101 = vector.extract_strided_slice %94 {offsets = [0, 128], sizes = [16, 128], strides = [1, 1]} : vector<16x512xf32> to vector<16x128xf32>
    %102 = arith.negf %101 : vector<16x128xf32>
    %103 = math.exp %102 : vector<16x128xf32>
    %cst_44 = arith.constant 1.000000e+00 : f32
    %104 = vector.broadcast %cst_44 : f32 to vector<16x128xf32>
    %105 = arith.addf %104, %103 : vector<16x128xf32>
    %106 = arith.divf %104, %105 : vector<16x128xf32>
    %107 = vector.extract_strided_slice %94 {offsets = [0, 256], sizes = [16, 128], strides = [1, 1]} : vector<16x512xf32> to vector<16x128xf32>
    %108 = math.tanh %107 : vector<16x128xf32>
    %109 = vector.extract_strided_slice %94 {offsets = [0, 384], sizes = [16, 128], strides = [1, 1]} : vector<16x512xf32> to vector<16x128xf32>
    %110 = arith.negf %109 : vector<16x128xf32>
    %111 = math.exp %110 : vector<16x128xf32>
    %cst_45 = arith.constant 1.000000e+00 : f32
    %112 = vector.broadcast %cst_45 : f32 to vector<16x128xf32>
    %113 = arith.addf %112, %111 : vector<16x128xf32>
    %114 = arith.divf %112, %113 : vector<16x128xf32>
    %115 = arith.mulf %106, %49 : vector<16x128xf32>
    %116 = arith.mulf %100, %108 : vector<16x128xf32>
    %117 = arith.addf %115, %116 : vector<16x128xf32>
    %118 = math.tanh %117 : vector<16x128xf32>
    %119 = arith.mulf %114, %118 : vector<16x128xf32>
    %120 = arith.truncf %119 : vector<16x128xf32> to vector<16x128xbf16>
    %c0_46 = arith.constant 0 : index
    %c0_47 = arith.constant 0 : index
    %121 = vector.load %arg4[%c0_46, %c0_47] : memref<128x512xbf16, #tpu.memory_space<vmem>>, vector<128x512xbf16>
    %cst_48 = arith.constant dense<0.000000e+00> : vector<16x512xf32>
    %122 = tpu.matmul %120, %121, %cst_48 {dimension_numbers = #tpu.dot_dimension_numbers<[1], [0], [0], [1], [0, 0, 1, 1], [], []>} : vector<16x128xbf16>, vector<128x512xbf16>, vector<16x512xf32> -> vector<16x512xf32>
    %123 = arith.truncf %84 : vector<16x128xf32> to vector<16x128xbf16>
    %c0_49 = arith.constant 0 : index
    %c0_50 = arith.constant 0 : index
    %124 = vector.load %arg6[%c0_49, %c0_50] : memref<128x512xbf16, #tpu.memory_space<vmem>>, vector<128x512xbf16>
    %cst_51 = arith.constant dense<0.000000e+00> : vector<16x512xf32>
    %125 = tpu.matmul %123, %124, %cst_51 {dimension_numbers = #tpu.dot_dimension_numbers<[1], [0], [0], [1], [0, 0, 1, 1], [], []>} : vector<16x128xbf16>, vector<128x512xbf16>, vector<16x512xf32> -> vector<16x512xf32>
    %126 = arith.addf %122, %125 : vector<16x512xf32>
    %127 = arith.addf %126, %8 : vector<16x512xf32>
    %128 = vector.extract_strided_slice %127 {offsets = [0, 0], sizes = [16, 128], strides = [1, 1]} : vector<16x512xf32> to vector<16x128xf32>
    %129 = arith.negf %128 : vector<16x128xf32>
    %130 = math.exp %129 : vector<16x128xf32>
    %cst_52 = arith.constant 1.000000e+00 : f32
    %131 = vector.broadcast %cst_52 : f32 to vector<16x128xf32>
    %132 = arith.addf %131, %130 : vector<16x128xf32>
    %133 = arith.divf %131, %132 : vector<16x128xf32>
    %134 = vector.extract_strided_slice %127 {offsets = [0, 128], sizes = [16, 128], strides = [1, 1]} : vector<16x512xf32> to vector<16x128xf32>
    %135 = arith.negf %134 : vector<16x128xf32>
    %136 = math.exp %135 : vector<16x128xf32>
    %cst_53 = arith.constant 1.000000e+00 : f32
    %137 = vector.broadcast %cst_53 : f32 to vector<16x128xf32>
    %138 = arith.addf %137, %136 : vector<16x128xf32>
    %139 = arith.divf %137, %138 : vector<16x128xf32>
    %140 = vector.extract_strided_slice %127 {offsets = [0, 256], sizes = [16, 128], strides = [1, 1]} : vector<16x512xf32> to vector<16x128xf32>
    %141 = math.tanh %140 : vector<16x128xf32>
    %142 = vector.extract_strided_slice %127 {offsets = [0, 384], sizes = [16, 128], strides = [1, 1]} : vector<16x512xf32> to vector<16x128xf32>
    %143 = arith.negf %142 : vector<16x128xf32>
    %144 = math.exp %143 : vector<16x128xf32>
    %cst_54 = arith.constant 1.000000e+00 : f32
    %145 = vector.broadcast %cst_54 : f32 to vector<16x128xf32>
    %146 = arith.addf %145, %144 : vector<16x128xf32>
    %147 = arith.divf %145, %146 : vector<16x128xf32>
    %148 = arith.mulf %139, %82 : vector<16x128xf32>
    %149 = arith.mulf %133, %141 : vector<16x128xf32>
    %150 = arith.addf %148, %149 : vector<16x128xf32>
    %151 = math.tanh %150 : vector<16x128xf32>
    %152 = arith.mulf %147, %151 : vector<16x128xf32>
    %c2_i32 = arith.constant 2 : i32
    %153 = arith.index_cast %c2_i32 : i32 to index
    %c0_55 = arith.constant 0 : index
    %c0_56 = arith.constant 0 : index
    %154 = vector.load %arg2[%153, %c0_55, %c0_56] : memref<8x16x128xbf16, #tpu.memory_space<vmem>>, vector<1x16x128xbf16>
    %155 = vector.shape_cast %154 : vector<1x16x128xbf16> to vector<16x128xbf16>
    %c0_57 = arith.constant 0 : index
    %c0_58 = arith.constant 0 : index
    %156 = vector.load %arg3[%c0_57, %c0_58] : memref<128x512xbf16, #tpu.memory_space<vmem>>, vector<128x512xbf16>
    %cst_59 = arith.constant dense<0.000000e+00> : vector<16x512xf32>
    %157 = tpu.matmul %155, %156, %cst_59 {dimension_numbers = #tpu.dot_dimension_numbers<[1], [0], [0], [1], [0, 0, 1, 1], [], []>} : vector<16x128xbf16>, vector<128x512xbf16>, vector<16x512xf32> -> vector<16x512xf32>
    %158 = arith.truncf %119 : vector<16x128xf32> to vector<16x128xbf16>
    %c0_60 = arith.constant 0 : index
    %c0_61 = arith.constant 0 : index
    %159 = vector.load %arg5[%c0_60, %c0_61] : memref<128x512xbf16, #tpu.memory_space<vmem>>, vector<128x512xbf16>
    %cst_62 = arith.constant dense<0.000000e+00> : vector<16x512xf32>
    %160 = tpu.matmul %158, %159, %cst_62 {dimension_numbers = #tpu.dot_dimension_numbers<[1], [0], [0], [1], [0, 0, 1, 1], [], []>} : vector<16x128xbf16>, vector<128x512xbf16>, vector<16x512xf32> -> vector<16x512xf32>
    %161 = arith.addf %157, %160 : vector<16x512xf32>
    %162 = arith.addf %161, %5 : vector<16x512xf32>
    %163 = vector.extract_strided_slice %162 {offsets = [0, 0], sizes = [16, 128], strides = [1, 1]} : vector<16x512xf32> to vector<16x128xf32>
    %164 = arith.negf %163 : vector<16x128xf32>
    %165 = math.exp %164 : vector<16x128xf32>
    %cst_63 = arith.constant 1.000000e+00 : f32
    %166 = vector.broadcast %cst_63 : f32 to vector<16x128xf32>
    %167 = arith.addf %166, %165 : vector<16x128xf32>
    %168 = arith.divf %166, %167 : vector<16x128xf32>
    %169 = vector.extract_strided_slice %162 {offsets = [0, 128], sizes = [16, 128], strides = [1, 1]} : vector<16x512xf32> to vector<16x128xf32>
    %170 = arith.negf %169 : vector<16x128xf32>
    %171 = math.exp %170 : vector<16x128xf32>
    %cst_64 = arith.constant 1.000000e+00 : f32
    %172 = vector.broadcast %cst_64 : f32 to vector<16x128xf32>
    %173 = arith.addf %172, %171 : vector<16x128xf32>
    %174 = arith.divf %172, %173 : vector<16x128xf32>
    %175 = vector.extract_strided_slice %162 {offsets = [0, 256], sizes = [16, 128], strides = [1, 1]} : vector<16x512xf32> to vector<16x128xf32>
    %176 = math.tanh %175 : vector<16x128xf32>
    %177 = vector.extract_strided_slice %162 {offsets = [0, 384], sizes = [16, 128], strides = [1, 1]} : vector<16x512xf32> to vector<16x128xf32>
    %178 = arith.negf %177 : vector<16x128xf32>
    %179 = math.exp %178 : vector<16x128xf32>
    %cst_65 = arith.constant 1.000000e+00 : f32
    %180 = vector.broadcast %cst_65 : f32 to vector<16x128xf32>
    %181 = arith.addf %180, %179 : vector<16x128xf32>
    %182 = arith.divf %180, %181 : vector<16x128xf32>
    %183 = arith.mulf %174, %117 : vector<16x128xf32>
    %184 = arith.mulf %168, %176 : vector<16x128xf32>
    %185 = arith.addf %183, %184 : vector<16x128xf32>
    %186 = math.tanh %185 : vector<16x128xf32>
    %187 = arith.mulf %182, %186 : vector<16x128xf32>
    %188 = arith.truncf %187 : vector<16x128xf32> to vector<16x128xbf16>
    %c0_66 = arith.constant 0 : index
    %c0_67 = arith.constant 0 : index
    %189 = vector.load %arg4[%c0_66, %c0_67] : memref<128x512xbf16, #tpu.memory_space<vmem>>, vector<128x512xbf16>
    %cst_68 = arith.constant dense<0.000000e+00> : vector<16x512xf32>
    %190 = tpu.matmul %188, %189, %cst_68 {dimension_numbers = #tpu.dot_dimension_numbers<[1], [0], [0], [1], [0, 0, 1, 1], [], []>} : vector<16x128xbf16>, vector<128x512xbf16>, vector<16x512xf32> -> vector<16x512xf32>
    %191 = arith.truncf %152 : vector<16x128xf32> to vector<16x128xbf16>
    %c0_69 = arith.constant 0 : index
    %c0_70 = arith.constant 0 : index
    %192 = vector.load %arg6[%c0_69, %c0_70] : memref<128x512xbf16, #tpu.memory_space<vmem>>, vector<128x512xbf16>
    %cst_71 = arith.constant dense<0.000000e+00> : vector<16x512xf32>
    %193 = tpu.matmul %191, %192, %cst_71 {dimension_numbers = #tpu.dot_dimension_numbers<[1], [0], [0], [1], [0, 0, 1, 1], [], []>} : vector<16x128xbf16>, vector<128x512xbf16>, vector<16x512xf32> -> vector<16x512xf32>
    %194 = arith.addf %190, %193 : vector<16x512xf32>
    %195 = arith.addf %194, %8 : vector<16x512xf32>
    %196 = vector.extract_strided_slice %195 {offsets = [0, 0], sizes = [16, 128], strides = [1, 1]} : vector<16x512xf32> to vector<16x128xf32>
    %197 = arith.negf %196 : vector<16x128xf32>
    %198 = math.exp %197 : vector<16x128xf32>
    %cst_72 = arith.constant 1.000000e+00 : f32
    %199 = vector.broadcast %cst_72 : f32 to vector<16x128xf32>
    %200 = arith.addf %199, %198 : vector<16x128xf32>
    %201 = arith.divf %199, %200 : vector<16x128xf32>
    %202 = vector.extract_strided_slice %195 {offsets = [0, 128], sizes = [16, 128], strides = [1, 1]} : vector<16x512xf32> to vector<16x128xf32>
    %203 = arith.negf %202 : vector<16x128xf32>
    %204 = math.exp %203 : vector<16x128xf32>
    %cst_73 = arith.constant 1.000000e+00 : f32
    %205 = vector.broadcast %cst_73 : f32 to vector<16x128xf32>
    %206 = arith.addf %205, %204 : vector<16x128xf32>
    %207 = arith.divf %205, %206 : vector<16x128xf32>
    %208 = vector.extract_strided_slice %195 {offsets = [0, 256], sizes = [16, 128], strides = [1, 1]} : vector<16x512xf32> to vector<16x128xf32>
    %209 = math.tanh %208 : vector<16x128xf32>
    %210 = vector.extract_strided_slice %195 {offsets = [0, 384], sizes = [16, 128], strides = [1, 1]} : vector<16x512xf32> to vector<16x128xf32>
    %211 = arith.negf %210 : vector<16x128xf32>
    %212 = math.exp %211 : vector<16x128xf32>
    %cst_74 = arith.constant 1.000000e+00 : f32
    %213 = vector.broadcast %cst_74 : f32 to vector<16x128xf32>
    %214 = arith.addf %213, %212 : vector<16x128xf32>
    %215 = arith.divf %213, %214 : vector<16x128xf32>
    %216 = arith.mulf %207, %150 : vector<16x128xf32>
    %217 = arith.mulf %201, %209 : vector<16x128xf32>
    %218 = arith.addf %216, %217 : vector<16x128xf32>
    %219 = math.tanh %218 : vector<16x128xf32>
    %220 = arith.mulf %215, %219 : vector<16x128xf32>
    %c3_i32 = arith.constant 3 : i32
    %221 = arith.index_cast %c3_i32 : i32 to index
    %c0_75 = arith.constant 0 : index
    %c0_76 = arith.constant 0 : index
    %222 = vector.load %arg2[%221, %c0_75, %c0_76] : memref<8x16x128xbf16, #tpu.memory_space<vmem>>, vector<1x16x128xbf16>
    %223 = vector.shape_cast %222 : vector<1x16x128xbf16> to vector<16x128xbf16>
    %c0_77 = arith.constant 0 : index
    %c0_78 = arith.constant 0 : index
    %224 = vector.load %arg3[%c0_77, %c0_78] : memref<128x512xbf16, #tpu.memory_space<vmem>>, vector<128x512xbf16>
    %cst_79 = arith.constant dense<0.000000e+00> : vector<16x512xf32>
    %225 = tpu.matmul %223, %224, %cst_79 {dimension_numbers = #tpu.dot_dimension_numbers<[1], [0], [0], [1], [0, 0, 1, 1], [], []>} : vector<16x128xbf16>, vector<128x512xbf16>, vector<16x512xf32> -> vector<16x512xf32>
    %226 = arith.truncf %187 : vector<16x128xf32> to vector<16x128xbf16>
    %c0_80 = arith.constant 0 : index
    %c0_81 = arith.constant 0 : index
    %227 = vector.load %arg5[%c0_80, %c0_81] : memref<128x512xbf16, #tpu.memory_space<vmem>>, vector<128x512xbf16>
    %cst_82 = arith.constant dense<0.000000e+00> : vector<16x512xf32>
    %228 = tpu.matmul %226, %227, %cst_82 {dimension_numbers = #tpu.dot_dimension_numbers<[1], [0], [0], [1], [0, 0, 1, 1], [], []>} : vector<16x128xbf16>, vector<128x512xbf16>, vector<16x512xf32> -> vector<16x512xf32>
    %229 = arith.addf %225, %228 : vector<16x512xf32>
    %230 = arith.addf %229, %5 : vector<16x512xf32>
    %231 = vector.extract_strided_slice %230 {offsets = [0, 0], sizes = [16, 128], strides = [1, 1]} : vector<16x512xf32> to vector<16x128xf32>
    %232 = arith.negf %231 : vector<16x128xf32>
    %233 = math.exp %232 : vector<16x128xf32>
    %cst_83 = arith.constant 1.000000e+00 : f32
    %234 = vector.broadcast %cst_83 : f32 to vector<16x128xf32>
    %235 = arith.addf %234, %233 : vector<16x128xf32>
    %236 = arith.divf %234, %235 : vector<16x128xf32>
    %237 = vector.extract_strided_slice %230 {offsets = [0, 128], sizes = [16, 128], strides = [1, 1]} : vector<16x512xf32> to vector<16x128xf32>
    %238 = arith.negf %237 : vector<16x128xf32>
    %239 = math.exp %238 : vector<16x128xf32>
    %cst_84 = arith.constant 1.000000e+00 : f32
    %240 = vector.broadcast %cst_84 : f32 to vector<16x128xf32>
    %241 = arith.addf %240, %239 : vector<16x128xf32>
    %242 = arith.divf %240, %241 : vector<16x128xf32>
    %243 = vector.extract_strided_slice %230 {offsets = [0, 256], sizes = [16, 128], strides = [1, 1]} : vector<16x512xf32> to vector<16x128xf32>
    %244 = math.tanh %243 : vector<16x128xf32>
    %245 = vector.extract_strided_slice %230 {offsets = [0, 384], sizes = [16, 128], strides = [1, 1]} : vector<16x512xf32> to vector<16x128xf32>
    %246 = arith.negf %245 : vector<16x128xf32>
    %247 = math.exp %246 : vector<16x128xf32>
    %cst_85 = arith.constant 1.000000e+00 : f32
    %248 = vector.broadcast %cst_85 : f32 to vector<16x128xf32>
    %249 = arith.addf %248, %247 : vector<16x128xf32>
    %250 = arith.divf %248, %249 : vector<16x128xf32>
    %251 = arith.mulf %242, %185 : vector<16x128xf32>
    %252 = arith.mulf %236, %244 : vector<16x128xf32>
    %253 = arith.addf %251, %252 : vector<16x128xf32>
    %254 = math.tanh %253 : vector<16x128xf32>
    %255 = arith.mulf %250, %254 : vector<16x128xf32>
    %256 = arith.truncf %255 : vector<16x128xf32> to vector<16x128xbf16>
    %c0_86 = arith.constant 0 : index
    %c0_87 = arith.constant 0 : index
    %257 = vector.load %arg4[%c0_86, %c0_87] : memref<128x512xbf16, #tpu.memory_space<vmem>>, vector<128x512xbf16>
    %cst_88 = arith.constant dense<0.000000e+00> : vector<16x512xf32>
    %258 = tpu.matmul %256, %257, %cst_88 {dimension_numbers = #tpu.dot_dimension_numbers<[1], [0], [0], [1], [0, 0, 1, 1], [], []>} : vector<16x128xbf16>, vector<128x512xbf16>, vector<16x512xf32> -> vector<16x512xf32>
    %259 = arith.truncf %220 : vector<16x128xf32> to vector<16x128xbf16>
    %c0_89 = arith.constant 0 : index
    %c0_90 = arith.constant 0 : index
    %260 = vector.load %arg6[%c0_89, %c0_90] : memref<128x512xbf16, #tpu.memory_space<vmem>>, vector<128x512xbf16>
    %cst_91 = arith.constant dense<0.000000e+00> : vector<16x512xf32>
    %261 = tpu.matmul %259, %260, %cst_91 {dimension_numbers = #tpu.dot_dimension_numbers<[1], [0], [0], [1], [0, 0, 1, 1], [], []>} : vector<16x128xbf16>, vector<128x512xbf16>, vector<16x512xf32> -> vector<16x512xf32>
    %262 = arith.addf %258, %261 : vector<16x512xf32>
    %263 = arith.addf %262, %8 : vector<16x512xf32>
    %264 = vector.extract_strided_slice %263 {offsets = [0, 0], sizes = [16, 128], strides = [1, 1]} : vector<16x512xf32> to vector<16x128xf32>
    %265 = arith.negf %264 : vector<16x128xf32>
    %266 = math.exp %265 : vector<16x128xf32>
    %cst_92 = arith.constant 1.000000e+00 : f32
    %267 = vector.broadcast %cst_92 : f32 to vector<16x128xf32>
    %268 = arith.addf %267, %266 : vector<16x128xf32>
    %269 = arith.divf %267, %268 : vector<16x128xf32>
    %270 = vector.extract_strided_slice %263 {offsets = [0, 128], sizes = [16, 128], strides = [1, 1]} : vector<16x512xf32> to vector<16x128xf32>
    %271 = arith.negf %270 : vector<16x128xf32>
    %272 = math.exp %271 : vector<16x128xf32>
    %cst_93 = arith.constant 1.000000e+00 : f32
    %273 = vector.broadcast %cst_93 : f32 to vector<16x128xf32>
    %274 = arith.addf %273, %272 : vector<16x128xf32>
    %275 = arith.divf %273, %274 : vector<16x128xf32>
    %276 = vector.extract_strided_slice %263 {offsets = [0, 256], sizes = [16, 128], strides = [1, 1]} : vector<16x512xf32> to vector<16x128xf32>
    %277 = math.tanh %276 : vector<16x128xf32>
    %278 = vector.extract_strided_slice %263 {offsets = [0, 384], sizes = [16, 128], strides = [1, 1]} : vector<16x512xf32> to vector<16x128xf32>
    %279 = arith.negf %278 : vector<16x128xf32>
    %280 = math.exp %279 : vector<16x128xf32>
    %cst_94 = arith.constant 1.000000e+00 : f32
    %281 = vector.broadcast %cst_94 : f32 to vector<16x128xf32>
    %282 = arith.addf %281, %280 : vector<16x128xf32>
    %283 = arith.divf %281, %282 : vector<16x128xf32>
    %284 = arith.mulf %275, %218 : vector<16x128xf32>
    %285 = arith.mulf %269, %277 : vector<16x128xf32>
    %286 = arith.addf %284, %285 : vector<16x128xf32>
    %287 = math.tanh %286 : vector<16x128xf32>
    %288 = arith.mulf %283, %287 : vector<16x128xf32>
    %c4_i32 = arith.constant 4 : i32
    %289 = arith.index_cast %c4_i32 : i32 to index
    %c0_95 = arith.constant 0 : index
    %c0_96 = arith.constant 0 : index
    %290 = vector.load %arg2[%289, %c0_95, %c0_96] : memref<8x16x128xbf16, #tpu.memory_space<vmem>>, vector<1x16x128xbf16>
    %291 = vector.shape_cast %290 : vector<1x16x128xbf16> to vector<16x128xbf16>
    %c0_97 = arith.constant 0 : index
    %c0_98 = arith.constant 0 : index
    %292 = vector.load %arg3[%c0_97, %c0_98] : memref<128x512xbf16, #tpu.memory_space<vmem>>, vector<128x512xbf16>
    %cst_99 = arith.constant dense<0.000000e+00> : vector<16x512xf32>
    %293 = tpu.matmul %291, %292, %cst_99 {dimension_numbers = #tpu.dot_dimension_numbers<[1], [0], [0], [1], [0, 0, 1, 1], [], []>} : vector<16x128xbf16>, vector<128x512xbf16>, vector<16x512xf32> -> vector<16x512xf32>
    %294 = arith.truncf %255 : vector<16x128xf32> to vector<16x128xbf16>
    %c0_100 = arith.constant 0 : index
    %c0_101 = arith.constant 0 : index
    %295 = vector.load %arg5[%c0_100, %c0_101] : memref<128x512xbf16, #tpu.memory_space<vmem>>, vector<128x512xbf16>
    %cst_102 = arith.constant dense<0.000000e+00> : vector<16x512xf32>
    %296 = tpu.matmul %294, %295, %cst_102 {dimension_numbers = #tpu.dot_dimension_numbers<[1], [0], [0], [1], [0, 0, 1, 1], [], []>} : vector<16x128xbf16>, vector<128x512xbf16>, vector<16x512xf32> -> vector<16x512xf32>
    %297 = arith.addf %293, %296 : vector<16x512xf32>
    %298 = arith.addf %297, %5 : vector<16x512xf32>
    %299 = vector.extract_strided_slice %298 {offsets = [0, 0], sizes = [16, 128], strides = [1, 1]} : vector<16x512xf32> to vector<16x128xf32>
    %300 = arith.negf %299 : vector<16x128xf32>
    %301 = math.exp %300 : vector<16x128xf32>
    %cst_103 = arith.constant 1.000000e+00 : f32
    %302 = vector.broadcast %cst_103 : f32 to vector<16x128xf32>
    %303 = arith.addf %302, %301 : vector<16x128xf32>
    %304 = arith.divf %302, %303 : vector<16x128xf32>
    %305 = vector.extract_strided_slice %298 {offsets = [0, 128], sizes = [16, 128], strides = [1, 1]} : vector<16x512xf32> to vector<16x128xf32>
    %306 = arith.negf %305 : vector<16x128xf32>
    %307 = math.exp %306 : vector<16x128xf32>
    %cst_104 = arith.constant 1.000000e+00 : f32
    %308 = vector.broadcast %cst_104 : f32 to vector<16x128xf32>
    %309 = arith.addf %308, %307 : vector<16x128xf32>
    %310 = arith.divf %308, %309 : vector<16x128xf32>
    %311 = vector.extract_strided_slice %298 {offsets = [0, 256], sizes = [16, 128], strides = [1, 1]} : vector<16x512xf32> to vector<16x128xf32>
    %312 = math.tanh %311 : vector<16x128xf32>
    %313 = vector.extract_strided_slice %298 {offsets = [0, 384], sizes = [16, 128], strides = [1, 1]} : vector<16x512xf32> to vector<16x128xf32>
    %314 = arith.negf %313 : vector<16x128xf32>
    %315 = math.exp %314 : vector<16x128xf32>
    %cst_105 = arith.constant 1.000000e+00 : f32
    %316 = vector.broadcast %cst_105 : f32 to vector<16x128xf32>
    %317 = arith.addf %316, %315 : vector<16x128xf32>
    %318 = arith.divf %316, %317 : vector<16x128xf32>
    %319 = arith.mulf %310, %253 : vector<16x128xf32>
    %320 = arith.mulf %304, %312 : vector<16x128xf32>
    %321 = arith.addf %319, %320 : vector<16x128xf32>
    %322 = math.tanh %321 : vector<16x128xf32>
    %323 = arith.mulf %318, %322 : vector<16x128xf32>
    %324 = arith.truncf %323 : vector<16x128xf32> to vector<16x128xbf16>
    %c0_106 = arith.constant 0 : index
    %c0_107 = arith.constant 0 : index
    %325 = vector.load %arg4[%c0_106, %c0_107] : memref<128x512xbf16, #tpu.memory_space<vmem>>, vector<128x512xbf16>
    %cst_108 = arith.constant dense<0.000000e+00> : vector<16x512xf32>
    %326 = tpu.matmul %324, %325, %cst_108 {dimension_numbers = #tpu.dot_dimension_numbers<[1], [0], [0], [1], [0, 0, 1, 1], [], []>} : vector<16x128xbf16>, vector<128x512xbf16>, vector<16x512xf32> -> vector<16x512xf32>
    %327 = arith.truncf %288 : vector<16x128xf32> to vector<16x128xbf16>
    %c0_109 = arith.constant 0 : index
    %c0_110 = arith.constant 0 : index
    %328 = vector.load %arg6[%c0_109, %c0_110] : memref<128x512xbf16, #tpu.memory_space<vmem>>, vector<128x512xbf16>
    %cst_111 = arith.constant dense<0.000000e+00> : vector<16x512xf32>
    %329 = tpu.matmul %327, %328, %cst_111 {dimension_numbers = #tpu.dot_dimension_numbers<[1], [0], [0], [1], [0, 0, 1, 1], [], []>} : vector<16x128xbf16>, vector<128x512xbf16>, vector<16x512xf32> -> vector<16x512xf32>
    %330 = arith.addf %326, %329 : vector<16x512xf32>
    %331 = arith.addf %330, %8 : vector<16x512xf32>
    %332 = vector.extract_strided_slice %331 {offsets = [0, 0], sizes = [16, 128], strides = [1, 1]} : vector<16x512xf32> to vector<16x128xf32>
    %333 = arith.negf %332 : vector<16x128xf32>
    %334 = math.exp %333 : vector<16x128xf32>
    %cst_112 = arith.constant 1.000000e+00 : f32
    %335 = vector.broadcast %cst_112 : f32 to vector<16x128xf32>
    %336 = arith.addf %335, %334 : vector<16x128xf32>
    %337 = arith.divf %335, %336 : vector<16x128xf32>
    %338 = vector.extract_strided_slice %331 {offsets = [0, 128], sizes = [16, 128], strides = [1, 1]} : vector<16x512xf32> to vector<16x128xf32>
    %339 = arith.negf %338 : vector<16x128xf32>
    %340 = math.exp %339 : vector<16x128xf32>
    %cst_113 = arith.constant 1.000000e+00 : f32
    %341 = vector.broadcast %cst_113 : f32 to vector<16x128xf32>
    %342 = arith.addf %341, %340 : vector<16x128xf32>
    %343 = arith.divf %341, %342 : vector<16x128xf32>
    %344 = vector.extract_strided_slice %331 {offsets = [0, 256], sizes = [16, 128], strides = [1, 1]} : vector<16x512xf32> to vector<16x128xf32>
    %345 = math.tanh %344 : vector<16x128xf32>
    %346 = vector.extract_strided_slice %331 {offsets = [0, 384], sizes = [16, 128], strides = [1, 1]} : vector<16x512xf32> to vector<16x128xf32>
    %347 = arith.negf %346 : vector<16x128xf32>
    %348 = math.exp %347 : vector<16x128xf32>
    %cst_114 = arith.constant 1.000000e+00 : f32
    %349 = vector.broadcast %cst_114 : f32 to vector<16x128xf32>
    %350 = arith.addf %349, %348 : vector<16x128xf32>
    %351 = arith.divf %349, %350 : vector<16x128xf32>
    %352 = arith.mulf %343, %286 : vector<16x128xf32>
    %353 = arith.mulf %337, %345 : vector<16x128xf32>
    %354 = arith.addf %352, %353 : vector<16x128xf32>
    %355 = math.tanh %354 : vector<16x128xf32>
    %356 = arith.mulf %351, %355 : vector<16x128xf32>
    %c5_i32 = arith.constant 5 : i32
    %357 = arith.index_cast %c5_i32 : i32 to index
    %c0_115 = arith.constant 0 : index
    %c0_116 = arith.constant 0 : index
    %358 = vector.load %arg2[%357, %c0_115, %c0_116] : memref<8x16x128xbf16, #tpu.memory_space<vmem>>, vector<1x16x128xbf16>
    %359 = vector.shape_cast %358 : vector<1x16x128xbf16> to vector<16x128xbf16>
    %c0_117 = arith.constant 0 : index
    %c0_118 = arith.constant 0 : index
    %360 = vector.load %arg3[%c0_117, %c0_118] : memref<128x512xbf16, #tpu.memory_space<vmem>>, vector<128x512xbf16>
    %cst_119 = arith.constant dense<0.000000e+00> : vector<16x512xf32>
    %361 = tpu.matmul %359, %360, %cst_119 {dimension_numbers = #tpu.dot_dimension_numbers<[1], [0], [0], [1], [0, 0, 1, 1], [], []>} : vector<16x128xbf16>, vector<128x512xbf16>, vector<16x512xf32> -> vector<16x512xf32>
    %362 = arith.truncf %323 : vector<16x128xf32> to vector<16x128xbf16>
    %c0_120 = arith.constant 0 : index
    %c0_121 = arith.constant 0 : index
    %363 = vector.load %arg5[%c0_120, %c0_121] : memref<128x512xbf16, #tpu.memory_space<vmem>>, vector<128x512xbf16>
    %cst_122 = arith.constant dense<0.000000e+00> : vector<16x512xf32>
    %364 = tpu.matmul %362, %363, %cst_122 {dimension_numbers = #tpu.dot_dimension_numbers<[1], [0], [0], [1], [0, 0, 1, 1], [], []>} : vector<16x128xbf16>, vector<128x512xbf16>, vector<16x512xf32> -> vector<16x512xf32>
    %365 = arith.addf %361, %364 : vector<16x512xf32>
    %366 = arith.addf %365, %5 : vector<16x512xf32>
    %367 = vector.extract_strided_slice %366 {offsets = [0, 0], sizes = [16, 128], strides = [1, 1]} : vector<16x512xf32> to vector<16x128xf32>
    %368 = arith.negf %367 : vector<16x128xf32>
    %369 = math.exp %368 : vector<16x128xf32>
    %cst_123 = arith.constant 1.000000e+00 : f32
    %370 = vector.broadcast %cst_123 : f32 to vector<16x128xf32>
    %371 = arith.addf %370, %369 : vector<16x128xf32>
    %372 = arith.divf %370, %371 : vector<16x128xf32>
    %373 = vector.extract_strided_slice %366 {offsets = [0, 128], sizes = [16, 128], strides = [1, 1]} : vector<16x512xf32> to vector<16x128xf32>
    %374 = arith.negf %373 : vector<16x128xf32>
    %375 = math.exp %374 : vector<16x128xf32>
    %cst_124 = arith.constant 1.000000e+00 : f32
    %376 = vector.broadcast %cst_124 : f32 to vector<16x128xf32>
    %377 = arith.addf %376, %375 : vector<16x128xf32>
    %378 = arith.divf %376, %377 : vector<16x128xf32>
    %379 = vector.extract_strided_slice %366 {offsets = [0, 256], sizes = [16, 128], strides = [1, 1]} : vector<16x512xf32> to vector<16x128xf32>
    %380 = math.tanh %379 : vector<16x128xf32>
    %381 = vector.extract_strided_slice %366 {offsets = [0, 384], sizes = [16, 128], strides = [1, 1]} : vector<16x512xf32> to vector<16x128xf32>
    %382 = arith.negf %381 : vector<16x128xf32>
    %383 = math.exp %382 : vector<16x128xf32>
    %cst_125 = arith.constant 1.000000e+00 : f32
    %384 = vector.broadcast %cst_125 : f32 to vector<16x128xf32>
    %385 = arith.addf %384, %383 : vector<16x128xf32>
    %386 = arith.divf %384, %385 : vector<16x128xf32>
    %387 = arith.mulf %378, %321 : vector<16x128xf32>
    %388 = arith.mulf %372, %380 : vector<16x128xf32>
    %389 = arith.addf %387, %388 : vector<16x128xf32>
    %390 = math.tanh %389 : vector<16x128xf32>
    %391 = arith.mulf %386, %390 : vector<16x128xf32>
    %392 = arith.truncf %391 : vector<16x128xf32> to vector<16x128xbf16>
    %c0_126 = arith.constant 0 : index
    %c0_127 = arith.constant 0 : index
    %393 = vector.load %arg4[%c0_126, %c0_127] : memref<128x512xbf16, #tpu.memory_space<vmem>>, vector<128x512xbf16>
    %cst_128 = arith.constant dense<0.000000e+00> : vector<16x512xf32>
    %394 = tpu.matmul %392, %393, %cst_128 {dimension_numbers = #tpu.dot_dimension_numbers<[1], [0], [0], [1], [0, 0, 1, 1], [], []>} : vector<16x128xbf16>, vector<128x512xbf16>, vector<16x512xf32> -> vector<16x512xf32>
    %395 = arith.truncf %356 : vector<16x128xf32> to vector<16x128xbf16>
    %c0_129 = arith.constant 0 : index
    %c0_130 = arith.constant 0 : index
    %396 = vector.load %arg6[%c0_129, %c0_130] : memref<128x512xbf16, #tpu.memory_space<vmem>>, vector<128x512xbf16>
    %cst_131 = arith.constant dense<0.000000e+00> : vector<16x512xf32>
    %397 = tpu.matmul %395, %396, %cst_131 {dimension_numbers = #tpu.dot_dimension_numbers<[1], [0], [0], [1], [0, 0, 1, 1], [], []>} : vector<16x128xbf16>, vector<128x512xbf16>, vector<16x512xf32> -> vector<16x512xf32>
    %398 = arith.addf %394, %397 : vector<16x512xf32>
    %399 = arith.addf %398, %8 : vector<16x512xf32>
    %400 = vector.extract_strided_slice %399 {offsets = [0, 0], sizes = [16, 128], strides = [1, 1]} : vector<16x512xf32> to vector<16x128xf32>
    %401 = arith.negf %400 : vector<16x128xf32>
    %402 = math.exp %401 : vector<16x128xf32>
    %cst_132 = arith.constant 1.000000e+00 : f32
    %403 = vector.broadcast %cst_132 : f32 to vector<16x128xf32>
    %404 = arith.addf %403, %402 : vector<16x128xf32>
    %405 = arith.divf %403, %404 : vector<16x128xf32>
    %406 = vector.extract_strided_slice %399 {offsets = [0, 128], sizes = [16, 128], strides = [1, 1]} : vector<16x512xf32> to vector<16x128xf32>
    %407 = arith.negf %406 : vector<16x128xf32>
    %408 = math.exp %407 : vector<16x128xf32>
    %cst_133 = arith.constant 1.000000e+00 : f32
    %409 = vector.broadcast %cst_133 : f32 to vector<16x128xf32>
    %410 = arith.addf %409, %408 : vector<16x128xf32>
    %411 = arith.divf %409, %410 : vector<16x128xf32>
    %412 = vector.extract_strided_slice %399 {offsets = [0, 256], sizes = [16, 128], strides = [1, 1]} : vector<16x512xf32> to vector<16x128xf32>
    %413 = math.tanh %412 : vector<16x128xf32>
    %414 = vector.extract_strided_slice %399 {offsets = [0, 384], sizes = [16, 128], strides = [1, 1]} : vector<16x512xf32> to vector<16x128xf32>
    %415 = arith.negf %414 : vector<16x128xf32>
    %416 = math.exp %415 : vector<16x128xf32>
    %cst_134 = arith.constant 1.000000e+00 : f32
    %417 = vector.broadcast %cst_134 : f32 to vector<16x128xf32>
    %418 = arith.addf %417, %416 : vector<16x128xf32>
    %419 = arith.divf %417, %418 : vector<16x128xf32>
    %420 = arith.mulf %411, %354 : vector<16x128xf32>
    %421 = arith.mulf %405, %413 : vector<16x128xf32>
    %422 = arith.addf %420, %421 : vector<16x128xf32>
    %423 = math.tanh %422 : vector<16x128xf32>
    %424 = arith.mulf %419, %423 : vector<16x128xf32>
    %c6_i32 = arith.constant 6 : i32
    %425 = arith.index_cast %c6_i32 : i32 to index
    %c0_135 = arith.constant 0 : index
    %c0_136 = arith.constant 0 : index
    %426 = vector.load %arg2[%425, %c0_135, %c0_136] : memref<8x16x128xbf16, #tpu.memory_space<vmem>>, vector<1x16x128xbf16>
    %427 = vector.shape_cast %426 : vector<1x16x128xbf16> to vector<16x128xbf16>
    %c0_137 = arith.constant 0 : index
    %c0_138 = arith.constant 0 : index
    %428 = vector.load %arg3[%c0_137, %c0_138] : memref<128x512xbf16, #tpu.memory_space<vmem>>, vector<128x512xbf16>
    %cst_139 = arith.constant dense<0.000000e+00> : vector<16x512xf32>
    %429 = tpu.matmul %427, %428, %cst_139 {dimension_numbers = #tpu.dot_dimension_numbers<[1], [0], [0], [1], [0, 0, 1, 1], [], []>} : vector<16x128xbf16>, vector<128x512xbf16>, vector<16x512xf32> -> vector<16x512xf32>
    %430 = arith.truncf %391 : vector<16x128xf32> to vector<16x128xbf16>
    %c0_140 = arith.constant 0 : index
    %c0_141 = arith.constant 0 : index
    %431 = vector.load %arg5[%c0_140, %c0_141] : memref<128x512xbf16, #tpu.memory_space<vmem>>, vector<128x512xbf16>
    %cst_142 = arith.constant dense<0.000000e+00> : vector<16x512xf32>
    %432 = tpu.matmul %430, %431, %cst_142 {dimension_numbers = #tpu.dot_dimension_numbers<[1], [0], [0], [1], [0, 0, 1, 1], [], []>} : vector<16x128xbf16>, vector<128x512xbf16>, vector<16x512xf32> -> vector<16x512xf32>
    %433 = arith.addf %429, %432 : vector<16x512xf32>
    %434 = arith.addf %433, %5 : vector<16x512xf32>
    %435 = vector.extract_strided_slice %434 {offsets = [0, 0], sizes = [16, 128], strides = [1, 1]} : vector<16x512xf32> to vector<16x128xf32>
    %436 = arith.negf %435 : vector<16x128xf32>
    %437 = math.exp %436 : vector<16x128xf32>
    %cst_143 = arith.constant 1.000000e+00 : f32
    %438 = vector.broadcast %cst_143 : f32 to vector<16x128xf32>
    %439 = arith.addf %438, %437 : vector<16x128xf32>
    %440 = arith.divf %438, %439 : vector<16x128xf32>
    %441 = vector.extract_strided_slice %434 {offsets = [0, 128], sizes = [16, 128], strides = [1, 1]} : vector<16x512xf32> to vector<16x128xf32>
    %442 = arith.negf %441 : vector<16x128xf32>
    %443 = math.exp %442 : vector<16x128xf32>
    %cst_144 = arith.constant 1.000000e+00 : f32
    %444 = vector.broadcast %cst_144 : f32 to vector<16x128xf32>
    %445 = arith.addf %444, %443 : vector<16x128xf32>
    %446 = arith.divf %444, %445 : vector<16x128xf32>
    %447 = vector.extract_strided_slice %434 {offsets = [0, 256], sizes = [16, 128], strides = [1, 1]} : vector<16x512xf32> to vector<16x128xf32>
    %448 = math.tanh %447 : vector<16x128xf32>
    %449 = vector.extract_strided_slice %434 {offsets = [0, 384], sizes = [16, 128], strides = [1, 1]} : vector<16x512xf32> to vector<16x128xf32>
    %450 = arith.negf %449 : vector<16x128xf32>
    %451 = math.exp %450 : vector<16x128xf32>
    %cst_145 = arith.constant 1.000000e+00 : f32
    %452 = vector.broadcast %cst_145 : f32 to vector<16x128xf32>
    %453 = arith.addf %452, %451 : vector<16x128xf32>
    %454 = arith.divf %452, %453 : vector<16x128xf32>
    %455 = arith.mulf %446, %389 : vector<16x128xf32>
    %456 = arith.mulf %440, %448 : vector<16x128xf32>
    %457 = arith.addf %455, %456 : vector<16x128xf32>
    %458 = math.tanh %457 : vector<16x128xf32>
    %459 = arith.mulf %454, %458 : vector<16x128xf32>
    %460 = arith.truncf %459 : vector<16x128xf32> to vector<16x128xbf16>
    %c0_146 = arith.constant 0 : index
    %c0_147 = arith.constant 0 : index
    %461 = vector.load %arg4[%c0_146, %c0_147] : memref<128x512xbf16, #tpu.memory_space<vmem>>, vector<128x512xbf16>
    %cst_148 = arith.constant dense<0.000000e+00> : vector<16x512xf32>
    %462 = tpu.matmul %460, %461, %cst_148 {dimension_numbers = #tpu.dot_dimension_numbers<[1], [0], [0], [1], [0, 0, 1, 1], [], []>} : vector<16x128xbf16>, vector<128x512xbf16>, vector<16x512xf32> -> vector<16x512xf32>
    %463 = arith.truncf %424 : vector<16x128xf32> to vector<16x128xbf16>
    %c0_149 = arith.constant 0 : index
    %c0_150 = arith.constant 0 : index
    %464 = vector.load %arg6[%c0_149, %c0_150] : memref<128x512xbf16, #tpu.memory_space<vmem>>, vector<128x512xbf16>
    %cst_151 = arith.constant dense<0.000000e+00> : vector<16x512xf32>
    %465 = tpu.matmul %463, %464, %cst_151 {dimension_numbers = #tpu.dot_dimension_numbers<[1], [0], [0], [1], [0, 0, 1, 1], [], []>} : vector<16x128xbf16>, vector<128x512xbf16>, vector<16x512xf32> -> vector<16x512xf32>
    %466 = arith.addf %462, %465 : vector<16x512xf32>
    %467 = arith.addf %466, %8 : vector<16x512xf32>
    %468 = vector.extract_strided_slice %467 {offsets = [0, 0], sizes = [16, 128], strides = [1, 1]} : vector<16x512xf32> to vector<16x128xf32>
    %469 = arith.negf %468 : vector<16x128xf32>
    %470 = math.exp %469 : vector<16x128xf32>
    %cst_152 = arith.constant 1.000000e+00 : f32
    %471 = vector.broadcast %cst_152 : f32 to vector<16x128xf32>
    %472 = arith.addf %471, %470 : vector<16x128xf32>
    %473 = arith.divf %471, %472 : vector<16x128xf32>
    %474 = vector.extract_strided_slice %467 {offsets = [0, 128], sizes = [16, 128], strides = [1, 1]} : vector<16x512xf32> to vector<16x128xf32>
    %475 = arith.negf %474 : vector<16x128xf32>
    %476 = math.exp %475 : vector<16x128xf32>
    %cst_153 = arith.constant 1.000000e+00 : f32
    %477 = vector.broadcast %cst_153 : f32 to vector<16x128xf32>
    %478 = arith.addf %477, %476 : vector<16x128xf32>
    %479 = arith.divf %477, %478 : vector<16x128xf32>
    %480 = vector.extract_strided_slice %467 {offsets = [0, 256], sizes = [16, 128], strides = [1, 1]} : vector<16x512xf32> to vector<16x128xf32>
    %481 = math.tanh %480 : vector<16x128xf32>
    %482 = vector.extract_strided_slice %467 {offsets = [0, 384], sizes = [16, 128], strides = [1, 1]} : vector<16x512xf32> to vector<16x128xf32>
    %483 = arith.negf %482 : vector<16x128xf32>
    %484 = math.exp %483 : vector<16x128xf32>
    %cst_154 = arith.constant 1.000000e+00 : f32
    %485 = vector.broadcast %cst_154 : f32 to vector<16x128xf32>
    %486 = arith.addf %485, %484 : vector<16x128xf32>
    %487 = arith.divf %485, %486 : vector<16x128xf32>
    %488 = arith.mulf %479, %422 : vector<16x128xf32>
    %489 = arith.mulf %473, %481 : vector<16x128xf32>
    %490 = arith.addf %488, %489 : vector<16x128xf32>
    %491 = math.tanh %490 : vector<16x128xf32>
    %492 = arith.mulf %487, %491 : vector<16x128xf32>
    %c7_i32 = arith.constant 7 : i32
    %493 = arith.index_cast %c7_i32 : i32 to index
    %c0_155 = arith.constant 0 : index
    %c0_156 = arith.constant 0 : index
    %494 = vector.load %arg2[%493, %c0_155, %c0_156] : memref<8x16x128xbf16, #tpu.memory_space<vmem>>, vector<1x16x128xbf16>
    %495 = vector.shape_cast %494 : vector<1x16x128xbf16> to vector<16x128xbf16>
    %c0_157 = arith.constant 0 : index
    %c0_158 = arith.constant 0 : index
    %496 = vector.load %arg3[%c0_157, %c0_158] : memref<128x512xbf16, #tpu.memory_space<vmem>>, vector<128x512xbf16>
    %cst_159 = arith.constant dense<0.000000e+00> : vector<16x512xf32>
    %497 = tpu.matmul %495, %496, %cst_159 {dimension_numbers = #tpu.dot_dimension_numbers<[1], [0], [0], [1], [0, 0, 1, 1], [], []>} : vector<16x128xbf16>, vector<128x512xbf16>, vector<16x512xf32> -> vector<16x512xf32>
    %498 = arith.truncf %459 : vector<16x128xf32> to vector<16x128xbf16>
    %c0_160 = arith.constant 0 : index
    %c0_161 = arith.constant 0 : index
    %499 = vector.load %arg5[%c0_160, %c0_161] : memref<128x512xbf16, #tpu.memory_space<vmem>>, vector<128x512xbf16>
    %cst_162 = arith.constant dense<0.000000e+00> : vector<16x512xf32>
    %500 = tpu.matmul %498, %499, %cst_162 {dimension_numbers = #tpu.dot_dimension_numbers<[1], [0], [0], [1], [0, 0, 1, 1], [], []>} : vector<16x128xbf16>, vector<128x512xbf16>, vector<16x512xf32> -> vector<16x512xf32>
    %501 = arith.addf %497, %500 : vector<16x512xf32>
    %502 = arith.addf %501, %5 : vector<16x512xf32>
    %503 = vector.extract_strided_slice %502 {offsets = [0, 0], sizes = [16, 128], strides = [1, 1]} : vector<16x512xf32> to vector<16x128xf32>
    %504 = arith.negf %503 : vector<16x128xf32>
    %505 = math.exp %504 : vector<16x128xf32>
    %cst_163 = arith.constant 1.000000e+00 : f32
    %506 = vector.broadcast %cst_163 : f32 to vector<16x128xf32>
    %507 = arith.addf %506, %505 : vector<16x128xf32>
    %508 = arith.divf %506, %507 : vector<16x128xf32>
    %509 = vector.extract_strided_slice %502 {offsets = [0, 128], sizes = [16, 128], strides = [1, 1]} : vector<16x512xf32> to vector<16x128xf32>
    %510 = arith.negf %509 : vector<16x128xf32>
    %511 = math.exp %510 : vector<16x128xf32>
    %cst_164 = arith.constant 1.000000e+00 : f32
    %512 = vector.broadcast %cst_164 : f32 to vector<16x128xf32>
    %513 = arith.addf %512, %511 : vector<16x128xf32>
    %514 = arith.divf %512, %513 : vector<16x128xf32>
    %515 = vector.extract_strided_slice %502 {offsets = [0, 256], sizes = [16, 128], strides = [1, 1]} : vector<16x512xf32> to vector<16x128xf32>
    %516 = math.tanh %515 : vector<16x128xf32>
    %517 = vector.extract_strided_slice %502 {offsets = [0, 384], sizes = [16, 128], strides = [1, 1]} : vector<16x512xf32> to vector<16x128xf32>
    %518 = arith.negf %517 : vector<16x128xf32>
    %519 = math.exp %518 : vector<16x128xf32>
    %cst_165 = arith.constant 1.000000e+00 : f32
    %520 = vector.broadcast %cst_165 : f32 to vector<16x128xf32>
    %521 = arith.addf %520, %519 : vector<16x128xf32>
    %522 = arith.divf %520, %521 : vector<16x128xf32>
    %523 = arith.mulf %514, %457 : vector<16x128xf32>
    %524 = arith.mulf %508, %516 : vector<16x128xf32>
    %525 = arith.addf %523, %524 : vector<16x128xf32>
    %526 = math.tanh %525 : vector<16x128xf32>
    %527 = arith.mulf %522, %526 : vector<16x128xf32>
    %528 = arith.truncf %527 : vector<16x128xf32> to vector<16x128xbf16>
    %c0_166 = arith.constant 0 : index
    %c0_167 = arith.constant 0 : index
    %529 = vector.load %arg4[%c0_166, %c0_167] : memref<128x512xbf16, #tpu.memory_space<vmem>>, vector<128x512xbf16>
    %cst_168 = arith.constant dense<0.000000e+00> : vector<16x512xf32>
    %530 = tpu.matmul %528, %529, %cst_168 {dimension_numbers = #tpu.dot_dimension_numbers<[1], [0], [0], [1], [0, 0, 1, 1], [], []>} : vector<16x128xbf16>, vector<128x512xbf16>, vector<16x512xf32> -> vector<16x512xf32>
    %531 = arith.truncf %492 : vector<16x128xf32> to vector<16x128xbf16>
    %c0_169 = arith.constant 0 : index
    %c0_170 = arith.constant 0 : index
    %532 = vector.load %arg6[%c0_169, %c0_170] : memref<128x512xbf16, #tpu.memory_space<vmem>>, vector<128x512xbf16>
    %cst_171 = arith.constant dense<0.000000e+00> : vector<16x512xf32>
    %533 = tpu.matmul %531, %532, %cst_171 {dimension_numbers = #tpu.dot_dimension_numbers<[1], [0], [0], [1], [0, 0, 1, 1], [], []>} : vector<16x128xbf16>, vector<128x512xbf16>, vector<16x512xf32> -> vector<16x512xf32>
    %534 = arith.addf %530, %533 : vector<16x512xf32>
    %535 = arith.addf %534, %8 : vector<16x512xf32>
    %536 = vector.extract_strided_slice %535 {offsets = [0, 0], sizes = [16, 128], strides = [1, 1]} : vector<16x512xf32> to vector<16x128xf32>
    %537 = arith.negf %536 : vector<16x128xf32>
    %538 = math.exp %537 : vector<16x128xf32>
    %cst_172 = arith.constant 1.000000e+00 : f32
    %539 = vector.broadcast %cst_172 : f32 to vector<16x128xf32>
    %540 = arith.addf %539, %538 : vector<16x128xf32>
    %541 = arith.divf %539, %540 : vector<16x128xf32>
    %542 = vector.extract_strided_slice %535 {offsets = [0, 128], sizes = [16, 128], strides = [1, 1]} : vector<16x512xf32> to vector<16x128xf32>
    %543 = arith.negf %542 : vector<16x128xf32>
    %544 = math.exp %543 : vector<16x128xf32>
    %cst_173 = arith.constant 1.000000e+00 : f32
    %545 = vector.broadcast %cst_173 : f32 to vector<16x128xf32>
    %546 = arith.addf %545, %544 : vector<16x128xf32>
    %547 = arith.divf %545, %546 : vector<16x128xf32>
    %548 = vector.extract_strided_slice %535 {offsets = [0, 256], sizes = [16, 128], strides = [1, 1]} : vector<16x512xf32> to vector<16x128xf32>
    %549 = math.tanh %548 : vector<16x128xf32>
    %550 = vector.extract_strided_slice %535 {offsets = [0, 384], sizes = [16, 128], strides = [1, 1]} : vector<16x512xf32> to vector<16x128xf32>
    %551 = arith.negf %550 : vector<16x128xf32>
    %552 = math.exp %551 : vector<16x128xf32>
    %cst_174 = arith.constant 1.000000e+00 : f32
    %553 = vector.broadcast %cst_174 : f32 to vector<16x128xf32>
    %554 = arith.addf %553, %552 : vector<16x128xf32>
    %555 = arith.divf %553, %554 : vector<16x128xf32>
    %556 = arith.mulf %547, %490 : vector<16x128xf32>
    %557 = arith.mulf %541, %549 : vector<16x128xf32>
    %558 = arith.addf %556, %557 : vector<16x128xf32>
    %559 = math.tanh %558 : vector<16x128xf32>
    %560 = arith.mulf %555, %559 : vector<16x128xf32>
    %c8_i32 = arith.constant 8 : i32
    %c0_175 = arith.constant 0 : index
    %c0_176 = arith.constant 0 : index
    %c0_177 = arith.constant 0 : index
    %561 = vector.load %arg9[%c0_175, %c0_176, %c0_177] : memref<2x16x128xf32, #tpu.memory_space<vmem>>, vector<1x16x128xf32>
    %562 = vector.shape_cast %561 : vector<1x16x128xf32> to vector<16x128xf32>
    %563 = vector.shape_cast %527 : vector<16x128xf32> to vector<1x16x128xf32>
    tpu.vector_store %arg9[%c0_175, %c0_176, %c0_177], %563 {strides = array<i32>} : memref<2x16x128xf32, #tpu.memory_space<vmem>>, vector<1x16x128xf32>,
    %c0_178 = arith.constant 0 : index
    %c0_179 = arith.constant 0 : index
    %c0_180 = arith.constant 0 : index
    %564 = vector.load %arg10[%c0_178, %c0_179, %c0_180] : memref<2x16x128xf32, #tpu.memory_space<vmem>>, vector<1x16x128xf32>
    %565 = vector.shape_cast %564 : vector<1x16x128xf32> to vector<16x128xf32>
    %566 = vector.shape_cast %525 : vector<16x128xf32> to vector<1x16x128xf32>
    tpu.vector_store %arg10[%c0_178, %c0_179, %c0_180], %566 {strides = array<i32>} : memref<2x16x128xf32, #tpu.memory_space<vmem>>, vector<1x16x128xf32>,
    %c1_181 = arith.constant 1 : index
    %c0_182 = arith.constant 0 : index
    %c0_183 = arith.constant 0 : index
    %567 = vector.load %arg9[%c1_181, %c0_182, %c0_183] : memref<2x16x128xf32, #tpu.memory_space<vmem>>, vector<1x16x128xf32>
    %568 = vector.shape_cast %567 : vector<1x16x128xf32> to vector<16x128xf32>
    %569 = vector.shape_cast %560 : vector<16x128xf32> to vector<1x16x128xf32>
    tpu.vector_store %arg9[%c1_181, %c0_182, %c0_183], %569 {strides = array<i32>} : memref<2x16x128xf32, #tpu.memory_space<vmem>>, vector<1x16x128xf32>,
    %c1_184 = arith.constant 1 : index
    %c0_185 = arith.constant 0 : index
    %c0_186 = arith.constant 0 : index
    %570 = vector.load %arg10[%c1_184, %c0_185, %c0_186] : memref<2x16x128xf32, #tpu.memory_space<vmem>>, vector<1x16x128xf32>
    %571 = vector.shape_cast %570 : vector<1x16x128xf32> to vector<16x128xf32>
    %572 = vector.shape_cast %558 : vector<16x128xf32> to vector<1x16x128xf32>
    tpu.vector_store %arg10[%c1_184, %c0_185, %c0_186], %572 {strides = array<i32>} : memref<2x16x128xf32, #tpu.memory_space<vmem>>, vector<1x16x128xf32>,
    return
  }
  func.func @transform_0(%arg0: i32, %arg1: i32) -> (i32, i32, i32) {
    %c0_i32 = arith.constant 0 : i32
    %c0_i32_0 = arith.constant 0 : i32
    return %arg1, %arg0, %c0_i32 : i32, i32, i32
  }
  func.func @transform_1(%arg0: i32, %arg1: i32) -> (i32, i32) {
    %c0_i32 = arith.constant 0 : i32
    %c0_i32_0 = arith.constant 0 : i32
    %c0_i32_1 = arith.constant 0 : i32
    return %c0_i32, %c0_i32_0 : i32, i32
  }
  func.func @transform_2(%arg0: i32, %arg1: i32) -> (i32, i32) {
    %c0_i32 = arith.constant 0 : i32
    %c0_i32_0 = arith.constant 0 : i32
    %c0_i32_1 = arith.constant 0 : i32
    return %c0_i32, %c0_i32_0 : i32, i32
  }
  func.func @transform_3(%arg0: i32, %arg1: i32) -> (i32, i32) {
    %c0_i32 = arith.constant 0 : i32
    %c0_i32_0 = arith.constant 0 : i32
    %c0_i32_1 = arith.constant 0 : i32
    return %c0_i32, %c0_i32_0 : i32, i32
  }
  func.func @transform_4(%arg0: i32, %arg1: i32) -> (i32, i32) {
    %c0_i32 = arith.constant 0 : i32
    %c0_i32_0 = arith.constant 0 : i32
    %c0_i32_1 = arith.constant 0 : i32
    return %c0_i32, %c0_i32_0 : i32, i32
  }
  func.func @transform_5(%arg0: i32, %arg1: i32) -> (i32, i32) {
    %c0_i32 = arith.constant 0 : i32
    %c0_i32_0 = arith.constant 0 : i32
    %c0_i32_1 = arith.constant 0 : i32
    return %c0_i32, %c0_i32_0 : i32, i32
  }
  func.func @transform_6(%arg0: i32, %arg1: i32) -> (i32, i32) {
    %c0_i32 = arith.constant 0 : i32
    %c0_i32_0 = arith.constant 0 : i32
    %c0_i32_1 = arith.constant 0 : i32
    return %c0_i32, %c0_i32_0 : i32, i32
  }
  func.func @transform_7(%arg0: i32, %arg1: i32) -> (i32, i32, i32) {
    %c0_i32 = arith.constant 0 : i32
    %c0_i32_0 = arith.constant 0 : i32
    %c0_i32_1 = arith.constant 0 : i32
    return %c0_i32, %arg0, %c0_i32_0 : i32, i32, i32
  }
  func.func @transform_8(%arg0: i32, %arg1: i32) -> (i32, i32, i32) {
    %c0_i32 = arith.constant 0 : i32
    %c0_i32_0 = arith.constant 0 : i32
    %c0_i32_1 = arith.constant 0 : i32
    return %c0_i32, %arg0, %c0_i32_0 : i32, i32, i32
  }
}

</mosaic_0001>

<bundles_post_ra>
// kernel: encoder_forward.1
= control target key start
LH: loop header
LB: loop body
LE: loop exit
PB: predicated region body
PF: predicated region fallthrough
CT: control target
= control target key end

     0   :  { %v10155_v1 = vmov 0   ;;  %v10153_v39 = vmov 0.0|0.0   ;;  %s10144_s3 = inlined_call_operand.vmem [shape: bf16[128,512], index: 3, kind: input, shape index: {}]   ;;  %s10145_s1 = inlined_call_operand.vmem [shape: bf16[128,512], index: 1, kind: input, shape index: {}]   ;;  %s10146_s0 = inlined_call_operand.vmem [shape: bf16[8,16,128], index: 0, kind: input, shape index: {}]   ;;  %s10147_s4 = inlined_call_operand.vmem [shape: bf16[128,512], index: 4, kind: input, shape index: {}]   ;;  %s10148_s2 = inlined_call_operand.vmem [shape: bf16[128,512], index: 2, kind: input, shape index: {}]   ;;  %s10149_s5 = inlined_call_operand.vmem [shape: f32[1,512], index: 5, kind: input, shape index: {}]   ;;  %s10150_s6 = inlined_call_operand.vmem [shape: f32[1,512], index: 6, kind: input, shape index: {}]   ;;  %s10151_s8 = inlined_call_operand.vmem [shape: f32[2,16,128], index: 8, kind: output, shape index: {1}]   ;;  %s10152_s7 = inlined_call_operand.vmem [shape: f32[2,16,128], index: 7, kind: output, shape index: {0}]  }
   0x1   :  { %v6145_v0 = vld [vmem:[%s10144_s3 + $0x4] ss:$16 sps:$4 sm:$0xff]   ;;  %354 = vmatprep.mubr.bf16.mxu0 %v10155_v1  ;;  %397 = vmatprep.mubr.bf16.mxu1 %v10155_v1  ;;  %v6152_v2 = vld [vmem:[%s10144_s3 + $0xc] ss:$16 sps:$4 sm:$0xff]   ;;  %v6158_v3 = vld [vmem:[%s10144_s3] ss:$16 sps:$4 sm:$0xff]  }
   0x2   :  { %322 = vmatprep.subr.bf16.mxu0 %v6145_v0  ;;  %v6163_v4 = vld [vmem:[%s10144_s3 + $0x8] ss:$16 sps:$4 sm:$0xff]   ;;  %365 = vmatprep.subr.bf16.mxu1 %v6152_v2  ;;  %v6169_v5 = vld [vmem:[%s10144_s3 + $0x24] ss:$16 sps:$4 sm:$0xff]   ;;  %v6176_v6 = vld [vmem:[%s10144_s3 + $0x2c] ss:$16 sps:$4 sm:$0xff]  }
   0x3   :  { %323 = vmatpush1.bf16.msra.mxu0 %v6158_v3  ;;  %366 = vmatpush1.bf16.msra.mxu1 %v6163_v4  ;;  %v6181_v7 = vld [vmem:[%s10144_s3 + $0x20] ss:$16 sps:$4 sm:$0xff]   ;;  %v6187_v8 = vld [vmem:[%s10144_s3 + $0x28] ss:$16 sps:$4 sm:$0xff]   ;;  %v6193_v9 = vld [vmem:[%s10144_s3 + $0x44] ss:$16 sps:$4 sm:$0xff]  }
   0x4   :  { %324 = vmatprep.subr.bf16.mxu0 %v6169_v5  ;;  %367 = vmatprep.subr.bf16.mxu1 %v6176_v6  ;;  %v6198_v10 = vld [vmem:[%s10144_s3 + $0x4c] ss:$16 sps:$4 sm:$0xff]   ;;  %v6203_v11 = vld [vmem:[%s10144_s3 + $0x40] ss:$16 sps:$4 sm:$0xff]   ;;  %v6208_v12 = vld [vmem:[%s10144_s3 + $0x48] ss:$16 sps:$4 sm:$0xff]  }
   0x5   :  { %v6215_v13 = vld [vmem:[%s10144_s3 + $0x64] ss:$16 sps:$4 sm:$0xff]   ;;  %v6222_v14 = vld [vmem:[%s10144_s3 + $0x6c] ss:$16 sps:$4 sm:$0xff]   ;;  %v6227_v15 = vld [vmem:[%s10144_s3 + $0x60] ss:$16 sps:$4 sm:$0xff]  }
   0x6   :  { %v6234_v16 = vld [vmem:[%s10144_s3 + $0x68] ss:$16 sps:$4 sm:$0xff]   ;;  %v6239_v17 = vld [vmem:[%s10144_s3 + $0x84] ss:$16 sps:$4 sm:$0xff]   ;;  %v6246_v18 = vld [vmem:[%s10144_s3 + $0x8c] ss:$16 sps:$4 sm:$0xff]  }
   0x7   :  { %325 = vmatpush1.bf16.msra.mxu0 %v6181_v7  ;;  %368 = vmatpush1.bf16.msra.mxu1 %v6187_v8  ;;  %v6251_v19 = vld [vmem:[%s10144_s3 + $0x80] ss:$16 sps:$4 sm:$0xff]   ;;  %v6256_v20 = vld [vmem:[%s10144_s3 + $0x88] ss:$16 sps:$4 sm:$0xff]   ;;  %v6263_v21 = vld [vmem:[%s10144_s3 + $0xa4] ss:$16 sps:$4 sm:$0xff]  }
   0x8   :  { %326 = vmatprep.subr.bf16.mxu0 %v6193_v9  ;;  %369 = vmatprep.subr.bf16.mxu1 %v6198_v10  ;;  %v6270_v22 = vld [vmem:[%s10144_s3 + $0xac] ss:$16 sps:$4 sm:$0xff]   ;;  %v6275_v23 = vld [vmem:[%s10144_s3 + $0xa0] ss:$16 sps:$4 sm:$0xff]   ;;  %v6282_v24 = vld [vmem:[%s10144_s3 + $0xa8] ss:$16 sps:$4 sm:$0xff]  }
   0x9   :  { %v6287_v25 = vld [vmem:[%s10144_s3 + $0xc4] ss:$16 sps:$4 sm:$0xff]   ;;  %v6294_v26 = vld [vmem:[%s10144_s3 + $0xcc] ss:$16 sps:$4 sm:$0xff]   ;;  %v6299_v27 = vld [vmem:[%s10144_s3 + $0xc0] ss:$16 sps:$4 sm:$0xff]  }
   0xa   :  { %v6304_v28 = vld [vmem:[%s10144_s3 + $0xc8] ss:$16 sps:$4 sm:$0xff]   ;;  %v6311_v29 = vld [vmem:[%s10144_s3 + $0xe4] ss:$16 sps:$4 sm:$0xff]   ;;  %v6318_v30 = vld [vmem:[%s10144_s3 + $0xec] ss:$16 sps:$4 sm:$0xff]  }
   0xb   :  { %327 = vmatpush1.bf16.msra.mxu0 %v6203_v11  ;;  %370 = vmatpush1.bf16.msra.mxu1 %v6208_v12  ;;  %v6323_v31 = vld [vmem:[%s10144_s3 + $0xe0] ss:$16 sps:$4 sm:$0xff]   ;;  %v6330_v32 = vld [vmem:[%s10144_s3 + $0xe8] ss:$16 sps:$4 sm:$0xff]   ;;  %v6335_v33 = vld [vmem:[%s10145_s1 + $0x4] ss:$16 sps:$4 sm:$0xff]  }
   0xc   :  { %328 = vmatprep.subr.bf16.mxu0 %v6215_v13  ;;  %371 = vmatprep.subr.bf16.mxu1 %v6222_v14  ;;  %v6342_v34 = vld [vmem:[%s10145_s1 + $0xc] ss:$16 sps:$4 sm:$0xff]   ;;  %v6347_v35 = vld [vmem:[%s10145_s1] ss:$16 sps:$4 sm:$0xff]   ;;  %v6352_v36 = vld [vmem:[%s10145_s1 + $0x8] ss:$16 sps:$4 sm:$0xff]  }
   0xd   :  { %v6359_v37 = vld [vmem:[%s10145_s1 + $0x24] ss:$16 sps:$4 sm:$0xff]   ;;  %v6366_v38 = vld [vmem:[%s10145_s1 + $0x2c] ss:$16 sps:$4 sm:$0xff]   ;;  %v6373_v40 = vld [vmem:[%s10145_s1 + $0x20] ss:$16 sps:$4 sm:$0xff]  }
   0xe   :  { %v6380_v41 = vld [vmem:[%s10145_s1 + $0x28] ss:$16 sps:$4 sm:$0xff]   ;;  %v6385_v42 = vld [vmem:[%s10145_s1 + $0x44] ss:$16 sps:$4 sm:$0xff]   ;;  %v6392_v43 = vld [vmem:[%s10145_s1 + $0x4c] ss:$16 sps:$4 sm:$0xff]  }
   0xf   :  { %329 = vmatpush1.bf16.msra.mxu0 %v6227_v15  ;;  %372 = vmatpush1.bf16.msra.mxu1 %v6234_v16  ;;  %v6399_v44 = vld [vmem:[%s10145_s1 + $0x40] ss:$16 sps:$4 sm:$0xff]   ;;  %v6404_v45 = vld [vmem:[%s10145_s1 + $0x48] ss:$16 sps:$4 sm:$0xff]   ;;  %v6411_v46 = vld [vmem:[%s10145_s1 + $0x64] ss:$16 sps:$4 sm:$0xff]  }
  0x10   :  { %330 = vmatprep.subr.bf16.mxu0 %v6239_v17  ;;  %373 = vmatprep.subr.bf16.mxu1 %v6246_v18  ;;  %10531 = vst [vmem:[#allocation2_spill] sm:$0xff] %v6404_v45  ;;  %10532 = vst [vmem:[#allocation3_spill] sm:$0xff] %v6411_v46  ;;  %v6418_v47 = vld [vmem:[%s10145_s1 + $0x6c] ss:$16 sps:$4 sm:$0xff]   ;;  %v6423_v48 = vld [vmem:[%s10145_s1 + $0x60] ss:$16 sps:$4 sm:$0xff]  }
  0x11   :  { %10533 = vst [vmem:[#allocation4_spill] sm:$0xff] %v6418_v47  ;;  %10534 = vst [vmem:[#allocation5_spill] sm:$0xff] %v6423_v48  ;;  %v6430_v49 = vld [vmem:[%s10145_s1 + $0x68] ss:$16 sps:$4 sm:$0xff]   ;;  %v6437_v50 = vld [vmem:[%s10145_s1 + $0x84] ss:$16 sps:$4 sm:$0xff]  }
  0x12   :  { %10535 = vst [vmem:[#allocation6_spill] sm:$0xff] %v6430_v49  ;;  %10536 = vst [vmem:[#allocation7_spill] sm:$0xff] %v6437_v50  ;;  %v6442_v51 = vld [vmem:[%s10145_s1 + $0x8c] ss:$16 sps:$4 sm:$0xff]   ;;  %v6449_v52 = vld [vmem:[%s10145_s1 + $0x80] ss:$16 sps:$4 sm:$0xff]  }
  0x13   :  { %331 = vmatpush1.bf16.msra.mxu0 %v6251_v19  ;;  %374 = vmatpush1.bf16.msra.mxu1 %v6256_v20  ;;  %10537 = vst [vmem:[#allocation8_spill] sm:$0xff] %v6442_v51  ;;  %10538 = vst [vmem:[#allocation9_spill] sm:$0xff] %v6449_v52  ;;  %v6454_v53 = vld [vmem:[%s10145_s1 + $0x88] ss:$16 sps:$4 sm:$0xff]   ;;  %v6459_v54 = vld [vmem:[%s10145_s1 + $0xa4] ss:$16 sps:$4 sm:$0xff]  }
  0x14   :  { %332 = vmatprep.subr.bf16.mxu0 %v6263_v21  ;;  %375 = vmatprep.subr.bf16.mxu1 %v6270_v22  ;;  %10539 = vst [vmem:[#allocation10_spill] sm:$0xff] %v6454_v53  ;;  %10540 = vst [vmem:[#allocation11_spill] sm:$0xff] %v6459_v54  ;;  %v6466_v55 = vld [vmem:[%s10145_s1 + $0xac] ss:$16 sps:$4 sm:$0xff]   ;;  %v6471_v56 = vld [vmem:[%s10145_s1 + $0xa0] ss:$16 sps:$4 sm:$0xff]  }
  0x15   :  { %10541 = vst [vmem:[#allocation12_spill] sm:$0xff] %v6466_v55  ;;  %10542 = vst [vmem:[#allocation13_spill] sm:$0xff] %v6471_v56  ;;  %v6478_v57 = vld [vmem:[%s10145_s1 + $0xa8] ss:$16 sps:$4 sm:$0xff]   ;;  %v6485_v58 = vld [vmem:[%s10145_s1 + $0xc4] ss:$16 sps:$4 sm:$0xff]  }
  0x16   :  { %10543 = vst [vmem:[#allocation14_spill] sm:$0xff] %v6478_v57  ;;  %10544 = vst [vmem:[#allocation15_spill] sm:$0xff] %v6485_v58  ;;  %v6490_v59 = vld [vmem:[%s10145_s1 + $0xcc] ss:$16 sps:$4 sm:$0xff]   ;;  %v6495_v60 = vld [vmem:[%s10145_s1 + $0xc0] ss:$16 sps:$4 sm:$0xff]  }
  0x17   :  { %333 = vmatpush1.bf16.msra.mxu0 %v6275_v23  ;;  %376 = vmatpush1.bf16.msra.mxu1 %v6282_v24  ;;  %10545 = vst [vmem:[#allocation16_spill] sm:$0xff] %v6490_v59  ;;  %10546 = vst [vmem:[#allocation17_spill] sm:$0xff] %v6495_v60  ;;  %v6500_v61 = vld [vmem:[%s10145_s1 + $0xc8] ss:$16 sps:$4 sm:$0xff]   ;;  %v6505_v62 = vld [vmem:[%s10145_s1 + $0xe4] ss:$16 sps:$4 sm:$0xff]  }
  0x18   :  { %334 = vmatprep.subr.bf16.mxu0 %v6287_v25  ;;  %377 = vmatprep.subr.bf16.mxu1 %v6294_v26  ;;  %10547 = vst [vmem:[#allocation18_spill] sm:$0xff] %v6500_v61  ;;  %10548 = vst [vmem:[#allocation19_spill] sm:$0xff] %v6505_v62  ;;  %v6510_v63 = vld [vmem:[%s10145_s1 + $0xec] ss:$16 sps:$4 sm:$0xff]  }
  0x19   :  { %10549 = vst [vmem:[#allocation20_spill] sm:$0xff] %v6510_v63 }
  0x1b   :  { %335 = vmatpush1.bf16.msra.mxu0 %v6299_v27  ;;  %378 = vmatpush1.bf16.msra.mxu1 %v6304_v28 }
  0x1c   :  { %336 = vmatprep.subr.bf16.mxu0 %v6311_v29  ;;  %379 = vmatprep.subr.bf16.mxu1 %v6318_v30 }
  0x1f   :  { %337 = vmatpush1.bf16.msra.mxu0 %v6323_v31  ;;  %380 = vmatpush1.bf16.msra.mxu1 %v6330_v32 }
  0x20   :  { %574 = vmatprep.subr.bf16.mxu0 %v6335_v33  ;;  %617 = vmatprep.subr.bf16.mxu1 %v6342_v34 }
  0x22   :  { %355 = vmatmul.mubr.bf16.vlgmr.msra.gmra.mrb[0].mxu0 %v10153_v39  ;;  %398 = vmatmul.mubr.bf16.vlgmr.msra.gmra.mrb[0].mxu1 %v10153_v39  ;;  %v6519_v39 = vld [vmem:[%s10145_s1 + $0xe0] ss:$16 sps:$4 sm:$0xff]  }
  0x23   :  { %575 = vmatpush1.bf16.msra.mxu0 %v6347_v35  ;;  %618 = vmatpush1.bf16.msra.mxu1 %v6352_v36  ;;  %10550 = vst [vmem:[#allocation21_spill] sm:$0xff] %v6519_v39 }
  0x24   :  { %576 = vmatprep.subr.bf16.mxu0 %v6359_v37  ;;  %619 = vmatprep.subr.bf16.mxu1 %v6366_v38 }
  0x25   :  { %606 = vmatprep.mubr.bf16.mxu0 %v10155_v1  ;;  %649 = vmatprep.mubr.bf16.mxu1 %v10155_v1  ;;  %v6524_v1 = vld [vmem:[%s10145_s1 + $0xe8] ss:$16 sps:$4 sm:$0xff]  }
  0x26   :  { %10551 = vst [vmem:[#allocation22_spill] sm:$0xff] %v6524_v1 }
  0x27   :  { %577 = vmatpush1.bf16.msra.mxu0 %v6373_v40  ;;  %620 = vmatpush1.bf16.msra.mxu1 %v6380_v41 }
  0x28   :  { %578 = vmatprep.subr.bf16.mxu0 %v6385_v42  ;;  %621 = vmatprep.subr.bf16.mxu1 %v6392_v43 }
  0x2b   :  { %579 = vmatpush1.bf16.msra.mxu0 %v6399_v44  ;;  %622 = vmatpush1.bf16.msra.mxu1 %v6404_v45 }
  0x2c   :  { %580 = vmatprep.subr.bf16.mxu0 %v6411_v46  ;;  %623 = vmatprep.subr.bf16.mxu1 %v6418_v47 }
  0x2f   :  { %581 = vmatpush1.bf16.msra.mxu0 %v6423_v48  ;;  %624 = vmatpush1.bf16.msra.mxu1 %v6430_v49 }
  0x30   :  { %582 = vmatprep.subr.bf16.mxu0 %v6437_v50  ;;  %625 = vmatprep.subr.bf16.mxu1 %v6442_v51 }
  0x33   :  { %583 = vmatpush1.bf16.msra.mxu0 %v6449_v52  ;;  %626 = vmatpush1.bf16.msra.mxu1 %v6454_v53 }
  0x34   :  { %584 = vmatprep.subr.bf16.mxu0 %v6459_v54  ;;  %627 = vmatprep.subr.bf16.mxu1 %v6466_v55 }
  0x37   :  { %585 = vmatpush1.bf16.msra.mxu0 %v6471_v56  ;;  %628 = vmatpush1.bf16.msra.mxu1 %v6478_v57  ;;  %v6529_v56 = vld [vmem:[%s10147_s4 + $0x4] ss:$16 sps:$4 sm:$0xff]   ;;  %v6546_v57 = vld [vmem:[%s10147_s4] ss:$16 sps:$4 sm:$0xff]  }
  0x38   :  { %586 = vmatprep.subr.bf16.mxu0 %v6485_v58  ;;  %629 = vmatprep.subr.bf16.mxu1 %v6490_v59  ;;  %10552 = vst [vmem:[#allocation23_spill] sm:$0xff] %v6529_v56  ;;  %v6534_v58 = vld [vmem:[%s10147_s4 + $0xc] ss:$16 sps:$4 sm:$0xff]   ;;  %v5095_v59 = vld [vmem:[%s10146_s0] sm:$0xff]   ;;  %10554 = vst [vmem:[#allocation25_spill] sm:$0xff] %v6546_v57 }
  0x39   :  { %10553 = vst [vmem:[#allocation24_spill] sm:$0xff] %v6534_v58 }
  0x3b   :  { %587 = vmatpush1.bf16.msra.mxu0 %v6495_v60  ;;  %630 = vmatpush1.bf16.msra.mxu1 %v6500_v61  ;;  %v6553_v61 = vld [vmem:[%s10147_s4 + $0x8] ss:$16 sps:$4 sm:$0xff]  }
  0x3c   :  { %588 = vmatprep.subr.bf16.mxu0 %v6505_v62  ;;  %631 = vmatprep.subr.bf16.mxu1 %v6510_v63  ;;  %10555 = vst [vmem:[#allocation26_spill] sm:$0xff] %v6553_v61  ;;  %v6560_v63 = vld [vmem:[%s10147_s4 + $0x24] ss:$16 sps:$4 sm:$0xff]   ;;  %v41_v62 = vld [vmem:[%s10149_s5] sm:$0xf] }
  0x3d   :  { %10556 = vst [vmem:[#allocation27_spill] sm:$0xff] %v6560_v63 }
  0x3f   :  { %589 = vmatpush1.bf16.msra.mxu0 %v6519_v39  ;;  %632 = vmatpush1.bf16.msra.mxu1 %v6524_v1  ;;  %v6565_v39 = vld [vmem:[%s10147_s4 + $0x2c] ss:$16 sps:$4 sm:$0xff]   ;;  %v10587_v1 = vmov 0.0|0.0  }
  0x40   :  { %942 = vmatprep.subr.bf16.mxu0 %v6529_v56  ;;  %985 = vmatprep.subr.bf16.mxu1 %v6534_v58  ;;  %10557 = vst [vmem:[#allocation28_spill] sm:$0xff] %v6565_v39  ;;  %v6572_v58 = vld [vmem:[%s10147_s4 + $0x20] ss:$16 sps:$4 sm:$0xff]   ;;  %v6577_v56 = vld [vmem:[%s10147_s4 + $0x28] ss:$16 sps:$4 sm:$0xff]  }
  0x41   :  { %10558 = vst [vmem:[#allocation29_spill] sm:$0xff] %v6572_v58  ;;  %10559 = vst [vmem:[#allocation30_spill] sm:$0xff] %v6577_v56 }
  0x42   :  { %607 = vmatmul.mubr.bf16.vlgmr.msra.gmra.mrb[0].mxu0 %v5095_v59  ;;  %650 = vmatmul.mubr.bf16.vlgmr.msra.gmra.mrb[0].mxu1 %v5095_v59  ;;  %v6584_v59 = vld [vmem:[%s10147_s4 + $0x44] ss:$16 sps:$4 sm:$0xff]  }
  0x43   :  { %943 = vmatpush1.bf16.msra.mxu0 %v6546_v57  ;;  %986 = vmatpush1.bf16.msra.mxu1 %v6553_v61  ;;  %10560 = vst [vmem:[#allocation31_spill] sm:$0xff] %v6584_v59  ;;  %v6589_v61 = vld [vmem:[%s10147_s4 + $0x4c] ss:$16 sps:$4 sm:$0xff]   ;;  %v10562_v57 = vmov 0  }
  0x44   :  { %944 = vmatprep.subr.bf16.mxu0 %v6560_v63  ;;  %987 = vmatprep.subr.bf16.mxu1 %v6565_v39  ;;  %10561 = vst [vmem:[#allocation32_spill] sm:$0xff] %v6589_v61  ;;  %v6598_v39 = vld [vmem:[%s10147_s4 + $0x40] ss:$16 sps:$4 sm:$0xff]   ;;  %v6603_v63 = vld [vmem:[%s10147_s4 + $0x48] ss:$16 sps:$4 sm:$0xff]  }
  0x45   :  { %974 = vmatprep.mubr.bf16.mxu0 %v10562_v57  ;;  %1017 = vmatprep.mubr.bf16.mxu1 %v10562_v57  ;;  %10563 = vst [vmem:[#allocation33_spill] sm:$0xff] %v6598_v39  ;;  %10564 = vst [vmem:[#allocation34_spill] sm:$0xff] %v6603_v63 }
  0x47   :  { %945 = vmatpush1.bf16.msra.mxu0 %v6572_v58  ;;  %988 = vmatpush1.bf16.msra.mxu1 %v6577_v56  ;;  %v6610_v58 = vld [vmem:[%s10147_s4 + $0x64] ss:$16 sps:$4 sm:$0xff]   ;;  %v6615_v56 = vld [vmem:[%s10147_s4 + $0x6c] ss:$16 sps:$4 sm:$0xff]  }
  0x48   :  { %946 = vmatprep.subr.bf16.mxu0 %v6584_v59  ;;  %989 = vmatprep.subr.bf16.mxu1 %v6589_v61  ;;  %10565 = vst [vmem:[#allocation35_spill] sm:$0xff] %v6610_v58  ;;  %10566 = vst [vmem:[#allocation36_spill] sm:$0xff] %v6615_v56  ;;  %v6622_v59 = vld [vmem:[%s10147_s4 + $0x60] ss:$16 sps:$4 sm:$0xff]   ;;  %v6627_v61 = vld [vmem:[%s10147_s4 + $0x68] ss:$16 sps:$4 sm:$0xff]  }
  0x49   :  { %10567 = vst [vmem:[#allocation37_spill] sm:$0xff] %v6622_v59  ;;  %10568 = vst [vmem:[#allocation38_spill] sm:$0xff] %v6627_v61 }
  0x4b   :  { %947 = vmatpush1.bf16.msra.mxu0 %v6598_v39  ;;  %990 = vmatpush1.bf16.msra.mxu1 %v6603_v63  ;;  %v6636_v63 = vld [vmem:[%s10147_s4 + $0x84] ss:$16 sps:$4 sm:$0xff]   ;;  %v6641_v39 = vld [vmem:[%s10147_s4 + $0x8c] ss:$16 sps:$4 sm:$0xff]  }
  0x4c   :  { %948 = vmatprep.subr.bf16.mxu0 %v6610_v58  ;;  %991 = vmatprep.subr.bf16.mxu1 %v6615_v56  ;;  %10569 = vst [vmem:[#allocation39_spill] sm:$0xff] %v6636_v63  ;;  %10570 = vst [vmem:[#allocation40_spill] sm:$0xff] %v6641_v39  ;;  %v6646_v58 = vld [vmem:[%s10147_s4 + $0x80] ss:$16 sps:$4 sm:$0xff]   ;;  %v6665_v56 = vld [vmem:[%s10147_s4 + $0xac] ss:$16 sps:$4 sm:$0xff]  }
  0x4d   :  { %10571 = vst [vmem:[#allocation41_spill] sm:$0xff] %v6646_v58  ;;  %10574 = vst [vmem:[#allocation44_spill] sm:$0xff] %v6665_v56 }
  0x4f   :  { %949 = vmatpush1.bf16.msra.mxu0 %v6622_v59  ;;  %992 = vmatpush1.bf16.msra.mxu1 %v6627_v61  ;;  %v6651_v59 = vld [vmem:[%s10147_s4 + $0x88] ss:$16 sps:$4 sm:$0xff]   ;;  %v6660_v61 = vld [vmem:[%s10147_s4 + $0xa4] ss:$16 sps:$4 sm:$0xff]  }
  0x50   :  { %10572 = vst [vmem:[#allocation42_spill] sm:$0xff] %v6651_v59  ;;  %950 = vmatprep.subr.bf16.mxu0 %v6636_v63  ;;  %993 = vmatprep.subr.bf16.mxu1 %v6641_v39  ;;  %10573 = vst [vmem:[#allocation43_spill] sm:$0xff] %v6660_v61  ;;  %v6670_v63 = vld [vmem:[%s10147_s4 + $0xa0] ss:$16 sps:$4 sm:$0xff]   ;;  %v6689_v39 = vld [vmem:[%s10147_s4 + $0xcc] ss:$16 sps:$4 sm:$0xff]  }
  0x51   :  { %10575 = vst [vmem:[#allocation45_spill] sm:$0xff] %v6670_v63  ;;  %10578 = vst [vmem:[#allocation48_spill] sm:$0xff] %v6689_v39 }
  0x53   :  { %951 = vmatpush1.bf16.msra.mxu0 %v6646_v58  ;;  %994 = vmatpush1.bf16.msra.mxu1 %v6651_v59  ;;  %v6675_v58 = vld [vmem:[%s10147_s4 + $0xa8] ss:$16 sps:$4 sm:$0xff]   ;;  %v6684_v59 = vld [vmem:[%s10147_s4 + $0xc4] ss:$16 sps:$4 sm:$0xff]  }
  0x54   :  { %10576 = vst [vmem:[#allocation46_spill] sm:$0xff] %v6675_v58  ;;  %952 = vmatprep.subr.bf16.mxu0 %v6660_v61  ;;  %995 = vmatprep.subr.bf16.mxu1 %v6665_v56  ;;  %10577 = vst [vmem:[#allocation47_spill] sm:$0xff] %v6684_v59  ;;  %v6694_v61 = vld [vmem:[%s10147_s4 + $0xc0] ss:$16 sps:$4 sm:$0xff]   ;;  %v6713_v56 = vld [vmem:[%s10147_s4 + $0xec] ss:$16 sps:$4 sm:$0xff]  }
  0x55   :  { %10579 = vst [vmem:[#allocation49_spill] sm:$0xff] %v6694_v61  ;;  %10582 = vst [vmem:[#allocation52_spill] sm:$0xff] %v6713_v56 }
  0x57   :  { %953 = vmatpush1.bf16.msra.mxu0 %v6670_v63  ;;  %996 = vmatpush1.bf16.msra.mxu1 %v6675_v58  ;;  %v6699_v63 = vld [vmem:[%s10147_s4 + $0xc8] ss:$16 sps:$4 sm:$0xff]   ;;  %v6708_v58 = vld [vmem:[%s10147_s4 + $0xe4] ss:$16 sps:$4 sm:$0xff]  }
  0x58   :  { %10580 = vst [vmem:[#allocation50_spill] sm:$0xff] %v6699_v63  ;;  %954 = vmatprep.subr.bf16.mxu0 %v6684_v59  ;;  %997 = vmatprep.subr.bf16.mxu1 %v6689_v39  ;;  %10581 = vst [vmem:[#allocation51_spill] sm:$0xff] %v6708_v58  ;;  %v6718_v59 = vld [vmem:[%s10147_s4 + $0xe0] ss:$16 sps:$4 sm:$0xff]   ;;  %v6737_v39 = vld [vmem:[%s10148_s2 + $0xc] ss:$16 sps:$4 sm:$0xff]  }
  0x59   :  { %10583 = vst [vmem:[#allocation53_spill] sm:$0xff] %v6718_v59  ;;  %10586 = vst [vmem:[#allocation56_spill] sm:$0xff] %v6737_v39 }
  0x5b   :  { %955 = vmatpush1.bf16.msra.mxu0 %v6694_v61  ;;  %998 = vmatpush1.bf16.msra.mxu1 %v6699_v63  ;;  %v6723_v61 = vld [vmem:[%s10147_s4 + $0xe8] ss:$16 sps:$4 sm:$0xff]   ;;  %v6732_v63 = vld [vmem:[%s10148_s2 + $0x4] ss:$16 sps:$4 sm:$0xff]  }
  0x5c   :  { %10584 = vst [vmem:[#allocation54_spill] sm:$0xff] %v6723_v61  ;;  %956 = vmatprep.subr.bf16.mxu0 %v6708_v58  ;;  %999 = vmatprep.subr.bf16.mxu1 %v6713_v56  ;;  %10585 = vst [vmem:[#allocation55_spill] sm:$0xff] %v6732_v63  ;;  %v6763_v56 = vld [vmem:[%s10148_s2 + $0x2c] ss:$16 sps:$4 sm:$0xff]  }
  0x5d   :  { %10591 = vst [vmem:[#allocation60_spill] sm:$0xff] %v6763_v56 }
  0x5f   :  { %957 = vmatpush1.bf16.msra.mxu0 %v6718_v59  ;;  %1000 = vmatpush1.bf16.msra.mxu1 %v6723_v61  ;;  %v6744_v59 = vld [vmem:[%s10148_s2] ss:$16 sps:$4 sm:$0xff]   ;;  %v6749_v61 = vld [vmem:[%s10148_s2 + $0x8] ss:$16 sps:$4 sm:$0xff]  }
  0x60   :  { %1188 = vmatprep.subr.bf16.mxu0 %v6732_v63  ;;  %10588 = vst [vmem:[#allocation57_spill] sm:$0xff] %v6744_v59  ;;  %10589 = vst [vmem:[#allocation58_spill] sm:$0xff] %v6749_v61  ;;  %1231 = vmatprep.subr.bf16.mxu1 %v6737_v39  ;;  %v6758_v63 = vld [vmem:[%s10148_s2 + $0x24] ss:$16 sps:$4 sm:$0xff]   ;;  %v6768_v39 = vld [vmem:[%s10148_s2 + $0x20] ss:$16 sps:$4 sm:$0xff]  }
  0x61   :  { %10590 = vst [vmem:[#allocation59_spill] sm:$0xff] %v6758_v63  ;;  %10592 = vst [vmem:[#allocation61_spill] sm:$0xff] %v6768_v39 }
  0x62   :  { %975 = vmatmul.mubr.bf16.vlgmr.msra.gmra.mrb[4].mxu0 %v10587_v1  ;;  %1018 = vmatmul.mubr.bf16.vlgmr.msra.gmra.mrb[4].mxu1 %v10587_v1  ;;  %v6773_v1 = vld [vmem:[%s10148_s2 + $0x28] ss:$16 sps:$4 sm:$0xff]  }
  0x63   :  { %1189 = vmatpush1.bf16.msra.mxu0 %v6744_v59  ;;  %1232 = vmatpush1.bf16.msra.mxu1 %v6749_v61  ;;  %10593 = vst [vmem:[#allocation62_spill] sm:$0xff] %v6773_v1  ;;  %v6784_v61 = vld [vmem:[%s10148_s2 + $0x44] ss:$16 sps:$4 sm:$0xff]   ;;  %v6789_v59 = vld [vmem:[%s10148_s2 + $0x4c] ss:$16 sps:$4 sm:$0xff]  }
  0x64   :  { %1220 = vmatprep.mubr.bf16.mxu0 %v10562_v57  ;;  %1263 = vmatprep.mubr.bf16.mxu1 %v10562_v57  ;;  %10594 = vst [vmem:[#allocation63_spill] sm:$0xff] %v6784_v61  ;;  %10595 = vst [vmem:[#allocation64_spill] sm:$0xff] %v6789_v59 }
  0x65   :  { %1190 = vmatprep.subr.bf16.mxu0 %v6758_v63  ;;  %1233 = vmatprep.subr.bf16.mxu1 %v6763_v56  ;;  %v6794_v63 = vld [vmem:[%s10148_s2 + $0x40] ss:$16 sps:$4 sm:$0xff]   ;;  %v6813_v56 = vld [vmem:[%s10148_s2 + $0x6c] ss:$16 sps:$4 sm:$0xff]  }
  0x66   :  { %10596 = vst [vmem:[#allocation65_spill] sm:$0xff] %v6794_v63  ;;  %10599 = vst [vmem:[#allocation68_spill] sm:$0xff] %v6813_v56 }
  0x67   :  { %1191 = vmatpush1.bf16.msra.mxu0 %v6768_v39  ;;  %1234 = vmatpush1.bf16.msra.mxu1 %v6773_v1  ;;  %v6799_v39 = vld [vmem:[%s10148_s2 + $0x48] ss:$16 sps:$4 sm:$0xff]   ;;  %v6808_v1 = vld [vmem:[%s10148_s2 + $0x64] ss:$16 sps:$4 sm:$0xff]  }
  0x68   :  { %10597 = vst [vmem:[#allocation66_spill] sm:$0xff] %v6799_v39  ;;  %1192 = vmatprep.subr.bf16.mxu0 %v6784_v61  ;;  %1235 = vmatprep.subr.bf16.mxu1 %v6789_v59  ;;  %10598 = vst [vmem:[#allocation67_spill] sm:$0xff] %v6808_v1  ;;  %v6818_v61 = vld [vmem:[%s10148_s2 + $0x60] ss:$16 sps:$4 sm:$0xff]   ;;  %v6837_v59 = vld [vmem:[%s10148_s2 + $0x8c] ss:$16 sps:$4 sm:$0xff]  }
  0x69   :  { %10600 = vst [vmem:[#allocation69_spill] sm:$0xff] %v6818_v61  ;;  %10603 = vst [vmem:[#allocation72_spill] sm:$0xff] %v6837_v59 }
  0x6b   :  { %1193 = vmatpush1.bf16.msra.mxu0 %v6794_v63  ;;  %1236 = vmatpush1.bf16.msra.mxu1 %v6799_v39  ;;  %v6823_v63 = vld [vmem:[%s10148_s2 + $0x68] ss:$16 sps:$4 sm:$0xff]   ;;  %v6832_v39 = vld [vmem:[%s10148_s2 + $0x84] ss:$16 sps:$4 sm:$0xff]  }
  0x6c   :  { %10601 = vst [vmem:[#allocation70_spill] sm:$0xff] %v6823_v63  ;;  %1194 = vmatprep.subr.bf16.mxu0 %v6808_v1  ;;  %1237 = vmatprep.subr.bf16.mxu1 %v6813_v56  ;;  %10602 = vst [vmem:[#allocation71_spill] sm:$0xff] %v6832_v39  ;;  %v6842_v1 = vld [vmem:[%s10148_s2 + $0x80] ss:$16 sps:$4 sm:$0xff]   ;;  %v6859_v56 = vld [vmem:[%s10148_s2 + $0xac] ss:$16 sps:$4 sm:$0xff]  }
  0x6d   :  { %10604 = vst [vmem:[#allocation73_spill] sm:$0xff] %v6842_v1  ;;  %10607 = vst [vmem:[#allocation76_spill] sm:$0xff] %v6859_v56 }
  0x6f   :  { %1195 = vmatpush1.bf16.msra.mxu0 %v6818_v61  ;;  %1238 = vmatpush1.bf16.msra.mxu1 %v6823_v63  ;;  %v6847_v61 = vld [vmem:[%s10148_s2 + $0x88] ss:$16 sps:$4 sm:$0xff]   ;;  %v6854_v63 = vld [vmem:[%s10148_s2 + $0xa4] ss:$16 sps:$4 sm:$0xff]  }
  0x70   :  { %10605 = vst [vmem:[#allocation74_spill] sm:$0xff] %v6847_v61  ;;  %1196 = vmatprep.subr.bf16.mxu0 %v6832_v39  ;;  %1239 = vmatprep.subr.bf16.mxu1 %v6837_v59  ;;  %10606 = vst [vmem:[#allocation75_spill] sm:$0xff] %v6854_v63  ;;  %v6866_v39 = vld [vmem:[%s10148_s2 + $0xa0] ss:$16 sps:$4 sm:$0xff]   ;;  %v6871_v59 = vld [vmem:[%s10148_s2 + $0xa8] ss:$16 sps:$4 sm:$0xff]  }
  0x71   :  { %10608 = vst [vmem:[#allocation77_spill] sm:$0xff] %v6866_v39  ;;  %10609 = vst [vmem:[#allocation78_spill] sm:$0xff] %v6871_v59 }
  0x73   :  { %1197 = vmatpush1.bf16.msra.mxu0 %v6842_v1  ;;  %1240 = vmatpush1.bf16.msra.mxu1 %v6847_v61  ;;  %v6878_v1 = vld [vmem:[%s10148_s2 + $0xc4] ss:$16 sps:$4 sm:$0xff]   ;;  %v6883_v61 = vld [vmem:[%s10148_s2 + $0xcc] ss:$16 sps:$4 sm:$0xff]  }
  0x74   :  { %1198 = vmatprep.subr.bf16.mxu0 %v6854_v63  ;;  %1241 = vmatprep.subr.bf16.mxu1 %v6859_v56  ;;  %10610 = vst [vmem:[#allocation79_spill] sm:$0xff] %v6878_v1  ;;  %10611 = vst [vmem:[#allocation80_spill] sm:$0xff] %v6883_v61  ;;  %v6890_v63 = vld [vmem:[%s10148_s2 + $0xc0] ss:$16 sps:$4 sm:$0xff]   ;;  %v6895_v56 = vld [vmem:[%s10148_s2 + $0xc8] ss:$16 sps:$4 sm:$0xff]  }
  0x75   :  { %10612 = vst [vmem:[#allocation81_spill] sm:$0xff] %v6890_v63  ;;  %10613 = vst [vmem:[#allocation82_spill] sm:$0xff] %v6895_v56 }
  0x77   :  { %1199 = vmatpush1.bf16.msra.mxu0 %v6866_v39  ;;  %1242 = vmatpush1.bf16.msra.mxu1 %v6871_v59  ;;  %v6902_v39 = vld [vmem:[%s10148_s2 + $0xe4] ss:$16 sps:$4 sm:$0xff]   ;;  %v6907_v59 = vld [vmem:[%s10148_s2 + $0xec] ss:$16 sps:$4 sm:$0xff]  }
  0x78   :  { %1200 = vmatprep.subr.bf16.mxu0 %v6878_v1  ;;  %1243 = vmatprep.subr.bf16.mxu1 %v6883_v61  ;;  %10614 = vst [vmem:[#allocation83_spill] sm:$0xff] %v6902_v39  ;;  %10615 = vst [vmem:[#allocation84_spill] sm:$0xff] %v6907_v59  ;;  %v6914_v1 = vld [vmem:[%s10148_s2 + $0xe0] ss:$16 sps:$4 sm:$0xff]   ;;  %v6919_v61 = vld [vmem:[%s10148_s2 + $0xe8] ss:$16 sps:$4 sm:$0xff]  }
  0x79   :  { %10616 = vst [vmem:[#allocation85_spill] sm:$0xff] %v6914_v1  ;;  %10617 = vst [vmem:[#allocation86_spill] sm:$0xff] %v6919_v61 }
  0x7b   :  { %1201 = vmatpush1.bf16.msra.mxu0 %v6890_v63  ;;  %1244 = vmatpush1.bf16.msra.mxu1 %v6895_v56  ;;  %v43_v56 = vlaneseq }
  0x7c   :  { %1202 = vmatprep.subr.bf16.mxu0 %v6902_v39  ;;  %1245 = vmatprep.subr.bf16.mxu1 %v6907_v59 }
  0x7d   :  { %v6927_v63 = vshrl.u32 %v43_v56, 7 }
  0x7f   :  { %1203 = vmatpush1.bf16.msra.mxu0 %v6914_v1  ;;  %1246 = vmatpush1.bf16.msra.mxu1 %v6919_v61  ;;  %v10236_v58 = vsub.s32 0, %v6927_v63  ;;  %v10239_v39 = vsub.s32 1, %v6927_v63  ;;  %v10244_v56 = vsub.s32 3, %v6927_v63 }
  0x80   :  { %1333 = vmatprep.subr.bf16.mxu0 %v6145_v0  ;;  %1376 = vmatprep.subr.bf16.mxu1 %v6152_v2 }
  0x81   :  { %v6936_v1 = vrot.slane %v41_v62, %v10236_v58  ;;  %v6940_v0 = vrot.slane %v41_v62, %v10239_v39  ;;  %v10247_v58 = vsub.s32 2, %v6927_v63  ;;  %v6949_v47 = vrot.slane %v41_v62, %v10244_v56 }
  0x83   :  { %10618 = vst [vmem:[#allocation87_spill] sm:$0xff] %v6936_v1  ;;  %10619 = vst [vmem:[#allocation88_spill] sm:$0xff] %v6949_v47 }
 0x115   :  { %v608_v2 = vpop.f32.mrb[0].mxu0  ;;  %v651_v61 = vpop.f32.mrb[0].mxu1 }
 0x116   :  { %v660_v59 = vadd.f32 %v608_v2, %v6936_v1  ;;  %v610_v60 = vpop.f32.mrb[1].mxu0  ;;  %v653_v55 = vpop.f32.mrb[1].mxu1 }
 0x117   :  { %v661_v54 = vadd.f32 %v610_v60, %v6940_v0  ;;  %v612_v53 = vpop.f32.mrb[2].mxu0  ;;  %v655_v52 = vpop.f32.mrb[2].mxu1  ;;  %v663_v45 = vadd.f32 %v653_v55, %v6949_v47 }
 0x118   :  { %v4684_v51 = vmul.f32 -1.442695, %v660_v59  ;;  %v664_v50 = vadd.f32 %v612_v53, %v6936_v1  ;;  %v614_v49 = vpop.f32.mrb[3].mxu0  ;;  %v657_v39 = vpop.f32.mrb[3].mxu1  ;;  %v6954_v59 = vrot.slane %v41_v62, %v10247_v58 }
 0x119   :  { %v4686_v48 = vmul.f32 -1.442695, %v661_v54  ;;  %v665_v2 = vadd.f32 %v614_v49, %v6940_v0  ;;  %v4688_v54 = vmul.f32 -1.442695, %v663_v45  ;;  %v667_v56 = vadd.f32 %v657_v39, %v6949_v47 }
 0x11a   :  { %5199 = vpow2.f32 %v4684_v51  ;;  %v4685_v46 = vmul.f32 -1.442695, %v664_v50  ;;  %10620 = vst [vmem:[#allocation89_spill] sm:$0xff] %v6954_v59  ;;  %v662_v53 = vadd.f32 %v651_v61, %v6954_v59  ;;  %v666_v1 = vadd.f32 %v655_v52, %v6954_v59 }
 0x11b   :  { %5201 = vpow2.f32 %v4686_v48  ;;  %v4687_v60 = vmul.f32 -1.442695, %v665_v2  ;;  %v4689_v51 = vmul.f32 -1.442695, %v667_v56 }
 0x11c   :  { %5203 = vpow2.f32 %v4685_v46 }
 0x11d   :  { %5205 = vpow2.f32 %v4687_v60 }
 0x11e   :  { %5207 = vtanh.f32 %v662_v53 }
 0x11f   :  { %5209 = vpow2.f32 %v4688_v54 }
 0x120   :  { %5211 = vtanh.f32 %v666_v1 }
 0x124   :  { %v5200_v49 = vpop.eup %5199 }
 0x125   :  { %v5202_v50 = vpop.eup %5201  ;;  %v674_v48 = vadd.f32 1.0, %v5200_v49 }
 0x126   :  { %v686_v2 = vadd.f32 1.0, %v5202_v50  ;;  %v5204_v62 = vpop.eup %5203 }
 0x127   :  { %5213 = vrcp.f32 %v674_v48  ;;  %v675_v46 = vadd.f32 1.0, %v5204_v62  ;;  %v5206_v55 = vpop.eup %5205 }
 0x128   :  { %5215 = vrcp.f32 %v686_v2  ;;  %v687_v45 = vadd.f32 1.0, %v5206_v55  ;;  %v5208_v39 = vpop.eup %5207 }
 0x129   :  { %5217 = vpow2.f32 %v4689_v51  ;;  %v5210_v61 = vpop.eup %5209 }
 0x12a   :  { %5219 = vrcp.f32 %v675_v46  ;;  %v5212_v52 = vpop.eup %5211  ;;  %v700_v50 = vadd.f32 1.0, %v5210_v61 }
 0x12b   :  { %5221 = vrcp.f32 %v687_v45 }
 0x12c   :  { %5223 = vrcp.f32 %v700_v50  ;;  %v10667_v50 = vld [vmem:[#allocation48_spill] sm:$0xff] }
 0x131   :  { %v5214_v60 = vpop.eup %5213 }
 0x132   :  { %v5216_v53 = vpop.eup %5215  ;;  %v708_v58 = vmul.f32 %v5214_v60, %v5208_v39 }
 0x133   :  { %v5218_v49 = vpop.eup %5217  ;;  %v706_v54 = vmul.f32 0.0, %v5216_v53  ;;  %v10663_v53 = vld [vmem:[#allocation44_spill] sm:$0xff] }
 0x134   :  { %v5220_v56 = vpop.eup %5219  ;;  %v701_v62 = vadd.f32 1.0, %v5218_v49  ;;  %v10664_v49 = vld [vmem:[#allocation45_spill] sm:$0xff] }
 0x135   :  { %v6960_v1 = vadd.f32 %v708_v58, %v706_v54  ;;  %v709_v48 = vmul.f32 %v5220_v56, %v5212_v52  ;;  %v5222_v2 = vpop.eup %5221  ;;  %v10662_v52 = vld [vmem:[#allocation43_spill] sm:$0xff]  ;;  %v10665_v54 = vld [vmem:[#allocation46_spill] sm:$0xff] }
 0x136   :  { %v707_v59 = vmul.f32 0.0, %v5222_v2  ;;  %v5224_v46 = vpop.eup %5223  ;;  %v10666_v56 = vld [vmem:[#allocation47_spill] sm:$0xff]  ;;  %v10669_v2 = vld [vmem:[#allocation50_spill] sm:$0xff] }
 0x137   :  { %5225 = vtanh.f32 %v6960_v1 }
 0x138   :  { %v6963_v51 = vadd.f32 %v709_v48, %v707_v59  ;;  %5227 = vrcp.f32 %v701_v62  ;;  %v10661_v59 = vld [vmem:[#allocation42_spill] sm:$0xff]  ;;  %v10668_v48 = vld [vmem:[#allocation49_spill] sm:$0xff]  ;;  %v10670_v62 = vld [vmem:[#allocation51_spill] sm:$0xff] }
 0x13a   :  { %5229 = vtanh.f32 %v6963_v51 }
 0x141   :  { %v5226_v55 = vpop.eup %5225 }
 0x142   :  { %v5228_v45 = vpop.eup %5227  ;;  %v714_v60 = vmul.f32 %v5226_v55, %v5224_v46  ;;  %v10671_v46 = vld [vmem:[#allocation52_spill] sm:$0xff]  ;;  %v10672_v55 = vld [vmem:[#allocation53_spill] sm:$0xff] }
 0x144   :  { %v5230_v39 = vpop.eup %5229 }
 0x145   :  { %v715_v61 = vmul.f32 %v5230_v39, %v5228_v45  ;;  %v10673_v45 = vld [vmem:[#allocation54_spill] sm:$0xff]  ;;  %v10674_v39 = vld [vmem:[#allocation55_spill] sm:$0xff] }
 0x147   :  { %v716_v58 = vpack.c.bf16 %v715_v61, %v714_v60  ;;  %v10675_v60 = vld [vmem:[#allocation56_spill] sm:$0xff] }
 0x148   :  { %v63_v61 = vld [vmem:[%s10150_s6] sm:$0xf] }
 0x149   :  { %1221 = vmatmul.mubr.bf16.vlgmr.msra.gmra.mrb[4].mxu0 %v716_v58  ;;  %1264 = vmatmul.mubr.bf16.vlgmr.msra.gmra.mrb[4].mxu1 %v716_v58 }
 0x14a   :  { %1334 = vmatpush1.bf16.msra.mxu0 %v6158_v3  ;;  %1377 = vmatpush1.bf16.msra.mxu1 %v6163_v4  ;;  %v10621_v3 = vld [vmem:[#allocation2_spill] sm:$0xff]  ;;  %v10622_v4 = vld [vmem:[#allocation3_spill] sm:$0xff] }
 0x14b   :  { %1335 = vmatprep.subr.bf16.mxu0 %v6169_v5  ;;  %1378 = vmatprep.subr.bf16.mxu1 %v6176_v6  ;;  %v10623_v5 = vld [vmem:[#allocation4_spill] sm:$0xff]  ;;  %v10624_v6 = vld [vmem:[#allocation5_spill] sm:$0xff] }
 0x14c   :  { %1365 = vmatprep.mubr.bf16.mxu0 %v10562_v57  ;;  %1408 = vmatprep.mubr.bf16.mxu1 %v10562_v57 }
 0x14e   :  { %1336 = vmatpush1.bf16.msra.mxu0 %v6181_v7  ;;  %1379 = vmatpush1.bf16.msra.mxu1 %v6187_v8  ;;  %v10625_v7 = vld [vmem:[#allocation6_spill] sm:$0xff]  ;;  %v10626_v8 = vld [vmem:[#allocation7_spill] sm:$0xff] }
 0x14f   :  { %1337 = vmatprep.subr.bf16.mxu0 %v6193_v9  ;;  %1380 = vmatprep.subr.bf16.mxu1 %v6198_v10  ;;  %v10627_v9 = vld [vmem:[#allocation8_spill] sm:$0xff]  ;;  %v10628_v10 = vld [vmem:[#allocation9_spill] sm:$0xff] }
 0x152   :  { %1338 = vmatpush1.bf16.msra.mxu0 %v6203_v11  ;;  %1381 = vmatpush1.bf16.msra.mxu1 %v6208_v12  ;;  %v10629_v11 = vld [vmem:[#allocation10_spill] sm:$0xff]  ;;  %v10630_v12 = vld [vmem:[#allocation11_spill] sm:$0xff] }
 0x153   :  { %1339 = vmatprep.subr.bf16.mxu0 %v6215_v13  ;;  %1382 = vmatprep.subr.bf16.mxu1 %v6222_v14  ;;  %v10631_v13 = vld [vmem:[#allocation12_spill] sm:$0xff]  ;;  %v10632_v14 = vld [vmem:[#allocation13_spill] sm:$0xff] }
 0x156   :  { %1340 = vmatpush1.bf16.msra.mxu0 %v6227_v15  ;;  %1383 = vmatpush1.bf16.msra.mxu1 %v6234_v16  ;;  %v10633_v15 = vld [vmem:[#allocation14_spill] sm:$0xff]  ;;  %v10634_v16 = vld [vmem:[#allocation15_spill] sm:$0xff] }
 0x157   :  { %1341 = vmatprep.subr.bf16.mxu0 %v6239_v17  ;;  %1384 = vmatprep.subr.bf16.mxu1 %v6246_v18  ;;  %v10635_v17 = vld [vmem:[#allocation16_spill] sm:$0xff]  ;;  %v10636_v18 = vld [vmem:[#allocation17_spill] sm:$0xff] }
 0x15a   :  { %1342 = vmatpush1.bf16.msra.mxu0 %v6251_v19  ;;  %1385 = vmatpush1.bf16.msra.mxu1 %v6256_v20  ;;  %v10637_v19 = vld [vmem:[#allocation18_spill] sm:$0xff]  ;;  %v10638_v20 = vld [vmem:[#allocation19_spill] sm:$0xff] }
 0x15b   :  { %1343 = vmatprep.subr.bf16.mxu0 %v6263_v21  ;;  %1386 = vmatprep.subr.bf16.mxu1 %v6270_v22  ;;  %v10639_v21 = vld [vmem:[#allocation20_spill] sm:$0xff]  ;;  %v5192_v22 = vld [vmem:[%s10146_s0 + $0x8] sm:$0xff]  }
 0x15e   :  { %1344 = vmatpush1.bf16.msra.mxu0 %v6275_v23  ;;  %1387 = vmatpush1.bf16.msra.mxu1 %v6282_v24  ;;  %v10640_v23 = vld [vmem:[#allocation21_spill] sm:$0xff]  ;;  %v10641_v24 = vld [vmem:[#allocation22_spill] sm:$0xff] }
 0x15f   :  { %1345 = vmatprep.subr.bf16.mxu0 %v6287_v25  ;;  %1388 = vmatprep.subr.bf16.mxu1 %v6294_v26  ;;  %v10642_v25 = vld [vmem:[#allocation23_spill] sm:$0xff]  ;;  %v10643_v26 = vld [vmem:[#allocation24_spill] sm:$0xff] }
 0x162   :  { %1346 = vmatpush1.bf16.msra.mxu0 %v6299_v27  ;;  %1389 = vmatpush1.bf16.msra.mxu1 %v6304_v28  ;;  %v10644_v27 = vld [vmem:[#allocation25_spill] sm:$0xff]  ;;  %v10645_v28 = vld [vmem:[#allocation26_spill] sm:$0xff] }
 0x163   :  { %1347 = vmatprep.subr.bf16.mxu0 %v6311_v29  ;;  %1390 = vmatprep.subr.bf16.mxu1 %v6318_v30  ;;  %v10646_v29 = vld [vmem:[#allocation27_spill] sm:$0xff]  ;;  %v10647_v30 = vld [vmem:[#allocation28_spill] sm:$0xff] }
 0x166   :  { %1348 = vmatpush1.bf16.msra.mxu0 %v6323_v31  ;;  %1391 = vmatpush1.bf16.msra.mxu1 %v6330_v32  ;;  %v10648_v31 = vld [vmem:[#allocation29_spill] sm:$0xff]  ;;  %v10649_v32 = vld [vmem:[#allocation30_spill] sm:$0xff] }
 0x167   :  { %1425 = vmatprep.subr.bf16.mxu0 %v6335_v33  ;;  %1468 = vmatprep.subr.bf16.mxu1 %v6342_v34  ;;  %v10650_v33 = vld [vmem:[#allocation31_spill] sm:$0xff]  ;;  %v10651_v34 = vld [vmem:[#allocation32_spill] sm:$0xff] }
 0x169   :  { %1366 = vmatmul.mubr.bf16.vlgmr.msra.gmra.mrb[8].mxu0 %v716_v58  ;;  %1409 = vmatmul.mubr.bf16.vlgmr.msra.gmra.mrb[8].mxu1 %v716_v58  ;;  %v10676_v58 = vsub.s32 0, %v6927_v63 }
 0x16a   :  { %1426 = vmatpush1.bf16.msra.mxu0 %v6347_v35  ;;  %1469 = vmatpush1.bf16.msra.mxu1 %v6352_v36  ;;  %v10652_v35 = vld [vmem:[#allocation33_spill] sm:$0xff]  ;;  %v10653_v36 = vld [vmem:[#allocation34_spill] sm:$0xff] }
 0x16b   :  { %1427 = vmatprep.subr.bf16.mxu0 %v6359_v37  ;;  %1470 = vmatprep.subr.bf16.mxu1 %v6366_v38  ;;  %v10654_v37 = vld [vmem:[#allocation35_spill] sm:$0xff]  ;;  %v10655_v38 = vld [vmem:[#allocation36_spill] sm:$0xff] }
 0x16c   :  { %1457 = vmatprep.mubr.bf16.mxu0 %v10562_v57  ;;  %1500 = vmatprep.mubr.bf16.mxu1 %v10562_v57 }
 0x16e   :  { %1428 = vmatpush1.bf16.msra.mxu0 %v6373_v40  ;;  %1471 = vmatpush1.bf16.msra.mxu1 %v6380_v41  ;;  %v10656_v40 = vld [vmem:[#allocation37_spill] sm:$0xff]  ;;  %v10657_v41 = vld [vmem:[#allocation38_spill] sm:$0xff] }
 0x16f   :  { %1429 = vmatprep.subr.bf16.mxu0 %v6385_v42  ;;  %1472 = vmatprep.subr.bf16.mxu1 %v6392_v43  ;;  %v10658_v42 = vld [vmem:[#allocation39_spill] sm:$0xff]  ;;  %v10659_v43 = vld [vmem:[#allocation40_spill] sm:$0xff] }
 0x172   :  { %1430 = vmatpush1.bf16.msra.mxu0 %v6399_v44  ;;  %1473 = vmatpush1.bf16.msra.mxu1 %v10621_v3  ;;  %v10660_v44 = vld [vmem:[#allocation41_spill] sm:$0xff]  ;;  %v7076_v3 = vrot.slane %v63_v61, %v10676_v58 }
 0x173   :  { %1431 = vmatprep.subr.bf16.mxu0 %v10622_v4  ;;  %1474 = vmatprep.subr.bf16.mxu1 %v10623_v5  ;;  %v10678_v4 = vsub.s32 1, %v6927_v63 }
 0x174   :  { %10677 = vst [vmem:[#allocation2_spill] sm:$0xff] %v7076_v3 }
 0x175   :  { %v7080_v5 = vrot.slane %v63_v61, %v10678_v4 }
 0x176   :  { %1432 = vmatpush1.bf16.msra.mxu0 %v10624_v6  ;;  %1475 = vmatpush1.bf16.msra.mxu1 %v10625_v7 }
 0x177   :  { %1433 = vmatprep.subr.bf16.mxu0 %v10626_v8  ;;  %1476 = vmatprep.subr.bf16.mxu1 %v10627_v9 }
 0x17a   :  { %1434 = vmatpush1.bf16.msra.mxu0 %v10628_v10  ;;  %1477 = vmatpush1.bf16.msra.mxu1 %v10629_v11 }
 0x17b   :  { %1435 = vmatprep.subr.bf16.mxu0 %v10630_v12  ;;  %1478 = vmatprep.subr.bf16.mxu1 %v10631_v13 }
 0x17e   :  { %1436 = vmatpush1.bf16.msra.mxu0 %v10632_v14  ;;  %1479 = vmatpush1.bf16.msra.mxu1 %v10633_v15 }
 0x17f   :  { %1437 = vmatprep.subr.bf16.mxu0 %v10634_v16  ;;  %1480 = vmatprep.subr.bf16.mxu1 %v10635_v17 }
 0x182   :  { %1438 = vmatpush1.bf16.msra.mxu0 %v10636_v18  ;;  %1481 = vmatpush1.bf16.msra.mxu1 %v10637_v19  ;;  %v10679_v19 = vsub.s32 3, %v6927_v63 }
 0x183   :  { %1439 = vmatprep.subr.bf16.mxu0 %v10638_v20  ;;  %1482 = vmatprep.subr.bf16.mxu1 %v10639_v21 }
 0x184   :  { %v7087_v20 = vrot.slane %v63_v61, %v10679_v19 }
 0x186   :  { %1440 = vmatpush1.bf16.msra.mxu0 %v10640_v23  ;;  %1483 = vmatpush1.bf16.msra.mxu1 %v10641_v24  ;;  %v10680_v24 = vsub.s32 2, %v6927_v63 }
 0x187   :  { %1569 = vmatprep.subr.bf16.mxu0 %v10642_v25  ;;  %1612 = vmatprep.subr.bf16.mxu1 %v10643_v26 }
 0x188   :  { %v7092_v25 = vrot.slane %v63_v61, %v10680_v24 }
 0x189   :  { %1458 = vmatmul.mubr.bf16.vlgmr.msra.gmra.mrb[8].mxu0 %v5192_v22  ;;  %1501 = vmatmul.mubr.bf16.vlgmr.msra.gmra.mrb[8].mxu1 %v5192_v22 }
 0x18a   :  { %1570 = vmatpush1.bf16.msra.mxu0 %v10644_v27  ;;  %1613 = vmatpush1.bf16.msra.mxu1 %v10645_v28 }
 0x18b   :  { %1571 = vmatprep.subr.bf16.mxu0 %v10646_v29  ;;  %1614 = vmatprep.subr.bf16.mxu1 %v10647_v30 }
 0x18c   :  { %1601 = vmatprep.mubr.bf16.mxu0 %v10562_v57  ;;  %1644 = vmatprep.mubr.bf16.mxu1 %v10562_v57 }
 0x18e   :  { %1572 = vmatpush1.bf16.msra.mxu0 %v10648_v31  ;;  %1615 = vmatpush1.bf16.msra.mxu1 %v10649_v32 }
 0x18f   :  { %1573 = vmatprep.subr.bf16.mxu0 %v10650_v33  ;;  %1616 = vmatprep.subr.bf16.mxu1 %v10651_v34 }
 0x192   :  { %1574 = vmatpush1.bf16.msra.mxu0 %v10652_v35  ;;  %1617 = vmatpush1.bf16.msra.mxu1 %v10653_v36 }
 0x193   :  { %1575 = vmatprep.subr.bf16.mxu0 %v10654_v37  ;;  %1618 = vmatprep.subr.bf16.mxu1 %v10655_v38 }
 0x196   :  { %1576 = vmatpush1.bf16.msra.mxu0 %v10656_v40  ;;  %1619 = vmatpush1.bf16.msra.mxu1 %v10657_v41 }
 0x197   :  { %1577 = vmatprep.subr.bf16.mxu0 %v10658_v42  ;;  %1620 = vmatprep.subr.bf16.mxu1 %v10659_v43 }
 0x19a   :  { %1578 = vmatpush1.bf16.msra.mxu0 %v10660_v44  ;;  %1621 = vmatpush1.bf16.msra.mxu1 %v10661_v59 }
 0x19b   :  { %1579 = vmatprep.subr.bf16.mxu0 %v10662_v52  ;;  %1622 = vmatprep.subr.bf16.mxu1 %v10663_v53 }
 0x19e   :  { %1580 = vmatpush1.bf16.msra.mxu0 %v10664_v49  ;;  %1623 = vmatpush1.bf16.msra.mxu1 %v10665_v54 }
 0x19f   :  { %1581 = vmatprep.subr.bf16.mxu0 %v10666_v56  ;;  %1624 = vmatprep.subr.bf16.mxu1 %v10667_v50 }
 0x1a2   :  { %1582 = vmatpush1.bf16.msra.mxu0 %v10668_v48  ;;  %1625 = vmatpush1.bf16.msra.mxu1 %v10669_v2 }
 0x1a3   :  { %1583 = vmatprep.subr.bf16.mxu0 %v10670_v62  ;;  %1626 = vmatprep.subr.bf16.mxu1 %v10671_v46 }
 0x1a6   :  { %1584 = vmatpush1.bf16.msra.mxu0 %v10672_v55  ;;  %1627 = vmatpush1.bf16.msra.mxu1 %v10673_v45 }
 0x1a7   :  { %1655 = vmatprep.subr.bf16.mxu0 %v10674_v39  ;;  %1698 = vmatprep.subr.bf16.mxu1 %v10675_v60 }
 0x21c   :  { %v1222_v6 = vpop.f32.mrb[4].mxu0  ;;  %v1265_v7 = vpop.f32.mrb[4].mxu1 }
 0x21d   :  { %v1274_v8 = vadd.f32 %v1222_v6, %v7076_v3  ;;  %v1224_v9 = vpop.f32.mrb[5].mxu0  ;;  %v1267_v10 = vpop.f32.mrb[5].mxu1  ;;  %v1276_v27 = vadd.f32 %v1265_v7, %v7092_v25  ;;  %v10681_v6 = vld [vmem:[#allocation57_spill] sm:$0xff]  ;;  %v10682_v7 = vld [vmem:[#allocation58_spill] sm:$0xff] }
 0x21e   :  { %v1275_v11 = vadd.f32 %v1224_v9, %v7080_v5  ;;  %v1226_v12 = vpop.f32.mrb[6].mxu0  ;;  %v1269_v13 = vpop.f32.mrb[6].mxu1  ;;  %v1277_v26 = vadd.f32 %v1267_v10, %v7087_v20  ;;  %v10684_v9 = vld [vmem:[#allocation60_spill] sm:$0xff]  ;;  %v10685_v10 = vld [vmem:[#allocation61_spill] sm:$0xff] }
 0x21f   :  { %v4754_v14 = vmul.f32 -1.442695, %v1274_v8  ;;  %v1278_v15 = vadd.f32 %v1226_v12, %v7076_v3  ;;  %v1228_v16 = vpop.f32.mrb[7].mxu0  ;;  %v1271_v17 = vpop.f32.mrb[7].mxu1  ;;  %v1280_v30 = vadd.f32 %v1269_v13, %v7092_v25  ;;  %v10683_v8 = vld [vmem:[#allocation59_spill] sm:$0xff]  ;;  %v10688_v13 = vld [vmem:[#allocation64_spill] sm:$0xff] }
 0x220   :  { %v4756_v18 = vmul.f32 -1.442695, %v1275_v11  ;;  %v1279_v21 = vadd.f32 %v1228_v16, %v7080_v5  ;;  %v4758_v28 = vmul.f32 -1.442695, %v1277_v26  ;;  %v1281_v29 = vadd.f32 %v1271_v17, %v7087_v20  ;;  %v10686_v11 = vld [vmem:[#allocation62_spill] sm:$0xff]  ;;  %v10687_v12 = vld [vmem:[#allocation63_spill] sm:$0xff] }
 0x221   :  { %5231 = vpow2.f32 %v4754_v14  ;;  %v4755_v22 = vmul.f32 -1.442695, %v1278_v15  ;;  %v10689_v14 = vld [vmem:[#allocation65_spill] sm:$0xff]  ;;  %v10690_v15 = vld [vmem:[#allocation66_spill] sm:$0xff]  ;;  %v10691_v16 = vld [vmem:[#allocation67_spill] sm:$0xff] }
 0x222   :  { %5233 = vpow2.f32 %v4756_v18  ;;  %v4757_v23 = vmul.f32 -1.442695, %v1279_v21  ;;  %v4759_v34 = vmul.f32 -1.442695, %v1281_v29  ;;  %v10692_v17 = vld [vmem:[#allocation68_spill] sm:$0xff]  ;;  %v10693_v21 = vld [vmem:[#allocation87_spill] sm:$0xff] }
 0x223   :  { %5235 = vpow2.f32 %v4755_v22  ;;  %v10694_v29 = vld [vmem:[#allocation69_spill] sm:$0xff] }
 0x224   :  { %5237 = vpow2.f32 %v4757_v23 }
 0x225   :  { %5239 = vtanh.f32 %v1276_v27 }
 0x226   :  { %5241 = vpow2.f32 %v4758_v28 }
 0x227   :  { %5243 = vtanh.f32 %v1280_v30  ;;  %v10695_v30 = vld [vmem:[#allocation70_spill] sm:$0xff] }
 0x22b   :  { %v5232_v31 = vpop.eup %5231 }
 0x22c   :  { %v5234_v32 = vpop.eup %5233  ;;  %v1288_v33 = vadd.f32 1.0, %v5232_v31 }
 0x22d   :  { %v1300_v63 = vadd.f32 1.0, %v5234_v32  ;;  %v5236_v35 = vpop.eup %5235 }
 0x22e   :  { %5245 = vrcp.f32 %v1288_v33  ;;  %v1289_v36 = vadd.f32 1.0, %v5236_v35  ;;  %v5238_v37 = vpop.eup %5237  ;;  %v10697_v35 = vld [vmem:[#allocation72_spill] sm:$0xff] }
 0x22f   :  { %5247 = vrcp.f32 %v1300_v63  ;;  %v1301_v38 = vadd.f32 1.0, %v5238_v37  ;;  %v5240_v40 = vpop.eup %5239  ;;  %v10696_v63 = vld [vmem:[#allocation71_spill] sm:$0xff] }
 0x230   :  { %5249 = vpow2.f32 %v4759_v34  ;;  %v5242_v41 = vpop.eup %5241 }
 0x231   :  { %5251 = vrcp.f32 %v1289_v36  ;;  %v5244_v42 = vpop.eup %5243  ;;  %v1314_v54 = vadd.f32 1.0, %v5242_v41  ;;  %v10698_v41 = vld [vmem:[#allocation73_spill] sm:$0xff] }
 0x232   :  { %5253 = vrcp.f32 %v1301_v38 }
 0x233   :  { %5255 = vrcp.f32 %v1314_v54 }
 0x238   :  { %v5246_v43 = vpop.eup %5245 }
 0x239   :  { %v5248_v44 = vpop.eup %5247  ;;  %v1322_v59 = vmul.f32 %v5246_v43, %v5240_v40  ;;  %v10700_v43 = vld [vmem:[#allocation75_spill] sm:$0xff] }
 0x23a   :  { %v5250_v52 = vpop.eup %5249  ;;  %v1320_v53 = vmul.f32 0.0, %v5248_v44  ;;  %v10701_v44 = vld [vmem:[#allocation76_spill] sm:$0xff] }
 0x23b   :  { %v5252_v49 = vpop.eup %5251  ;;  %v1315_v2 = vadd.f32 1.0, %v5250_v52  ;;  %v10702_v52 = vld [vmem:[#allocation77_spill] sm:$0xff] }
 0x23c   :  { %v7098_v56 = vadd.f32 %v1322_v59, %v1320_v53  ;;  %v1323_v50 = vmul.f32 %v5252_v49, %v5244_v42  ;;  %v5254_v48 = vpop.eup %5253  ;;  %v10699_v42 = vld [vmem:[#allocation74_spill] sm:$0xff]  ;;  %v10704_v49 = vld [vmem:[#allocation89_spill] sm:$0xff] }
 0x23d   :  { %v1321_v62 = vmul.f32 0.0, %v5254_v48  ;;  %v5256_v55 = vpop.eup %5255  ;;  %v10703_v53 = vld [vmem:[#allocation78_spill] sm:$0xff]  ;;  %v10706_v48 = vld [vmem:[#allocation80_spill] sm:$0xff] }
 0x23e   :  { %5257 = vtanh.f32 %v7098_v56 }
 0x23f   :  { %v7101_v46 = vadd.f32 %v1323_v50, %v1321_v62  ;;  %5259 = vrcp.f32 %v1315_v2  ;;  %v10705_v50 = vld [vmem:[#allocation79_spill] sm:$0xff] }
 0x241   :  { %5261 = vtanh.f32 %v7101_v46 }
 0x248   :  { %v5258_v45 = vpop.eup %5257 }
 0x249   :  { %v5260_v39 = vpop.eup %5259  ;;  %v1328_v61 = vmul.f32 %v5258_v45, %v5256_v55  ;;  %v10707_v45 = vld [vmem:[#allocation81_spill] sm:$0xff] }
 0x24b   :  { %v5262_v60 = vpop.eup %5261 }
 0x24c   :  { %v1329_v58 = vmul.f32 %v5262_v60, %v5260_v39  ;;  %v10708_v39 = vld [vmem:[#allocation82_spill] sm:$0xff] }
 0x24e   :  { %v1568_v4 = vpack.c.bf16 %v1329_v58, %v1328_v61  ;;  %v10709_v61 = vld [vmem:[#allocation83_spill] sm:$0xff]  ;;  %v10710_v58 = vld [vmem:[#allocation84_spill] sm:$0xff] }
 0x250   :  { %1602 = vmatmul.mubr.bf16.vlgmr.msra.gmra.mrb[12].mxu0 %v1568_v4  ;;  %1645 = vmatmul.mubr.bf16.vlgmr.msra.gmra.mrb[12].mxu1 %v1568_v4 }
 0x251   :  { %1656 = vmatpush1.bf16.msra.mxu0 %v10681_v6  ;;  %1699 = vmatpush1.bf16.msra.mxu1 %v10682_v7 }
 0x252   :  { %1657 = vmatprep.subr.bf16.mxu0 %v10683_v8  ;;  %1700 = vmatprep.subr.bf16.mxu1 %v10684_v9 }
 0x253   :  { %1687 = vmatprep.mubr.bf16.mxu0 %v10562_v57  ;;  %1730 = vmatprep.mubr.bf16.mxu1 %v10562_v57 }
 0x255   :  { %1658 = vmatpush1.bf16.msra.mxu0 %v10685_v10  ;;  %1701 = vmatpush1.bf16.msra.mxu1 %v10686_v11  ;;  %v10711_v10 = vld [vmem:[#allocation85_spill] sm:$0xff]  ;;  %v10712_v11 = vld [vmem:[#allocation86_spill] sm:$0xff] }
 0x256   :  { %1659 = vmatprep.subr.bf16.mxu0 %v10687_v12  ;;  %1702 = vmatprep.subr.bf16.mxu1 %v10688_v13  ;;  %v7147_v13 = vld [vmem:[%s10144_s3 + $0x4] ss:$16 sps:$4 sm:$0xff]  }
 0x259   :  { %1660 = vmatpush1.bf16.msra.mxu0 %v10689_v14  ;;  %1703 = vmatpush1.bf16.msra.mxu1 %v10690_v15  ;;  %v7153_v14 = vld [vmem:[%s10144_s3 + $0xc] ss:$16 sps:$4 sm:$0xff]  }
 0x25a   :  { %1661 = vmatprep.subr.bf16.mxu0 %v10691_v16  ;;  %1704 = vmatprep.subr.bf16.mxu1 %v10692_v17 }
 0x25c   :  { %v1459_v18 = vpop.f32.mrb[8].mxu0  ;;  %v1502_v19 = vpop.f32.mrb[8].mxu1 }
 0x25d   :  { %v1511_v22 = vadd.f32 %v1459_v18, %v10693_v21  ;;  %v1461_v23 = vpop.f32.mrb[9].mxu0  ;;  %v1504_v24 = vpop.f32.mrb[9].mxu1  ;;  %1662 = vmatpush1.bf16.msra.mxu0 %v10694_v29  ;;  %1705 = vmatpush1.bf16.msra.mxu1 %v10695_v30  ;;  %v1513_v54 = vadd.f32 %v1502_v19, %v10704_v49 }
 0x25e   :  { %v1512_v26 = vadd.f32 %v1461_v23, %v6940_v0  ;;  %v1463_v27 = vpop.f32.mrb[10].mxu0  ;;  %v1506_v28 = vpop.f32.mrb[10].mxu1  ;;  %1663 = vmatprep.subr.bf16.mxu0 %v10696_v63  ;;  %1706 = vmatprep.subr.bf16.mxu1 %v10697_v35  ;;  %v1514_v59 = vadd.f32 %v1504_v24, %v6949_v47 }
 0x25f   :  { %v4763_v31 = vmul.f32 -1.442695, %v1511_v22  ;;  %v1515_v32 = vadd.f32 %v1463_v27, %v10693_v21  ;;  %v1465_v33 = vpop.f32.mrb[11].mxu0  ;;  %v1508_v34 = vpop.f32.mrb[11].mxu1  ;;  %v1517_v55 = vadd.f32 %v1506_v28, %v10704_v49 }
 0x260   :  { %v4765_v36 = vmul.f32 -1.442695, %v1512_v26  ;;  %v1516_v37 = vadd.f32 %v1465_v33, %v6940_v0  ;;  %v4767_v2 = vmul.f32 -1.442695, %v1514_v59  ;;  %v1518_v62 = vadd.f32 %v1508_v34, %v6949_v47  ;;  %v7197_v59 = vld [vmem:[%s10144_s3 + $0x20] ss:$16 sps:$4 sm:$0xff]  }
 0x261   :  { %5263 = vpow2.f32 %v4763_v31  ;;  %v4764_v38 = vmul.f32 -1.442695, %v1515_v32  ;;  %1664 = vmatpush1.bf16.msra.mxu0 %v10698_v41  ;;  %1707 = vmatpush1.bf16.msra.mxu1 %v10699_v42  ;;  %v7177_v42 = vld [vmem:[%s10144_s3 + $0x8] ss:$16 sps:$4 sm:$0xff]  }
 0x262   :  { %5265 = vpow2.f32 %v4765_v36  ;;  %v4766_v40 = vmul.f32 -1.442695, %v1516_v37  ;;  %1665 = vmatprep.subr.bf16.mxu0 %v10700_v43  ;;  %1708 = vmatprep.subr.bf16.mxu1 %v10701_v44  ;;  %v4768_v7 = vmul.f32 -1.442695, %v1518_v62  ;;  %v7183_v43 = vld [vmem:[%s10144_s3 + $0x24] ss:$16 sps:$4 sm:$0xff]  }
 0x263   :  { %5267 = vpow2.f32 %v4764_v38  ;;  %v7189_v44 = vld [vmem:[%s10144_s3 + $0x2c] ss:$16 sps:$4 sm:$0xff]  }
 0x264   :  { %5269 = vpow2.f32 %v4766_v40  ;;  %v7239_v62 = vld [vmem:[%s10144_s3 + $0x6c] ss:$16 sps:$4 sm:$0xff]  }
 0x265   :  { %1666 = vmatpush1.bf16.msra.mxu0 %v10702_v52  ;;  %1709 = vmatpush1.bf16.msra.mxu1 %v10703_v53  ;;  %5271 = vtanh.f32 %v1513_v54  ;;  %v7203_v52 = vld [vmem:[%s10144_s3 + $0x28] ss:$16 sps:$4 sm:$0xff]   ;;  %v7209_v53 = vld [vmem:[%s10144_s3 + $0x44] ss:$16 sps:$4 sm:$0xff]   ;;  %v7215_v54 = vld [vmem:[%s10144_s3 + $0x4c] ss:$16 sps:$4 sm:$0xff]  }
 0x266   :  { %1667 = vmatprep.subr.bf16.mxu0 %v10705_v50  ;;  %1710 = vmatprep.subr.bf16.mxu1 %v10706_v48  ;;  %5273 = vpow2.f32 %v4767_v2  ;;  %v7221_v50 = vld [vmem:[%s10144_s3 + $0x40] ss:$16 sps:$4 sm:$0xff]   ;;  %v7227_v48 = vld [vmem:[%s10144_s3 + $0x48] ss:$16 sps:$4 sm:$0xff]   ;;  %v7233_v2 = vld [vmem:[%s10144_s3 + $0x64] ss:$16 sps:$4 sm:$0xff]  }
 0x267   :  { %5275 = vtanh.f32 %v1517_v55  ;;  %v7245_v55 = vld [vmem:[%s10144_s3 + $0x60] ss:$16 sps:$4 sm:$0xff]  }
 0x269   :  { %1668 = vmatpush1.bf16.msra.mxu0 %v10707_v45  ;;  %1711 = vmatpush1.bf16.msra.mxu1 %v10708_v39  ;;  %v7251_v45 = vld [vmem:[%s10144_s3 + $0x68] ss:$16 sps:$4 sm:$0xff]   ;;  %v7257_v39 = vld [vmem:[%s10144_s3 + $0x84] ss:$16 sps:$4 sm:$0xff]  }
 0x26a   :  { %1669 = vmatprep.subr.bf16.mxu0 %v10709_v61  ;;  %1712 = vmatprep.subr.bf16.mxu1 %v10710_v58  ;;  %v7269_v61 = vld [vmem:[%s10144_s3 + $0x80] ss:$16 sps:$4 sm:$0xff]   ;;  %v7275_v58 = vld [vmem:[%s10144_s3 + $0x88] ss:$16 sps:$4 sm:$0xff]  }
 0x26b   :  { %v5264_v60 = vpop.eup %5263 }
 0x26c   :  { %v5266_v4 = vpop.eup %5265  ;;  %v1525_v6 = vadd.f32 1.0, %v5264_v60  ;;  %v7263_v60 = vld [vmem:[%s10144_s3 + $0x8c] ss:$16 sps:$4 sm:$0xff]  }
 0x26d   :  { %v1537_v8 = vadd.f32 1.0, %v5266_v4  ;;  %v5268_v9 = vpop.eup %5267  ;;  %1670 = vmatpush1.bf16.msra.mxu0 %v10711_v10  ;;  %1713 = vmatpush1.bf16.msra.mxu1 %v10712_v11  ;;  %v7281_v4 = vld [vmem:[%s10144_s3 + $0xa4] ss:$16 sps:$4 sm:$0xff]   ;;  %v7311_v10 = vld [vmem:[%s10144_s3 + $0xcc] ss:$16 sps:$4 sm:$0xff]  }
 0x26e   :  { %5277 = vrcp.f32 %v1525_v6  ;;  %v1526_v12 = vadd.f32 1.0, %v5268_v9  ;;  %1800 = vmatprep.subr.bf16.mxu0 %v7147_v13  ;;  %1843 = vmatprep.subr.bf16.mxu1 %v7153_v14  ;;  %v5270_v15 = vpop.eup %5269  ;;  %v7287_v6 = vld [vmem:[%s10144_s3 + $0xac] ss:$16 sps:$4 sm:$0xff]   ;;  %v7305_v9 = vld [vmem:[%s10144_s3 + $0xc4] ss:$16 sps:$4 sm:$0xff]  }
 0x26f   :  { %5279 = vrcp.f32 %v1537_v8  ;;  %v1538_v16 = vadd.f32 1.0, %v5270_v15  ;;  %v5272_v17 = vpop.eup %5271  ;;  %v7299_v8 = vld [vmem:[%s10144_s3 + $0xa8] ss:$16 sps:$4 sm:$0xff]   ;;  %v7317_v11 = vld [vmem:[%s10144_s3 + $0xc0] ss:$16 sps:$4 sm:$0xff]  }
 0x270   :  { %5281 = vpow2.f32 %v4768_v7  ;;  %v5274_v18 = vpop.eup %5273  ;;  %v7293_v7 = vld [vmem:[%s10144_s3 + $0xa0] ss:$16 sps:$4 sm:$0xff]   ;;  %v7329_v15 = vld [vmem:[%s10144_s3 + $0xe4] ss:$16 sps:$4 sm:$0xff]  }
 0x271   :  { %5283 = vrcp.f32 %v1526_v12  ;;  %v5276_v19 = vpop.eup %5275  ;;  %v1551_v29 = vadd.f32 1.0, %v5274_v18  ;;  %v7323_v12 = vld [vmem:[%s10144_s3 + $0xc8] ss:$16 sps:$4 sm:$0xff]  }
 0x272   :  { %5285 = vrcp.f32 %v1538_v16  ;;  %v7335_v16 = vld [vmem:[%s10144_s3 + $0xec] ss:$16 sps:$4 sm:$0xff]   ;;  %v7347_v18 = vld [vmem:[%s10144_s3 + $0xe8] ss:$16 sps:$4 sm:$0xff]  }
 0x273   :  { %5287 = vrcp.f32 %v1551_v29  ;;  %v7399_v29 = vld [vmem:[%s10145_s1 + $0x28] ss:$16 sps:$4 sm:$0xff]  }
 0x274   :  { %10719 = vst [vmem:[#allocation9_spill] sm:$0xff] %v7399_v29 }
 0x278   :  { %v5278_v22 = vpop.eup %5277 }
 0x279   :  { %v5280_v23 = vpop.eup %5279  ;;  %v1559_v24 = vmul.f32 %v5278_v22, %v5272_v17  ;;  %v7341_v17 = vld [vmem:[%s10144_s3 + $0xe0] ss:$16 sps:$4 sm:$0xff]   ;;  %v7359_v22 = vld [vmem:[%s10145_s1 + $0xc] ss:$16 sps:$4 sm:$0xff]  }
 0x27a   :  { %v5282_v26 = vpop.eup %5281  ;;  %v1557_v27 = vmul.f32 %v5280_v23, %v6960_v1  ;;  %10713 = vst [vmem:[#allocation3_spill] sm:$0xff] %v7359_v22  ;;  %v7367_v23 = vld [vmem:[%s10145_s1] ss:$16 sps:$4 sm:$0xff]  }
 0x27b   :  { %v5284_v28 = vpop.eup %5283  ;;  %v1552_v33 = vadd.f32 1.0, %v5282_v26  ;;  %10714 = vst [vmem:[#allocation4_spill] sm:$0xff] %v7367_v23  ;;  %v7379_v26 = vld [vmem:[%s10145_s1 + $0x24] ss:$16 sps:$4 sm:$0xff]  }
 0x27c   :  { %v7157_v30 = vadd.f32 %v1559_v24, %v1557_v27  ;;  %v1560_v31 = vmul.f32 %v5284_v28, %v5276_v19  ;;  %v5286_v32 = vpop.eup %5285  ;;  %v7353_v19 = vld [vmem:[%s10145_s1 + $0x4] ss:$16 sps:$4 sm:$0xff]   ;;  %v7373_v24 = vld [vmem:[%s10145_s1 + $0x8] ss:$16 sps:$4 sm:$0xff]   ;;  %10716 = vst [vmem:[#allocation6_spill] sm:$0xff] %v7379_v26 }
 0x27d   :  { %v1558_v34 = vmul.f32 %v5286_v32, %v6963_v51  ;;  %v5288_v35 = vpop.eup %5287  ;;  %v7171_v51 = vld [vmem:[%s10144_s3] ss:$16 sps:$4 sm:$0xff]   ;;  %10715 = vst [vmem:[#allocation5_spill] sm:$0xff] %v7373_v24  ;;  %v7385_v27 = vld [vmem:[%s10145_s1 + $0x2c] ss:$16 sps:$4 sm:$0xff]  }
 0x27e   :  { %5289 = vtanh.f32 %v7157_v30  ;;  %10717 = vst [vmem:[#allocation7_spill] sm:$0xff] %v7385_v27  ;;  %v7393_v28 = vld [vmem:[%s10145_s1 + $0x20] ss:$16 sps:$4 sm:$0xff]   ;;  %v7411_v32 = vld [vmem:[%s10145_s1 + $0x4c] ss:$16 sps:$4 sm:$0xff]  }
 0x27f   :  { %v7161_v63 = vadd.f32 %v1560_v31, %v1558_v34  ;;  %5291 = vrcp.f32 %v1552_v33  ;;  %10718 = vst [vmem:[#allocation8_spill] sm:$0xff] %v7393_v28  ;;  %v7405_v31 = vld [vmem:[%s10145_s1 + $0x44] ss:$16 sps:$4 sm:$0xff]   ;;  %10721 = vst [vmem:[#allocation11_spill] sm:$0xff] %v7411_v32  ;;  %v7417_v33 = vld [vmem:[%s10145_s1 + $0x40] ss:$16 sps:$4 sm:$0xff]  }
 0x280   :  { %10720 = vst [vmem:[#allocation10_spill] sm:$0xff] %v7405_v31  ;;  %10722 = vst [vmem:[#allocation12_spill] sm:$0xff] %v7417_v33  ;;  %v7423_v34 = vld [vmem:[%s10145_s1 + $0x48] ss:$16 sps:$4 sm:$0xff]  }
 0x281   :  { %5293 = vtanh.f32 %v7161_v63  ;;  %10723 = vst [vmem:[#allocation13_spill] sm:$0xff] %v7423_v34 }
 0x288   :  { %v5290_v36 = vpop.eup %5289 }
 0x289   :  { %v5292_v1 = vpop.eup %5291  ;;  %v1565_v38 = vmul.f32 %v5290_v36, %v5288_v35  ;;  %v7429_v35 = vld [vmem:[%s10145_s1 + $0x64] ss:$16 sps:$4 sm:$0xff]   ;;  %v7435_v36 = vld [vmem:[%s10145_s1 + $0x6c] ss:$16 sps:$4 sm:$0xff]  }
 0x28a   :  { %10724 = vst [vmem:[#allocation14_spill] sm:$0xff] %v7429_v35  ;;  %10725 = vst [vmem:[#allocation15_spill] sm:$0xff] %v7435_v36 }
 0x28b   :  { %v5294_v37 = vpop.eup %5293 }
 0x28c   :  { %v1566_v40 = vmul.f32 %v5294_v37, %v5292_v1  ;;  %v7441_v1 = vld [vmem:[%s10145_s1 + $0x60] ss:$16 sps:$4 sm:$0xff]   ;;  %v7447_v37 = vld [vmem:[%s10145_s1 + $0x68] ss:$16 sps:$4 sm:$0xff]  }
 0x28d   :  { %10726 = vst [vmem:[#allocation16_spill] sm:$0xff] %v7441_v1  ;;  %10727 = vst [vmem:[#allocation17_spill] sm:$0xff] %v7447_v37 }
 0x28e   :  { %v7164_v41 = vpack.c.bf16 %v1566_v40, %v1565_v38  ;;  %v7453_v38 = vld [vmem:[%s10145_s1 + $0x84] ss:$16 sps:$4 sm:$0xff]   ;;  %v7459_v40 = vld [vmem:[%s10145_s1 + $0x8c] ss:$16 sps:$4 sm:$0xff]  }
 0x28f   :  { %10728 = vst [vmem:[#allocation18_spill] sm:$0xff] %v7453_v38  ;;  %10729 = vst [vmem:[#allocation19_spill] sm:$0xff] %v7459_v40 }
 0x290   :  { %1688 = vmatmul.mubr.bf16.vlgmr.msra.gmra.mrb[12].mxu0 %v7164_v41  ;;  %1731 = vmatmul.mubr.bf16.vlgmr.msra.gmra.mrb[12].mxu1 %v7164_v41 }
 0x291   :  { %1801 = vmatpush1.bf16.msra.mxu0 %v7171_v51  ;;  %1844 = vmatpush1.bf16.msra.mxu1 %v7177_v42 }
 0x292   :  { %1802 = vmatprep.subr.bf16.mxu0 %v7183_v43  ;;  %1845 = vmatprep.subr.bf16.mxu1 %v7189_v44 }
 0x293   :  { %1832 = vmatprep.mubr.bf16.mxu0 %v10562_v57  ;;  %1875 = vmatprep.mubr.bf16.mxu1 %v10562_v57 }
 0x295   :  { %1803 = vmatpush1.bf16.msra.mxu0 %v7197_v59  ;;  %1846 = vmatpush1.bf16.msra.mxu1 %v7203_v52 }
 0x296   :  { %1804 = vmatprep.subr.bf16.mxu0 %v7209_v53  ;;  %1847 = vmatprep.subr.bf16.mxu1 %v7215_v54 }
 0x299   :  { %1805 = vmatpush1.bf16.msra.mxu0 %v7221_v50  ;;  %1848 = vmatpush1.bf16.msra.mxu1 %v7227_v48 }
 0x29a   :  { %1806 = vmatprep.subr.bf16.mxu0 %v7233_v2  ;;  %1849 = vmatprep.subr.bf16.mxu1 %v7239_v62 }
 0x29d   :  { %1807 = vmatpush1.bf16.msra.mxu0 %v7245_v55  ;;  %1850 = vmatpush1.bf16.msra.mxu1 %v7251_v45 }
 0x29e   :  { %1808 = vmatprep.subr.bf16.mxu0 %v7257_v39  ;;  %1851 = vmatprep.subr.bf16.mxu1 %v7263_v60 }
 0x2a1   :  { %1809 = vmatpush1.bf16.msra.mxu0 %v7269_v61  ;;  %1852 = vmatpush1.bf16.msra.mxu1 %v7275_v58 }
 0x2a2   :  { %1810 = vmatprep.subr.bf16.mxu0 %v7281_v4  ;;  %1853 = vmatprep.subr.bf16.mxu1 %v7287_v6 }
 0x2a5   :  { %1811 = vmatpush1.bf16.msra.mxu0 %v7293_v7  ;;  %1854 = vmatpush1.bf16.msra.mxu1 %v7299_v8 }
 0x2a6   :  { %1812 = vmatprep.subr.bf16.mxu0 %v7305_v9  ;;  %1855 = vmatprep.subr.bf16.mxu1 %v7311_v10 }
 0x2a9   :  { %1813 = vmatpush1.bf16.msra.mxu0 %v7317_v11  ;;  %1856 = vmatpush1.bf16.msra.mxu1 %v7323_v12 }
 0x2aa   :  { %1814 = vmatprep.subr.bf16.mxu0 %v7329_v15  ;;  %1857 = vmatprep.subr.bf16.mxu1 %v7335_v16 }
 0x2ad   :  { %1815 = vmatpush1.bf16.msra.mxu0 %v7341_v17  ;;  %1858 = vmatpush1.bf16.msra.mxu1 %v7347_v18 }
 0x2ae   :  { %1892 = vmatprep.subr.bf16.mxu0 %v7353_v19  ;;  %1935 = vmatprep.subr.bf16.mxu1 %v7359_v22 }
 0x2b0   :  { %1833 = vmatmul.mubr.bf16.vlgmr.msra.gmra.mrb[16].mxu0 %v7164_v41  ;;  %1876 = vmatmul.mubr.bf16.vlgmr.msra.gmra.mrb[16].mxu1 %v7164_v41  ;;  %v7465_v41 = vld [vmem:[%s10145_s1 + $0x80] ss:$16 sps:$4 sm:$0xff]  }
 0x2b1   :  { %1893 = vmatpush1.bf16.msra.mxu0 %v7367_v23  ;;  %1936 = vmatpush1.bf16.msra.mxu1 %v7373_v24  ;;  %10730 = vst [vmem:[#allocation20_spill] sm:$0xff] %v7465_v41 }
 0x2b2   :  { %1894 = vmatprep.subr.bf16.mxu0 %v7379_v26  ;;  %1937 = vmatprep.subr.bf16.mxu1 %v7385_v27 }
 0x2b3   :  { %1924 = vmatprep.mubr.bf16.mxu0 %v10562_v57  ;;  %1967 = vmatprep.mubr.bf16.mxu1 %v10562_v57 }
 0x2b5   :  { %1895 = vmatpush1.bf16.msra.mxu0 %v7393_v28  ;;  %1938 = vmatpush1.bf16.msra.mxu1 %v7399_v29 }
 0x2b6   :  { %1896 = vmatprep.subr.bf16.mxu0 %v7405_v31  ;;  %1939 = vmatprep.subr.bf16.mxu1 %v7411_v32 }
 0x2b9   :  { %1897 = vmatpush1.bf16.msra.mxu0 %v7417_v33  ;;  %1940 = vmatpush1.bf16.msra.mxu1 %v7423_v34 }
 0x2ba   :  { %1898 = vmatprep.subr.bf16.mxu0 %v7429_v35  ;;  %1941 = vmatprep.subr.bf16.mxu1 %v7435_v36 }
 0x2bd   :  { %1899 = vmatpush1.bf16.msra.mxu0 %v7441_v1  ;;  %1942 = vmatpush1.bf16.msra.mxu1 %v7447_v37  ;;  %v7471_v37 = vld [vmem:[%s10145_s1 + $0x88] ss:$16 sps:$4 sm:$0xff]   ;;  %v7558_v1 = vld [vmem:[%s10147_s4 + $0xc] ss:$16 sps:$4 sm:$0xff]  }
 0x2be   :  { %1900 = vmatprep.subr.bf16.mxu0 %v7453_v38  ;;  %1943 = vmatprep.subr.bf16.mxu1 %v7459_v40  ;;  %10731 = vst [vmem:[#allocation21_spill] sm:$0xff] %v7471_v37  ;;  %v7477_v38 = vld [vmem:[%s10145_s1 + $0xa4] ss:$16 sps:$4 sm:$0xff]   ;;  %v7483_v40 = vld [vmem:[%s10145_s1 + $0xac] ss:$16 sps:$4 sm:$0xff]   ;;  %10745 = vst [vmem:[#allocation35_spill] sm:$0xff] %v7558_v1 }
 0x2bf   :  { %10732 = vst [vmem:[#allocation22_spill] sm:$0xff] %v7477_v38  ;;  %10733 = vst [vmem:[#allocation23_spill] sm:$0xff] %v7483_v40 }
 0x2c1   :  { %1901 = vmatpush1.bf16.msra.mxu0 %v7465_v41  ;;  %1944 = vmatpush1.bf16.msra.mxu1 %v7471_v37  ;;  %v7489_v41 = vld [vmem:[%s10145_s1 + $0xa0] ss:$16 sps:$4 sm:$0xff]   ;;  %v7495_v37 = vld [vmem:[%s10145_s1 + $0xa8] ss:$16 sps:$4 sm:$0xff]  }
 0x2c2   :  { %1902 = vmatprep.subr.bf16.mxu0 %v7477_v38  ;;  %1945 = vmatprep.subr.bf16.mxu1 %v7483_v40  ;;  %10734 = vst [vmem:[#allocation24_spill] sm:$0xff] %v7489_v41  ;;  %10735 = vst [vmem:[#allocation25_spill] sm:$0xff] %v7495_v37  ;;  %v7501_v38 = vld [vmem:[%s10145_s1 + $0xc4] ss:$16 sps:$4 sm:$0xff]   ;;  %v7507_v40 = vld [vmem:[%s10145_s1 + $0xcc] ss:$16 sps:$4 sm:$0xff]  }
 0x2c3   :  { %10736 = vst [vmem:[#allocation26_spill] sm:$0xff] %v7501_v38  ;;  %10737 = vst [vmem:[#allocation27_spill] sm:$0xff] %v7507_v40 }
 0x2c5   :  { %1903 = vmatpush1.bf16.msra.mxu0 %v7489_v41  ;;  %1946 = vmatpush1.bf16.msra.mxu1 %v7495_v37  ;;  %v7513_v41 = vld [vmem:[%s10145_s1 + $0xc0] ss:$16 sps:$4 sm:$0xff]   ;;  %v7519_v37 = vld [vmem:[%s10145_s1 + $0xc8] ss:$16 sps:$4 sm:$0xff]  }
 0x2c6   :  { %1904 = vmatprep.subr.bf16.mxu0 %v7501_v38  ;;  %1947 = vmatprep.subr.bf16.mxu1 %v7507_v40  ;;  %10738 = vst [vmem:[#allocation28_spill] sm:$0xff] %v7513_v41  ;;  %10739 = vst [vmem:[#allocation29_spill] sm:$0xff] %v7519_v37  ;;  %v7525_v38 = vld [vmem:[%s10145_s1 + $0xe4] ss:$16 sps:$4 sm:$0xff]   ;;  %v7531_v40 = vld [vmem:[%s10145_s1 + $0xec] ss:$16 sps:$4 sm:$0xff]  }
 0x2c7   :  { %10740 = vst [vmem:[#allocation30_spill] sm:$0xff] %v7525_v38  ;;  %10741 = vst [vmem:[#allocation31_spill] sm:$0xff] %v7531_v40 }
 0x2c9   :  { %1905 = vmatpush1.bf16.msra.mxu0 %v7513_v41  ;;  %1948 = vmatpush1.bf16.msra.mxu1 %v7519_v37  ;;  %v5193_v41 = vld [vmem:[%s10146_s0 + $0x10] sm:$0xff]  }
 0x2ca   :  { %1906 = vmatprep.subr.bf16.mxu0 %v7525_v38  ;;  %1949 = vmatprep.subr.bf16.mxu1 %v7531_v40  ;;  %v7540_v37 = vld [vmem:[%s10145_s1 + $0xe0] ss:$16 sps:$4 sm:$0xff]   ;;  %v7546_v38 = vld [vmem:[%s10145_s1 + $0xe8] ss:$16 sps:$4 sm:$0xff]   ;;  %v7552_v40 = vld [vmem:[%s10147_s4 + $0x4] ss:$16 sps:$4 sm:$0xff]  }
 0x2cb   :  { %10742 = vst [vmem:[#allocation32_spill] sm:$0xff] %v7540_v37  ;;  %10743 = vst [vmem:[#allocation33_spill] sm:$0xff] %v7546_v38 }
 0x2cc   :  { %10744 = vst [vmem:[#allocation34_spill] sm:$0xff] %v7552_v40 }
 0x2cd   :  { %1907 = vmatpush1.bf16.msra.mxu0 %v7540_v37  ;;  %1950 = vmatpush1.bf16.msra.mxu1 %v7546_v38  ;;  %v7564_v38 = vld [vmem:[%s10147_s4] ss:$16 sps:$4 sm:$0xff]  }
 0x2ce   :  { %2036 = vmatprep.subr.bf16.mxu0 %v7552_v40  ;;  %2079 = vmatprep.subr.bf16.mxu1 %v7558_v1  ;;  %10746 = vst [vmem:[#allocation36_spill] sm:$0xff] %v7564_v38  ;;  %v7570_v40 = vld [vmem:[%s10147_s4 + $0x8] ss:$16 sps:$4 sm:$0xff]   ;;  %v7576_v1 = vld [vmem:[%s10147_s4 + $0x24] ss:$16 sps:$4 sm:$0xff]  }
 0x2cf   :  { %10747 = vst [vmem:[#allocation37_spill] sm:$0xff] %v7570_v40  ;;  %10748 = vst [vmem:[#allocation38_spill] sm:$0xff] %v7576_v1 }
 0x2d0   :  { %1925 = vmatmul.mubr.bf16.vlgmr.msra.gmra.mrb[16].mxu0 %v5193_v41  ;;  %1968 = vmatmul.mubr.bf16.vlgmr.msra.gmra.mrb[16].mxu1 %v5193_v41  ;;  %v7582_v41 = vld [vmem:[%s10147_s4 + $0x2c] ss:$16 sps:$4 sm:$0xff]  }
 0x2d1   :  { %2037 = vmatpush1.bf16.msra.mxu0 %v7564_v38  ;;  %2080 = vmatpush1.bf16.msra.mxu1 %v7570_v40  ;;  %10749 = vst [vmem:[#allocation39_spill] sm:$0xff] %v7582_v41  ;;  %v7590_v40 = vld [vmem:[%s10147_s4 + $0x20] ss:$16 sps:$4 sm:$0xff]   ;;  %v7608_v38 = vld [vmem:[%s10147_s4 + $0x4c] ss:$16 sps:$4 sm:$0xff]  }
 0x2d2   :  { %2038 = vmatprep.subr.bf16.mxu0 %v7576_v1  ;;  %2081 = vmatprep.subr.bf16.mxu1 %v7582_v41  ;;  %10750 = vst [vmem:[#allocation40_spill] sm:$0xff] %v7590_v40  ;;  %v7596_v1 = vld [vmem:[%s10147_s4 + $0x28] ss:$16 sps:$4 sm:$0xff]   ;;  %v7602_v41 = vld [vmem:[%s10147_s4 + $0x44] ss:$16 sps:$4 sm:$0xff]   ;;  %10753 = vst [vmem:[#allocation43_spill] sm:$0xff] %v7608_v38 }
 0x2d3   :  { %2068 = vmatprep.mubr.bf16.mxu0 %v10562_v57  ;;  %2111 = vmatprep.mubr.bf16.mxu1 %v10562_v57  ;;  %10751 = vst [vmem:[#allocation41_spill] sm:$0xff] %v7596_v1  ;;  %10752 = vst [vmem:[#allocation42_spill] sm:$0xff] %v7602_v41 }
 0x2d5   :  { %2039 = vmatpush1.bf16.msra.mxu0 %v7590_v40  ;;  %2082 = vmatpush1.bf16.msra.mxu1 %v7596_v1  ;;  %v7614_v40 = vld [vmem:[%s10147_s4 + $0x40] ss:$16 sps:$4 sm:$0xff]   ;;  %v7620_v1 = vld [vmem:[%s10147_s4 + $0x48] ss:$16 sps:$4 sm:$0xff]  }
 0x2d6   :  { %2040 = vmatprep.subr.bf16.mxu0 %v7602_v41  ;;  %2083 = vmatprep.subr.bf16.mxu1 %v7608_v38  ;;  %10754 = vst [vmem:[#allocation44_spill] sm:$0xff] %v7614_v40  ;;  %10755 = vst [vmem:[#allocation45_spill] sm:$0xff] %v7620_v1  ;;  %v7626_v41 = vld [vmem:[%s10147_s4 + $0x64] ss:$16 sps:$4 sm:$0xff]   ;;  %v7632_v38 = vld [vmem:[%s10147_s4 + $0x6c] ss:$16 sps:$4 sm:$0xff]  }
 0x2d7   :  { %10756 = vst [vmem:[#allocation46_spill] sm:$0xff] %v7626_v41  ;;  %10757 = vst [vmem:[#allocation47_spill] sm:$0xff] %v7632_v38 }
 0x2d9   :  { %2041 = vmatpush1.bf16.msra.mxu0 %v7614_v40  ;;  %2084 = vmatpush1.bf16.msra.mxu1 %v7620_v1  ;;  %v7638_v40 = vld [vmem:[%s10147_s4 + $0x60] ss:$16 sps:$4 sm:$0xff]   ;;  %v7644_v1 = vld [vmem:[%s10147_s4 + $0x68] ss:$16 sps:$4 sm:$0xff]  }
 0x2da   :  { %2042 = vmatprep.subr.bf16.mxu0 %v7626_v41  ;;  %2085 = vmatprep.subr.bf16.mxu1 %v7632_v38  ;;  %10758 = vst [vmem:[#allocation48_spill] sm:$0xff] %v7638_v40  ;;  %10759 = vst [vmem:[#allocation49_spill] sm:$0xff] %v7644_v1  ;;  %v7650_v41 = vld [vmem:[%s10147_s4 + $0x84] ss:$16 sps:$4 sm:$0xff]   ;;  %v7656_v38 = vld [vmem:[%s10147_s4 + $0x8c] ss:$16 sps:$4 sm:$0xff]  }
 0x2db   :  { %10760 = vst [vmem:[#allocation50_spill] sm:$0xff] %v7650_v41  ;;  %10761 = vst [vmem:[#allocation51_spill] sm:$0xff] %v7656_v38 }
 0x2dd   :  { %2043 = vmatpush1.bf16.msra.mxu0 %v7638_v40  ;;  %2086 = vmatpush1.bf16.msra.mxu1 %v7644_v1  ;;  %v7662_v40 = vld [vmem:[%s10147_s4 + $0x80] ss:$16 sps:$4 sm:$0xff]   ;;  %v7668_v1 = vld [vmem:[%s10147_s4 + $0x88] ss:$16 sps:$4 sm:$0xff]  }
 0x2de   :  { %2044 = vmatprep.subr.bf16.mxu0 %v7650_v41  ;;  %2087 = vmatprep.subr.bf16.mxu1 %v7656_v38  ;;  %10762 = vst [vmem:[#allocation52_spill] sm:$0xff] %v7662_v40  ;;  %10763 = vst [vmem:[#allocation53_spill] sm:$0xff] %v7668_v1  ;;  %v7674_v41 = vld [vmem:[%s10147_s4 + $0xa4] ss:$16 sps:$4 sm:$0xff]   ;;  %v7680_v38 = vld [vmem:[%s10147_s4 + $0xac] ss:$16 sps:$4 sm:$0xff]  }
 0x2df   :  { %10764 = vst [vmem:[#allocation54_spill] sm:$0xff] %v7674_v41  ;;  %10765 = vst [vmem:[#allocation55_spill] sm:$0xff] %v7680_v38 }
 0x2e1   :  { %2045 = vmatpush1.bf16.msra.mxu0 %v7662_v40  ;;  %2088 = vmatpush1.bf16.msra.mxu1 %v7668_v1  ;;  %v7686_v40 = vld [vmem:[%s10147_s4 + $0xa0] ss:$16 sps:$4 sm:$0xff]   ;;  %v7692_v1 = vld [vmem:[%s10147_s4 + $0xa8] ss:$16 sps:$4 sm:$0xff]  }
 0x2e2   :  { %2046 = vmatprep.subr.bf16.mxu0 %v7674_v41  ;;  %2089 = vmatprep.subr.bf16.mxu1 %v7680_v38  ;;  %10766 = vst [vmem:[#allocation56_spill] sm:$0xff] %v7686_v40  ;;  %10767 = vst [vmem:[#allocation57_spill] sm:$0xff] %v7692_v1  ;;  %v7698_v41 = vld [vmem:[%s10147_s4 + $0xc4] ss:$16 sps:$4 sm:$0xff]   ;;  %v7704_v38 = vld [vmem:[%s10147_s4 + $0xcc] ss:$16 sps:$4 sm:$0xff]  }
 0x2e3   :  { %10768 = vst [vmem:[#allocation58_spill] sm:$0xff] %v7698_v41  ;;  %10769 = vst [vmem:[#allocation59_spill] sm:$0xff] %v7704_v38 }
 0x2e5   :  { %2047 = vmatpush1.bf16.msra.mxu0 %v7686_v40  ;;  %2090 = vmatpush1.bf16.msra.mxu1 %v7692_v1  ;;  %v7710_v40 = vld [vmem:[%s10147_s4 + $0xc0] ss:$16 sps:$4 sm:$0xff]   ;;  %v7716_v1 = vld [vmem:[%s10147_s4 + $0xc8] ss:$16 sps:$4 sm:$0xff]  }
 0x2e6   :  { %2048 = vmatprep.subr.bf16.mxu0 %v7698_v41  ;;  %2091 = vmatprep.subr.bf16.mxu1 %v7704_v38  ;;  %10770 = vst [vmem:[#allocation60_spill] sm:$0xff] %v7710_v40  ;;  %10771 = vst [vmem:[#allocation61_spill] sm:$0xff] %v7716_v1  ;;  %v7722_v41 = vld [vmem:[%s10147_s4 + $0xe4] ss:$16 sps:$4 sm:$0xff]   ;;  %v7728_v38 = vld [vmem:[%s10147_s4 + $0xec] ss:$16 sps:$4 sm:$0xff]  }
 0x2e7   :  { %10772 = vst [vmem:[#allocation62_spill] sm:$0xff] %v7722_v41  ;;  %10773 = vst [vmem:[#allocation63_spill] sm:$0xff] %v7728_v38 }
 0x2e9   :  { %2049 = vmatpush1.bf16.msra.mxu0 %v7710_v40  ;;  %2092 = vmatpush1.bf16.msra.mxu1 %v7716_v1  ;;  %v7734_v40 = vld [vmem:[%s10147_s4 + $0xe0] ss:$16 sps:$4 sm:$0xff]   ;;  %v7740_v1 = vld [vmem:[%s10147_s4 + $0xe8] ss:$16 sps:$4 sm:$0xff]  }
 0x2ea   :  { %2050 = vmatprep.subr.bf16.mxu0 %v7722_v41  ;;  %2093 = vmatprep.subr.bf16.mxu1 %v7728_v38  ;;  %10774 = vst [vmem:[#allocation64_spill] sm:$0xff] %v7734_v40  ;;  %10775 = vst [vmem:[#allocation65_spill] sm:$0xff] %v7740_v1  ;;  %v7746_v41 = vld [vmem:[%s10148_s2 + $0x4] ss:$16 sps:$4 sm:$0xff]   ;;  %v7752_v38 = vld [vmem:[%s10148_s2 + $0xc] ss:$16 sps:$4 sm:$0xff]  }
 0x2eb   :  { %10776 = vst [vmem:[#allocation66_spill] sm:$0xff] %v7746_v41  ;;  %10777 = vst [vmem:[#allocation67_spill] sm:$0xff] %v7752_v38 }
 0x2ed   :  { %2051 = vmatpush1.bf16.msra.mxu0 %v7734_v40  ;;  %2094 = vmatpush1.bf16.msra.mxu1 %v7740_v1 }
 0x2ee   :  { %2122 = vmatprep.subr.bf16.mxu0 %v7746_v41  ;;  %2165 = vmatprep.subr.bf16.mxu1 %v7752_v38 }
 0x363   :  { %v1689_v40 = vpop.f32.mrb[12].mxu0  ;;  %v1732_v37 = vpop.f32.mrb[12].mxu1 }
 0x364   :  { %v1741_v36 = vadd.f32 %v1689_v40, %v7076_v3  ;;  %v1691_v35 = vpop.f32.mrb[13].mxu0  ;;  %v1734_v1 = vpop.f32.mrb[13].mxu1 }
 0x365   :  { %v1742_v34 = vadd.f32 %v1691_v35, %v7080_v5  ;;  %v1693_v33 = vpop.f32.mrb[14].mxu0  ;;  %v1736_v32 = vpop.f32.mrb[14].mxu1  ;;  %v1744_v40 = vadd.f32 %v1734_v1, %v7087_v20  ;;  %v1743_v35 = vadd.f32 %v1732_v37, %v7092_v25 }
 0x366   :  { %v4769_v31 = vmul.f32 -1.442695, %v1741_v36  ;;  %v1745_v41 = vadd.f32 %v1693_v33, %v7076_v3  ;;  %v1695_v29 = vpop.f32.mrb[15].mxu0  ;;  %v1738_v28 = vpop.f32.mrb[15].mxu1  ;;  %v1747_v33 = vadd.f32 %v1736_v32, %v7092_v25 }
 0x367   :  { %v4771_v27 = vmul.f32 -1.442695, %v1742_v34  ;;  %v1746_v26 = vadd.f32 %v1695_v29, %v7080_v5  ;;  %v4773_v23 = vmul.f32 -1.442695, %v1744_v40  ;;  %v1748_v36 = vadd.f32 %v1738_v28, %v7087_v20 }
 0x368   :  { %5295 = vpow2.f32 %v4769_v31  ;;  %v4770_v38 = vmul.f32 -1.442695, %v1745_v41 }
 0x369   :  { %5297 = vpow2.f32 %v4771_v27  ;;  %v4772_v24 = vmul.f32 -1.442695, %v1746_v26  ;;  %v4774_v29 = vmul.f32 -1.442695, %v1748_v36 }
 0x36a   :  { %5299 = vpow2.f32 %v4770_v38 }
 0x36b   :  { %5301 = vpow2.f32 %v4772_v24 }
 0x36c   :  { %5303 = vtanh.f32 %v1743_v35 }
 0x36d   :  { %5305 = vpow2.f32 %v4773_v23 }
 0x36e   :  { %5307 = vtanh.f32 %v1747_v33 }
 0x372   :  { %v5296_v3 = vpop.eup %5295 }
 0x373   :  { %v5298_v34 = vpop.eup %5297  ;;  %v1755_v22 = vadd.f32 1.0, %v5296_v3 }
 0x374   :  { %v1767_v31 = vadd.f32 1.0, %v5298_v34  ;;  %v5300_v26 = vpop.eup %5299 }
 0x375   :  { %5309 = vrcp.f32 %v1755_v22  ;;  %v1756_v27 = vadd.f32 1.0, %v5300_v26  ;;  %v5302_v24 = vpop.eup %5301 }
 0x376   :  { %5311 = vrcp.f32 %v1767_v31  ;;  %v1768_v1 = vadd.f32 1.0, %v5302_v24  ;;  %v5304_v28 = vpop.eup %5303 }
 0x377   :  { %5313 = vpow2.f32 %v4774_v29  ;;  %v5306_v37 = vpop.eup %5305 }
 0x378   :  { %5315 = vrcp.f32 %v1756_v27  ;;  %v5308_v32 = vpop.eup %5307  ;;  %v1781_v36 = vadd.f32 1.0, %v5306_v37 }
 0x379   :  { %5317 = vrcp.f32 %v1768_v1 }
 0x37a   :  { %5319 = vrcp.f32 %v1781_v36  ;;  %v7818_v36 = vld [vmem:[%s10148_s2 + $0x4c] ss:$16 sps:$4 sm:$0xff]  }
 0x37b   :  { %10780 = vst [vmem:[#allocation70_spill] sm:$0xff] %v7818_v36 }
 0x37f   :  { %v5310_v38 = vpop.eup %5309 }
 0x380   :  { %v5312_v41 = vpop.eup %5311  ;;  %v1789_v40 = vmul.f32 %v5310_v38, %v5304_v28 }
 0x381   :  { %v5314_v3 = vpop.eup %5313  ;;  %v1787_v23 = vmul.f32 %v5312_v41, %v7098_v56  ;;  %v7786_v41 = vld [vmem:[%s10148_s2 + $0x24] ss:$16 sps:$4 sm:$0xff]  }
 0x382   :  { %v5316_v35 = vpop.eup %5315  ;;  %v1782_v31 = vadd.f32 1.0, %v5314_v3  ;;  %v7800_v3 = vld [vmem:[%s10148_s2 + $0x20] ss:$16 sps:$4 sm:$0xff]  }
 0x383   :  { %v7764_v33 = vadd.f32 %v1789_v40, %v1787_v23  ;;  %v1790_v22 = vmul.f32 %v5316_v35, %v5308_v32  ;;  %v5318_v34 = vpop.eup %5317  ;;  %v7780_v32 = vld [vmem:[%s10148_s2 + $0x8] ss:$16 sps:$4 sm:$0xff]   ;;  %v7792_v40 = vld [vmem:[%s10148_s2 + $0x2c] ss:$16 sps:$4 sm:$0xff]   ;;  %v7812_v35 = vld [vmem:[%s10148_s2 + $0x44] ss:$16 sps:$4 sm:$0xff]  }
 0x384   :  { %v1788_v29 = vmul.f32 %v5318_v34, %v7101_v46  ;;  %v5320_v27 = vpop.eup %5319  ;;  %v7774_v46 = vld [vmem:[%s10148_s2] ss:$16 sps:$4 sm:$0xff]   ;;  %v7806_v23 = vld [vmem:[%s10148_s2 + $0x28] ss:$16 sps:$4 sm:$0xff]   ;;  %10779 = vst [vmem:[#allocation69_spill] sm:$0xff] %v7812_v35 }
 0x385   :  { %5321 = vtanh.f32 %v7764_v33  ;;  %10778 = vst [vmem:[#allocation68_spill] sm:$0xff] %v7806_v23  ;;  %v7830_v34 = vld [vmem:[%s10148_s2 + $0x48] ss:$16 sps:$4 sm:$0xff]  }
 0x386   :  { %v7768_v26 = vadd.f32 %v1790_v22, %v1788_v29  ;;  %5323 = vrcp.f32 %v1782_v31  ;;  %v7824_v22 = vld [vmem:[%s10148_s2 + $0x40] ss:$16 sps:$4 sm:$0xff]   ;;  %10782 = vst [vmem:[#allocation72_spill] sm:$0xff] %v7830_v34  ;;  %v7836_v31 = vld [vmem:[%s10148_s2 + $0x64] ss:$16 sps:$4 sm:$0xff]  }
 0x387   :  { %10781 = vst [vmem:[#allocation71_spill] sm:$0xff] %v7824_v22  ;;  %10783 = vst [vmem:[#allocation73_spill] sm:$0xff] %v7836_v31  ;;  %v7842_v29 = vld [vmem:[%s10148_s2 + $0x6c] ss:$16 sps:$4 sm:$0xff]  }
 0x388   :  { %5325 = vtanh.f32 %v7768_v26  ;;  %10784 = vst [vmem:[#allocation74_spill] sm:$0xff] %v7842_v29 }
 0x38f   :  { %v5322_v24 = vpop.eup %5321 }
 0x390   :  { %v5324_v56 = vpop.eup %5323  ;;  %v1795_v28 = vmul.f32 %v5322_v24, %v5320_v27 }
 0x392   :  { %v5326_v1 = vpop.eup %5325 }
 0x393   :  { %v1796_v37 = vmul.f32 %v5326_v1, %v5324_v56 }
 0x395   :  { %v2035_v38 = vpack.c.bf16 %v1796_v37, %v1795_v28 }
 0x397   :  { %2069 = vmatmul.mubr.bf16.vlgmr.msra.gmra.mrb[20].mxu0 %v2035_v38  ;;  %2112 = vmatmul.mubr.bf16.vlgmr.msra.gmra.mrb[20].mxu1 %v2035_v38 }
 0x398   :  { %2123 = vmatpush1.bf16.msra.mxu0 %v7774_v46  ;;  %2166 = vmatpush1.bf16.msra.mxu1 %v7780_v32 }
 0x399   :  { %2124 = vmatprep.subr.bf16.mxu0 %v7786_v41  ;;  %2167 = vmatprep.subr.bf16.mxu1 %v7792_v40 }
 0x39a   :  { %2154 = vmatprep.mubr.bf16.mxu0 %v10562_v57  ;;  %2197 = vmatprep.mubr.bf16.mxu1 %v10562_v57 }
 0x39c   :  { %2125 = vmatpush1.bf16.msra.mxu0 %v7800_v3  ;;  %2168 = vmatpush1.bf16.msra.mxu1 %v7806_v23  ;;  %v7876_v23 = vld [vmem:[%s10148_s2 + $0x80] ss:$16 sps:$4 sm:$0xff]  }
 0x39d   :  { %2126 = vmatprep.subr.bf16.mxu0 %v7812_v35  ;;  %2169 = vmatprep.subr.bf16.mxu1 %v7818_v36  ;;  %v7863_v35 = vld [vmem:[%s10148_s2 + $0x84] ss:$16 sps:$4 sm:$0xff]   ;;  %10788 = vst [vmem:[#allocation78_spill] sm:$0xff] %v7876_v23 }
 0x39e   :  { %10787 = vst [vmem:[#allocation77_spill] sm:$0xff] %v7863_v35 }
 0x3a0   :  { %2127 = vmatpush1.bf16.msra.mxu0 %v7824_v22  ;;  %2170 = vmatpush1.bf16.msra.mxu1 %v7830_v34 }
 0x3a1   :  { %2128 = vmatprep.subr.bf16.mxu0 %v7836_v31  ;;  %2171 = vmatprep.subr.bf16.mxu1 %v7842_v29  ;;  %v7850_v31 = vld [vmem:[%s10148_s2 + $0x60] ss:$16 sps:$4 sm:$0xff]   ;;  %v7856_v29 = vld [vmem:[%s10148_s2 + $0x68] ss:$16 sps:$4 sm:$0xff]  }
 0x3a2   :  { %10785 = vst [vmem:[#allocation75_spill] sm:$0xff] %v7850_v31  ;;  %10786 = vst [vmem:[#allocation76_spill] sm:$0xff] %v7856_v29 }
 0x3a3   :  { %v1926_v27 = vpop.f32.mrb[16].mxu0  ;;  %v1969_v24 = vpop.f32.mrb[16].mxu1 }
 0x3a4   :  { %v1978_v56 = vadd.f32 %v1926_v27, %v10693_v21  ;;  %v1928_v1 = vpop.f32.mrb[17].mxu0  ;;  %v1971_v28 = vpop.f32.mrb[17].mxu1  ;;  %2129 = vmatpush1.bf16.msra.mxu0 %v7850_v31  ;;  %2172 = vmatpush1.bf16.msra.mxu1 %v7856_v29  ;;  %v7869_v31 = vld [vmem:[%s10148_s2 + $0x8c] ss:$16 sps:$4 sm:$0xff]  }
 0x3a5   :  { %v1979_v37 = vadd.f32 %v1928_v1, %v6940_v0  ;;  %v1930_v38 = vpop.f32.mrb[18].mxu0  ;;  %v1973_v34 = vpop.f32.mrb[18].mxu1  ;;  %2130 = vmatprep.subr.bf16.mxu0 %v7863_v35  ;;  %2173 = vmatprep.subr.bf16.mxu1 %v7869_v31  ;;  %v7882_v35 = vld [vmem:[%s10148_s2 + $0x88] ss:$16 sps:$4 sm:$0xff]  }
 0x3a6   :  { %v4778_v27 = vmul.f32 -1.442695, %v1978_v56  ;;  %v1982_v22 = vadd.f32 %v1930_v38, %v10693_v21  ;;  %v1932_v1 = vpop.f32.mrb[19].mxu0  ;;  %v1975_v36 = vpop.f32.mrb[19].mxu1  ;;  %10789 = vst [vmem:[#allocation79_spill] sm:$0xff] %v7882_v35 }
 0x3a7   :  { %v4780_v29 = vmul.f32 -1.442695, %v1979_v37  ;;  %v1983_v56 = vadd.f32 %v1932_v1, %v6940_v0  ;;  %v1981_v37 = vadd.f32 %v1971_v28, %v6949_v47  ;;  %v7907_v1 = vld [vmem:[%s10148_s2 + $0xa8] ss:$16 sps:$4 sm:$0xff]   ;;  %v7920_v28 = vld [vmem:[%s10148_s2 + $0xcc] ss:$16 sps:$4 sm:$0xff]  }
 0x3a8   :  { %5327 = vpow2.f32 %v4778_v27  ;;  %v4779_v38 = vmul.f32 -1.442695, %v1982_v22  ;;  %2131 = vmatpush1.bf16.msra.mxu0 %v7876_v23  ;;  %2174 = vmatpush1.bf16.msra.mxu1 %v7882_v35  ;;  %v7888_v22 = vld [vmem:[%s10148_s2 + $0xa4] ss:$16 sps:$4 sm:$0xff]   ;;  %v7901_v27 = vld [vmem:[%s10148_s2 + $0xa0] ss:$16 sps:$4 sm:$0xff]  }
 0x3a9   :  { %5329 = vpow2.f32 %v4780_v29  ;;  %v4781_v21 = vmul.f32 -1.442695, %v1983_v56  ;;  %10790 = vst [vmem:[#allocation80_spill] sm:$0xff] %v7888_v22  ;;  %2132 = vmatprep.subr.bf16.mxu0 %v7888_v22  ;;  %v7894_v29 = vld [vmem:[%s10148_s2 + $0xac] ss:$16 sps:$4 sm:$0xff]   ;;  %10792 = vst [vmem:[#allocation82_spill] sm:$0xff] %v7901_v27  ;;  %v1980_v56 = vadd.f32 %v1969_v24, %v10704_v49 }
 0x3aa   :  { %10791 = vst [vmem:[#allocation81_spill] sm:$0xff] %v7894_v29  ;;  %2175 = vmatprep.subr.bf16.mxu1 %v7894_v29  ;;  %5331 = vpow2.f32 %v4779_v38  ;;  %10793 = vst [vmem:[#allocation83_spill] sm:$0xff] %v7907_v1  ;;  %v4782_v38 = vmul.f32 -1.442695, %v1981_v37  ;;  %v7928_v24 = vld [vmem:[%s10148_s2 + $0xc0] ss:$16 sps:$4 sm:$0xff]  }
 0x3ab   :  { %5333 = vpow2.f32 %v4781_v21  ;;  %v7914_v21 = vld [vmem:[%s10148_s2 + $0xc4] ss:$16 sps:$4 sm:$0xff]   ;;  %10795 = vst [vmem:[#allocation85_spill] sm:$0xff] %v7920_v28  ;;  %10796 = vst [vmem:[#allocation86_spill] sm:$0xff] %v7928_v24 }
 0x3ac   :  { %2133 = vmatpush1.bf16.msra.mxu0 %v7901_v27  ;;  %2176 = vmatpush1.bf16.msra.mxu1 %v7907_v1  ;;  %10794 = vst [vmem:[#allocation84_spill] sm:$0xff] %v7914_v21  ;;  %v1985_v27 = vadd.f32 %v1975_v36, %v6949_v47  ;;  %v1984_v1 = vadd.f32 %v1973_v34, %v10704_v49  ;;  %5335 = vtanh.f32 %v1980_v56  ;;  %v7940_v36 = vld [vmem:[%s10148_s2 + $0xe4] ss:$16 sps:$4 sm:$0xff]   ;;  %v7946_v34 = vld [vmem:[%s10148_s2 + $0xec] ss:$16 sps:$4 sm:$0xff]  }
 0x3ad   :  { %2134 = vmatprep.subr.bf16.mxu0 %v7914_v21  ;;  %2177 = vmatprep.subr.bf16.mxu1 %v7920_v28  ;;  %v7934_v21 = vld [vmem:[%s10148_s2 + $0xc8] ss:$16 sps:$4 sm:$0xff]   ;;  %10798 = vst [vmem:[#allocation91_spill] sm:$0xff] %v7940_v36  ;;  %10799 = vst [vmem:[#allocation92_spill] sm:$0xff] %v7946_v34  ;;  %5337 = vpow2.f32 %v4782_v38  ;;  %v7952_v47 = vld [vmem:[%s10148_s2 + $0xe0] ss:$16 sps:$4 sm:$0xff]  }
 0x3ae   :  { %10797 = vst [vmem:[#allocation90_spill] sm:$0xff] %v7934_v21  ;;  %5339 = vtanh.f32 %v1984_v1  ;;  %10800 = vst [vmem:[#allocation93_spill] sm:$0xff] %v7952_v47 }
 0x3b0   :  { %2135 = vmatpush1.bf16.msra.mxu0 %v7928_v24  ;;  %2178 = vmatpush1.bf16.msra.mxu1 %v7934_v21  ;;  %v4783_v21 = vmul.f32 -1.442695, %v1985_v27 }
 0x3b1   :  { %2136 = vmatprep.subr.bf16.mxu0 %v7940_v36  ;;  %2179 = vmatprep.subr.bf16.mxu1 %v7946_v34  ;;  %v7958_v36 = vld [vmem:[%s10148_s2 + $0xe8] ss:$16 sps:$4 sm:$0xff]  }
 0x3b2   :  { %v5328_v28 = vpop.eup %5327  ;;  %10801 = vst [vmem:[#allocation94_spill] sm:$0xff] %v7958_v36 }
 0x3b3   :  { %v5330_v37 = vpop.eup %5329  ;;  %v1992_v24 = vadd.f32 1.0, %v5328_v28 }
 0x3b4   :  { %v2004_v49 = vadd.f32 1.0, %v5330_v37  ;;  %v5332_v56 = vpop.eup %5331  ;;  %2137 = vmatpush1.bf16.msra.mxu0 %v7952_v47  ;;  %2180 = vmatpush1.bf16.msra.mxu1 %v7958_v36 }
 0x3b5   :  { %5341 = vrcp.f32 %v1992_v24  ;;  %v1993_v27 = vadd.f32 1.0, %v5332_v56  ;;  %2267 = vmatprep.subr.bf16.mxu0 %v7147_v13  ;;  %2310 = vmatprep.subr.bf16.mxu1 %v7153_v14  ;;  %v5334_v1 = vpop.eup %5333 }
 0x3b6   :  { %5343 = vrcp.f32 %v2004_v49  ;;  %v2005_v28 = vadd.f32 1.0, %v5334_v1  ;;  %v5336_v38 = vpop.eup %5335 }
 0x3b7   :  { %5345 = vpow2.f32 %v4783_v21  ;;  %v5338_v24 = vpop.eup %5337 }
 0x3b8   :  { %5347 = vrcp.f32 %v1993_v27  ;;  %v5340_v37 = vpop.eup %5339  ;;  %v2018_v56 = vadd.f32 1.0, %v5338_v24  ;;  %v10836_v24 = vld [vmem:[#allocation37_spill] sm:$0xff] }
 0x3b9   :  { %5349 = vrcp.f32 %v2005_v28 }
 0x3ba   :  { %5351 = vrcp.f32 %v2018_v56  ;;  %v10839_v56 = vld [vmem:[#allocation40_spill] sm:$0xff] }
 0x3bf   :  { %v5342_v47 = vpop.eup %5341 }
 0x3c0   :  { %v5344_v34 = vpop.eup %5343  ;;  %v2026_v29 = vmul.f32 %v5342_v47, %v5336_v38  ;;  %v10835_v38 = vld [vmem:[#allocation36_spill] sm:$0xff] }
 0x3c1   :  { %v5346_v22 = vpop.eup %5345  ;;  %v2024_v36 = vmul.f32 %v5344_v34, %v7157_v30 }
 0x3c2   :  { %v5348_v49 = vpop.eup %5347  ;;  %v2019_v23 = vadd.f32 1.0, %v5346_v22  ;;  %v10834_v22 = vld [vmem:[#allocation35_spill] sm:$0xff] }
 0x3c3   :  { %v7964_v35 = vadd.f32 %v2026_v29, %v2024_v36  ;;  %v2027_v13 = vmul.f32 %v5348_v49, %v5340_v37  ;;  %v5350_v14 = vpop.eup %5349  ;;  %v10837_v37 = vld [vmem:[#allocation38_spill] sm:$0xff]  ;;  %v10838_v49 = vld [vmem:[#allocation39_spill] sm:$0xff] }
 0x3c4   :  { %v2025_v21 = vmul.f32 %v5350_v14, %v7161_v63  ;;  %v5352_v47 = vpop.eup %5351  ;;  %v10802_v63 = vld [vmem:[#allocation3_spill] sm:$0xff]  ;;  %v10841_v14 = vld [vmem:[#allocation42_spill] sm:$0xff] }
 0x3c5   :  { %5353 = vtanh.f32 %v7964_v35 }
 0x3c6   :  { %v7968_v27 = vadd.f32 %v2027_v13, %v2025_v21  ;;  %5355 = vrcp.f32 %v2019_v23  ;;  %v10833_v23 = vld [vmem:[#allocation34_spill] sm:$0xff]  ;;  %v10840_v13 = vld [vmem:[#allocation41_spill] sm:$0xff]  ;;  %v10842_v21 = vld [vmem:[#allocation43_spill] sm:$0xff] }
 0x3c8   :  { %5357 = vtanh.f32 %v7968_v27 }
 0x3cf   :  { %v5354_v1 = vpop.eup %5353 }
 0x3d0   :  { %v5356_v30 = vpop.eup %5355  ;;  %v2032_v28 = vmul.f32 %v5354_v1, %v5352_v47  ;;  %v10843_v47 = vld [vmem:[#allocation44_spill] sm:$0xff]  ;;  %v10844_v1 = vld [vmem:[#allocation45_spill] sm:$0xff] }
 0x3d2   :  { %v5358_v34 = vpop.eup %5357 }
 0x3d3   :  { %v2033_v29 = vmul.f32 %v5358_v34, %v5356_v30  ;;  %v10845_v30 = vld [vmem:[#allocation46_spill] sm:$0xff]  ;;  %v10846_v34 = vld [vmem:[#allocation47_spill] sm:$0xff] }
 0x3d5   :  { %v2034_v36 = vpack.c.bf16 %v2033_v29, %v2032_v28  ;;  %v10847_v28 = vld [vmem:[#allocation48_spill] sm:$0xff]  ;;  %v10848_v29 = vld [vmem:[#allocation49_spill] sm:$0xff] }
 0x3d7   :  { %2155 = vmatmul.mubr.bf16.vlgmr.msra.gmra.mrb[20].mxu0 %v2034_v36  ;;  %2198 = vmatmul.mubr.bf16.vlgmr.msra.gmra.mrb[20].mxu1 %v2034_v36 }
 0x3d8   :  { %2268 = vmatpush1.bf16.msra.mxu0 %v7171_v51  ;;  %2311 = vmatpush1.bf16.msra.mxu1 %v7177_v42  ;;  %v10803_v51 = vld [vmem:[#allocation4_spill] sm:$0xff]  ;;  %v10804_v42 = vld [vmem:[#allocation5_spill] sm:$0xff] }
 0x3d9   :  { %2269 = vmatprep.subr.bf16.mxu0 %v7183_v43  ;;  %2312 = vmatprep.subr.bf16.mxu1 %v7189_v44  ;;  %v10805_v43 = vld [vmem:[#allocation6_spill] sm:$0xff]  ;;  %v10806_v44 = vld [vmem:[#allocation7_spill] sm:$0xff] }
 0x3da   :  { %2299 = vmatprep.mubr.bf16.mxu0 %v10562_v57  ;;  %2342 = vmatprep.mubr.bf16.mxu1 %v10562_v57 }
 0x3dc   :  { %2270 = vmatpush1.bf16.msra.mxu0 %v7197_v59  ;;  %2313 = vmatpush1.bf16.msra.mxu1 %v7203_v52  ;;  %v10807_v59 = vld [vmem:[#allocation8_spill] sm:$0xff]  ;;  %v10808_v52 = vld [vmem:[#allocation9_spill] sm:$0xff] }
 0x3dd   :  { %2271 = vmatprep.subr.bf16.mxu0 %v7209_v53  ;;  %2314 = vmatprep.subr.bf16.mxu1 %v7215_v54  ;;  %v10809_v53 = vld [vmem:[#allocation10_spill] sm:$0xff]  ;;  %v10810_v54 = vld [vmem:[#allocation11_spill] sm:$0xff] }
 0x3e0   :  { %2272 = vmatpush1.bf16.msra.mxu0 %v7221_v50  ;;  %2315 = vmatpush1.bf16.msra.mxu1 %v7227_v48  ;;  %v10811_v50 = vld [vmem:[#allocation12_spill] sm:$0xff]  ;;  %v10812_v48 = vld [vmem:[#allocation13_spill] sm:$0xff] }
 0x3e1   :  { %2273 = vmatprep.subr.bf16.mxu0 %v7233_v2  ;;  %2316 = vmatprep.subr.bf16.mxu1 %v7239_v62  ;;  %v10813_v2 = vld [vmem:[#allocation14_spill] sm:$0xff]  ;;  %v10814_v62 = vld [vmem:[#allocation15_spill] sm:$0xff] }
 0x3e4   :  { %2274 = vmatpush1.bf16.msra.mxu0 %v7245_v55  ;;  %2317 = vmatpush1.bf16.msra.mxu1 %v7251_v45  ;;  %v10815_v55 = vld [vmem:[#allocation16_spill] sm:$0xff]  ;;  %v10816_v45 = vld [vmem:[#allocation17_spill] sm:$0xff] }
 0x3e5   :  { %2275 = vmatprep.subr.bf16.mxu0 %v7257_v39  ;;  %2318 = vmatprep.subr.bf16.mxu1 %v7263_v60  ;;  %v10817_v39 = vld [vmem:[#allocation18_spill] sm:$0xff]  ;;  %v10818_v60 = vld [vmem:[#allocation19_spill] sm:$0xff] }
 0x3e8   :  { %2276 = vmatpush1.bf16.msra.mxu0 %v7269_v61  ;;  %2319 = vmatpush1.bf16.msra.mxu1 %v7275_v58  ;;  %v10819_v61 = vld [vmem:[#allocation20_spill] sm:$0xff]  ;;  %v10820_v58 = vld [vmem:[#allocation21_spill] sm:$0xff] }
 0x3e9   :  { %2277 = vmatprep.subr.bf16.mxu0 %v7281_v4  ;;  %2320 = vmatprep.subr.bf16.mxu1 %v7287_v6  ;;  %v10821_v4 = vld [vmem:[#allocation22_spill] sm:$0xff]  ;;  %v10822_v6 = vld [vmem:[#allocation23_spill] sm:$0xff] }
 0x3ec   :  { %2278 = vmatpush1.bf16.msra.mxu0 %v7293_v7  ;;  %2321 = vmatpush1.bf16.msra.mxu1 %v7299_v8  ;;  %v10823_v7 = vld [vmem:[#allocation24_spill] sm:$0xff]  ;;  %v10824_v8 = vld [vmem:[#allocation25_spill] sm:$0xff] }
 0x3ed   :  { %2279 = vmatprep.subr.bf16.mxu0 %v7305_v9  ;;  %2322 = vmatprep.subr.bf16.mxu1 %v7311_v10  ;;  %v10825_v9 = vld [vmem:[#allocation26_spill] sm:$0xff]  ;;  %v10826_v10 = vld [vmem:[#allocation27_spill] sm:$0xff] }
 0x3f0   :  { %2280 = vmatpush1.bf16.msra.mxu0 %v7317_v11  ;;  %2323 = vmatpush1.bf16.msra.mxu1 %v7323_v12  ;;  %v10827_v11 = vld [vmem:[#allocation28_spill] sm:$0xff]  ;;  %v10828_v12 = vld [vmem:[#allocation29_spill] sm:$0xff] }
 0x3f1   :  { %2281 = vmatprep.subr.bf16.mxu0 %v7329_v15  ;;  %2324 = vmatprep.subr.bf16.mxu1 %v7335_v16  ;;  %v10829_v15 = vld [vmem:[#allocation30_spill] sm:$0xff]  ;;  %v10830_v16 = vld [vmem:[#allocation31_spill] sm:$0xff] }
 0x3f4   :  { %2282 = vmatpush1.bf16.msra.mxu0 %v7341_v17  ;;  %2325 = vmatpush1.bf16.msra.mxu1 %v7347_v18  ;;  %v5194_v17 = vld [vmem:[%s10146_s0 + $0x18] sm:$0xff]   ;;  %v10831_v18 = vld [vmem:[#allocation32_spill] sm:$0xff] }
 0x3f5   :  { %2359 = vmatprep.subr.bf16.mxu0 %v7353_v19  ;;  %2402 = vmatprep.subr.bf16.mxu1 %v10802_v63  ;;  %v10832_v19 = vld [vmem:[#allocation33_spill] sm:$0xff]  ;;  %v10850_v63 = vld [vmem:[#allocation51_spill] sm:$0xff] }
 0x3f7   :  { %2300 = vmatmul.mubr.bf16.vlgmr.msra.gmra.mrb[24].mxu0 %v2034_v36  ;;  %2343 = vmatmul.mubr.bf16.vlgmr.msra.gmra.mrb[24].mxu1 %v2034_v36  ;;  %v10849_v36 = vld [vmem:[#allocation50_spill] sm:$0xff] }
 0x3f8   :  { %2360 = vmatpush1.bf16.msra.mxu0 %v10803_v51  ;;  %2403 = vmatpush1.bf16.msra.mxu1 %v10804_v42  ;;  %v10851_v51 = vld [vmem:[#allocation52_spill] sm:$0xff]  ;;  %v10852_v42 = vld [vmem:[#allocation53_spill] sm:$0xff] }
 0x3f9   :  { %2361 = vmatprep.subr.bf16.mxu0 %v10805_v43  ;;  %2404 = vmatprep.subr.bf16.mxu1 %v10806_v44  ;;  %v10853_v43 = vld [vmem:[#allocation54_spill] sm:$0xff]  ;;  %v10854_v44 = vld [vmem:[#allocation55_spill] sm:$0xff] }
 0x3fa   :  { %2391 = vmatprep.mubr.bf16.mxu0 %v10562_v57  ;;  %2434 = vmatprep.mubr.bf16.mxu1 %v10562_v57 }
 0x3fc   :  { %2362 = vmatpush1.bf16.msra.mxu0 %v10807_v59  ;;  %2405 = vmatpush1.bf16.msra.mxu1 %v10808_v52  ;;  %v10855_v59 = vld [vmem:[#allocation56_spill] sm:$0xff]  ;;  %v10856_v52 = vld [vmem:[#allocation57_spill] sm:$0xff] }
 0x3fd   :  { %2363 = vmatprep.subr.bf16.mxu0 %v10809_v53  ;;  %2406 = vmatprep.subr.bf16.mxu1 %v10810_v54  ;;  %v10857_v53 = vld [vmem:[#allocation58_spill] sm:$0xff]  ;;  %v10858_v54 = vld [vmem:[#allocation59_spill] sm:$0xff] }
 0x400   :  { %2364 = vmatpush1.bf16.msra.mxu0 %v10811_v50  ;;  %2407 = vmatpush1.bf16.msra.mxu1 %v10812_v48  ;;  %v10859_v50 = vld [vmem:[#allocation60_spill] sm:$0xff]  ;;  %v10860_v48 = vld [vmem:[#allocation61_spill] sm:$0xff] }
 0x401   :  { %2365 = vmatprep.subr.bf16.mxu0 %v10813_v2  ;;  %2408 = vmatprep.subr.bf16.mxu1 %v10814_v62  ;;  %v10861_v2 = vld [vmem:[#allocation62_spill] sm:$0xff]  ;;  %v10862_v62 = vld [vmem:[#allocation63_spill] sm:$0xff] }
 0x404   :  { %2366 = vmatpush1.bf16.msra.mxu0 %v10815_v55  ;;  %2409 = vmatpush1.bf16.msra.mxu1 %v10816_v45  ;;  %v10863_v55 = vld [vmem:[#allocation64_spill] sm:$0xff]  ;;  %v10864_v45 = vld [vmem:[#allocation65_spill] sm:$0xff] }
 0x405   :  { %2367 = vmatprep.subr.bf16.mxu0 %v10817_v39  ;;  %2410 = vmatprep.subr.bf16.mxu1 %v10818_v60  ;;  %v10865_v39 = vld [vmem:[#allocation66_spill] sm:$0xff]  ;;  %v10866_v60 = vld [vmem:[#allocation67_spill] sm:$0xff] }
 0x408   :  { %2368 = vmatpush1.bf16.msra.mxu0 %v10819_v61  ;;  %2411 = vmatpush1.bf16.msra.mxu1 %v10820_v58 }
 0x409   :  { %2369 = vmatprep.subr.bf16.mxu0 %v10821_v4  ;;  %2412 = vmatprep.subr.bf16.mxu1 %v10822_v6  ;;  %v10867_v4 = vld [vmem:[#allocation2_spill] sm:$0xff] }
 0x40c   :  { %2370 = vmatpush1.bf16.msra.mxu0 %v10823_v7  ;;  %2413 = vmatpush1.bf16.msra.mxu1 %v10824_v8 }
 0x40d   :  { %2371 = vmatprep.subr.bf16.mxu0 %v10825_v9  ;;  %2414 = vmatprep.subr.bf16.mxu1 %v10826_v10 }
 0x410   :  { %2372 = vmatpush1.bf16.msra.mxu0 %v10827_v11  ;;  %2415 = vmatpush1.bf16.msra.mxu1 %v10828_v12 }
 0x411   :  { %2373 = vmatprep.subr.bf16.mxu0 %v10829_v15  ;;  %2416 = vmatprep.subr.bf16.mxu1 %v10830_v16 }
 0x414   :  { %2374 = vmatpush1.bf16.msra.mxu0 %v10831_v18  ;;  %2417 = vmatpush1.bf16.msra.mxu1 %v10832_v19 }
 0x415   :  { %2503 = vmatprep.subr.bf16.mxu0 %v10833_v23  ;;  %2546 = vmatprep.subr.bf16.mxu1 %v10834_v22 }
 0x417   :  { %2392 = vmatmul.mubr.bf16.vlgmr.msra.gmra.mrb[24].mxu0 %v5194_v17  ;;  %2435 = vmatmul.mubr.bf16.vlgmr.msra.gmra.mrb[24].mxu1 %v5194_v17 }
 0x418   :  { %2504 = vmatpush1.bf16.msra.mxu0 %v10835_v38  ;;  %2547 = vmatpush1.bf16.msra.mxu1 %v10836_v24 }
 0x419   :  { %2505 = vmatprep.subr.bf16.mxu0 %v10837_v37  ;;  %2548 = vmatprep.subr.bf16.mxu1 %v10838_v49 }
 0x41a   :  { %2535 = vmatprep.mubr.bf16.mxu0 %v10562_v57  ;;  %2578 = vmatprep.mubr.bf16.mxu1 %v10562_v57 }
 0x41c   :  { %2506 = vmatpush1.bf16.msra.mxu0 %v10839_v56  ;;  %2549 = vmatpush1.bf16.msra.mxu1 %v10840_v13 }
 0x41d   :  { %2507 = vmatprep.subr.bf16.mxu0 %v10841_v14  ;;  %2550 = vmatprep.subr.bf16.mxu1 %v10842_v21 }
 0x420   :  { %2508 = vmatpush1.bf16.msra.mxu0 %v10843_v47  ;;  %2551 = vmatpush1.bf16.msra.mxu1 %v10844_v1 }
 0x421   :  { %2509 = vmatprep.subr.bf16.mxu0 %v10845_v30  ;;  %2552 = vmatprep.subr.bf16.mxu1 %v10846_v34 }
 0x424   :  { %2510 = vmatpush1.bf16.msra.mxu0 %v10847_v28  ;;  %2553 = vmatpush1.bf16.msra.mxu1 %v10848_v29 }
 0x425   :  { %2511 = vmatprep.subr.bf16.mxu0 %v10849_v36  ;;  %2554 = vmatprep.subr.bf16.mxu1 %v10850_v63 }
 0x428   :  { %2512 = vmatpush1.bf16.msra.mxu0 %v10851_v51  ;;  %2555 = vmatpush1.bf16.msra.mxu1 %v10852_v42 }
 0x429   :  { %2513 = vmatprep.subr.bf16.mxu0 %v10853_v43  ;;  %2556 = vmatprep.subr.bf16.mxu1 %v10854_v44 }
 0x42c   :  { %2514 = vmatpush1.bf16.msra.mxu0 %v10855_v59  ;;  %2557 = vmatpush1.bf16.msra.mxu1 %v10856_v52 }
 0x42d   :  { %2515 = vmatprep.subr.bf16.mxu0 %v10857_v53  ;;  %2558 = vmatprep.subr.bf16.mxu1 %v10858_v54 }
 0x430   :  { %2516 = vmatpush1.bf16.msra.mxu0 %v10859_v50  ;;  %2559 = vmatpush1.bf16.msra.mxu1 %v10860_v48 }
 0x431   :  { %2517 = vmatprep.subr.bf16.mxu0 %v10861_v2  ;;  %2560 = vmatprep.subr.bf16.mxu1 %v10862_v62 }
 0x434   :  { %2518 = vmatpush1.bf16.msra.mxu0 %v10863_v55  ;;  %2561 = vmatpush1.bf16.msra.mxu1 %v10864_v45 }
 0x435   :  { %2589 = vmatprep.subr.bf16.mxu0 %v10865_v39  ;;  %2632 = vmatprep.subr.bf16.mxu1 %v10866_v60 }
 0x4aa   :  { %v2156_v61 = vpop.f32.mrb[20].mxu0  ;;  %v2199_v58 = vpop.f32.mrb[20].mxu1 }
 0x4ab   :  { %v2208_v6 = vadd.f32 %v2156_v61, %v10867_v4  ;;  %v2158_v7 = vpop.f32.mrb[21].mxu0  ;;  %v2201_v8 = vpop.f32.mrb[21].mxu1  ;;  %v2210_v24 = vadd.f32 %v2199_v58, %v7092_v25 }
 0x4ac   :  { %v2209_v9 = vadd.f32 %v2158_v7, %v7080_v5  ;;  %v2160_v10 = vpop.f32.mrb[22].mxu0  ;;  %v2203_v11 = vpop.f32.mrb[22].mxu1  ;;  %v2211_v38 = vadd.f32 %v2201_v8, %v7087_v20  ;;  %v10869_v8 = vld [vmem:[#allocation69_spill] sm:$0xff] }
 0x4ad   :  { %v4784_v12 = vmul.f32 -1.442695, %v2208_v6  ;;  %v2212_v15 = vadd.f32 %v2160_v10, %v10867_v4  ;;  %v2162_v16 = vpop.f32.mrb[23].mxu0  ;;  %v2205_v17 = vpop.f32.mrb[23].mxu1  ;;  %v2214_v56 = vadd.f32 %v2203_v11, %v7092_v25  ;;  %v10871_v10 = vld [vmem:[#allocation71_spill] sm:$0xff] }
 0x4ae   :  { %v4786_v18 = vmul.f32 -1.442695, %v2209_v9  ;;  %v2213_v19 = vadd.f32 %v2162_v16, %v7080_v5  ;;  %v4788_v37 = vmul.f32 -1.442695, %v2211_v38  ;;  %v2215_v49 = vadd.f32 %v2205_v17, %v7087_v20  ;;  %v10870_v9 = vld [vmem:[#allocation70_spill] sm:$0xff] }
 0x4af   :  { %5359 = vpow2.f32 %v4784_v12  ;;  %v4785_v23 = vmul.f32 -1.442695, %v2212_v15  ;;  %v10875_v12 = vld [vmem:[#allocation87_spill] sm:$0xff] }
 0x4b0   :  { %5361 = vpow2.f32 %v4786_v18  ;;  %v4787_v22 = vmul.f32 -1.442695, %v2213_v19  ;;  %v4789_v47 = vmul.f32 -1.442695, %v2215_v49 }
 0x4b1   :  { %5363 = vpow2.f32 %v4785_v23  ;;  %v10876_v23 = vld [vmem:[#allocation75_spill] sm:$0xff] }
 0x4b2   :  { %5365 = vpow2.f32 %v4787_v22  ;;  %v10877_v22 = vld [vmem:[#allocation76_spill] sm:$0xff] }
 0x4b3   :  { %5367 = vtanh.f32 %v2210_v24 }
 0x4b4   :  { %5369 = vpow2.f32 %v4788_v37 }
 0x4b5   :  { %5371 = vtanh.f32 %v2214_v56  ;;  %v10878_v56 = vld [vmem:[#allocation77_spill] sm:$0xff] }
 0x4b9   :  { %v5360_v13 = vpop.eup %5359 }
 0x4ba   :  { %v5362_v14 = vpop.eup %5361  ;;  %v2222_v21 = vadd.f32 1.0, %v5360_v13 }
 0x4bb   :  { %v2234_v1 = vadd.f32 1.0, %v5362_v14  ;;  %v5364_v30 = vpop.eup %5363 }
 0x4bc   :  { %5373 = vrcp.f32 %v2222_v21  ;;  %v2223_v34 = vadd.f32 1.0, %v5364_v30  ;;  %v5366_v28 = vpop.eup %5365  ;;  %v10880_v30 = vld [vmem:[#allocation79_spill] sm:$0xff] }
 0x4bd   :  { %5375 = vrcp.f32 %v2234_v1  ;;  %v2235_v29 = vadd.f32 1.0, %v5366_v28  ;;  %v5368_v36 = vpop.eup %5367  ;;  %v10879_v1 = vld [vmem:[#allocation78_spill] sm:$0xff]  ;;  %v10882_v28 = vld [vmem:[#allocation81_spill] sm:$0xff] }
 0x4be   :  { %5377 = vpow2.f32 %v4789_v47  ;;  %v5370_v63 = vpop.eup %5369 }
 0x4bf   :  { %5379 = vrcp.f32 %v2223_v34  ;;  %v5372_v51 = vpop.eup %5371  ;;  %v2248_v54 = vadd.f32 1.0, %v5370_v63  ;;  %v10881_v34 = vld [vmem:[#allocation80_spill] sm:$0xff]  ;;  %v10885_v63 = vld [vmem:[#allocation83_spill] sm:$0xff] }
 0x4c0   :  { %5381 = vrcp.f32 %v2235_v29  ;;  %v10883_v29 = vld [vmem:[#allocation88_spill] sm:$0xff] }
 0x4c1   :  { %5383 = vrcp.f32 %v2248_v54  ;;  %v10889_v54 = vld [vmem:[#allocation86_spill] sm:$0xff] }
 0x4c6   :  { %v5374_v42 = vpop.eup %5373 }
 0x4c7   :  { %v5376_v43 = vpop.eup %5375  ;;  %v2256_v44 = vmul.f32 %v5374_v42, %v5368_v36 }
 0x4c8   :  { %v5378_v59 = vpop.eup %5377  ;;  %v2254_v52 = vmul.f32 %v5376_v43, %v7764_v33  ;;  %v10887_v43 = vld [vmem:[#allocation84_spill] sm:$0xff] }
 0x4c9   :  { %v5380_v53 = vpop.eup %5379  ;;  %v2249_v62 = vadd.f32 1.0, %v5378_v59 }
 0x4ca   :  { %v8085_v50 = vadd.f32 %v2256_v44, %v2254_v52  ;;  %v2257_v48 = vmul.f32 %v5380_v53, %v5372_v51  ;;  %v5382_v2 = vpop.eup %5381  ;;  %v10886_v51 = vld [vmem:[#allocation89_spill] sm:$0xff] }
 0x4cb   :  { %v2255_v55 = vmul.f32 %v5382_v2, %v7768_v26  ;;  %v5384_v39 = vpop.eup %5383  ;;  %v10868_v26 = vld [vmem:[#allocation68_spill] sm:$0xff]  ;;  %v10888_v44 = vld [vmem:[#allocation85_spill] sm:$0xff] }
 0x4cc   :  { %5385 = vtanh.f32 %v8085_v50 }
 0x4cd   :  { %v8089_v45 = vadd.f32 %v2257_v48, %v2255_v55  ;;  %5387 = vrcp.f32 %v2249_v62  ;;  %v10890_v48 = vld [vmem:[#allocation90_spill] sm:$0xff]  ;;  %v10891_v62 = vld [vmem:[#allocation91_spill] sm:$0xff]  ;;  %v10892_v55 = vld [vmem:[#allocation92_spill] sm:$0xff] }
 0x4cf   :  { %5389 = vtanh.f32 %v8089_v45 }
 0x4d6   :  { %v5386_v60 = vpop.eup %5385 }
 0x4d7   :  { %v5388_v33 = vpop.eup %5387  ;;  %v2262_v58 = vmul.f32 %v5386_v60, %v5384_v39 }
 0x4d9   :  { %v5390_v61 = vpop.eup %5389 }
 0x4da   :  { %v2263_v6 = vmul.f32 %v5390_v61, %v5388_v33 }
 0x4dc   :  { %v2502_v7 = vpack.c.bf16 %v2263_v6, %v2262_v58  ;;  %v10893_v6 = vld [vmem:[#allocation93_spill] sm:$0xff] }
 0x4de   :  { %2536 = vmatmul.mubr.bf16.vlgmr.msra.gmra.mrb[28].mxu0 %v2502_v7  ;;  %2579 = vmatmul.mubr.bf16.vlgmr.msra.gmra.mrb[28].mxu1 %v2502_v7  ;;  %v10894_v7 = vld [vmem:[#allocation94_spill] sm:$0xff] }
 0x4df   :  { %2590 = vmatpush1.bf16.msra.mxu0 %v7774_v46  ;;  %2633 = vmatpush1.bf16.msra.mxu1 %v7780_v32  ;;  %v10872_v46 = vld [vmem:[#allocation72_spill] sm:$0xff]  ;;  %v10873_v32 = vld [vmem:[#allocation73_spill] sm:$0xff] }
 0x4e0   :  { %2591 = vmatprep.subr.bf16.mxu0 %v7786_v41  ;;  %2634 = vmatprep.subr.bf16.mxu1 %v7792_v40  ;;  %v10874_v41 = vld [vmem:[#allocation74_spill] sm:$0xff] }
 0x4e1   :  { %2621 = vmatprep.mubr.bf16.mxu0 %v10562_v57  ;;  %2664 = vmatprep.mubr.bf16.mxu1 %v10562_v57 }
 0x4e3   :  { %2592 = vmatpush1.bf16.msra.mxu0 %v7800_v3  ;;  %2635 = vmatpush1.bf16.msra.mxu1 %v10868_v26 }
 0x4e4   :  { %2593 = vmatprep.subr.bf16.mxu0 %v10869_v8  ;;  %2636 = vmatprep.subr.bf16.mxu1 %v10870_v9  ;;  %v8135_v8 = vld [vmem:[%s10144_s3 + $0x4] ss:$16 sps:$4 sm:$0xff]   ;;  %v8141_v9 = vld [vmem:[%s10144_s3 + $0xc] ss:$16 sps:$4 sm:$0xff]  }
 0x4e7   :  { %2594 = vmatpush1.bf16.msra.mxu0 %v10871_v10  ;;  %2637 = vmatpush1.bf16.msra.mxu1 %v10872_v46 }
 0x4e8   :  { %2595 = vmatprep.subr.bf16.mxu0 %v10873_v32  ;;  %2638 = vmatprep.subr.bf16.mxu1 %v10874_v41 }
 0x4ea   :  { %v2393_v40 = vpop.f32.mrb[24].mxu0  ;;  %v2436_v11 = vpop.f32.mrb[24].mxu1 }
 0x4eb   :  { %v2445_v15 = vadd.f32 %v2393_v40, %v10875_v12  ;;  %v2395_v16 = vpop.f32.mrb[25].mxu0  ;;  %v2438_v3 = vpop.f32.mrb[25].mxu1  ;;  %2596 = vmatpush1.bf16.msra.mxu0 %v10876_v23  ;;  %2639 = vmatpush1.bf16.msra.mxu1 %v10877_v22  ;;  %v2447_v42 = vadd.f32 %v2436_v11, %v10886_v51 }
 0x4ec   :  { %v2446_v17 = vadd.f32 %v2395_v16, %v6940_v0  ;;  %v2397_v18 = vpop.f32.mrb[26].mxu0  ;;  %v2440_v19 = vpop.f32.mrb[26].mxu1  ;;  %2597 = vmatprep.subr.bf16.mxu0 %v10878_v56  ;;  %2640 = vmatprep.subr.bf16.mxu1 %v7869_v31  ;;  %v2448_v36 = vadd.f32 %v2438_v3, %v10883_v29  ;;  %v10884_v31 = vld [vmem:[#allocation82_spill] sm:$0xff] }
 0x4ed   :  { %v4793_v38 = vmul.f32 -1.442695, %v2445_v15  ;;  %v2449_v24 = vadd.f32 %v2397_v18, %v10875_v12  ;;  %v2399_v37 = vpop.f32.mrb[27].mxu0  ;;  %v2442_v49 = vpop.f32.mrb[27].mxu1  ;;  %v2451_v53 = vadd.f32 %v2440_v19, %v10886_v51 }
 0x4ee   :  { %v4795_v13 = vmul.f32 -1.442695, %v2446_v17  ;;  %v2450_v14 = vadd.f32 %v2399_v37, %v6940_v0  ;;  %v4797_v59 = vmul.f32 -1.442695, %v2448_v36  ;;  %v2452_v52 = vadd.f32 %v2442_v49, %v10883_v29  ;;  %v8185_v36 = vld [vmem:[%s10144_s3 + $0x20] ss:$16 sps:$4 sm:$0xff]  }
 0x4ef   :  { %5391 = vpow2.f32 %v4793_v38  ;;  %v4794_v21 = vmul.f32 -1.442695, %v2449_v24  ;;  %2598 = vmatpush1.bf16.msra.mxu0 %v10879_v1  ;;  %2641 = vmatpush1.bf16.msra.mxu1 %v10880_v30  ;;  %v8165_v30 = vld [vmem:[%s10144_s3 + $0x8] ss:$16 sps:$4 sm:$0xff]  }
 0x4f0   :  { %5393 = vpow2.f32 %v4795_v13  ;;  %v4796_v47 = vmul.f32 -1.442695, %v2450_v14  ;;  %2599 = vmatprep.subr.bf16.mxu0 %v10881_v34  ;;  %2642 = vmatprep.subr.bf16.mxu1 %v10882_v28  ;;  %v4798_v33 = vmul.f32 -1.442695, %v2452_v52  ;;  %v8171_v34 = vld [vmem:[%s10144_s3 + $0x24] ss:$16 sps:$4 sm:$0xff]  }
 0x4f1   :  { %5395 = vpow2.f32 %v4794_v21  ;;  %v8177_v28 = vld [vmem:[%s10144_s3 + $0x2c] ss:$16 sps:$4 sm:$0xff]  }
 0x4f2   :  { %5397 = vpow2.f32 %v4796_v47  ;;  %v8227_v52 = vld [vmem:[%s10144_s3 + $0x6c] ss:$16 sps:$4 sm:$0xff]  }
 0x4f3   :  { %2600 = vmatpush1.bf16.msra.mxu0 %v10884_v31  ;;  %2643 = vmatpush1.bf16.msra.mxu1 %v10885_v63  ;;  %5399 = vtanh.f32 %v2447_v42  ;;  %v8191_v31 = vld [vmem:[%s10144_s3 + $0x28] ss:$16 sps:$4 sm:$0xff]   ;;  %v8197_v63 = vld [vmem:[%s10144_s3 + $0x44] ss:$16 sps:$4 sm:$0xff]   ;;  %v8203_v42 = vld [vmem:[%s10144_s3 + $0x4c] ss:$16 sps:$4 sm:$0xff]  }
 0x4f4   :  { %2601 = vmatprep.subr.bf16.mxu0 %v10887_v43  ;;  %2644 = vmatprep.subr.bf16.mxu1 %v10888_v44  ;;  %5401 = vpow2.f32 %v4797_v59  ;;  %v8209_v43 = vld [vmem:[%s10144_s3 + $0x40] ss:$16 sps:$4 sm:$0xff]   ;;  %v8215_v44 = vld [vmem:[%s10144_s3 + $0x48] ss:$16 sps:$4 sm:$0xff]   ;;  %v8221_v59 = vld [vmem:[%s10144_s3 + $0x64] ss:$16 sps:$4 sm:$0xff]  }
 0x4f5   :  { %5403 = vtanh.f32 %v2451_v53  ;;  %v8233_v53 = vld [vmem:[%s10144_s3 + $0x60] ss:$16 sps:$4 sm:$0xff]  }
 0x4f7   :  { %2602 = vmatpush1.bf16.msra.mxu0 %v10889_v54  ;;  %2645 = vmatpush1.bf16.msra.mxu1 %v10890_v48  ;;  %v8239_v54 = vld [vmem:[%s10144_s3 + $0x68] ss:$16 sps:$4 sm:$0xff]   ;;  %v8245_v48 = vld [vmem:[%s10144_s3 + $0x84] ss:$16 sps:$4 sm:$0xff]  }
 0x4f8   :  { %2603 = vmatprep.subr.bf16.mxu0 %v10891_v62  ;;  %2646 = vmatprep.subr.bf16.mxu1 %v10892_v55  ;;  %v8257_v62 = vld [vmem:[%s10144_s3 + $0x80] ss:$16 sps:$4 sm:$0xff]   ;;  %v8263_v55 = vld [vmem:[%s10144_s3 + $0x88] ss:$16 sps:$4 sm:$0xff]  }
 0x4f9   :  { %v5392_v2 = vpop.eup %5391 }
 0x4fa   :  { %v5394_v39 = vpop.eup %5393  ;;  %v2459_v60 = vadd.f32 1.0, %v5392_v2  ;;  %v8251_v2 = vld [vmem:[%s10144_s3 + $0x8c] ss:$16 sps:$4 sm:$0xff]  }
 0x4fb   :  { %v2471_v61 = vadd.f32 1.0, %v5394_v39  ;;  %v5396_v58 = vpop.eup %5395  ;;  %2604 = vmatpush1.bf16.msra.mxu0 %v10893_v6  ;;  %2647 = vmatpush1.bf16.msra.mxu1 %v10894_v7  ;;  %v8269_v39 = vld [vmem:[%s10144_s3 + $0xa4] ss:$16 sps:$4 sm:$0xff]   ;;  %v8299_v6 = vld [vmem:[%s10144_s3 + $0xcc] ss:$16 sps:$4 sm:$0xff]  }
 0x4fc   :  { %5405 = vrcp.f32 %v2459_v60  ;;  %v2460_v26 = vadd.f32 1.0, %v5396_v58  ;;  %2734 = vmatprep.subr.bf16.mxu0 %v8135_v8  ;;  %2777 = vmatprep.subr.bf16.mxu1 %v8141_v9  ;;  %v5398_v10 = vpop.eup %5397  ;;  %v8275_v60 = vld [vmem:[%s10144_s3 + $0xac] ss:$16 sps:$4 sm:$0xff]   ;;  %v8293_v58 = vld [vmem:[%s10144_s3 + $0xc4] ss:$16 sps:$4 sm:$0xff]  }
 0x4fd   :  { %5407 = vrcp.f32 %v2471_v61  ;;  %v2472_v46 = vadd.f32 1.0, %v5398_v10  ;;  %v5400_v32 = vpop.eup %5399  ;;  %v8287_v61 = vld [vmem:[%s10144_s3 + $0xa8] ss:$16 sps:$4 sm:$0xff]   ;;  %v8305_v7 = vld [vmem:[%s10144_s3 + $0xc0] ss:$16 sps:$4 sm:$0xff]  }
 0x4fe   :  { %5409 = vpow2.f32 %v4798_v33  ;;  %v5402_v41 = vpop.eup %5401  ;;  %v8281_v33 = vld [vmem:[%s10144_s3 + $0xa0] ss:$16 sps:$4 sm:$0xff]   ;;  %v8317_v10 = vld [vmem:[%s10144_s3 + $0xe4] ss:$16 sps:$4 sm:$0xff]  }
 0x4ff   :  { %5411 = vrcp.f32 %v2460_v26  ;;  %v5404_v40 = vpop.eup %5403  ;;  %v2485_v19 = vadd.f32 1.0, %v5402_v41  ;;  %v8311_v26 = vld [vmem:[%s10144_s3 + $0xc8] ss:$16 sps:$4 sm:$0xff]  }
 0x500   :  { %5413 = vrcp.f32 %v2472_v46  ;;  %v8323_v46 = vld [vmem:[%s10144_s3 + $0xec] ss:$16 sps:$4 sm:$0xff]   ;;  %v8335_v41 = vld [vmem:[%s10144_s3 + $0xe8] ss:$16 sps:$4 sm:$0xff]  }
 0x501   :  { %5415 = vrcp.f32 %v2485_v19  ;;  %v8387_v19 = vld [vmem:[%s10145_s1 + $0x28] ss:$16 sps:$4 sm:$0xff]  }
 0x502   :  { %10901 = vst [vmem:[#allocation9_spill] sm:$0xff] %v8387_v19 }
 0x506   :  { %v5406_v11 = vpop.eup %5405 }
 0x507   :  { %v5408_v15 = vpop.eup %5407  ;;  %v2493_v16 = vmul.f32 %v5406_v11, %v5400_v32  ;;  %v8329_v32 = vld [vmem:[%s10144_s3 + $0xe0] ss:$16 sps:$4 sm:$0xff]   ;;  %v8347_v11 = vld [vmem:[%s10145_s1 + $0xc] ss:$16 sps:$4 sm:$0xff]  }
 0x508   :  { %v5410_v3 = vpop.eup %5409  ;;  %v2491_v17 = vmul.f32 %v5408_v15, %v7964_v35  ;;  %10895 = vst [vmem:[#allocation3_spill] sm:$0xff] %v8347_v11  ;;  %v8355_v15 = vld [vmem:[%s10145_s1] ss:$16 sps:$4 sm:$0xff]  }
 0x509   :  { %v5412_v18 = vpop.eup %5411  ;;  %v2486_v24 = vadd.f32 1.0, %v5410_v3  ;;  %10896 = vst [vmem:[#allocation4_spill] sm:$0xff] %v8355_v15  ;;  %v8367_v3 = vld [vmem:[%s10145_s1 + $0x24] ss:$16 sps:$4 sm:$0xff]  }
 0x50a   :  { %v8145_v23 = vadd.f32 %v2493_v16, %v2491_v17  ;;  %v2494_v22 = vmul.f32 %v5412_v18, %v5404_v40  ;;  %v5414_v38 = vpop.eup %5413  ;;  %v8341_v40 = vld [vmem:[%s10145_s1 + $0x4] ss:$16 sps:$4 sm:$0xff]   ;;  %v8361_v16 = vld [vmem:[%s10145_s1 + $0x8] ss:$16 sps:$4 sm:$0xff]   ;;  %10898 = vst [vmem:[#allocation6_spill] sm:$0xff] %v8367_v3 }
 0x50b   :  { %v2492_v37 = vmul.f32 %v5414_v38, %v7968_v27  ;;  %v5416_v56 = vpop.eup %5415  ;;  %v8159_v27 = vld [vmem:[%s10144_s3] ss:$16 sps:$4 sm:$0xff]   ;;  %10897 = vst [vmem:[#allocation5_spill] sm:$0xff] %v8361_v16  ;;  %v8373_v17 = vld [vmem:[%s10145_s1 + $0x2c] ss:$16 sps:$4 sm:$0xff]  }
 0x50c   :  { %5417 = vtanh.f32 %v8145_v23  ;;  %10899 = vst [vmem:[#allocation7_spill] sm:$0xff] %v8373_v17  ;;  %v8381_v18 = vld [vmem:[%s10145_s1 + $0x20] ss:$16 sps:$4 sm:$0xff]   ;;  %v8399_v38 = vld [vmem:[%s10145_s1 + $0x4c] ss:$16 sps:$4 sm:$0xff]  }
 0x50d   :  { %v8149_v49 = vadd.f32 %v2494_v22, %v2492_v37  ;;  %5419 = vrcp.f32 %v2486_v24  ;;  %10900 = vst [vmem:[#allocation8_spill] sm:$0xff] %v8381_v18  ;;  %v8393_v22 = vld [vmem:[%s10145_s1 + $0x44] ss:$16 sps:$4 sm:$0xff]   ;;  %10903 = vst [vmem:[#allocation11_spill] sm:$0xff] %v8399_v38  ;;  %v8405_v24 = vld [vmem:[%s10145_s1 + $0x40] ss:$16 sps:$4 sm:$0xff]  }
 0x50e   :  { %10902 = vst [vmem:[#allocation10_spill] sm:$0xff] %v8393_v22  ;;  %10904 = vst [vmem:[#allocation12_spill] sm:$0xff] %v8405_v24  ;;  %v8411_v37 = vld [vmem:[%s10145_s1 + $0x48] ss:$16 sps:$4 sm:$0xff]  }
 0x50f   :  { %5421 = vtanh.f32 %v8149_v49  ;;  %10905 = vst [vmem:[#allocation13_spill] sm:$0xff] %v8411_v37 }
 0x516   :  { %v5418_v13 = vpop.eup %5417 }
 0x517   :  { %v5420_v35 = vpop.eup %5419  ;;  %v2499_v21 = vmul.f32 %v5418_v13, %v5416_v56  ;;  %v8417_v56 = vld [vmem:[%s10145_s1 + $0x64] ss:$16 sps:$4 sm:$0xff]   ;;  %v8423_v13 = vld [vmem:[%s10145_s1 + $0x6c] ss:$16 sps:$4 sm:$0xff]  }
 0x518   :  { %10906 = vst [vmem:[#allocation14_spill] sm:$0xff] %v8417_v56  ;;  %10907 = vst [vmem:[#allocation15_spill] sm:$0xff] %v8423_v13 }
 0x519   :  { %v5422_v14 = vpop.eup %5421 }
 0x51a   :  { %v2500_v47 = vmul.f32 %v5422_v14, %v5420_v35  ;;  %v8429_v35 = vld [vmem:[%s10145_s1 + $0x60] ss:$16 sps:$4 sm:$0xff]   ;;  %v8435_v14 = vld [vmem:[%s10145_s1 + $0x68] ss:$16 sps:$4 sm:$0xff]  }
 0x51b   :  { %10908 = vst [vmem:[#allocation16_spill] sm:$0xff] %v8429_v35  ;;  %10909 = vst [vmem:[#allocation17_spill] sm:$0xff] %v8435_v14 }
 0x51c   :  { %v8152_v1 = vpack.c.bf16 %v2500_v47, %v2499_v21  ;;  %v8441_v21 = vld [vmem:[%s10145_s1 + $0x84] ss:$16 sps:$4 sm:$0xff]   ;;  %v8447_v47 = vld [vmem:[%s10145_s1 + $0x8c] ss:$16 sps:$4 sm:$0xff]  }
 0x51d   :  { %10910 = vst [vmem:[#allocation18_spill] sm:$0xff] %v8441_v21  ;;  %10911 = vst [vmem:[#allocation19_spill] sm:$0xff] %v8447_v47 }
 0x51e   :  { %2622 = vmatmul.mubr.bf16.vlgmr.msra.gmra.mrb[28].mxu0 %v8152_v1  ;;  %2665 = vmatmul.mubr.bf16.vlgmr.msra.gmra.mrb[28].mxu1 %v8152_v1 }
 0x51f   :  { %2735 = vmatpush1.bf16.msra.mxu0 %v8159_v27  ;;  %2778 = vmatpush1.bf16.msra.mxu1 %v8165_v30 }
 0x520   :  { %2736 = vmatprep.subr.bf16.mxu0 %v8171_v34  ;;  %2779 = vmatprep.subr.bf16.mxu1 %v8177_v28 }
 0x521   :  { %2766 = vmatprep.mubr.bf16.mxu0 %v10562_v57  ;;  %2809 = vmatprep.mubr.bf16.mxu1 %v10562_v57 }
 0x523   :  { %2737 = vmatpush1.bf16.msra.mxu0 %v8185_v36  ;;  %2780 = vmatpush1.bf16.msra.mxu1 %v8191_v31 }
 0x524   :  { %2738 = vmatprep.subr.bf16.mxu0 %v8197_v63  ;;  %2781 = vmatprep.subr.bf16.mxu1 %v8203_v42 }
 0x527   :  { %2739 = vmatpush1.bf16.msra.mxu0 %v8209_v43  ;;  %2782 = vmatpush1.bf16.msra.mxu1 %v8215_v44 }
 0x528   :  { %2740 = vmatprep.subr.bf16.mxu0 %v8221_v59  ;;  %2783 = vmatprep.subr.bf16.mxu1 %v8227_v52 }
 0x52b   :  { %2741 = vmatpush1.bf16.msra.mxu0 %v8233_v53  ;;  %2784 = vmatpush1.bf16.msra.mxu1 %v8239_v54 }
 0x52c   :  { %2742 = vmatprep.subr.bf16.mxu0 %v8245_v48  ;;  %2785 = vmatprep.subr.bf16.mxu1 %v8251_v2 }
 0x52f   :  { %2743 = vmatpush1.bf16.msra.mxu0 %v8257_v62  ;;  %2786 = vmatpush1.bf16.msra.mxu1 %v8263_v55 }
 0x530   :  { %2744 = vmatprep.subr.bf16.mxu0 %v8269_v39  ;;  %2787 = vmatprep.subr.bf16.mxu1 %v8275_v60 }
 0x533   :  { %2745 = vmatpush1.bf16.msra.mxu0 %v8281_v33  ;;  %2788 = vmatpush1.bf16.msra.mxu1 %v8287_v61 }
 0x534   :  { %2746 = vmatprep.subr.bf16.mxu0 %v8293_v58  ;;  %2789 = vmatprep.subr.bf16.mxu1 %v8299_v6 }
 0x537   :  { %2747 = vmatpush1.bf16.msra.mxu0 %v8305_v7  ;;  %2790 = vmatpush1.bf16.msra.mxu1 %v8311_v26 }
 0x538   :  { %2748 = vmatprep.subr.bf16.mxu0 %v8317_v10  ;;  %2791 = vmatprep.subr.bf16.mxu1 %v8323_v46 }
 0x53b   :  { %2749 = vmatpush1.bf16.msra.mxu0 %v8329_v32  ;;  %2792 = vmatpush1.bf16.msra.mxu1 %v8335_v41 }
 0x53c   :  { %2826 = vmatprep.subr.bf16.mxu0 %v8341_v40  ;;  %2869 = vmatprep.subr.bf16.mxu1 %v8347_v11 }
 0x53e   :  { %2767 = vmatmul.mubr.bf16.vlgmr.msra.gmra.mrb[32].mxu0 %v8152_v1  ;;  %2810 = vmatmul.mubr.bf16.vlgmr.msra.gmra.mrb[32].mxu1 %v8152_v1  ;;  %v8453_v1 = vld [vmem:[%s10145_s1 + $0x80] ss:$16 sps:$4 sm:$0xff]  }
 0x53f   :  { %2827 = vmatpush1.bf16.msra.mxu0 %v8355_v15  ;;  %2870 = vmatpush1.bf16.msra.mxu1 %v8361_v16  ;;  %10912 = vst [vmem:[#allocation20_spill] sm:$0xff] %v8453_v1 }
 0x540   :  { %2828 = vmatprep.subr.bf16.mxu0 %v8367_v3  ;;  %2871 = vmatprep.subr.bf16.mxu1 %v8373_v17 }
 0x541   :  { %2858 = vmatprep.mubr.bf16.mxu0 %v10562_v57  ;;  %2901 = vmatprep.mubr.bf16.mxu1 %v10562_v57 }
 0x543   :  { %2829 = vmatpush1.bf16.msra.mxu0 %v8381_v18  ;;  %2872 = vmatpush1.bf16.msra.mxu1 %v8387_v19 }
 0x544   :  { %2830 = vmatprep.subr.bf16.mxu0 %v8393_v22  ;;  %2873 = vmatprep.subr.bf16.mxu1 %v8399_v38 }
 0x547   :  { %2831 = vmatpush1.bf16.msra.mxu0 %v8405_v24  ;;  %2874 = vmatpush1.bf16.msra.mxu1 %v8411_v37 }
 0x548   :  { %2832 = vmatprep.subr.bf16.mxu0 %v8417_v56  ;;  %2875 = vmatprep.subr.bf16.mxu1 %v8423_v13 }
 0x54b   :  { %2833 = vmatpush1.bf16.msra.mxu0 %v8429_v35  ;;  %2876 = vmatpush1.bf16.msra.mxu1 %v8435_v14  ;;  %v8459_v14 = vld [vmem:[%s10145_s1 + $0x88] ss:$16 sps:$4 sm:$0xff]   ;;  %v8546_v35 = vld [vmem:[%s10147_s4 + $0xc] ss:$16 sps:$4 sm:$0xff]  }
 0x54c   :  { %2834 = vmatprep.subr.bf16.mxu0 %v8441_v21  ;;  %2877 = vmatprep.subr.bf16.mxu1 %v8447_v47  ;;  %10913 = vst [vmem:[#allocation21_spill] sm:$0xff] %v8459_v14  ;;  %v8465_v21 = vld [vmem:[%s10145_s1 + $0xa4] ss:$16 sps:$4 sm:$0xff]   ;;  %v8471_v47 = vld [vmem:[%s10145_s1 + $0xac] ss:$16 sps:$4 sm:$0xff]   ;;  %10927 = vst [vmem:[#allocation35_spill] sm:$0xff] %v8546_v35 }
 0x54d   :  { %10914 = vst [vmem:[#allocation22_spill] sm:$0xff] %v8465_v21  ;;  %10915 = vst [vmem:[#allocation23_spill] sm:$0xff] %v8471_v47 }
 0x54f   :  { %2835 = vmatpush1.bf16.msra.mxu0 %v8453_v1  ;;  %2878 = vmatpush1.bf16.msra.mxu1 %v8459_v14  ;;  %v8477_v1 = vld [vmem:[%s10145_s1 + $0xa0] ss:$16 sps:$4 sm:$0xff]   ;;  %v8483_v14 = vld [vmem:[%s10145_s1 + $0xa8] ss:$16 sps:$4 sm:$0xff]  }
 0x550   :  { %2836 = vmatprep.subr.bf16.mxu0 %v8465_v21  ;;  %2879 = vmatprep.subr.bf16.mxu1 %v8471_v47  ;;  %10916 = vst [vmem:[#allocation24_spill] sm:$0xff] %v8477_v1  ;;  %10917 = vst [vmem:[#allocation25_spill] sm:$0xff] %v8483_v14  ;;  %v8489_v21 = vld [vmem:[%s10145_s1 + $0xc4] ss:$16 sps:$4 sm:$0xff]   ;;  %v8495_v47 = vld [vmem:[%s10145_s1 + $0xcc] ss:$16 sps:$4 sm:$0xff]  }
 0x551   :  { %10918 = vst [vmem:[#allocation26_spill] sm:$0xff] %v8489_v21  ;;  %10919 = vst [vmem:[#allocation27_spill] sm:$0xff] %v8495_v47 }
 0x553   :  { %2837 = vmatpush1.bf16.msra.mxu0 %v8477_v1  ;;  %2880 = vmatpush1.bf16.msra.mxu1 %v8483_v14  ;;  %v8501_v1 = vld [vmem:[%s10145_s1 + $0xc0] ss:$16 sps:$4 sm:$0xff]   ;;  %v8507_v14 = vld [vmem:[%s10145_s1 + $0xc8] ss:$16 sps:$4 sm:$0xff]  }
 0x554   :  { %2838 = vmatprep.subr.bf16.mxu0 %v8489_v21  ;;  %2881 = vmatprep.subr.bf16.mxu1 %v8495_v47  ;;  %10920 = vst [vmem:[#allocation28_spill] sm:$0xff] %v8501_v1  ;;  %10921 = vst [vmem:[#allocation29_spill] sm:$0xff] %v8507_v14  ;;  %v8513_v21 = vld [vmem:[%s10145_s1 + $0xe4] ss:$16 sps:$4 sm:$0xff]   ;;  %v8519_v47 = vld [vmem:[%s10145_s1 + $0xec] ss:$16 sps:$4 sm:$0xff]  }
 0x555   :  { %10922 = vst [vmem:[#allocation30_spill] sm:$0xff] %v8513_v21  ;;  %10923 = vst [vmem:[#allocation31_spill] sm:$0xff] %v8519_v47 }
 0x557   :  { %2839 = vmatpush1.bf16.msra.mxu0 %v8501_v1  ;;  %2882 = vmatpush1.bf16.msra.mxu1 %v8507_v14  ;;  %v5195_v1 = vld [vmem:[%s10146_s0 + $0x20] sm:$0xff]  }
 0x558   :  { %2840 = vmatprep.subr.bf16.mxu0 %v8513_v21  ;;  %2883 = vmatprep.subr.bf16.mxu1 %v8519_v47  ;;  %v8528_v14 = vld [vmem:[%s10145_s1 + $0xe0] ss:$16 sps:$4 sm:$0xff]   ;;  %v8534_v21 = vld [vmem:[%s10145_s1 + $0xe8] ss:$16 sps:$4 sm:$0xff]   ;;  %v8540_v47 = vld [vmem:[%s10147_s4 + $0x4] ss:$16 sps:$4 sm:$0xff]  }
 0x559   :  { %10924 = vst [vmem:[#allocation32_spill] sm:$0xff] %v8528_v14  ;;  %10925 = vst [vmem:[#allocation33_spill] sm:$0xff] %v8534_v21 }
 0x55a   :  { %10926 = vst [vmem:[#allocation34_spill] sm:$0xff] %v8540_v47 }
 0x55b   :  { %2841 = vmatpush1.bf16.msra.mxu0 %v8528_v14  ;;  %2884 = vmatpush1.bf16.msra.mxu1 %v8534_v21  ;;  %v8552_v21 = vld [vmem:[%s10147_s4] ss:$16 sps:$4 sm:$0xff]  }
 0x55c   :  { %2970 = vmatprep.subr.bf16.mxu0 %v8540_v47  ;;  %3013 = vmatprep.subr.bf16.mxu1 %v8546_v35  ;;  %10928 = vst [vmem:[#allocation36_spill] sm:$0xff] %v8552_v21  ;;  %v8558_v47 = vld [vmem:[%s10147_s4 + $0x8] ss:$16 sps:$4 sm:$0xff]   ;;  %v8564_v35 = vld [vmem:[%s10147_s4 + $0x24] ss:$16 sps:$4 sm:$0xff]  }
 0x55d   :  { %10929 = vst [vmem:[#allocation37_spill] sm:$0xff] %v8558_v47  ;;  %10930 = vst [vmem:[#allocation38_spill] sm:$0xff] %v8564_v35 }
 0x55e   :  { %2859 = vmatmul.mubr.bf16.vlgmr.msra.gmra.mrb[32].mxu0 %v5195_v1  ;;  %2902 = vmatmul.mubr.bf16.vlgmr.msra.gmra.mrb[32].mxu1 %v5195_v1  ;;  %v8570_v1 = vld [vmem:[%s10147_s4 + $0x2c] ss:$16 sps:$4 sm:$0xff]  }
 0x55f   :  { %2971 = vmatpush1.bf16.msra.mxu0 %v8552_v21  ;;  %3014 = vmatpush1.bf16.msra.mxu1 %v8558_v47  ;;  %10931 = vst [vmem:[#allocation39_spill] sm:$0xff] %v8570_v1  ;;  %v8578_v47 = vld [vmem:[%s10147_s4 + $0x20] ss:$16 sps:$4 sm:$0xff]   ;;  %v8596_v21 = vld [vmem:[%s10147_s4 + $0x4c] ss:$16 sps:$4 sm:$0xff]  }
 0x560   :  { %2972 = vmatprep.subr.bf16.mxu0 %v8564_v35  ;;  %3015 = vmatprep.subr.bf16.mxu1 %v8570_v1  ;;  %10932 = vst [vmem:[#allocation40_spill] sm:$0xff] %v8578_v47  ;;  %v8584_v35 = vld [vmem:[%s10147_s4 + $0x28] ss:$16 sps:$4 sm:$0xff]   ;;  %v8590_v1 = vld [vmem:[%s10147_s4 + $0x44] ss:$16 sps:$4 sm:$0xff]   ;;  %10935 = vst [vmem:[#allocation43_spill] sm:$0xff] %v8596_v21 }
 0x561   :  { %3002 = vmatprep.mubr.bf16.mxu0 %v10562_v57  ;;  %3045 = vmatprep.mubr.bf16.mxu1 %v10562_v57  ;;  %10933 = vst [vmem:[#allocation41_spill] sm:$0xff] %v8584_v35  ;;  %10934 = vst [vmem:[#allocation42_spill] sm:$0xff] %v8590_v1 }
 0x563   :  { %2973 = vmatpush1.bf16.msra.mxu0 %v8578_v47  ;;  %3016 = vmatpush1.bf16.msra.mxu1 %v8584_v35  ;;  %v8602_v47 = vld [vmem:[%s10147_s4 + $0x40] ss:$16 sps:$4 sm:$0xff]   ;;  %v8608_v35 = vld [vmem:[%s10147_s4 + $0x48] ss:$16 sps:$4 sm:$0xff]  }
 0x564   :  { %2974 = vmatprep.subr.bf16.mxu0 %v8590_v1  ;;  %3017 = vmatprep.subr.bf16.mxu1 %v8596_v21  ;;  %10936 = vst [vmem:[#allocation44_spill] sm:$0xff] %v8602_v47  ;;  %10937 = vst [vmem:[#allocation45_spill] sm:$0xff] %v8608_v35  ;;  %v8614_v1 = vld [vmem:[%s10147_s4 + $0x64] ss:$16 sps:$4 sm:$0xff]   ;;  %v8620_v21 = vld [vmem:[%s10147_s4 + $0x6c] ss:$16 sps:$4 sm:$0xff]  }
 0x565   :  { %10938 = vst [vmem:[#allocation46_spill] sm:$0xff] %v8614_v1  ;;  %10939 = vst [vmem:[#allocation47_spill] sm:$0xff] %v8620_v21 }
 0x567   :  { %2975 = vmatpush1.bf16.msra.mxu0 %v8602_v47  ;;  %3018 = vmatpush1.bf16.msra.mxu1 %v8608_v35  ;;  %v8626_v47 = vld [vmem:[%s10147_s4 + $0x60] ss:$16 sps:$4 sm:$0xff]   ;;  %v8632_v35 = vld [vmem:[%s10147_s4 + $0x68] ss:$16 sps:$4 sm:$0xff]  }
 0x568   :  { %2976 = vmatprep.subr.bf16.mxu0 %v8614_v1  ;;  %3019 = vmatprep.subr.bf16.mxu1 %v8620_v21  ;;  %10940 = vst [vmem:[#allocation48_spill] sm:$0xff] %v8626_v47  ;;  %10941 = vst [vmem:[#allocation49_spill] sm:$0xff] %v8632_v35  ;;  %v8638_v1 = vld [vmem:[%s10147_s4 + $0x84] ss:$16 sps:$4 sm:$0xff]   ;;  %v8644_v21 = vld [vmem:[%s10147_s4 + $0x8c] ss:$16 sps:$4 sm:$0xff]  }
 0x569   :  { %10942 = vst [vmem:[#allocation50_spill] sm:$0xff] %v8638_v1  ;;  %10943 = vst [vmem:[#allocation51_spill] sm:$0xff] %v8644_v21 }
 0x56b   :  { %2977 = vmatpush1.bf16.msra.mxu0 %v8626_v47  ;;  %3020 = vmatpush1.bf16.msra.mxu1 %v8632_v35  ;;  %v8650_v47 = vld [vmem:[%s10147_s4 + $0x80] ss:$16 sps:$4 sm:$0xff]   ;;  %v8656_v35 = vld [vmem:[%s10147_s4 + $0x88] ss:$16 sps:$4 sm:$0xff]  }
 0x56c   :  { %2978 = vmatprep.subr.bf16.mxu0 %v8638_v1  ;;  %3021 = vmatprep.subr.bf16.mxu1 %v8644_v21  ;;  %10944 = vst [vmem:[#allocation52_spill] sm:$0xff] %v8650_v47  ;;  %10945 = vst [vmem:[#allocation53_spill] sm:$0xff] %v8656_v35  ;;  %v8662_v1 = vld [vmem:[%s10147_s4 + $0xa4] ss:$16 sps:$4 sm:$0xff]   ;;  %v8668_v21 = vld [vmem:[%s10147_s4 + $0xac] ss:$16 sps:$4 sm:$0xff]  }
 0x56d   :  { %10946 = vst [vmem:[#allocation54_spill] sm:$0xff] %v8662_v1  ;;  %10947 = vst [vmem:[#allocation55_spill] sm:$0xff] %v8668_v21 }
 0x56f   :  { %2979 = vmatpush1.bf16.msra.mxu0 %v8650_v47  ;;  %3022 = vmatpush1.bf16.msra.mxu1 %v8656_v35  ;;  %v8674_v47 = vld [vmem:[%s10147_s4 + $0xa0] ss:$16 sps:$4 sm:$0xff]   ;;  %v8680_v35 = vld [vmem:[%s10147_s4 + $0xa8] ss:$16 sps:$4 sm:$0xff]  }
 0x570   :  { %2980 = vmatprep.subr.bf16.mxu0 %v8662_v1  ;;  %3023 = vmatprep.subr.bf16.mxu1 %v8668_v21  ;;  %10948 = vst [vmem:[#allocation56_spill] sm:$0xff] %v8674_v47  ;;  %10949 = vst [vmem:[#allocation57_spill] sm:$0xff] %v8680_v35  ;;  %v8686_v1 = vld [vmem:[%s10147_s4 + $0xc4] ss:$16 sps:$4 sm:$0xff]   ;;  %v8692_v21 = vld [vmem:[%s10147_s4 + $0xcc] ss:$16 sps:$4 sm:$0xff]  }
 0x571   :  { %10950 = vst [vmem:[#allocation58_spill] sm:$0xff] %v8686_v1  ;;  %10951 = vst [vmem:[#allocation59_spill] sm:$0xff] %v8692_v21 }
 0x573   :  { %2981 = vmatpush1.bf16.msra.mxu0 %v8674_v47  ;;  %3024 = vmatpush1.bf16.msra.mxu1 %v8680_v35  ;;  %v8698_v47 = vld [vmem:[%s10147_s4 + $0xc0] ss:$16 sps:$4 sm:$0xff]   ;;  %v8704_v35 = vld [vmem:[%s10147_s4 + $0xc8] ss:$16 sps:$4 sm:$0xff]  }
 0x574   :  { %2982 = vmatprep.subr.bf16.mxu0 %v8686_v1  ;;  %3025 = vmatprep.subr.bf16.mxu1 %v8692_v21  ;;  %10952 = vst [vmem:[#allocation60_spill] sm:$0xff] %v8698_v47  ;;  %10953 = vst [vmem:[#allocation61_spill] sm:$0xff] %v8704_v35  ;;  %v8710_v1 = vld [vmem:[%s10147_s4 + $0xe4] ss:$16 sps:$4 sm:$0xff]   ;;  %v8716_v21 = vld [vmem:[%s10147_s4 + $0xec] ss:$16 sps:$4 sm:$0xff]  }
 0x575   :  { %10954 = vst [vmem:[#allocation62_spill] sm:$0xff] %v8710_v1  ;;  %10955 = vst [vmem:[#allocation63_spill] sm:$0xff] %v8716_v21 }
 0x577   :  { %2983 = vmatpush1.bf16.msra.mxu0 %v8698_v47  ;;  %3026 = vmatpush1.bf16.msra.mxu1 %v8704_v35  ;;  %v8722_v47 = vld [vmem:[%s10147_s4 + $0xe0] ss:$16 sps:$4 sm:$0xff]   ;;  %v8728_v35 = vld [vmem:[%s10147_s4 + $0xe8] ss:$16 sps:$4 sm:$0xff]  }
 0x578   :  { %2984 = vmatprep.subr.bf16.mxu0 %v8710_v1  ;;  %3027 = vmatprep.subr.bf16.mxu1 %v8716_v21  ;;  %10956 = vst [vmem:[#allocation64_spill] sm:$0xff] %v8722_v47  ;;  %10957 = vst [vmem:[#allocation65_spill] sm:$0xff] %v8728_v35  ;;  %v8734_v1 = vld [vmem:[%s10148_s2 + $0x4] ss:$16 sps:$4 sm:$0xff]   ;;  %v8740_v21 = vld [vmem:[%s10148_s2 + $0xc] ss:$16 sps:$4 sm:$0xff]  }
 0x579   :  { %10958 = vst [vmem:[#allocation66_spill] sm:$0xff] %v8734_v1  ;;  %10959 = vst [vmem:[#allocation67_spill] sm:$0xff] %v8740_v21 }
 0x57b   :  { %2985 = vmatpush1.bf16.msra.mxu0 %v8722_v47  ;;  %3028 = vmatpush1.bf16.msra.mxu1 %v8728_v35 }
 0x57c   :  { %3056 = vmatprep.subr.bf16.mxu0 %v8734_v1  ;;  %3099 = vmatprep.subr.bf16.mxu1 %v8740_v21 }
 0x5f1   :  { %v2623_v47 = vpop.f32.mrb[28].mxu0  ;;  %v2666_v14 = vpop.f32.mrb[28].mxu1 }
 0x5f2   :  { %v2675_v13 = vadd.f32 %v2623_v47, %v10867_v4  ;;  %v2625_v56 = vpop.f32.mrb[29].mxu0  ;;  %v2668_v35 = vpop.f32.mrb[29].mxu1 }
 0x5f3   :  { %v2676_v37 = vadd.f32 %v2625_v56, %v7080_v5  ;;  %v2627_v24 = vpop.f32.mrb[30].mxu0  ;;  %v2670_v38 = vpop.f32.mrb[30].mxu1  ;;  %v2678_v47 = vadd.f32 %v2668_v35, %v7087_v20  ;;  %v2677_v56 = vadd.f32 %v2666_v14, %v7092_v25 }
 0x5f4   :  { %v4799_v22 = vmul.f32 -1.442695, %v2675_v13  ;;  %v2679_v1 = vadd.f32 %v2627_v24, %v10867_v4  ;;  %v2629_v19 = vpop.f32.mrb[31].mxu0  ;;  %v2672_v18 = vpop.f32.mrb[31].mxu1  ;;  %v2681_v24 = vadd.f32 %v2670_v38, %v7092_v25 }
 0x5f5   :  { %v4801_v17 = vmul.f32 -1.442695, %v2676_v37  ;;  %v2680_v3 = vadd.f32 %v2629_v19, %v7080_v5  ;;  %v4803_v15 = vmul.f32 -1.442695, %v2678_v47  ;;  %v2682_v13 = vadd.f32 %v2672_v18, %v7087_v20 }
 0x5f6   :  { %5423 = vpow2.f32 %v4799_v22  ;;  %v4800_v21 = vmul.f32 -1.442695, %v2679_v1 }
 0x5f7   :  { %5425 = vpow2.f32 %v4801_v17  ;;  %v4802_v16 = vmul.f32 -1.442695, %v2680_v3  ;;  %v4804_v19 = vmul.f32 -1.442695, %v2682_v13 }
 0x5f8   :  { %5427 = vpow2.f32 %v4800_v21 }
 0x5f9   :  { %5429 = vpow2.f32 %v4802_v16 }
 0x5fa   :  { %5431 = vtanh.f32 %v2677_v56 }
 0x5fb   :  { %5433 = vpow2.f32 %v4803_v15 }
 0x5fc   :  { %5435 = vtanh.f32 %v2681_v24 }
 0x600   :  { %v5424_v4 = vpop.eup %5423 }
 0x601   :  { %v5426_v37 = vpop.eup %5425  ;;  %v2689_v11 = vadd.f32 1.0, %v5424_v4 }
 0x602   :  { %v2701_v22 = vadd.f32 1.0, %v5426_v37  ;;  %v5428_v3 = vpop.eup %5427 }
 0x603   :  { %5437 = vrcp.f32 %v2689_v11  ;;  %v2690_v17 = vadd.f32 1.0, %v5428_v3  ;;  %v5430_v16 = vpop.eup %5429 }
 0x604   :  { %5439 = vrcp.f32 %v2701_v22  ;;  %v2702_v35 = vadd.f32 1.0, %v5430_v16  ;;  %v5432_v18 = vpop.eup %5431 }
 0x605   :  { %5441 = vpow2.f32 %v4804_v19  ;;  %v5434_v14 = vpop.eup %5433 }
 0x606   :  { %5443 = vrcp.f32 %v2690_v17  ;;  %v5436_v38 = vpop.eup %5435  ;;  %v2715_v13 = vadd.f32 1.0, %v5434_v14 }
 0x607   :  { %5445 = vrcp.f32 %v2702_v35 }
 0x608   :  { %5447 = vrcp.f32 %v2715_v13  ;;  %v8806_v13 = vld [vmem:[%s10148_s2 + $0x4c] ss:$16 sps:$4 sm:$0xff]  }
 0x609   :  { %10962 = vst [vmem:[#allocation70_spill] sm:$0xff] %v8806_v13 }
 0x60d   :  { %v5438_v21 = vpop.eup %5437 }
 0x60e   :  { %v5440_v1 = vpop.eup %5439  ;;  %v2723_v47 = vmul.f32 %v5438_v21, %v5432_v18 }
 0x60f   :  { %v5442_v4 = vpop.eup %5441  ;;  %v2721_v15 = vmul.f32 %v5440_v1, %v8085_v50  ;;  %v8774_v1 = vld [vmem:[%s10148_s2 + $0x24] ss:$16 sps:$4 sm:$0xff]  }
 0x610   :  { %v5444_v56 = vpop.eup %5443  ;;  %v2716_v22 = vadd.f32 1.0, %v5442_v4  ;;  %v8788_v4 = vld [vmem:[%s10148_s2 + $0x20] ss:$16 sps:$4 sm:$0xff]  }
 0x611   :  { %v8752_v24 = vadd.f32 %v2723_v47, %v2721_v15  ;;  %v2724_v11 = vmul.f32 %v5444_v56, %v5436_v38  ;;  %v5446_v37 = vpop.eup %5445  ;;  %v8768_v38 = vld [vmem:[%s10148_s2 + $0x8] ss:$16 sps:$4 sm:$0xff]   ;;  %v8780_v47 = vld [vmem:[%s10148_s2 + $0x2c] ss:$16 sps:$4 sm:$0xff]   ;;  %v8800_v56 = vld [vmem:[%s10148_s2 + $0x44] ss:$16 sps:$4 sm:$0xff]  }
 0x612   :  { %v2722_v19 = vmul.f32 %v5446_v37, %v8089_v45  ;;  %v5448_v17 = vpop.eup %5447  ;;  %v8762_v45 = vld [vmem:[%s10148_s2] ss:$16 sps:$4 sm:$0xff]   ;;  %v8794_v15 = vld [vmem:[%s10148_s2 + $0x28] ss:$16 sps:$4 sm:$0xff]   ;;  %10961 = vst [vmem:[#allocation69_spill] sm:$0xff] %v8800_v56 }
 0x613   :  { %5449 = vtanh.f32 %v8752_v24  ;;  %10960 = vst [vmem:[#allocation68_spill] sm:$0xff] %v8794_v15  ;;  %v8818_v37 = vld [vmem:[%s10148_s2 + $0x48] ss:$16 sps:$4 sm:$0xff]  }
 0x614   :  { %v8756_v3 = vadd.f32 %v2724_v11, %v2722_v19  ;;  %5451 = vrcp.f32 %v2716_v22  ;;  %v8812_v11 = vld [vmem:[%s10148_s2 + $0x40] ss:$16 sps:$4 sm:$0xff]   ;;  %10964 = vst [vmem:[#allocation72_spill] sm:$0xff] %v8818_v37  ;;  %v8824_v22 = vld [vmem:[%s10148_s2 + $0x64] ss:$16 sps:$4 sm:$0xff]  }
 0x615   :  { %10963 = vst [vmem:[#allocation71_spill] sm:$0xff] %v8812_v11  ;;  %10965 = vst [vmem:[#allocation73_spill] sm:$0xff] %v8824_v22  ;;  %v8830_v19 = vld [vmem:[%s10148_s2 + $0x6c] ss:$16 sps:$4 sm:$0xff]  }
 0x616   :  { %5453 = vtanh.f32 %v8756_v3  ;;  %10966 = vst [vmem:[#allocation74_spill] sm:$0xff] %v8830_v19 }
 0x61d   :  { %v5450_v16 = vpop.eup %5449 }
 0x61e   :  { %v5452_v50 = vpop.eup %5451  ;;  %v2729_v18 = vmul.f32 %v5450_v16, %v5448_v17 }
 0x620   :  { %v5454_v35 = vpop.eup %5453 }
 0x621   :  { %v2730_v14 = vmul.f32 %v5454_v35, %v5452_v50 }
 0x623   :  { %v2969_v21 = vpack.c.bf16 %v2730_v14, %v2729_v18 }
 0x625   :  { %3003 = vmatmul.mubr.bf16.vlgmr.msra.gmra.mrb[36].mxu0 %v2969_v21  ;;  %3046 = vmatmul.mubr.bf16.vlgmr.msra.gmra.mrb[36].mxu1 %v2969_v21 }
 0x626   :  { %3057 = vmatpush1.bf16.msra.mxu0 %v8762_v45  ;;  %3100 = vmatpush1.bf16.msra.mxu1 %v8768_v38 }
 0x627   :  { %3058 = vmatprep.subr.bf16.mxu0 %v8774_v1  ;;  %3101 = vmatprep.subr.bf16.mxu1 %v8780_v47 }
 0x628   :  { %3088 = vmatprep.mubr.bf16.mxu0 %v10562_v57  ;;  %3131 = vmatprep.mubr.bf16.mxu1 %v10562_v57 }
 0x62a   :  { %3059 = vmatpush1.bf16.msra.mxu0 %v8788_v4  ;;  %3102 = vmatpush1.bf16.msra.mxu1 %v8794_v15  ;;  %v8864_v15 = vld [vmem:[%s10148_s2 + $0x80] ss:$16 sps:$4 sm:$0xff]  }
 0x62b   :  { %3060 = vmatprep.subr.bf16.mxu0 %v8800_v56  ;;  %3103 = vmatprep.subr.bf16.mxu1 %v8806_v13  ;;  %v8851_v56 = vld [vmem:[%s10148_s2 + $0x84] ss:$16 sps:$4 sm:$0xff]   ;;  %10970 = vst [vmem:[#allocation78_spill] sm:$0xff] %v8864_v15 }
 0x62c   :  { %10969 = vst [vmem:[#allocation77_spill] sm:$0xff] %v8851_v56 }
 0x62e   :  { %3061 = vmatpush1.bf16.msra.mxu0 %v8812_v11  ;;  %3104 = vmatpush1.bf16.msra.mxu1 %v8818_v37 }
 0x62f   :  { %3062 = vmatprep.subr.bf16.mxu0 %v8824_v22  ;;  %3105 = vmatprep.subr.bf16.mxu1 %v8830_v19  ;;  %v8838_v22 = vld [vmem:[%s10148_s2 + $0x60] ss:$16 sps:$4 sm:$0xff]   ;;  %v8844_v19 = vld [vmem:[%s10148_s2 + $0x68] ss:$16 sps:$4 sm:$0xff]  }
 0x630   :  { %10967 = vst [vmem:[#allocation75_spill] sm:$0xff] %v8838_v22  ;;  %10968 = vst [vmem:[#allocation76_spill] sm:$0xff] %v8844_v19 }
 0x631   :  { %v2860_v17 = vpop.f32.mrb[32].mxu0  ;;  %v2903_v16 = vpop.f32.mrb[32].mxu1 }
 0x632   :  { %v2912_v50 = vadd.f32 %v2860_v17, %v10875_v12  ;;  %v2862_v35 = vpop.f32.mrb[33].mxu0  ;;  %v2905_v18 = vpop.f32.mrb[33].mxu1  ;;  %3063 = vmatpush1.bf16.msra.mxu0 %v8838_v22  ;;  %3106 = vmatpush1.bf16.msra.mxu1 %v8844_v19  ;;  %v8857_v22 = vld [vmem:[%s10148_s2 + $0x8c] ss:$16 sps:$4 sm:$0xff]  }
 0x633   :  { %v2913_v14 = vadd.f32 %v2862_v35, %v6940_v0  ;;  %v2864_v21 = vpop.f32.mrb[34].mxu0  ;;  %v2907_v37 = vpop.f32.mrb[34].mxu1  ;;  %3064 = vmatprep.subr.bf16.mxu0 %v8851_v56  ;;  %3107 = vmatprep.subr.bf16.mxu1 %v8857_v22  ;;  %v8870_v56 = vld [vmem:[%s10148_s2 + $0x88] ss:$16 sps:$4 sm:$0xff]  }
 0x634   :  { %v4808_v17 = vmul.f32 -1.442695, %v2912_v50  ;;  %v2916_v11 = vadd.f32 %v2864_v21, %v10875_v12  ;;  %v2866_v35 = vpop.f32.mrb[35].mxu0  ;;  %v2909_v13 = vpop.f32.mrb[35].mxu1  ;;  %10971 = vst [vmem:[#allocation79_spill] sm:$0xff] %v8870_v56 }
 0x635   :  { %v4810_v19 = vmul.f32 -1.442695, %v2913_v14  ;;  %v2917_v50 = vadd.f32 %v2866_v35, %v6940_v0  ;;  %v2915_v14 = vadd.f32 %v2905_v18, %v10883_v29  ;;  %v8895_v35 = vld [vmem:[%s10148_s2 + $0xa8] ss:$16 sps:$4 sm:$0xff]   ;;  %v8908_v18 = vld [vmem:[%s10148_s2 + $0xcc] ss:$16 sps:$4 sm:$0xff]  }
 0x636   :  { %5455 = vpow2.f32 %v4808_v17  ;;  %v4809_v21 = vmul.f32 -1.442695, %v2916_v11  ;;  %3065 = vmatpush1.bf16.msra.mxu0 %v8864_v15  ;;  %3108 = vmatpush1.bf16.msra.mxu1 %v8870_v56  ;;  %v8876_v11 = vld [vmem:[%s10148_s2 + $0xa4] ss:$16 sps:$4 sm:$0xff]   ;;  %v8889_v17 = vld [vmem:[%s10148_s2 + $0xa0] ss:$16 sps:$4 sm:$0xff]  }
 0x637   :  { %5457 = vpow2.f32 %v4810_v19  ;;  %v4811_v12 = vmul.f32 -1.442695, %v2917_v50  ;;  %10972 = vst [vmem:[#allocation80_spill] sm:$0xff] %v8876_v11  ;;  %3066 = vmatprep.subr.bf16.mxu0 %v8876_v11  ;;  %v8882_v19 = vld [vmem:[%s10148_s2 + $0xac] ss:$16 sps:$4 sm:$0xff]   ;;  %10974 = vst [vmem:[#allocation82_spill] sm:$0xff] %v8889_v17  ;;  %v2914_v50 = vadd.f32 %v2903_v16, %v10886_v51 }
 0x638   :  { %10973 = vst [vmem:[#allocation81_spill] sm:$0xff] %v8882_v19  ;;  %3109 = vmatprep.subr.bf16.mxu1 %v8882_v19  ;;  %5459 = vpow2.f32 %v4809_v21  ;;  %10975 = vst [vmem:[#allocation83_spill] sm:$0xff] %v8895_v35  ;;  %v4812_v21 = vmul.f32 -1.442695, %v2915_v14  ;;  %v8916_v16 = vld [vmem:[%s10148_s2 + $0xc0] ss:$16 sps:$4 sm:$0xff]  }
 0x639   :  { %5461 = vpow2.f32 %v4811_v12  ;;  %v8902_v12 = vld [vmem:[%s10148_s2 + $0xc4] ss:$16 sps:$4 sm:$0xff]   ;;  %10977 = vst [vmem:[#allocation85_spill] sm:$0xff] %v8908_v18  ;;  %10978 = vst [vmem:[#allocation86_spill] sm:$0xff] %v8916_v16 }
 0x63a   :  { %3067 = vmatpush1.bf16.msra.mxu0 %v8889_v17  ;;  %3110 = vmatpush1.bf16.msra.mxu1 %v8895_v35  ;;  %10976 = vst [vmem:[#allocation84_spill] sm:$0xff] %v8902_v12  ;;  %v2919_v17 = vadd.f32 %v2909_v13, %v10883_v29  ;;  %v2918_v35 = vadd.f32 %v2907_v37, %v10886_v51  ;;  %5463 = vtanh.f32 %v2914_v50  ;;  %v8928_v13 = vld [vmem:[%s10148_s2 + $0xe4] ss:$16 sps:$4 sm:$0xff]   ;;  %v8934_v37 = vld [vmem:[%s10148_s2 + $0xec] ss:$16 sps:$4 sm:$0xff]  }
 0x63b   :  { %3068 = vmatprep.subr.bf16.mxu0 %v8902_v12  ;;  %3111 = vmatprep.subr.bf16.mxu1 %v8908_v18  ;;  %v8922_v12 = vld [vmem:[%s10148_s2 + $0xc8] ss:$16 sps:$4 sm:$0xff]   ;;  %10980 = vst [vmem:[#allocation91_spill] sm:$0xff] %v8928_v13  ;;  %10981 = vst [vmem:[#allocation92_spill] sm:$0xff] %v8934_v37  ;;  %5465 = vpow2.f32 %v4812_v21  ;;  %v8940_v29 = vld [vmem:[%s10148_s2 + $0xe0] ss:$16 sps:$4 sm:$0xff]  }
 0x63c   :  { %10979 = vst [vmem:[#allocation90_spill] sm:$0xff] %v8922_v12  ;;  %5467 = vtanh.f32 %v2918_v35  ;;  %10982 = vst [vmem:[#allocation93_spill] sm:$0xff] %v8940_v29 }
 0x63e   :  { %3069 = vmatpush1.bf16.msra.mxu0 %v8916_v16  ;;  %3112 = vmatpush1.bf16.msra.mxu1 %v8922_v12  ;;  %v4813_v12 = vmul.f32 -1.442695, %v2919_v17 }
 0x63f   :  { %3070 = vmatprep.subr.bf16.mxu0 %v8928_v13  ;;  %3113 = vmatprep.subr.bf16.mxu1 %v8934_v37  ;;  %v8946_v13 = vld [vmem:[%s10148_s2 + $0xe8] ss:$16 sps:$4 sm:$0xff]  }
 0x640   :  { %v5456_v18 = vpop.eup %5455  ;;  %10983 = vst [vmem:[#allocation94_spill] sm:$0xff] %v8946_v13 }
 0x641   :  { %v5458_v14 = vpop.eup %5457  ;;  %v2926_v16 = vadd.f32 1.0, %v5456_v18 }
 0x642   :  { %v2938_v51 = vadd.f32 1.0, %v5458_v14  ;;  %v5460_v50 = vpop.eup %5459  ;;  %3071 = vmatpush1.bf16.msra.mxu0 %v8940_v29  ;;  %3114 = vmatpush1.bf16.msra.mxu1 %v8946_v13 }
 0x643   :  { %5469 = vrcp.f32 %v2926_v16  ;;  %v2927_v17 = vadd.f32 1.0, %v5460_v50  ;;  %3201 = vmatprep.subr.bf16.mxu0 %v8135_v8  ;;  %3244 = vmatprep.subr.bf16.mxu1 %v8141_v9  ;;  %v5462_v35 = vpop.eup %5461 }
 0x644   :  { %5471 = vrcp.f32 %v2938_v51  ;;  %v2939_v18 = vadd.f32 1.0, %v5462_v35  ;;  %v5464_v21 = vpop.eup %5463 }
 0x645   :  { %5473 = vpow2.f32 %v4813_v12  ;;  %v5466_v16 = vpop.eup %5465 }
 0x646   :  { %5475 = vrcp.f32 %v2927_v17  ;;  %v5468_v14 = vpop.eup %5467  ;;  %v2952_v50 = vadd.f32 1.0, %v5466_v16  ;;  %v11018_v16 = vld [vmem:[#allocation37_spill] sm:$0xff] }
 0x647   :  { %5477 = vrcp.f32 %v2939_v18 }
 0x648   :  { %5479 = vrcp.f32 %v2952_v50  ;;  %v11021_v50 = vld [vmem:[#allocation40_spill] sm:$0xff] }
 0x64d   :  { %v5470_v29 = vpop.eup %5469 }
 0x64e   :  { %v5472_v37 = vpop.eup %5471  ;;  %v2960_v19 = vmul.f32 %v5470_v29, %v5464_v21  ;;  %v11017_v21 = vld [vmem:[#allocation36_spill] sm:$0xff] }
 0x64f   :  { %v5474_v11 = vpop.eup %5473  ;;  %v2958_v13 = vmul.f32 %v5472_v37, %v8145_v23 }
 0x650   :  { %v5476_v51 = vpop.eup %5475  ;;  %v2953_v15 = vadd.f32 1.0, %v5474_v11  ;;  %v11016_v11 = vld [vmem:[#allocation35_spill] sm:$0xff] }
 0x651   :  { %v8952_v56 = vadd.f32 %v2960_v19, %v2958_v13  ;;  %v2961_v8 = vmul.f32 %v5476_v51, %v5468_v14  ;;  %v5478_v9 = vpop.eup %5477  ;;  %v11019_v14 = vld [vmem:[#allocation38_spill] sm:$0xff]  ;;  %v11020_v51 = vld [vmem:[#allocation39_spill] sm:$0xff] }
 0x652   :  { %v2959_v12 = vmul.f32 %v5478_v9, %v8149_v49  ;;  %v5480_v29 = vpop.eup %5479  ;;  %v10984_v49 = vld [vmem:[#allocation3_spill] sm:$0xff]  ;;  %v11023_v9 = vld [vmem:[#allocation42_spill] sm:$0xff] }
 0x653   :  { %5481 = vtanh.f32 %v8952_v56 }
 0x654   :  { %v8956_v17 = vadd.f32 %v2961_v8, %v2959_v12  ;;  %5483 = vrcp.f32 %v2953_v15  ;;  %v11015_v15 = vld [vmem:[#allocation34_spill] sm:$0xff]  ;;  %v11022_v8 = vld [vmem:[#allocation41_spill] sm:$0xff]  ;;  %v11024_v12 = vld [vmem:[#allocation43_spill] sm:$0xff] }
 0x656   :  { %5485 = vtanh.f32 %v8956_v17 }
 0x65d   :  { %v5482_v35 = vpop.eup %5481 }
 0x65e   :  { %v5484_v23 = vpop.eup %5483  ;;  %v2966_v18 = vmul.f32 %v5482_v35, %v5480_v29  ;;  %v11025_v29 = vld [vmem:[#allocation44_spill] sm:$0xff]  ;;  %v11026_v35 = vld [vmem:[#allocation45_spill] sm:$0xff] }
 0x660   :  { %v5486_v37 = vpop.eup %5485 }
 0x661   :  { %v2967_v19 = vmul.f32 %v5486_v37, %v5484_v23  ;;  %v11027_v23 = vld [vmem:[#allocation46_spill] sm:$0xff]  ;;  %v11028_v37 = vld [vmem:[#allocation47_spill] sm:$0xff] }
 0x663   :  { %v2968_v13 = vpack.c.bf16 %v2967_v19, %v2966_v18  ;;  %v11029_v18 = vld [vmem:[#allocation48_spill] sm:$0xff]  ;;  %v11030_v19 = vld [vmem:[#allocation49_spill] sm:$0xff] }
 0x665   :  { %3089 = vmatmul.mubr.bf16.vlgmr.msra.gmra.mrb[36].mxu0 %v2968_v13  ;;  %3132 = vmatmul.mubr.bf16.vlgmr.msra.gmra.mrb[36].mxu1 %v2968_v13 }
 0x666   :  { %3202 = vmatpush1.bf16.msra.mxu0 %v8159_v27  ;;  %3245 = vmatpush1.bf16.msra.mxu1 %v8165_v30  ;;  %v10985_v27 = vld [vmem:[#allocation4_spill] sm:$0xff]  ;;  %v10986_v30 = vld [vmem:[#allocation5_spill] sm:$0xff] }
 0x667   :  { %3203 = vmatprep.subr.bf16.mxu0 %v8171_v34  ;;  %3246 = vmatprep.subr.bf16.mxu1 %v8177_v28  ;;  %v10987_v34 = vld [vmem:[#allocation6_spill] sm:$0xff]  ;;  %v10988_v28 = vld [vmem:[#allocation7_spill] sm:$0xff] }
 0x668   :  { %3233 = vmatprep.mubr.bf16.mxu0 %v10562_v57  ;;  %3276 = vmatprep.mubr.bf16.mxu1 %v10562_v57 }
 0x66a   :  { %3204 = vmatpush1.bf16.msra.mxu0 %v8185_v36  ;;  %3247 = vmatpush1.bf16.msra.mxu1 %v8191_v31  ;;  %v10989_v36 = vld [vmem:[#allocation8_spill] sm:$0xff]  ;;  %v10990_v31 = vld [vmem:[#allocation9_spill] sm:$0xff] }
 0x66b   :  { %3205 = vmatprep.subr.bf16.mxu0 %v8197_v63  ;;  %3248 = vmatprep.subr.bf16.mxu1 %v8203_v42  ;;  %v10991_v63 = vld [vmem:[#allocation10_spill] sm:$0xff]  ;;  %v10992_v42 = vld [vmem:[#allocation11_spill] sm:$0xff] }
 0x66e   :  { %3206 = vmatpush1.bf16.msra.mxu0 %v8209_v43  ;;  %3249 = vmatpush1.bf16.msra.mxu1 %v8215_v44  ;;  %v10993_v43 = vld [vmem:[#allocation12_spill] sm:$0xff]  ;;  %v10994_v44 = vld [vmem:[#allocation13_spill] sm:$0xff] }
 0x66f   :  { %3207 = vmatprep.subr.bf16.mxu0 %v8221_v59  ;;  %3250 = vmatprep.subr.bf16.mxu1 %v8227_v52  ;;  %v10995_v59 = vld [vmem:[#allocation14_spill] sm:$0xff]  ;;  %v10996_v52 = vld [vmem:[#allocation15_spill] sm:$0xff] }
 0x672   :  { %3208 = vmatpush1.bf16.msra.mxu0 %v8233_v53  ;;  %3251 = vmatpush1.bf16.msra.mxu1 %v8239_v54  ;;  %v10997_v53 = vld [vmem:[#allocation16_spill] sm:$0xff]  ;;  %v10998_v54 = vld [vmem:[#allocation17_spill] sm:$0xff] }
 0x673   :  { %3209 = vmatprep.subr.bf16.mxu0 %v8245_v48  ;;  %3252 = vmatprep.subr.bf16.mxu1 %v8251_v2  ;;  %v10999_v48 = vld [vmem:[#allocation18_spill] sm:$0xff]  ;;  %v11000_v2 = vld [vmem:[#allocation19_spill] sm:$0xff] }
 0x676   :  { %3210 = vmatpush1.bf16.msra.mxu0 %v8257_v62  ;;  %3253 = vmatpush1.bf16.msra.mxu1 %v8263_v55  ;;  %v11001_v62 = vld [vmem:[#allocation20_spill] sm:$0xff]  ;;  %v11002_v55 = vld [vmem:[#allocation21_spill] sm:$0xff] }
 0x677   :  { %3211 = vmatprep.subr.bf16.mxu0 %v8269_v39  ;;  %3254 = vmatprep.subr.bf16.mxu1 %v8275_v60  ;;  %v11003_v39 = vld [vmem:[#allocation22_spill] sm:$0xff]  ;;  %v11004_v60 = vld [vmem:[#allocation23_spill] sm:$0xff] }
 0x67a   :  { %3212 = vmatpush1.bf16.msra.mxu0 %v8281_v33  ;;  %3255 = vmatpush1.bf16.msra.mxu1 %v8287_v61  ;;  %v11005_v33 = vld [vmem:[#allocation24_spill] sm:$0xff]  ;;  %v11006_v61 = vld [vmem:[#allocation25_spill] sm:$0xff] }
 0x67b   :  { %3213 = vmatprep.subr.bf16.mxu0 %v8293_v58  ;;  %3256 = vmatprep.subr.bf16.mxu1 %v8299_v6  ;;  %v11007_v58 = vld [vmem:[#allocation26_spill] sm:$0xff]  ;;  %v11008_v6 = vld [vmem:[#allocation27_spill] sm:$0xff] }
 0x67e   :  { %3214 = vmatpush1.bf16.msra.mxu0 %v8305_v7  ;;  %3257 = vmatpush1.bf16.msra.mxu1 %v8311_v26  ;;  %v11009_v7 = vld [vmem:[#allocation28_spill] sm:$0xff]  ;;  %v11010_v26 = vld [vmem:[#allocation29_spill] sm:$0xff] }
 0x67f   :  { %3215 = vmatprep.subr.bf16.mxu0 %v8317_v10  ;;  %3258 = vmatprep.subr.bf16.mxu1 %v8323_v46  ;;  %v11011_v10 = vld [vmem:[#allocation30_spill] sm:$0xff]  ;;  %v11012_v46 = vld [vmem:[#allocation31_spill] sm:$0xff] }
 0x682   :  { %3216 = vmatpush1.bf16.msra.mxu0 %v8329_v32  ;;  %3259 = vmatpush1.bf16.msra.mxu1 %v8335_v41  ;;  %v5196_v32 = vld [vmem:[%s10146_s0 + $0x28] sm:$0xff]   ;;  %v11013_v41 = vld [vmem:[#allocation32_spill] sm:$0xff] }
 0x683   :  { %3293 = vmatprep.subr.bf16.mxu0 %v8341_v40  ;;  %3336 = vmatprep.subr.bf16.mxu1 %v10984_v49  ;;  %v11014_v40 = vld [vmem:[#allocation33_spill] sm:$0xff]  ;;  %v11032_v49 = vld [vmem:[#allocation51_spill] sm:$0xff] }
 0x685   :  { %3234 = vmatmul.mubr.bf16.vlgmr.msra.gmra.mrb[40].mxu0 %v2968_v13  ;;  %3277 = vmatmul.mubr.bf16.vlgmr.msra.gmra.mrb[40].mxu1 %v2968_v13  ;;  %v11031_v13 = vld [vmem:[#allocation50_spill] sm:$0xff] }
 0x686   :  { %3294 = vmatpush1.bf16.msra.mxu0 %v10985_v27  ;;  %3337 = vmatpush1.bf16.msra.mxu1 %v10986_v30  ;;  %v11033_v27 = vld [vmem:[#allocation52_spill] sm:$0xff]  ;;  %v11034_v30 = vld [vmem:[#allocation53_spill] sm:$0xff] }
 0x687   :  { %3295 = vmatprep.subr.bf16.mxu0 %v10987_v34  ;;  %3338 = vmatprep.subr.bf16.mxu1 %v10988_v28  ;;  %v11035_v34 = vld [vmem:[#allocation54_spill] sm:$0xff]  ;;  %v11036_v28 = vld [vmem:[#allocation55_spill] sm:$0xff] }
 0x688   :  { %3325 = vmatprep.mubr.bf16.mxu0 %v10562_v57  ;;  %3368 = vmatprep.mubr.bf16.mxu1 %v10562_v57 }
 0x68a   :  { %3296 = vmatpush1.bf16.msra.mxu0 %v10989_v36  ;;  %3339 = vmatpush1.bf16.msra.mxu1 %v10990_v31  ;;  %v11037_v36 = vld [vmem:[#allocation56_spill] sm:$0xff]  ;;  %v11038_v31 = vld [vmem:[#allocation57_spill] sm:$0xff] }
 0x68b   :  { %3297 = vmatprep.subr.bf16.mxu0 %v10991_v63  ;;  %3340 = vmatprep.subr.bf16.mxu1 %v10992_v42  ;;  %v11039_v63 = vld [vmem:[#allocation58_spill] sm:$0xff]  ;;  %v11040_v42 = vld [vmem:[#allocation59_spill] sm:$0xff] }
 0x68e   :  { %3298 = vmatpush1.bf16.msra.mxu0 %v10993_v43  ;;  %3341 = vmatpush1.bf16.msra.mxu1 %v10994_v44  ;;  %v11041_v43 = vld [vmem:[#allocation60_spill] sm:$0xff]  ;;  %v11042_v44 = vld [vmem:[#allocation61_spill] sm:$0xff] }
 0x68f   :  { %3299 = vmatprep.subr.bf16.mxu0 %v10995_v59  ;;  %3342 = vmatprep.subr.bf16.mxu1 %v10996_v52  ;;  %v11043_v59 = vld [vmem:[#allocation62_spill] sm:$0xff]  ;;  %v11044_v52 = vld [vmem:[#allocation63_spill] sm:$0xff] }
 0x692   :  { %3300 = vmatpush1.bf16.msra.mxu0 %v10997_v53  ;;  %3343 = vmatpush1.bf16.msra.mxu1 %v10998_v54  ;;  %v11045_v53 = vld [vmem:[#allocation64_spill] sm:$0xff]  ;;  %v11046_v54 = vld [vmem:[#allocation65_spill] sm:$0xff] }
 0x693   :  { %3301 = vmatprep.subr.bf16.mxu0 %v10999_v48  ;;  %3344 = vmatprep.subr.bf16.mxu1 %v11000_v2  ;;  %v11047_v48 = vld [vmem:[#allocation66_spill] sm:$0xff]  ;;  %v11048_v2 = vld [vmem:[#allocation67_spill] sm:$0xff] }
 0x696   :  { %3302 = vmatpush1.bf16.msra.mxu0 %v11001_v62  ;;  %3345 = vmatpush1.bf16.msra.mxu1 %v11002_v55 }
 0x697   :  { %3303 = vmatprep.subr.bf16.mxu0 %v11003_v39  ;;  %3346 = vmatprep.subr.bf16.mxu1 %v11004_v60  ;;  %v11049_v39 = vld [vmem:[#allocation2_spill] sm:$0xff] }
 0x69a   :  { %3304 = vmatpush1.bf16.msra.mxu0 %v11005_v33  ;;  %3347 = vmatpush1.bf16.msra.mxu1 %v11006_v61 }
 0x69b   :  { %3305 = vmatprep.subr.bf16.mxu0 %v11007_v58  ;;  %3348 = vmatprep.subr.bf16.mxu1 %v11008_v6 }
 0x69e   :  { %3306 = vmatpush1.bf16.msra.mxu0 %v11009_v7  ;;  %3349 = vmatpush1.bf16.msra.mxu1 %v11010_v26 }
 0x69f   :  { %3307 = vmatprep.subr.bf16.mxu0 %v11011_v10  ;;  %3350 = vmatprep.subr.bf16.mxu1 %v11012_v46 }
 0x6a2   :  { %3308 = vmatpush1.bf16.msra.mxu0 %v11013_v41  ;;  %3351 = vmatpush1.bf16.msra.mxu1 %v11014_v40 }
 0x6a3   :  { %3437 = vmatprep.subr.bf16.mxu0 %v11015_v15  ;;  %3480 = vmatprep.subr.bf16.mxu1 %v11016_v11 }
 0x6a5   :  { %3326 = vmatmul.mubr.bf16.vlgmr.msra.gmra.mrb[40].mxu0 %v5196_v32  ;;  %3369 = vmatmul.mubr.bf16.vlgmr.msra.gmra.mrb[40].mxu1 %v5196_v32 }
 0x6a6   :  { %3438 = vmatpush1.bf16.msra.mxu0 %v11017_v21  ;;  %3481 = vmatpush1.bf16.msra.mxu1 %v11018_v16 }
 0x6a7   :  { %3439 = vmatprep.subr.bf16.mxu0 %v11019_v14  ;;  %3482 = vmatprep.subr.bf16.mxu1 %v11020_v51 }
 0x6a8   :  { %3469 = vmatprep.mubr.bf16.mxu0 %v10562_v57  ;;  %3512 = vmatprep.mubr.bf16.mxu1 %v10562_v57 }
 0x6aa   :  { %3440 = vmatpush1.bf16.msra.mxu0 %v11021_v50  ;;  %3483 = vmatpush1.bf16.msra.mxu1 %v11022_v8 }
 0x6ab   :  { %3441 = vmatprep.subr.bf16.mxu0 %v11023_v9  ;;  %3484 = vmatprep.subr.bf16.mxu1 %v11024_v12 }
 0x6ae   :  { %3442 = vmatpush1.bf16.msra.mxu0 %v11025_v29  ;;  %3485 = vmatpush1.bf16.msra.mxu1 %v11026_v35 }
 0x6af   :  { %3443 = vmatprep.subr.bf16.mxu0 %v11027_v23  ;;  %3486 = vmatprep.subr.bf16.mxu1 %v11028_v37 }
 0x6b2   :  { %3444 = vmatpush1.bf16.msra.mxu0 %v11029_v18  ;;  %3487 = vmatpush1.bf16.msra.mxu1 %v11030_v19 }
 0x6b3   :  { %3445 = vmatprep.subr.bf16.mxu0 %v11031_v13  ;;  %3488 = vmatprep.subr.bf16.mxu1 %v11032_v49 }
 0x6b6   :  { %3446 = vmatpush1.bf16.msra.mxu0 %v11033_v27  ;;  %3489 = vmatpush1.bf16.msra.mxu1 %v11034_v30 }
 0x6b7   :  { %3447 = vmatprep.subr.bf16.mxu0 %v11035_v34  ;;  %3490 = vmatprep.subr.bf16.mxu1 %v11036_v28 }
 0x6ba   :  { %3448 = vmatpush1.bf16.msra.mxu0 %v11037_v36  ;;  %3491 = vmatpush1.bf16.msra.mxu1 %v11038_v31 }
 0x6bb   :  { %3449 = vmatprep.subr.bf16.mxu0 %v11039_v63  ;;  %3492 = vmatprep.subr.bf16.mxu1 %v11040_v42 }
 0x6be   :  { %3450 = vmatpush1.bf16.msra.mxu0 %v11041_v43  ;;  %3493 = vmatpush1.bf16.msra.mxu1 %v11042_v44 }
 0x6bf   :  { %3451 = vmatprep.subr.bf16.mxu0 %v11043_v59  ;;  %3494 = vmatprep.subr.bf16.mxu1 %v11044_v52 }
 0x6c2   :  { %3452 = vmatpush1.bf16.msra.mxu0 %v11045_v53  ;;  %3495 = vmatpush1.bf16.msra.mxu1 %v11046_v54 }
 0x6c3   :  { %3523 = vmatprep.subr.bf16.mxu0 %v11047_v48  ;;  %3566 = vmatprep.subr.bf16.mxu1 %v11048_v2 }
 0x738   :  { %v3090_v62 = vpop.f32.mrb[36].mxu0  ;;  %v3133_v55 = vpop.f32.mrb[36].mxu1 }
 0x739   :  { %v3142_v60 = vadd.f32 %v3090_v62, %v11049_v39  ;;  %v3092_v33 = vpop.f32.mrb[37].mxu0  ;;  %v3135_v61 = vpop.f32.mrb[37].mxu1  ;;  %v3144_v16 = vadd.f32 %v3133_v55, %v7092_v25 }
 0x73a   :  { %v3143_v58 = vadd.f32 %v3092_v33, %v7080_v5  ;;  %v3094_v6 = vpop.f32.mrb[38].mxu0  ;;  %v3137_v7 = vpop.f32.mrb[38].mxu1  ;;  %v3145_v21 = vadd.f32 %v3135_v61, %v7087_v20  ;;  %v11051_v61 = vld [vmem:[#allocation69_spill] sm:$0xff] }
 0x73b   :  { %v4814_v26 = vmul.f32 -1.442695, %v3142_v60  ;;  %v3146_v10 = vadd.f32 %v3094_v6, %v11049_v39  ;;  %v3096_v46 = vpop.f32.mrb[39].mxu0  ;;  %v3139_v32 = vpop.f32.mrb[39].mxu1  ;;  %v3148_v50 = vadd.f32 %v3137_v7, %v7092_v25  ;;  %v11053_v6 = vld [vmem:[#allocation71_spill] sm:$0xff] }
 0x73c   :  { %v4816_v41 = vmul.f32 -1.442695, %v3143_v58  ;;  %v3147_v40 = vadd.f32 %v3096_v46, %v7080_v5  ;;  %v4818_v14 = vmul.f32 -1.442695, %v3145_v21  ;;  %v3149_v51 = vadd.f32 %v3139_v32, %v7087_v20  ;;  %v11052_v58 = vld [vmem:[#allocation70_spill] sm:$0xff] }
 0x73d   :  { %5487 = vpow2.f32 %v4814_v26  ;;  %v4815_v15 = vmul.f32 -1.442695, %v3146_v10  ;;  %v11057_v26 = vld [vmem:[#allocation87_spill] sm:$0xff] }
 0x73e   :  { %5489 = vpow2.f32 %v4816_v41  ;;  %v4817_v11 = vmul.f32 -1.442695, %v3147_v40  ;;  %v4819_v29 = vmul.f32 -1.442695, %v3149_v51 }
 0x73f   :  { %5491 = vpow2.f32 %v4815_v15  ;;  %v11058_v15 = vld [vmem:[#allocation75_spill] sm:$0xff] }
 0x740   :  { %5493 = vpow2.f32 %v4817_v11  ;;  %v11059_v11 = vld [vmem:[#allocation76_spill] sm:$0xff] }
 0x741   :  { %5495 = vtanh.f32 %v3144_v16 }
 0x742   :  { %5497 = vpow2.f32 %v4818_v14 }
 0x743   :  { %5499 = vtanh.f32 %v3148_v50  ;;  %v11060_v50 = vld [vmem:[#allocation77_spill] sm:$0xff] }
 0x747   :  { %v5488_v8 = vpop.eup %5487 }
 0x748   :  { %v5490_v9 = vpop.eup %5489  ;;  %v3156_v12 = vadd.f32 1.0, %v5488_v8 }
 0x749   :  { %v3168_v35 = vadd.f32 1.0, %v5490_v9  ;;  %v5492_v23 = vpop.eup %5491 }
 0x74a   :  { %5501 = vrcp.f32 %v3156_v12  ;;  %v3157_v37 = vadd.f32 1.0, %v5492_v23  ;;  %v5494_v18 = vpop.eup %5493  ;;  %v11062_v23 = vld [vmem:[#allocation79_spill] sm:$0xff] }
 0x74b   :  { %5503 = vrcp.f32 %v3168_v35  ;;  %v3169_v19 = vadd.f32 1.0, %v5494_v18  ;;  %v5496_v13 = vpop.eup %5495  ;;  %v11061_v35 = vld [vmem:[#allocation78_spill] sm:$0xff]  ;;  %v11064_v18 = vld [vmem:[#allocation81_spill] sm:$0xff] }
 0x74c   :  { %5505 = vpow2.f32 %v4819_v29  ;;  %v5498_v49 = vpop.eup %5497 }
 0x74d   :  { %5507 = vrcp.f32 %v3157_v37  ;;  %v5500_v27 = vpop.eup %5499  ;;  %v3182_v42 = vadd.f32 1.0, %v5498_v49  ;;  %v11063_v37 = vld [vmem:[#allocation80_spill] sm:$0xff]  ;;  %v11067_v49 = vld [vmem:[#allocation83_spill] sm:$0xff] }
 0x74e   :  { %5509 = vrcp.f32 %v3169_v19  ;;  %v11065_v19 = vld [vmem:[#allocation88_spill] sm:$0xff] }
 0x74f   :  { %5511 = vrcp.f32 %v3182_v42  ;;  %v11071_v42 = vld [vmem:[#allocation86_spill] sm:$0xff] }
 0x754   :  { %v5502_v30 = vpop.eup %5501 }
 0x755   :  { %v5504_v34 = vpop.eup %5503  ;;  %v3190_v28 = vmul.f32 %v5502_v30, %v5496_v13 }
 0x756   :  { %v5506_v36 = vpop.eup %5505  ;;  %v3188_v31 = vmul.f32 %v5504_v34, %v8752_v24  ;;  %v11069_v34 = vld [vmem:[#allocation84_spill] sm:$0xff] }
 0x757   :  { %v5508_v63 = vpop.eup %5507  ;;  %v3183_v52 = vadd.f32 1.0, %v5506_v36 }
 0x758   :  { %v9073_v43 = vadd.f32 %v3190_v28, %v3188_v31  ;;  %v3191_v44 = vmul.f32 %v5508_v63, %v5500_v27  ;;  %v5510_v59 = vpop.eup %5509  ;;  %v11068_v27 = vld [vmem:[#allocation89_spill] sm:$0xff] }
 0x759   :  { %v3189_v53 = vmul.f32 %v5510_v59, %v8756_v3  ;;  %v5512_v48 = vpop.eup %5511  ;;  %v11050_v3 = vld [vmem:[#allocation68_spill] sm:$0xff]  ;;  %v11070_v28 = vld [vmem:[#allocation85_spill] sm:$0xff] }
 0x75a   :  { %5513 = vtanh.f32 %v9073_v43 }
 0x75b   :  { %v9077_v54 = vadd.f32 %v3191_v44, %v3189_v53  ;;  %5515 = vrcp.f32 %v3183_v52  ;;  %v11072_v44 = vld [vmem:[#allocation90_spill] sm:$0xff]  ;;  %v11073_v52 = vld [vmem:[#allocation91_spill] sm:$0xff]  ;;  %v11074_v53 = vld [vmem:[#allocation92_spill] sm:$0xff] }
 0x75d   :  { %5517 = vtanh.f32 %v9077_v54 }
 0x764   :  { %v5514_v2 = vpop.eup %5513 }
 0x765   :  { %v5516_v24 = vpop.eup %5515  ;;  %v3196_v55 = vmul.f32 %v5514_v2, %v5512_v48 }
 0x767   :  { %v5518_v62 = vpop.eup %5517 }
 0x768   :  { %v3197_v60 = vmul.f32 %v5518_v62, %v5516_v24 }
 0x76a   :  { %v3436_v33 = vpack.c.bf16 %v3197_v60, %v3196_v55  ;;  %v11075_v60 = vld [vmem:[#allocation93_spill] sm:$0xff] }
 0x76c   :  { %3470 = vmatmul.mubr.bf16.vlgmr.msra.gmra.mrb[44].mxu0 %v3436_v33  ;;  %3513 = vmatmul.mubr.bf16.vlgmr.msra.gmra.mrb[44].mxu1 %v3436_v33  ;;  %v11076_v33 = vld [vmem:[#allocation94_spill] sm:$0xff] }
 0x76d   :  { %3524 = vmatpush1.bf16.msra.mxu0 %v8762_v45  ;;  %3567 = vmatpush1.bf16.msra.mxu1 %v8768_v38  ;;  %v11054_v45 = vld [vmem:[#allocation72_spill] sm:$0xff]  ;;  %v11055_v38 = vld [vmem:[#allocation73_spill] sm:$0xff] }
 0x76e   :  { %3525 = vmatprep.subr.bf16.mxu0 %v8774_v1  ;;  %3568 = vmatprep.subr.bf16.mxu1 %v8780_v47  ;;  %v11056_v1 = vld [vmem:[#allocation74_spill] sm:$0xff] }
 0x76f   :  { %3555 = vmatprep.mubr.bf16.mxu0 %v10562_v57  ;;  %3598 = vmatprep.mubr.bf16.mxu1 %v10562_v57 }
 0x771   :  { %3526 = vmatpush1.bf16.msra.mxu0 %v8788_v4  ;;  %3569 = vmatpush1.bf16.msra.mxu1 %v11050_v3 }
 0x772   :  { %3527 = vmatprep.subr.bf16.mxu0 %v11051_v61  ;;  %3570 = vmatprep.subr.bf16.mxu1 %v11052_v58  ;;  %v9123_v61 = vld [vmem:[%s10144_s3 + $0x4] ss:$16 sps:$4 sm:$0xff]   ;;  %v9129_v58 = vld [vmem:[%s10144_s3 + $0xc] ss:$16 sps:$4 sm:$0xff]  }
 0x775   :  { %3528 = vmatpush1.bf16.msra.mxu0 %v11053_v6  ;;  %3571 = vmatpush1.bf16.msra.mxu1 %v11054_v45 }
 0x776   :  { %3529 = vmatprep.subr.bf16.mxu0 %v11055_v38  ;;  %3572 = vmatprep.subr.bf16.mxu1 %v11056_v1 }
 0x778   :  { %v3327_v47 = vpop.f32.mrb[40].mxu0  ;;  %v3370_v7 = vpop.f32.mrb[40].mxu1 }
 0x779   :  { %v3379_v10 = vadd.f32 %v3327_v47, %v11057_v26  ;;  %v3329_v46 = vpop.f32.mrb[41].mxu0  ;;  %v3372_v4 = vpop.f32.mrb[41].mxu1  ;;  %3530 = vmatpush1.bf16.msra.mxu0 %v11058_v15  ;;  %3573 = vmatpush1.bf16.msra.mxu1 %v11059_v11  ;;  %v3381_v30 = vadd.f32 %v3370_v7, %v11068_v27 }
 0x77a   :  { %v3380_v32 = vadd.f32 %v3329_v46, %v6940_v0  ;;  %v3331_v41 = vpop.f32.mrb[42].mxu0  ;;  %v3374_v40 = vpop.f32.mrb[42].mxu1  ;;  %3531 = vmatprep.subr.bf16.mxu0 %v11060_v50  ;;  %3574 = vmatprep.subr.bf16.mxu1 %v8857_v22  ;;  %v3382_v13 = vadd.f32 %v3372_v4, %v11065_v19  ;;  %v11066_v22 = vld [vmem:[#allocation82_spill] sm:$0xff] }
 0x77b   :  { %v4823_v21 = vmul.f32 -1.442695, %v3379_v10  ;;  %v3383_v16 = vadd.f32 %v3331_v41, %v11057_v26  ;;  %v3333_v14 = vpop.f32.mrb[43].mxu0  ;;  %v3376_v51 = vpop.f32.mrb[43].mxu1  ;;  %v3385_v63 = vadd.f32 %v3374_v40, %v11068_v27 }
 0x77c   :  { %v4825_v8 = vmul.f32 -1.442695, %v3380_v32  ;;  %v3384_v9 = vadd.f32 %v3333_v14, %v6940_v0  ;;  %v4827_v36 = vmul.f32 -1.442695, %v3382_v13  ;;  %v3386_v31 = vadd.f32 %v3376_v51, %v11065_v19  ;;  %v9173_v13 = vld [vmem:[%s10144_s3 + $0x20] ss:$16 sps:$4 sm:$0xff]  }
 0x77d   :  { %5519 = vpow2.f32 %v4823_v21  ;;  %v4824_v12 = vmul.f32 -1.442695, %v3383_v16  ;;  %3532 = vmatpush1.bf16.msra.mxu0 %v11061_v35  ;;  %3575 = vmatpush1.bf16.msra.mxu1 %v11062_v23  ;;  %v9153_v23 = vld [vmem:[%s10144_s3 + $0x8] ss:$16 sps:$4 sm:$0xff]  }
 0x77e   :  { %5521 = vpow2.f32 %v4825_v8  ;;  %v4826_v29 = vmul.f32 -1.442695, %v3384_v9  ;;  %3533 = vmatprep.subr.bf16.mxu0 %v11063_v37  ;;  %3576 = vmatprep.subr.bf16.mxu1 %v11064_v18  ;;  %v4828_v24 = vmul.f32 -1.442695, %v3386_v31  ;;  %v9159_v37 = vld [vmem:[%s10144_s3 + $0x24] ss:$16 sps:$4 sm:$0xff]  }
 0x77f   :  { %5523 = vpow2.f32 %v4824_v12  ;;  %v9165_v18 = vld [vmem:[%s10144_s3 + $0x2c] ss:$16 sps:$4 sm:$0xff]  }
 0x780   :  { %5525 = vpow2.f32 %v4826_v29  ;;  %v9215_v31 = vld [vmem:[%s10144_s3 + $0x6c] ss:$16 sps:$4 sm:$0xff]  }
 0x781   :  { %3534 = vmatpush1.bf16.msra.mxu0 %v11066_v22  ;;  %3577 = vmatpush1.bf16.msra.mxu1 %v11067_v49  ;;  %5527 = vtanh.f32 %v3381_v30  ;;  %v9179_v22 = vld [vmem:[%s10144_s3 + $0x28] ss:$16 sps:$4 sm:$0xff]   ;;  %v9185_v49 = vld [vmem:[%s10144_s3 + $0x44] ss:$16 sps:$4 sm:$0xff]   ;;  %v9191_v30 = vld [vmem:[%s10144_s3 + $0x4c] ss:$16 sps:$4 sm:$0xff]  }
 0x782   :  { %3535 = vmatprep.subr.bf16.mxu0 %v11069_v34  ;;  %3578 = vmatprep.subr.bf16.mxu1 %v11070_v28  ;;  %5529 = vpow2.f32 %v4827_v36  ;;  %v9197_v34 = vld [vmem:[%s10144_s3 + $0x40] ss:$16 sps:$4 sm:$0xff]   ;;  %v9203_v28 = vld [vmem:[%s10144_s3 + $0x48] ss:$16 sps:$4 sm:$0xff]   ;;  %v9209_v36 = vld [vmem:[%s10144_s3 + $0x64] ss:$16 sps:$4 sm:$0xff]  }
 0x783   :  { %5531 = vtanh.f32 %v3385_v63  ;;  %v9221_v63 = vld [vmem:[%s10144_s3 + $0x60] ss:$16 sps:$4 sm:$0xff]  }
 0x785   :  { %3536 = vmatpush1.bf16.msra.mxu0 %v11071_v42  ;;  %3579 = vmatpush1.bf16.msra.mxu1 %v11072_v44  ;;  %v9227_v42 = vld [vmem:[%s10144_s3 + $0x68] ss:$16 sps:$4 sm:$0xff]   ;;  %v9233_v44 = vld [vmem:[%s10144_s3 + $0x84] ss:$16 sps:$4 sm:$0xff]  }
 0x786   :  { %3537 = vmatprep.subr.bf16.mxu0 %v11073_v52  ;;  %3580 = vmatprep.subr.bf16.mxu1 %v11074_v53  ;;  %v9245_v52 = vld [vmem:[%s10144_s3 + $0x80] ss:$16 sps:$4 sm:$0xff]   ;;  %v9251_v53 = vld [vmem:[%s10144_s3 + $0x88] ss:$16 sps:$4 sm:$0xff]  }
 0x787   :  { %v5520_v59 = vpop.eup %5519 }
 0x788   :  { %v5522_v48 = vpop.eup %5521  ;;  %v3393_v2 = vadd.f32 1.0, %v5520_v59  ;;  %v9239_v59 = vld [vmem:[%s10144_s3 + $0x8c] ss:$16 sps:$4 sm:$0xff]  }
 0x789   :  { %v3405_v62 = vadd.f32 1.0, %v5522_v48  ;;  %v5524_v55 = vpop.eup %5523  ;;  %3538 = vmatpush1.bf16.msra.mxu0 %v11075_v60  ;;  %3581 = vmatpush1.bf16.msra.mxu1 %v11076_v33  ;;  %v9257_v48 = vld [vmem:[%s10144_s3 + $0xa4] ss:$16 sps:$4 sm:$0xff]   ;;  %v9287_v60 = vld [vmem:[%s10144_s3 + $0xcc] ss:$16 sps:$4 sm:$0xff]  }
 0x78a   :  { %5533 = vrcp.f32 %v3393_v2  ;;  %v3394_v3 = vadd.f32 1.0, %v5524_v55  ;;  %3668 = vmatprep.subr.bf16.mxu0 %v9123_v61  ;;  %3711 = vmatprep.subr.bf16.mxu1 %v9129_v58  ;;  %v5526_v6 = vpop.eup %5525  ;;  %v9263_v2 = vld [vmem:[%s10144_s3 + $0xac] ss:$16 sps:$4 sm:$0xff]   ;;  %v9281_v55 = vld [vmem:[%s10144_s3 + $0xc4] ss:$16 sps:$4 sm:$0xff]  }
 0x78b   :  { %5535 = vrcp.f32 %v3405_v62  ;;  %v3406_v45 = vadd.f32 1.0, %v5526_v6  ;;  %v5528_v38 = vpop.eup %5527  ;;  %v9275_v62 = vld [vmem:[%s10144_s3 + $0xa8] ss:$16 sps:$4 sm:$0xff]   ;;  %v9293_v33 = vld [vmem:[%s10144_s3 + $0xc0] ss:$16 sps:$4 sm:$0xff]  }
 0x78c   :  { %5537 = vpow2.f32 %v4828_v24  ;;  %v5530_v1 = vpop.eup %5529  ;;  %v9269_v24 = vld [vmem:[%s10144_s3 + $0xa0] ss:$16 sps:$4 sm:$0xff]   ;;  %v9305_v6 = vld [vmem:[%s10144_s3 + $0xe4] ss:$16 sps:$4 sm:$0xff]  }
 0x78d   :  { %5539 = vrcp.f32 %v3394_v3  ;;  %v5532_v47 = vpop.eup %5531  ;;  %v3419_v40 = vadd.f32 1.0, %v5530_v1  ;;  %v9299_v3 = vld [vmem:[%s10144_s3 + $0xc8] ss:$16 sps:$4 sm:$0xff]  }
 0x78e   :  { %5541 = vrcp.f32 %v3406_v45  ;;  %v9311_v45 = vld [vmem:[%s10144_s3 + $0xec] ss:$16 sps:$4 sm:$0xff]   ;;  %v9323_v1 = vld [vmem:[%s10144_s3 + $0xe8] ss:$16 sps:$4 sm:$0xff]  }
 0x78f   :  { %5543 = vrcp.f32 %v3419_v40  ;;  %v9375_v40 = vld [vmem:[%s10145_s1 + $0x28] ss:$16 sps:$4 sm:$0xff]  }
 0x790   :  { %11083 = vst [vmem:[#allocation9_spill] sm:$0xff] %v9375_v40 }
 0x794   :  { %v5534_v7 = vpop.eup %5533 }
 0x795   :  { %v5536_v10 = vpop.eup %5535  ;;  %v3427_v46 = vmul.f32 %v5534_v7, %v5528_v38  ;;  %v9317_v38 = vld [vmem:[%s10144_s3 + $0xe0] ss:$16 sps:$4 sm:$0xff]   ;;  %v9335_v7 = vld [vmem:[%s10145_s1 + $0xc] ss:$16 sps:$4 sm:$0xff]  }
 0x796   :  { %v5538_v4 = vpop.eup %5537  ;;  %v3425_v32 = vmul.f32 %v5536_v10, %v8952_v56  ;;  %11077 = vst [vmem:[#allocation3_spill] sm:$0xff] %v9335_v7  ;;  %v9343_v10 = vld [vmem:[%s10145_s1] ss:$16 sps:$4 sm:$0xff]  }
 0x797   :  { %v5540_v41 = vpop.eup %5539  ;;  %v3420_v16 = vadd.f32 1.0, %v5538_v4  ;;  %11078 = vst [vmem:[#allocation4_spill] sm:$0xff] %v9343_v10  ;;  %v9355_v4 = vld [vmem:[%s10145_s1 + $0x24] ss:$16 sps:$4 sm:$0xff]  }
 0x798   :  { %v9133_v15 = vadd.f32 %v3427_v46, %v3425_v32  ;;  %v3428_v11 = vmul.f32 %v5540_v41, %v5532_v47  ;;  %v5542_v21 = vpop.eup %5541  ;;  %v9329_v47 = vld [vmem:[%s10145_s1 + $0x4] ss:$16 sps:$4 sm:$0xff]   ;;  %v9349_v46 = vld [vmem:[%s10145_s1 + $0x8] ss:$16 sps:$4 sm:$0xff]   ;;  %11080 = vst [vmem:[#allocation6_spill] sm:$0xff] %v9355_v4 }
 0x799   :  { %v3426_v14 = vmul.f32 %v5542_v21, %v8956_v17  ;;  %v5544_v50 = vpop.eup %5543  ;;  %v9147_v17 = vld [vmem:[%s10144_s3] ss:$16 sps:$4 sm:$0xff]   ;;  %11079 = vst [vmem:[#allocation5_spill] sm:$0xff] %v9349_v46  ;;  %v9361_v32 = vld [vmem:[%s10145_s1 + $0x2c] ss:$16 sps:$4 sm:$0xff]  }
 0x79a   :  { %5545 = vtanh.f32 %v9133_v15  ;;  %11081 = vst [vmem:[#allocation7_spill] sm:$0xff] %v9361_v32  ;;  %v9369_v41 = vld [vmem:[%s10145_s1 + $0x20] ss:$16 sps:$4 sm:$0xff]   ;;  %v9387_v21 = vld [vmem:[%s10145_s1 + $0x4c] ss:$16 sps:$4 sm:$0xff]  }
 0x79b   :  { %v9137_v51 = vadd.f32 %v3428_v11, %v3426_v14  ;;  %5547 = vrcp.f32 %v3420_v16  ;;  %11082 = vst [vmem:[#allocation8_spill] sm:$0xff] %v9369_v41  ;;  %v9381_v11 = vld [vmem:[%s10145_s1 + $0x44] ss:$16 sps:$4 sm:$0xff]   ;;  %11085 = vst [vmem:[#allocation11_spill] sm:$0xff] %v9387_v21  ;;  %v9393_v16 = vld [vmem:[%s10145_s1 + $0x40] ss:$16 sps:$4 sm:$0xff]  }
 0x79c   :  { %11084 = vst [vmem:[#allocation10_spill] sm:$0xff] %v9381_v11  ;;  %11086 = vst [vmem:[#allocation12_spill] sm:$0xff] %v9393_v16  ;;  %v9399_v14 = vld [vmem:[%s10145_s1 + $0x48] ss:$16 sps:$4 sm:$0xff]  }
 0x79d   :  { %5549 = vtanh.f32 %v9137_v51  ;;  %11087 = vst [vmem:[#allocation13_spill] sm:$0xff] %v9399_v14 }
 0x7a4   :  { %v5546_v8 = vpop.eup %5545 }
 0x7a5   :  { %v5548_v56 = vpop.eup %5547  ;;  %v3433_v12 = vmul.f32 %v5546_v8, %v5544_v50  ;;  %v9405_v50 = vld [vmem:[%s10145_s1 + $0x64] ss:$16 sps:$4 sm:$0xff]   ;;  %v9411_v8 = vld [vmem:[%s10145_s1 + $0x6c] ss:$16 sps:$4 sm:$0xff]  }
 0x7a6   :  { %11088 = vst [vmem:[#allocation14_spill] sm:$0xff] %v9405_v50  ;;  %11089 = vst [vmem:[#allocation15_spill] sm:$0xff] %v9411_v8 }
 0x7a7   :  { %v5550_v9 = vpop.eup %5549 }
 0x7a8   :  { %v3434_v29 = vmul.f32 %v5550_v9, %v5548_v56  ;;  %v9417_v56 = vld [vmem:[%s10145_s1 + $0x60] ss:$16 sps:$4 sm:$0xff]   ;;  %v9423_v9 = vld [vmem:[%s10145_s1 + $0x68] ss:$16 sps:$4 sm:$0xff]  }
 0x7a9   :  { %11090 = vst [vmem:[#allocation16_spill] sm:$0xff] %v9417_v56  ;;  %11091 = vst [vmem:[#allocation17_spill] sm:$0xff] %v9423_v9 }
 0x7aa   :  { %v9140_v35 = vpack.c.bf16 %v3434_v29, %v3433_v12  ;;  %v9429_v12 = vld [vmem:[%s10145_s1 + $0x84] ss:$16 sps:$4 sm:$0xff]   ;;  %v9435_v29 = vld [vmem:[%s10145_s1 + $0x8c] ss:$16 sps:$4 sm:$0xff]  }
 0x7ab   :  { %11092 = vst [vmem:[#allocation18_spill] sm:$0xff] %v9429_v12  ;;  %11093 = vst [vmem:[#allocation19_spill] sm:$0xff] %v9435_v29 }
 0x7ac   :  { %3556 = vmatmul.mubr.bf16.vlgmr.msra.gmra.mrb[44].mxu0 %v9140_v35  ;;  %3599 = vmatmul.mubr.bf16.vlgmr.msra.gmra.mrb[44].mxu1 %v9140_v35 }
 0x7ad   :  { %3669 = vmatpush1.bf16.msra.mxu0 %v9147_v17  ;;  %3712 = vmatpush1.bf16.msra.mxu1 %v9153_v23 }
 0x7ae   :  { %3670 = vmatprep.subr.bf16.mxu0 %v9159_v37  ;;  %3713 = vmatprep.subr.bf16.mxu1 %v9165_v18 }
 0x7af   :  { %3700 = vmatprep.mubr.bf16.mxu0 %v10562_v57  ;;  %3743 = vmatprep.mubr.bf16.mxu1 %v10562_v57 }
 0x7b1   :  { %3671 = vmatpush1.bf16.msra.mxu0 %v9173_v13  ;;  %3714 = vmatpush1.bf16.msra.mxu1 %v9179_v22 }
 0x7b2   :  { %3672 = vmatprep.subr.bf16.mxu0 %v9185_v49  ;;  %3715 = vmatprep.subr.bf16.mxu1 %v9191_v30 }
 0x7b5   :  { %3673 = vmatpush1.bf16.msra.mxu0 %v9197_v34  ;;  %3716 = vmatpush1.bf16.msra.mxu1 %v9203_v28 }
 0x7b6   :  { %3674 = vmatprep.subr.bf16.mxu0 %v9209_v36  ;;  %3717 = vmatprep.subr.bf16.mxu1 %v9215_v31 }
 0x7b9   :  { %3675 = vmatpush1.bf16.msra.mxu0 %v9221_v63  ;;  %3718 = vmatpush1.bf16.msra.mxu1 %v9227_v42 }
 0x7ba   :  { %3676 = vmatprep.subr.bf16.mxu0 %v9233_v44  ;;  %3719 = vmatprep.subr.bf16.mxu1 %v9239_v59 }
 0x7bd   :  { %3677 = vmatpush1.bf16.msra.mxu0 %v9245_v52  ;;  %3720 = vmatpush1.bf16.msra.mxu1 %v9251_v53 }
 0x7be   :  { %3678 = vmatprep.subr.bf16.mxu0 %v9257_v48  ;;  %3721 = vmatprep.subr.bf16.mxu1 %v9263_v2 }
 0x7c1   :  { %3679 = vmatpush1.bf16.msra.mxu0 %v9269_v24  ;;  %3722 = vmatpush1.bf16.msra.mxu1 %v9275_v62 }
 0x7c2   :  { %3680 = vmatprep.subr.bf16.mxu0 %v9281_v55  ;;  %3723 = vmatprep.subr.bf16.mxu1 %v9287_v60 }
 0x7c5   :  { %3681 = vmatpush1.bf16.msra.mxu0 %v9293_v33  ;;  %3724 = vmatpush1.bf16.msra.mxu1 %v9299_v3 }
 0x7c6   :  { %3682 = vmatprep.subr.bf16.mxu0 %v9305_v6  ;;  %3725 = vmatprep.subr.bf16.mxu1 %v9311_v45 }
 0x7c9   :  { %3683 = vmatpush1.bf16.msra.mxu0 %v9317_v38  ;;  %3726 = vmatpush1.bf16.msra.mxu1 %v9323_v1 }
 0x7ca   :  { %3760 = vmatprep.subr.bf16.mxu0 %v9329_v47  ;;  %3803 = vmatprep.subr.bf16.mxu1 %v9335_v7 }
 0x7cc   :  { %3701 = vmatmul.mubr.bf16.vlgmr.msra.gmra.mrb[48].mxu0 %v9140_v35  ;;  %3744 = vmatmul.mubr.bf16.vlgmr.msra.gmra.mrb[48].mxu1 %v9140_v35  ;;  %v9441_v35 = vld [vmem:[%s10145_s1 + $0x80] ss:$16 sps:$4 sm:$0xff]  }
 0x7cd   :  { %3761 = vmatpush1.bf16.msra.mxu0 %v9343_v10  ;;  %3804 = vmatpush1.bf16.msra.mxu1 %v9349_v46  ;;  %11094 = vst [vmem:[#allocation20_spill] sm:$0xff] %v9441_v35 }
 0x7ce   :  { %3762 = vmatprep.subr.bf16.mxu0 %v9355_v4  ;;  %3805 = vmatprep.subr.bf16.mxu1 %v9361_v32 }
 0x7cf   :  { %3792 = vmatprep.mubr.bf16.mxu0 %v10562_v57  ;;  %3835 = vmatprep.mubr.bf16.mxu1 %v10562_v57 }
 0x7d1   :  { %3763 = vmatpush1.bf16.msra.mxu0 %v9369_v41  ;;  %3806 = vmatpush1.bf16.msra.mxu1 %v9375_v40 }
 0x7d2   :  { %3764 = vmatprep.subr.bf16.mxu0 %v9381_v11  ;;  %3807 = vmatprep.subr.bf16.mxu1 %v9387_v21 }
 0x7d5   :  { %3765 = vmatpush1.bf16.msra.mxu0 %v9393_v16  ;;  %3808 = vmatpush1.bf16.msra.mxu1 %v9399_v14 }
 0x7d6   :  { %3766 = vmatprep.subr.bf16.mxu0 %v9405_v50  ;;  %3809 = vmatprep.subr.bf16.mxu1 %v9411_v8 }
 0x7d9   :  { %3767 = vmatpush1.bf16.msra.mxu0 %v9417_v56  ;;  %3810 = vmatpush1.bf16.msra.mxu1 %v9423_v9  ;;  %v9447_v9 = vld [vmem:[%s10145_s1 + $0x88] ss:$16 sps:$4 sm:$0xff]   ;;  %v9534_v56 = vld [vmem:[%s10147_s4 + $0xc] ss:$16 sps:$4 sm:$0xff]  }
 0x7da   :  { %3768 = vmatprep.subr.bf16.mxu0 %v9429_v12  ;;  %3811 = vmatprep.subr.bf16.mxu1 %v9435_v29  ;;  %11095 = vst [vmem:[#allocation21_spill] sm:$0xff] %v9447_v9  ;;  %v9453_v12 = vld [vmem:[%s10145_s1 + $0xa4] ss:$16 sps:$4 sm:$0xff]   ;;  %v9459_v29 = vld [vmem:[%s10145_s1 + $0xac] ss:$16 sps:$4 sm:$0xff]   ;;  %11109 = vst [vmem:[#allocation35_spill] sm:$0xff] %v9534_v56 }
 0x7db   :  { %11096 = vst [vmem:[#allocation22_spill] sm:$0xff] %v9453_v12  ;;  %11097 = vst [vmem:[#allocation23_spill] sm:$0xff] %v9459_v29 }
 0x7dd   :  { %3769 = vmatpush1.bf16.msra.mxu0 %v9441_v35  ;;  %3812 = vmatpush1.bf16.msra.mxu1 %v9447_v9  ;;  %v9465_v35 = vld [vmem:[%s10145_s1 + $0xa0] ss:$16 sps:$4 sm:$0xff]   ;;  %v9471_v9 = vld [vmem:[%s10145_s1 + $0xa8] ss:$16 sps:$4 sm:$0xff]  }
 0x7de   :  { %3770 = vmatprep.subr.bf16.mxu0 %v9453_v12  ;;  %3813 = vmatprep.subr.bf16.mxu1 %v9459_v29  ;;  %11098 = vst [vmem:[#allocation24_spill] sm:$0xff] %v9465_v35  ;;  %11099 = vst [vmem:[#allocation25_spill] sm:$0xff] %v9471_v9  ;;  %v9477_v12 = vld [vmem:[%s10145_s1 + $0xc4] ss:$16 sps:$4 sm:$0xff]   ;;  %v9483_v29 = vld [vmem:[%s10145_s1 + $0xcc] ss:$16 sps:$4 sm:$0xff]  }
 0x7df   :  { %11100 = vst [vmem:[#allocation26_spill] sm:$0xff] %v9477_v12  ;;  %11101 = vst [vmem:[#allocation27_spill] sm:$0xff] %v9483_v29 }
 0x7e1   :  { %3771 = vmatpush1.bf16.msra.mxu0 %v9465_v35  ;;  %3814 = vmatpush1.bf16.msra.mxu1 %v9471_v9  ;;  %v9489_v35 = vld [vmem:[%s10145_s1 + $0xc0] ss:$16 sps:$4 sm:$0xff]   ;;  %v9495_v9 = vld [vmem:[%s10145_s1 + $0xc8] ss:$16 sps:$4 sm:$0xff]  }
 0x7e2   :  { %3772 = vmatprep.subr.bf16.mxu0 %v9477_v12  ;;  %3815 = vmatprep.subr.bf16.mxu1 %v9483_v29  ;;  %11102 = vst [vmem:[#allocation28_spill] sm:$0xff] %v9489_v35  ;;  %11103 = vst [vmem:[#allocation29_spill] sm:$0xff] %v9495_v9  ;;  %v9501_v12 = vld [vmem:[%s10145_s1 + $0xe4] ss:$16 sps:$4 sm:$0xff]   ;;  %v9507_v29 = vld [vmem:[%s10145_s1 + $0xec] ss:$16 sps:$4 sm:$0xff]  }
 0x7e3   :  { %11104 = vst [vmem:[#allocation30_spill] sm:$0xff] %v9501_v12  ;;  %11105 = vst [vmem:[#allocation31_spill] sm:$0xff] %v9507_v29 }
 0x7e5   :  { %3773 = vmatpush1.bf16.msra.mxu0 %v9489_v35  ;;  %3816 = vmatpush1.bf16.msra.mxu1 %v9495_v9  ;;  %v5197_v35 = vld [vmem:[%s10146_s0 + $0x30] sm:$0xff]  }
 0x7e6   :  { %3774 = vmatprep.subr.bf16.mxu0 %v9501_v12  ;;  %3817 = vmatprep.subr.bf16.mxu1 %v9507_v29  ;;  %v9516_v9 = vld [vmem:[%s10145_s1 + $0xe0] ss:$16 sps:$4 sm:$0xff]   ;;  %v9522_v12 = vld [vmem:[%s10145_s1 + $0xe8] ss:$16 sps:$4 sm:$0xff]   ;;  %v9528_v29 = vld [vmem:[%s10147_s4 + $0x4] ss:$16 sps:$4 sm:$0xff]  }
 0x7e7   :  { %11106 = vst [vmem:[#allocation32_spill] sm:$0xff] %v9516_v9  ;;  %11107 = vst [vmem:[#allocation33_spill] sm:$0xff] %v9522_v12 }
 0x7e8   :  { %11108 = vst [vmem:[#allocation34_spill] sm:$0xff] %v9528_v29 }
 0x7e9   :  { %3775 = vmatpush1.bf16.msra.mxu0 %v9516_v9  ;;  %3818 = vmatpush1.bf16.msra.mxu1 %v9522_v12  ;;  %v9540_v12 = vld [vmem:[%s10147_s4] ss:$16 sps:$4 sm:$0xff]  }
 0x7ea   :  { %3904 = vmatprep.subr.bf16.mxu0 %v9528_v29  ;;  %3947 = vmatprep.subr.bf16.mxu1 %v9534_v56  ;;  %11110 = vst [vmem:[#allocation36_spill] sm:$0xff] %v9540_v12  ;;  %v9546_v29 = vld [vmem:[%s10147_s4 + $0x8] ss:$16 sps:$4 sm:$0xff]   ;;  %v9552_v56 = vld [vmem:[%s10147_s4 + $0x24] ss:$16 sps:$4 sm:$0xff]  }
 0x7eb   :  { %11111 = vst [vmem:[#allocation37_spill] sm:$0xff] %v9546_v29  ;;  %11112 = vst [vmem:[#allocation38_spill] sm:$0xff] %v9552_v56 }
 0x7ec   :  { %3793 = vmatmul.mubr.bf16.vlgmr.msra.gmra.mrb[48].mxu0 %v5197_v35  ;;  %3836 = vmatmul.mubr.bf16.vlgmr.msra.gmra.mrb[48].mxu1 %v5197_v35  ;;  %v9558_v35 = vld [vmem:[%s10147_s4 + $0x2c] ss:$16 sps:$4 sm:$0xff]  }
 0x7ed   :  { %3905 = vmatpush1.bf16.msra.mxu0 %v9540_v12  ;;  %3948 = vmatpush1.bf16.msra.mxu1 %v9546_v29  ;;  %11113 = vst [vmem:[#allocation39_spill] sm:$0xff] %v9558_v35  ;;  %v9566_v29 = vld [vmem:[%s10147_s4 + $0x20] ss:$16 sps:$4 sm:$0xff]   ;;  %v9584_v12 = vld [vmem:[%s10147_s4 + $0x4c] ss:$16 sps:$4 sm:$0xff]  }
 0x7ee   :  { %3906 = vmatprep.subr.bf16.mxu0 %v9552_v56  ;;  %3949 = vmatprep.subr.bf16.mxu1 %v9558_v35  ;;  %11114 = vst [vmem:[#allocation40_spill] sm:$0xff] %v9566_v29  ;;  %v9572_v56 = vld [vmem:[%s10147_s4 + $0x28] ss:$16 sps:$4 sm:$0xff]   ;;  %v9578_v35 = vld [vmem:[%s10147_s4 + $0x44] ss:$16 sps:$4 sm:$0xff]   ;;  %11117 = vst [vmem:[#allocation43_spill] sm:$0xff] %v9584_v12 }
 0x7ef   :  { %3936 = vmatprep.mubr.bf16.mxu0 %v10562_v57  ;;  %3979 = vmatprep.mubr.bf16.mxu1 %v10562_v57  ;;  %11115 = vst [vmem:[#allocation41_spill] sm:$0xff] %v9572_v56  ;;  %11116 = vst [vmem:[#allocation42_spill] sm:$0xff] %v9578_v35 }
 0x7f1   :  { %3907 = vmatpush1.bf16.msra.mxu0 %v9566_v29  ;;  %3950 = vmatpush1.bf16.msra.mxu1 %v9572_v56  ;;  %v9590_v29 = vld [vmem:[%s10147_s4 + $0x40] ss:$16 sps:$4 sm:$0xff]   ;;  %v9596_v56 = vld [vmem:[%s10147_s4 + $0x48] ss:$16 sps:$4 sm:$0xff]  }
 0x7f2   :  { %3908 = vmatprep.subr.bf16.mxu0 %v9578_v35  ;;  %3951 = vmatprep.subr.bf16.mxu1 %v9584_v12  ;;  %11118 = vst [vmem:[#allocation44_spill] sm:$0xff] %v9590_v29  ;;  %11119 = vst [vmem:[#allocation45_spill] sm:$0xff] %v9596_v56  ;;  %v9602_v35 = vld [vmem:[%s10147_s4 + $0x64] ss:$16 sps:$4 sm:$0xff]   ;;  %v9608_v12 = vld [vmem:[%s10147_s4 + $0x6c] ss:$16 sps:$4 sm:$0xff]  }
 0x7f3   :  { %11120 = vst [vmem:[#allocation46_spill] sm:$0xff] %v9602_v35  ;;  %11121 = vst [vmem:[#allocation47_spill] sm:$0xff] %v9608_v12 }
 0x7f5   :  { %3909 = vmatpush1.bf16.msra.mxu0 %v9590_v29  ;;  %3952 = vmatpush1.bf16.msra.mxu1 %v9596_v56  ;;  %v9614_v29 = vld [vmem:[%s10147_s4 + $0x60] ss:$16 sps:$4 sm:$0xff]   ;;  %v9620_v56 = vld [vmem:[%s10147_s4 + $0x68] ss:$16 sps:$4 sm:$0xff]  }
 0x7f6   :  { %3910 = vmatprep.subr.bf16.mxu0 %v9602_v35  ;;  %3953 = vmatprep.subr.bf16.mxu1 %v9608_v12  ;;  %11122 = vst [vmem:[#allocation48_spill] sm:$0xff] %v9614_v29  ;;  %11123 = vst [vmem:[#allocation49_spill] sm:$0xff] %v9620_v56  ;;  %v9626_v35 = vld [vmem:[%s10147_s4 + $0x84] ss:$16 sps:$4 sm:$0xff]   ;;  %v9632_v12 = vld [vmem:[%s10147_s4 + $0x8c] ss:$16 sps:$4 sm:$0xff]  }
 0x7f7   :  { %11124 = vst [vmem:[#allocation50_spill] sm:$0xff] %v9626_v35  ;;  %11125 = vst [vmem:[#allocation51_spill] sm:$0xff] %v9632_v12 }
 0x7f9   :  { %3911 = vmatpush1.bf16.msra.mxu0 %v9614_v29  ;;  %3954 = vmatpush1.bf16.msra.mxu1 %v9620_v56  ;;  %v9638_v29 = vld [vmem:[%s10147_s4 + $0x80] ss:$16 sps:$4 sm:$0xff]   ;;  %v9644_v56 = vld [vmem:[%s10147_s4 + $0x88] ss:$16 sps:$4 sm:$0xff]  }
 0x7fa   :  { %3912 = vmatprep.subr.bf16.mxu0 %v9626_v35  ;;  %3955 = vmatprep.subr.bf16.mxu1 %v9632_v12  ;;  %11126 = vst [vmem:[#allocation52_spill] sm:$0xff] %v9638_v29  ;;  %11127 = vst [vmem:[#allocation53_spill] sm:$0xff] %v9644_v56  ;;  %v9650_v35 = vld [vmem:[%s10147_s4 + $0xa4] ss:$16 sps:$4 sm:$0xff]   ;;  %v9656_v12 = vld [vmem:[%s10147_s4 + $0xac] ss:$16 sps:$4 sm:$0xff]  }
 0x7fb   :  { %11128 = vst [vmem:[#allocation54_spill] sm:$0xff] %v9650_v35  ;;  %11129 = vst [vmem:[#allocation55_spill] sm:$0xff] %v9656_v12 }
 0x7fd   :  { %3913 = vmatpush1.bf16.msra.mxu0 %v9638_v29  ;;  %3956 = vmatpush1.bf16.msra.mxu1 %v9644_v56  ;;  %v9662_v29 = vld [vmem:[%s10147_s4 + $0xa0] ss:$16 sps:$4 sm:$0xff]   ;;  %v9668_v56 = vld [vmem:[%s10147_s4 + $0xa8] ss:$16 sps:$4 sm:$0xff]  }
 0x7fe   :  { %3914 = vmatprep.subr.bf16.mxu0 %v9650_v35  ;;  %3957 = vmatprep.subr.bf16.mxu1 %v9656_v12  ;;  %11130 = vst [vmem:[#allocation56_spill] sm:$0xff] %v9662_v29  ;;  %11131 = vst [vmem:[#allocation57_spill] sm:$0xff] %v9668_v56  ;;  %v9674_v35 = vld [vmem:[%s10147_s4 + $0xc4] ss:$16 sps:$4 sm:$0xff]   ;;  %v9680_v12 = vld [vmem:[%s10147_s4 + $0xcc] ss:$16 sps:$4 sm:$0xff]  }
 0x7ff   :  { %11132 = vst [vmem:[#allocation58_spill] sm:$0xff] %v9674_v35  ;;  %11133 = vst [vmem:[#allocation59_spill] sm:$0xff] %v9680_v12 }
 0x801   :  { %3915 = vmatpush1.bf16.msra.mxu0 %v9662_v29  ;;  %3958 = vmatpush1.bf16.msra.mxu1 %v9668_v56  ;;  %v9686_v29 = vld [vmem:[%s10147_s4 + $0xc0] ss:$16 sps:$4 sm:$0xff]   ;;  %v9692_v56 = vld [vmem:[%s10147_s4 + $0xc8] ss:$16 sps:$4 sm:$0xff]  }
 0x802   :  { %3916 = vmatprep.subr.bf16.mxu0 %v9674_v35  ;;  %3959 = vmatprep.subr.bf16.mxu1 %v9680_v12  ;;  %11134 = vst [vmem:[#allocation60_spill] sm:$0xff] %v9686_v29  ;;  %11135 = vst [vmem:[#allocation61_spill] sm:$0xff] %v9692_v56  ;;  %v9698_v35 = vld [vmem:[%s10147_s4 + $0xe4] ss:$16 sps:$4 sm:$0xff]   ;;  %v9704_v12 = vld [vmem:[%s10147_s4 + $0xec] ss:$16 sps:$4 sm:$0xff]  }
 0x803   :  { %11136 = vst [vmem:[#allocation62_spill] sm:$0xff] %v9698_v35  ;;  %11137 = vst [vmem:[#allocation63_spill] sm:$0xff] %v9704_v12 }
 0x805   :  { %3917 = vmatpush1.bf16.msra.mxu0 %v9686_v29  ;;  %3960 = vmatpush1.bf16.msra.mxu1 %v9692_v56  ;;  %v9710_v29 = vld [vmem:[%s10147_s4 + $0xe0] ss:$16 sps:$4 sm:$0xff]   ;;  %v9716_v56 = vld [vmem:[%s10147_s4 + $0xe8] ss:$16 sps:$4 sm:$0xff]  }
 0x806   :  { %3918 = vmatprep.subr.bf16.mxu0 %v9698_v35  ;;  %3961 = vmatprep.subr.bf16.mxu1 %v9704_v12  ;;  %11138 = vst [vmem:[#allocation64_spill] sm:$0xff] %v9710_v29  ;;  %11139 = vst [vmem:[#allocation65_spill] sm:$0xff] %v9716_v56  ;;  %v9722_v35 = vld [vmem:[%s10148_s2 + $0x4] ss:$16 sps:$4 sm:$0xff]   ;;  %v9728_v12 = vld [vmem:[%s10148_s2 + $0xc] ss:$16 sps:$4 sm:$0xff]  }
 0x807   :  { %11140 = vst [vmem:[#allocation66_spill] sm:$0xff] %v9722_v35  ;;  %11141 = vst [vmem:[#allocation67_spill] sm:$0xff] %v9728_v12 }
 0x809   :  { %3919 = vmatpush1.bf16.msra.mxu0 %v9710_v29  ;;  %3962 = vmatpush1.bf16.msra.mxu1 %v9716_v56 }
 0x80a   :  { %3990 = vmatprep.subr.bf16.mxu0 %v9722_v35  ;;  %4033 = vmatprep.subr.bf16.mxu1 %v9728_v12 }
 0x87f   :  { %v3557_v29 = vpop.f32.mrb[44].mxu0  ;;  %v3600_v9 = vpop.f32.mrb[44].mxu1 }
 0x880   :  { %v3609_v8 = vadd.f32 %v3557_v29, %v11049_v39  ;;  %v3559_v50 = vpop.f32.mrb[45].mxu0  ;;  %v3602_v56 = vpop.f32.mrb[45].mxu1 }
 0x881   :  { %v3610_v14 = vadd.f32 %v3559_v50, %v7080_v5  ;;  %v3561_v16 = vpop.f32.mrb[46].mxu0  ;;  %v3604_v21 = vpop.f32.mrb[46].mxu1  ;;  %v3612_v29 = vadd.f32 %v3602_v56, %v7087_v20  ;;  %v3611_v50 = vadd.f32 %v3600_v9, %v7092_v25 }
 0x882   :  { %v4829_v11 = vmul.f32 -1.442695, %v3609_v8  ;;  %v3613_v35 = vadd.f32 %v3561_v16, %v11049_v39  ;;  %v3563_v40 = vpop.f32.mrb[47].mxu0  ;;  %v3606_v41 = vpop.f32.mrb[47].mxu1  ;;  %v3615_v16 = vadd.f32 %v3604_v21, %v7092_v25 }
 0x883   :  { %v4831_v32 = vmul.f32 -1.442695, %v3610_v14  ;;  %v3614_v4 = vadd.f32 %v3563_v40, %v7080_v5  ;;  %v4833_v10 = vmul.f32 -1.442695, %v3612_v29  ;;  %v3616_v8 = vadd.f32 %v3606_v41, %v7087_v20 }
 0x884   :  { %5551 = vpow2.f32 %v4829_v11  ;;  %v4830_v12 = vmul.f32 -1.442695, %v3613_v35 }
 0x885   :  { %5553 = vpow2.f32 %v4831_v32  ;;  %v4832_v46 = vmul.f32 -1.442695, %v3614_v4  ;;  %v4834_v40 = vmul.f32 -1.442695, %v3616_v8 }
 0x886   :  { %5555 = vpow2.f32 %v4830_v12 }
 0x887   :  { %5557 = vpow2.f32 %v4832_v46 }
 0x888   :  { %5559 = vtanh.f32 %v3611_v50 }
 0x889   :  { %5561 = vpow2.f32 %v4833_v10 }
 0x88a   :  { %5563 = vtanh.f32 %v3615_v16 }
 0x88e   :  { %v5552_v39 = vpop.eup %5551 }
 0x88f   :  { %v5554_v14 = vpop.eup %5553  ;;  %v3623_v7 = vadd.f32 1.0, %v5552_v39 }
 0x890   :  { %v3635_v11 = vadd.f32 1.0, %v5554_v14  ;;  %v5556_v4 = vpop.eup %5555 }
 0x891   :  { %5565 = vrcp.f32 %v3623_v7  ;;  %v3624_v32 = vadd.f32 1.0, %v5556_v4  ;;  %v5558_v46 = vpop.eup %5557 }
 0x892   :  { %5567 = vrcp.f32 %v3635_v11  ;;  %v3636_v56 = vadd.f32 1.0, %v5558_v46  ;;  %v5560_v41 = vpop.eup %5559 }
 0x893   :  { %5569 = vpow2.f32 %v4834_v40  ;;  %v5562_v9 = vpop.eup %5561 }
 0x894   :  { %5571 = vrcp.f32 %v3624_v32  ;;  %v5564_v21 = vpop.eup %5563  ;;  %v3649_v8 = vadd.f32 1.0, %v5562_v9 }
 0x895   :  { %5573 = vrcp.f32 %v3636_v56 }
 0x896   :  { %5575 = vrcp.f32 %v3649_v8  ;;  %v9794_v8 = vld [vmem:[%s10148_s2 + $0x4c] ss:$16 sps:$4 sm:$0xff]  }
 0x897   :  { %11144 = vst [vmem:[#allocation70_spill] sm:$0xff] %v9794_v8 }
 0x89b   :  { %v5566_v12 = vpop.eup %5565 }
 0x89c   :  { %v5568_v35 = vpop.eup %5567  ;;  %v3657_v29 = vmul.f32 %v5566_v12, %v5560_v41 }
 0x89d   :  { %v5570_v39 = vpop.eup %5569  ;;  %v3655_v10 = vmul.f32 %v5568_v35, %v9073_v43  ;;  %v9762_v35 = vld [vmem:[%s10148_s2 + $0x24] ss:$16 sps:$4 sm:$0xff]  }
 0x89e   :  { %v5572_v50 = vpop.eup %5571  ;;  %v3650_v11 = vadd.f32 1.0, %v5570_v39  ;;  %v9776_v39 = vld [vmem:[%s10148_s2 + $0x20] ss:$16 sps:$4 sm:$0xff]  }
 0x89f   :  { %v9740_v16 = vadd.f32 %v3657_v29, %v3655_v10  ;;  %v3658_v7 = vmul.f32 %v5572_v50, %v5564_v21  ;;  %v5574_v14 = vpop.eup %5573  ;;  %v9756_v21 = vld [vmem:[%s10148_s2 + $0x8] ss:$16 sps:$4 sm:$0xff]   ;;  %v9768_v29 = vld [vmem:[%s10148_s2 + $0x2c] ss:$16 sps:$4 sm:$0xff]   ;;  %v9788_v50 = vld [vmem:[%s10148_s2 + $0x44] ss:$16 sps:$4 sm:$0xff]  }
 0x8a0   :  { %v3656_v40 = vmul.f32 %v5574_v14, %v9077_v54  ;;  %v5576_v32 = vpop.eup %5575  ;;  %v9750_v54 = vld [vmem:[%s10148_s2] ss:$16 sps:$4 sm:$0xff]   ;;  %v9782_v10 = vld [vmem:[%s10148_s2 + $0x28] ss:$16 sps:$4 sm:$0xff]   ;;  %11143 = vst [vmem:[#allocation69_spill] sm:$0xff] %v9788_v50 }
 0x8a1   :  { %5577 = vtanh.f32 %v9740_v16  ;;  %11142 = vst [vmem:[#allocation68_spill] sm:$0xff] %v9782_v10  ;;  %v9806_v14 = vld [vmem:[%s10148_s2 + $0x48] ss:$16 sps:$4 sm:$0xff]  }
 0x8a2   :  { %v9744_v4 = vadd.f32 %v3658_v7, %v3656_v40  ;;  %5579 = vrcp.f32 %v3650_v11  ;;  %v9800_v7 = vld [vmem:[%s10148_s2 + $0x40] ss:$16 sps:$4 sm:$0xff]   ;;  %11146 = vst [vmem:[#allocation72_spill] sm:$0xff] %v9806_v14  ;;  %v9812_v11 = vld [vmem:[%s10148_s2 + $0x64] ss:$16 sps:$4 sm:$0xff]  }
 0x8a3   :  { %11145 = vst [vmem:[#allocation71_spill] sm:$0xff] %v9800_v7  ;;  %11147 = vst [vmem:[#allocation73_spill] sm:$0xff] %v9812_v11  ;;  %v9818_v40 = vld [vmem:[%s10148_s2 + $0x6c] ss:$16 sps:$4 sm:$0xff]  }
 0x8a4   :  { %5581 = vtanh.f32 %v9744_v4  ;;  %11148 = vst [vmem:[#allocation74_spill] sm:$0xff] %v9818_v40 }
 0x8ab   :  { %v5578_v46 = vpop.eup %5577 }
 0x8ac   :  { %v5580_v43 = vpop.eup %5579  ;;  %v3663_v41 = vmul.f32 %v5578_v46, %v5576_v32 }
 0x8ae   :  { %v5582_v56 = vpop.eup %5581 }
 0x8af   :  { %v3664_v9 = vmul.f32 %v5582_v56, %v5580_v43 }
 0x8b1   :  { %v3903_v12 = vpack.c.bf16 %v3664_v9, %v3663_v41 }
 0x8b3   :  { %3937 = vmatmul.mubr.bf16.vlgmr.msra.gmra.mrb[52].mxu0 %v3903_v12  ;;  %3980 = vmatmul.mubr.bf16.vlgmr.msra.gmra.mrb[52].mxu1 %v3903_v12 }
 0x8b4   :  { %3991 = vmatpush1.bf16.msra.mxu0 %v9750_v54  ;;  %4034 = vmatpush1.bf16.msra.mxu1 %v9756_v21 }
 0x8b5   :  { %3992 = vmatprep.subr.bf16.mxu0 %v9762_v35  ;;  %4035 = vmatprep.subr.bf16.mxu1 %v9768_v29 }
 0x8b6   :  { %4022 = vmatprep.mubr.bf16.mxu0 %v10562_v57  ;;  %4065 = vmatprep.mubr.bf16.mxu1 %v10562_v57 }
 0x8b8   :  { %3993 = vmatpush1.bf16.msra.mxu0 %v9776_v39  ;;  %4036 = vmatpush1.bf16.msra.mxu1 %v9782_v10  ;;  %v9852_v10 = vld [vmem:[%s10148_s2 + $0x80] ss:$16 sps:$4 sm:$0xff]  }
 0x8b9   :  { %3994 = vmatprep.subr.bf16.mxu0 %v9788_v50  ;;  %4037 = vmatprep.subr.bf16.mxu1 %v9794_v8  ;;  %v9839_v50 = vld [vmem:[%s10148_s2 + $0x84] ss:$16 sps:$4 sm:$0xff]   ;;  %11152 = vst [vmem:[#allocation78_spill] sm:$0xff] %v9852_v10 }
 0x8ba   :  { %11151 = vst [vmem:[#allocation77_spill] sm:$0xff] %v9839_v50 }
 0x8bc   :  { %3995 = vmatpush1.bf16.msra.mxu0 %v9800_v7  ;;  %4038 = vmatpush1.bf16.msra.mxu1 %v9806_v14 }
 0x8bd   :  { %3996 = vmatprep.subr.bf16.mxu0 %v9812_v11  ;;  %4039 = vmatprep.subr.bf16.mxu1 %v9818_v40  ;;  %v9826_v11 = vld [vmem:[%s10148_s2 + $0x60] ss:$16 sps:$4 sm:$0xff]   ;;  %v9832_v40 = vld [vmem:[%s10148_s2 + $0x68] ss:$16 sps:$4 sm:$0xff]  }
 0x8be   :  { %11149 = vst [vmem:[#allocation75_spill] sm:$0xff] %v9826_v11  ;;  %11150 = vst [vmem:[#allocation76_spill] sm:$0xff] %v9832_v40 }
 0x8bf   :  { %v3794_v32 = vpop.f32.mrb[48].mxu0  ;;  %v3837_v46 = vpop.f32.mrb[48].mxu1 }
 0x8c0   :  { %v3846_v43 = vadd.f32 %v3794_v32, %v11057_v26  ;;  %v3796_v56 = vpop.f32.mrb[49].mxu0  ;;  %v3839_v41 = vpop.f32.mrb[49].mxu1  ;;  %3997 = vmatpush1.bf16.msra.mxu0 %v9826_v11  ;;  %4040 = vmatpush1.bf16.msra.mxu1 %v9832_v40  ;;  %v9845_v11 = vld [vmem:[%s10148_s2 + $0x8c] ss:$16 sps:$4 sm:$0xff]  }
 0x8c1   :  { %v3847_v9 = vadd.f32 %v3796_v56, %v6940_v0  ;;  %v3798_v12 = vpop.f32.mrb[50].mxu0  ;;  %v3841_v14 = vpop.f32.mrb[50].mxu1  ;;  %3998 = vmatprep.subr.bf16.mxu0 %v9839_v50  ;;  %4041 = vmatprep.subr.bf16.mxu1 %v9845_v11  ;;  %v9858_v50 = vld [vmem:[%s10148_s2 + $0x88] ss:$16 sps:$4 sm:$0xff]  }
 0x8c2   :  { %v4838_v32 = vmul.f32 -1.442695, %v3846_v43  ;;  %v3850_v7 = vadd.f32 %v3798_v12, %v11057_v26  ;;  %v3800_v56 = vpop.f32.mrb[51].mxu0  ;;  %v3843_v8 = vpop.f32.mrb[51].mxu1  ;;  %11153 = vst [vmem:[#allocation79_spill] sm:$0xff] %v9858_v50 }
 0x8c3   :  { %v4840_v40 = vmul.f32 -1.442695, %v3847_v9  ;;  %v3851_v43 = vadd.f32 %v3800_v56, %v6940_v0  ;;  %v3849_v9 = vadd.f32 %v3839_v41, %v11065_v19  ;;  %v9883_v56 = vld [vmem:[%s10148_s2 + $0xa8] ss:$16 sps:$4 sm:$0xff]   ;;  %v9896_v41 = vld [vmem:[%s10148_s2 + $0xcc] ss:$16 sps:$4 sm:$0xff]  }
 0x8c4   :  { %5583 = vpow2.f32 %v4838_v32  ;;  %v4839_v12 = vmul.f32 -1.442695, %v3850_v7  ;;  %3999 = vmatpush1.bf16.msra.mxu0 %v9852_v10  ;;  %4042 = vmatpush1.bf16.msra.mxu1 %v9858_v50  ;;  %v9864_v7 = vld [vmem:[%s10148_s2 + $0xa4] ss:$16 sps:$4 sm:$0xff]   ;;  %v9877_v32 = vld [vmem:[%s10148_s2 + $0xa0] ss:$16 sps:$4 sm:$0xff]  }
 0x8c5   :  { %5585 = vpow2.f32 %v4840_v40  ;;  %v4841_v26 = vmul.f32 -1.442695, %v3851_v43  ;;  %11154 = vst [vmem:[#allocation80_spill] sm:$0xff] %v9864_v7  ;;  %4000 = vmatprep.subr.bf16.mxu0 %v9864_v7  ;;  %v9870_v40 = vld [vmem:[%s10148_s2 + $0xac] ss:$16 sps:$4 sm:$0xff]   ;;  %11156 = vst [vmem:[#allocation82_spill] sm:$0xff] %v9877_v32  ;;  %v3848_v43 = vadd.f32 %v3837_v46, %v11068_v27 }
 0x8c6   :  { %11155 = vst [vmem:[#allocation81_spill] sm:$0xff] %v9870_v40  ;;  %4043 = vmatprep.subr.bf16.mxu1 %v9870_v40  ;;  %5587 = vpow2.f32 %v4839_v12  ;;  %11157 = vst [vmem:[#allocation83_spill] sm:$0xff] %v9883_v56  ;;  %v4842_v12 = vmul.f32 -1.442695, %v3849_v9  ;;  %v9904_v46 = vld [vmem:[%s10148_s2 + $0xc0] ss:$16 sps:$4 sm:$0xff]  }
 0x8c7   :  { %5589 = vpow2.f32 %v4841_v26  ;;  %v9890_v26 = vld [vmem:[%s10148_s2 + $0xc4] ss:$16 sps:$4 sm:$0xff]   ;;  %11159 = vst [vmem:[#allocation85_spill] sm:$0xff] %v9896_v41  ;;  %11160 = vst [vmem:[#allocation86_spill] sm:$0xff] %v9904_v46 }
 0x8c8   :  { %4001 = vmatpush1.bf16.msra.mxu0 %v9877_v32  ;;  %4044 = vmatpush1.bf16.msra.mxu1 %v9883_v56  ;;  %11158 = vst [vmem:[#allocation84_spill] sm:$0xff] %v9890_v26  ;;  %v3853_v32 = vadd.f32 %v3843_v8, %v11065_v19  ;;  %v3852_v56 = vadd.f32 %v3841_v14, %v11068_v27  ;;  %5591 = vtanh.f32 %v3848_v43  ;;  %v9916_v8 = vld [vmem:[%s10148_s2 + $0xe4] ss:$16 sps:$4 sm:$0xff]   ;;  %v9922_v14 = vld [vmem:[%s10148_s2 + $0xec] ss:$16 sps:$4 sm:$0xff]  }
 0x8c9   :  { %4002 = vmatprep.subr.bf16.mxu0 %v9890_v26  ;;  %4045 = vmatprep.subr.bf16.mxu1 %v9896_v41  ;;  %v9910_v26 = vld [vmem:[%s10148_s2 + $0xc8] ss:$16 sps:$4 sm:$0xff]   ;;  %11162 = vst [vmem:[#allocation91_spill] sm:$0xff] %v9916_v8  ;;  %11163 = vst [vmem:[#allocation92_spill] sm:$0xff] %v9922_v14  ;;  %5593 = vpow2.f32 %v4842_v12  ;;  %v9928_v19 = vld [vmem:[%s10148_s2 + $0xe0] ss:$16 sps:$4 sm:$0xff]  }
 0x8ca   :  { %11161 = vst [vmem:[#allocation90_spill] sm:$0xff] %v9910_v26  ;;  %5595 = vtanh.f32 %v3852_v56  ;;  %11164 = vst [vmem:[#allocation93_spill] sm:$0xff] %v9928_v19 }
 0x8cc   :  { %4003 = vmatpush1.bf16.msra.mxu0 %v9904_v46  ;;  %4046 = vmatpush1.bf16.msra.mxu1 %v9910_v26  ;;  %v4843_v26 = vmul.f32 -1.442695, %v3853_v32 }
 0x8cd   :  { %4004 = vmatprep.subr.bf16.mxu0 %v9916_v8  ;;  %4047 = vmatprep.subr.bf16.mxu1 %v9922_v14  ;;  %v9934_v8 = vld [vmem:[%s10148_s2 + $0xe8] ss:$16 sps:$4 sm:$0xff]  }
 0x8ce   :  { %v5584_v41 = vpop.eup %5583  ;;  %11165 = vst [vmem:[#allocation94_spill] sm:$0xff] %v9934_v8 }
 0x8cf   :  { %v5586_v9 = vpop.eup %5585  ;;  %v3860_v46 = vadd.f32 1.0, %v5584_v41 }
 0x8d0   :  { %v3872_v27 = vadd.f32 1.0, %v5586_v9  ;;  %v5588_v43 = vpop.eup %5587  ;;  %4005 = vmatpush1.bf16.msra.mxu0 %v9928_v19  ;;  %4048 = vmatpush1.bf16.msra.mxu1 %v9934_v8 }
 0x8d1   :  { %5597 = vrcp.f32 %v3860_v46  ;;  %v3861_v32 = vadd.f32 1.0, %v5588_v43  ;;  %4135 = vmatprep.subr.bf16.mxu0 %v9123_v61  ;;  %4178 = vmatprep.subr.bf16.mxu1 %v9129_v58  ;;  %v5590_v56 = vpop.eup %5589 }
 0x8d2   :  { %5599 = vrcp.f32 %v3872_v27  ;;  %v3873_v41 = vadd.f32 1.0, %v5590_v56  ;;  %v5592_v12 = vpop.eup %5591 }
 0x8d3   :  { %5601 = vpow2.f32 %v4843_v26  ;;  %v5594_v46 = vpop.eup %5593 }
 0x8d4   :  { %5603 = vrcp.f32 %v3861_v32  ;;  %v5596_v9 = vpop.eup %5595  ;;  %v3886_v43 = vadd.f32 1.0, %v5594_v46  ;;  %v11200_v46 = vld [vmem:[#allocation37_spill] sm:$0xff] }
 0x8d5   :  { %5605 = vrcp.f32 %v3873_v41 }
 0x8d6   :  { %5607 = vrcp.f32 %v3886_v43  ;;  %v11203_v43 = vld [vmem:[#allocation40_spill] sm:$0xff] }
 0x8db   :  { %v5598_v19 = vpop.eup %5597 }
 0x8dc   :  { %v5600_v14 = vpop.eup %5599  ;;  %v3894_v40 = vmul.f32 %v5598_v19, %v5592_v12  ;;  %v11199_v12 = vld [vmem:[#allocation36_spill] sm:$0xff] }
 0x8dd   :  { %v5602_v7 = vpop.eup %5601  ;;  %v3892_v8 = vmul.f32 %v5600_v14, %v9133_v15 }
 0x8de   :  { %v5604_v27 = vpop.eup %5603  ;;  %v3887_v10 = vadd.f32 1.0, %v5602_v7  ;;  %v11198_v7 = vld [vmem:[#allocation35_spill] sm:$0xff] }
 0x8df   :  { %v9940_v50 = vadd.f32 %v3894_v40, %v3892_v8  ;;  %v3895_v61 = vmul.f32 %v5604_v27, %v5596_v9  ;;  %v5606_v58 = vpop.eup %5605  ;;  %v11201_v9 = vld [vmem:[#allocation38_spill] sm:$0xff]  ;;  %v11202_v27 = vld [vmem:[#allocation39_spill] sm:$0xff] }
 0x8e0   :  { %v3893_v26 = vmul.f32 %v5606_v58, %v9137_v51  ;;  %v5608_v19 = vpop.eup %5607  ;;  %v11166_v51 = vld [vmem:[#allocation3_spill] sm:$0xff]  ;;  %v11205_v58 = vld [vmem:[#allocation42_spill] sm:$0xff] }
 0x8e1   :  { %5609 = vtanh.f32 %v9940_v50 }
 0x8e2   :  { %v9944_v32 = vadd.f32 %v3895_v61, %v3893_v26  ;;  %5611 = vrcp.f32 %v3887_v10  ;;  %v11197_v10 = vld [vmem:[#allocation34_spill] sm:$0xff]  ;;  %v11204_v61 = vld [vmem:[#allocation41_spill] sm:$0xff]  ;;  %v11206_v26 = vld [vmem:[#allocation43_spill] sm:$0xff] }
 0x8e4   :  { %5613 = vtanh.f32 %v9944_v32 }
 0x8eb   :  { %v5610_v56 = vpop.eup %5609 }
 0x8ec   :  { %v5612_v15 = vpop.eup %5611  ;;  %v3900_v41 = vmul.f32 %v5610_v56, %v5608_v19  ;;  %v11207_v19 = vld [vmem:[#allocation44_spill] sm:$0xff]  ;;  %v11208_v56 = vld [vmem:[#allocation45_spill] sm:$0xff] }
 0x8ee   :  { %v5614_v14 = vpop.eup %5613 }
 0x8ef   :  { %v3901_v40 = vmul.f32 %v5614_v14, %v5612_v15  ;;  %v11209_v15 = vld [vmem:[#allocation46_spill] sm:$0xff]  ;;  %v11210_v14 = vld [vmem:[#allocation47_spill] sm:$0xff] }
 0x8f1   :  { %v3902_v8 = vpack.c.bf16 %v3901_v40, %v3900_v41  ;;  %v11211_v41 = vld [vmem:[#allocation48_spill] sm:$0xff]  ;;  %v11212_v40 = vld [vmem:[#allocation49_spill] sm:$0xff] }
 0x8f3   :  { %4023 = vmatmul.mubr.bf16.vlgmr.msra.gmra.mrb[52].mxu0 %v3902_v8  ;;  %4066 = vmatmul.mubr.bf16.vlgmr.msra.gmra.mrb[52].mxu1 %v3902_v8 }
 0x8f4   :  { %4136 = vmatpush1.bf16.msra.mxu0 %v9147_v17  ;;  %4179 = vmatpush1.bf16.msra.mxu1 %v9153_v23  ;;  %v11167_v17 = vld [vmem:[#allocation4_spill] sm:$0xff]  ;;  %v11168_v23 = vld [vmem:[#allocation5_spill] sm:$0xff] }
 0x8f5   :  { %4137 = vmatprep.subr.bf16.mxu0 %v9159_v37  ;;  %4180 = vmatprep.subr.bf16.mxu1 %v9165_v18  ;;  %v11169_v37 = vld [vmem:[#allocation6_spill] sm:$0xff]  ;;  %v11170_v18 = vld [vmem:[#allocation7_spill] sm:$0xff] }
 0x8f6   :  { %4167 = vmatprep.mubr.bf16.mxu0 %v10562_v57  ;;  %4210 = vmatprep.mubr.bf16.mxu1 %v10562_v57 }
 0x8f8   :  { %4138 = vmatpush1.bf16.msra.mxu0 %v9173_v13  ;;  %4181 = vmatpush1.bf16.msra.mxu1 %v9179_v22  ;;  %v11171_v13 = vld [vmem:[#allocation8_spill] sm:$0xff]  ;;  %v11172_v22 = vld [vmem:[#allocation9_spill] sm:$0xff] }
 0x8f9   :  { %4139 = vmatprep.subr.bf16.mxu0 %v9185_v49  ;;  %4182 = vmatprep.subr.bf16.mxu1 %v9191_v30  ;;  %v11173_v49 = vld [vmem:[#allocation10_spill] sm:$0xff]  ;;  %v11174_v30 = vld [vmem:[#allocation11_spill] sm:$0xff] }
 0x8fc   :  { %4140 = vmatpush1.bf16.msra.mxu0 %v9197_v34  ;;  %4183 = vmatpush1.bf16.msra.mxu1 %v9203_v28  ;;  %v11175_v34 = vld [vmem:[#allocation12_spill] sm:$0xff]  ;;  %v11176_v28 = vld [vmem:[#allocation13_spill] sm:$0xff] }
 0x8fd   :  { %4141 = vmatprep.subr.bf16.mxu0 %v9209_v36  ;;  %4184 = vmatprep.subr.bf16.mxu1 %v9215_v31  ;;  %v11177_v36 = vld [vmem:[#allocation14_spill] sm:$0xff]  ;;  %v11178_v31 = vld [vmem:[#allocation15_spill] sm:$0xff] }
 0x900   :  { %4142 = vmatpush1.bf16.msra.mxu0 %v9221_v63  ;;  %4185 = vmatpush1.bf16.msra.mxu1 %v9227_v42  ;;  %v11179_v63 = vld [vmem:[#allocation16_spill] sm:$0xff]  ;;  %v11180_v42 = vld [vmem:[#allocation17_spill] sm:$0xff] }
 0x901   :  { %4143 = vmatprep.subr.bf16.mxu0 %v9233_v44  ;;  %4186 = vmatprep.subr.bf16.mxu1 %v9239_v59  ;;  %v11181_v44 = vld [vmem:[#allocation18_spill] sm:$0xff]  ;;  %v11182_v59 = vld [vmem:[#allocation19_spill] sm:$0xff] }
 0x904   :  { %4144 = vmatpush1.bf16.msra.mxu0 %v9245_v52  ;;  %4187 = vmatpush1.bf16.msra.mxu1 %v9251_v53  ;;  %v11183_v52 = vld [vmem:[#allocation20_spill] sm:$0xff]  ;;  %v11184_v53 = vld [vmem:[#allocation21_spill] sm:$0xff] }
 0x905   :  { %4145 = vmatprep.subr.bf16.mxu0 %v9257_v48  ;;  %4188 = vmatprep.subr.bf16.mxu1 %v9263_v2  ;;  %v11185_v48 = vld [vmem:[#allocation22_spill] sm:$0xff]  ;;  %v11186_v2 = vld [vmem:[#allocation23_spill] sm:$0xff] }
 0x908   :  { %4146 = vmatpush1.bf16.msra.mxu0 %v9269_v24  ;;  %4189 = vmatpush1.bf16.msra.mxu1 %v9275_v62  ;;  %v11187_v24 = vld [vmem:[#allocation24_spill] sm:$0xff]  ;;  %v11188_v62 = vld [vmem:[#allocation25_spill] sm:$0xff] }
 0x909   :  { %4147 = vmatprep.subr.bf16.mxu0 %v9281_v55  ;;  %4190 = vmatprep.subr.bf16.mxu1 %v9287_v60  ;;  %v11189_v55 = vld [vmem:[#allocation26_spill] sm:$0xff]  ;;  %v11190_v60 = vld [vmem:[#allocation27_spill] sm:$0xff] }
 0x90c   :  { %4148 = vmatpush1.bf16.msra.mxu0 %v9293_v33  ;;  %4191 = vmatpush1.bf16.msra.mxu1 %v9299_v3  ;;  %v11191_v33 = vld [vmem:[#allocation28_spill] sm:$0xff]  ;;  %v11192_v3 = vld [vmem:[#allocation29_spill] sm:$0xff] }
 0x90d   :  { %4149 = vmatprep.subr.bf16.mxu0 %v9305_v6  ;;  %4192 = vmatprep.subr.bf16.mxu1 %v9311_v45  ;;  %v11193_v6 = vld [vmem:[#allocation30_spill] sm:$0xff]  ;;  %v11194_v45 = vld [vmem:[#allocation31_spill] sm:$0xff] }
 0x910   :  { %4150 = vmatpush1.bf16.msra.mxu0 %v9317_v38  ;;  %4193 = vmatpush1.bf16.msra.mxu1 %v9323_v1  ;;  %v5198_v38 = vld [vmem:[%s10146_s0 + $0x38] sm:$0xff]   ;;  %v11195_v1 = vld [vmem:[#allocation32_spill] sm:$0xff] }
 0x911   :  { %4227 = vmatprep.subr.bf16.mxu0 %v9329_v47  ;;  %4270 = vmatprep.subr.bf16.mxu1 %v11166_v51  ;;  %v11196_v47 = vld [vmem:[#allocation33_spill] sm:$0xff]  ;;  %v11214_v51 = vld [vmem:[#allocation51_spill] sm:$0xff] }
 0x913   :  { %4168 = vmatmul.mubr.bf16.vlgmr.msra.gmra.mrb[56].mxu0 %v3902_v8  ;;  %4211 = vmatmul.mubr.bf16.vlgmr.msra.gmra.mrb[56].mxu1 %v3902_v8  ;;  %v11213_v8 = vld [vmem:[#allocation50_spill] sm:$0xff] }
 0x914   :  { %4228 = vmatpush1.bf16.msra.mxu0 %v11167_v17  ;;  %4271 = vmatpush1.bf16.msra.mxu1 %v11168_v23  ;;  %v11215_v17 = vld [vmem:[#allocation52_spill] sm:$0xff]  ;;  %v11216_v23 = vld [vmem:[#allocation53_spill] sm:$0xff] }
 0x915   :  { %4229 = vmatprep.subr.bf16.mxu0 %v11169_v37  ;;  %4272 = vmatprep.subr.bf16.mxu1 %v11170_v18  ;;  %v11217_v37 = vld [vmem:[#allocation54_spill] sm:$0xff]  ;;  %v11218_v18 = vld [vmem:[#allocation55_spill] sm:$0xff] }
 0x916   :  { %4259 = vmatprep.mubr.bf16.mxu0 %v10562_v57  ;;  %4302 = vmatprep.mubr.bf16.mxu1 %v10562_v57 }
 0x918   :  { %4230 = vmatpush1.bf16.msra.mxu0 %v11171_v13  ;;  %4273 = vmatpush1.bf16.msra.mxu1 %v11172_v22  ;;  %v11219_v13 = vld [vmem:[#allocation56_spill] sm:$0xff]  ;;  %v11220_v22 = vld [vmem:[#allocation57_spill] sm:$0xff] }
 0x919   :  { %4231 = vmatprep.subr.bf16.mxu0 %v11173_v49  ;;  %4274 = vmatprep.subr.bf16.mxu1 %v11174_v30  ;;  %v11221_v49 = vld [vmem:[#allocation58_spill] sm:$0xff]  ;;  %v11222_v30 = vld [vmem:[#allocation59_spill] sm:$0xff] }
 0x91c   :  { %4232 = vmatpush1.bf16.msra.mxu0 %v11175_v34  ;;  %4275 = vmatpush1.bf16.msra.mxu1 %v11176_v28  ;;  %v11223_v34 = vld [vmem:[#allocation60_spill] sm:$0xff]  ;;  %v11224_v28 = vld [vmem:[#allocation61_spill] sm:$0xff] }
 0x91d   :  { %4233 = vmatprep.subr.bf16.mxu0 %v11177_v36  ;;  %4276 = vmatprep.subr.bf16.mxu1 %v11178_v31  ;;  %v11225_v36 = vld [vmem:[#allocation62_spill] sm:$0xff]  ;;  %v11226_v31 = vld [vmem:[#allocation63_spill] sm:$0xff] }
 0x920   :  { %4234 = vmatpush1.bf16.msra.mxu0 %v11179_v63  ;;  %4277 = vmatpush1.bf16.msra.mxu1 %v11180_v42  ;;  %v11227_v63 = vld [vmem:[#allocation64_spill] sm:$0xff]  ;;  %v11228_v42 = vld [vmem:[#allocation65_spill] sm:$0xff] }
 0x921   :  { %4235 = vmatprep.subr.bf16.mxu0 %v11181_v44  ;;  %4278 = vmatprep.subr.bf16.mxu1 %v11182_v59  ;;  %v11229_v44 = vld [vmem:[#allocation66_spill] sm:$0xff]  ;;  %v11230_v59 = vld [vmem:[#allocation67_spill] sm:$0xff] }
 0x924   :  { %4236 = vmatpush1.bf16.msra.mxu0 %v11183_v52  ;;  %4279 = vmatpush1.bf16.msra.mxu1 %v11184_v53 }
 0x925   :  { %4237 = vmatprep.subr.bf16.mxu0 %v11185_v48  ;;  %4280 = vmatprep.subr.bf16.mxu1 %v11186_v2  ;;  %v11231_v48 = vld [vmem:[#allocation2_spill] sm:$0xff] }
 0x928   :  { %4238 = vmatpush1.bf16.msra.mxu0 %v11187_v24  ;;  %4281 = vmatpush1.bf16.msra.mxu1 %v11188_v62 }
 0x929   :  { %4239 = vmatprep.subr.bf16.mxu0 %v11189_v55  ;;  %4282 = vmatprep.subr.bf16.mxu1 %v11190_v60 }
 0x92c   :  { %4240 = vmatpush1.bf16.msra.mxu0 %v11191_v33  ;;  %4283 = vmatpush1.bf16.msra.mxu1 %v11192_v3 }
 0x92d   :  { %4241 = vmatprep.subr.bf16.mxu0 %v11193_v6  ;;  %4284 = vmatprep.subr.bf16.mxu1 %v11194_v45 }
 0x930   :  { %4242 = vmatpush1.bf16.msra.mxu0 %v11195_v1  ;;  %4285 = vmatpush1.bf16.msra.mxu1 %v11196_v47 }
 0x931   :  { %4371 = vmatprep.subr.bf16.mxu0 %v11197_v10  ;;  %4414 = vmatprep.subr.bf16.mxu1 %v11198_v7 }
 0x933   :  { %4260 = vmatmul.mubr.bf16.vlgmr.msra.gmra.mrb[56].mxu0 %v5198_v38  ;;  %4303 = vmatmul.mubr.bf16.vlgmr.msra.gmra.mrb[56].mxu1 %v5198_v38 }
 0x934   :  { %4372 = vmatpush1.bf16.msra.mxu0 %v11199_v12  ;;  %4415 = vmatpush1.bf16.msra.mxu1 %v11200_v46 }
 0x935   :  { %4373 = vmatprep.subr.bf16.mxu0 %v11201_v9  ;;  %4416 = vmatprep.subr.bf16.mxu1 %v11202_v27 }
 0x936   :  { %4403 = vmatprep.mubr.bf16.mxu0 %v10562_v57  ;;  %4446 = vmatprep.mubr.bf16.mxu1 %v10562_v57 }
 0x938   :  { %4374 = vmatpush1.bf16.msra.mxu0 %v11203_v43  ;;  %4417 = vmatpush1.bf16.msra.mxu1 %v11204_v61 }
 0x939   :  { %4375 = vmatprep.subr.bf16.mxu0 %v11205_v58  ;;  %4418 = vmatprep.subr.bf16.mxu1 %v11206_v26 }
 0x93c   :  { %4376 = vmatpush1.bf16.msra.mxu0 %v11207_v19  ;;  %4419 = vmatpush1.bf16.msra.mxu1 %v11208_v56 }
 0x93d   :  { %4377 = vmatprep.subr.bf16.mxu0 %v11209_v15  ;;  %4420 = vmatprep.subr.bf16.mxu1 %v11210_v14 }
 0x940   :  { %4378 = vmatpush1.bf16.msra.mxu0 %v11211_v41  ;;  %4421 = vmatpush1.bf16.msra.mxu1 %v11212_v40 }
 0x941   :  { %4379 = vmatprep.subr.bf16.mxu0 %v11213_v8  ;;  %4422 = vmatprep.subr.bf16.mxu1 %v11214_v51 }
 0x944   :  { %4380 = vmatpush1.bf16.msra.mxu0 %v11215_v17  ;;  %4423 = vmatpush1.bf16.msra.mxu1 %v11216_v23 }
 0x945   :  { %4381 = vmatprep.subr.bf16.mxu0 %v11217_v37  ;;  %4424 = vmatprep.subr.bf16.mxu1 %v11218_v18 }
 0x948   :  { %4382 = vmatpush1.bf16.msra.mxu0 %v11219_v13  ;;  %4425 = vmatpush1.bf16.msra.mxu1 %v11220_v22 }
 0x949   :  { %4383 = vmatprep.subr.bf16.mxu0 %v11221_v49  ;;  %4426 = vmatprep.subr.bf16.mxu1 %v11222_v30 }
 0x94c   :  { %4384 = vmatpush1.bf16.msra.mxu0 %v11223_v34  ;;  %4427 = vmatpush1.bf16.msra.mxu1 %v11224_v28 }
 0x94d   :  { %4385 = vmatprep.subr.bf16.mxu0 %v11225_v36  ;;  %4428 = vmatprep.subr.bf16.mxu1 %v11226_v31 }
 0x950   :  { %4386 = vmatpush1.bf16.msra.mxu0 %v11227_v63  ;;  %4429 = vmatpush1.bf16.msra.mxu1 %v11228_v42 }
 0x951   :  { %4457 = vmatprep.subr.bf16.mxu0 %v11229_v44  ;;  %4500 = vmatprep.subr.bf16.mxu1 %v11230_v59 }
 0x9c6   :  { %v4024_v52 = vpop.f32.mrb[52].mxu0  ;;  %v4067_v53 = vpop.f32.mrb[52].mxu1 }
 0x9c7   :  { %v4076_v2 = vadd.f32 %v4024_v52, %v11231_v48  ;;  %v4026_v24 = vpop.f32.mrb[53].mxu0  ;;  %v4069_v62 = vpop.f32.mrb[53].mxu1  ;;  %v4078_v46 = vadd.f32 %v4067_v53, %v7092_v25 }
 0x9c8   :  { %v4077_v55 = vadd.f32 %v4026_v24, %v7080_v5  ;;  %v4028_v60 = vpop.f32.mrb[54].mxu0  ;;  %v4071_v33 = vpop.f32.mrb[54].mxu1  ;;  %v4079_v12 = vadd.f32 %v4069_v62, %v7087_v20  ;;  %v11233_v62 = vld [vmem:[#allocation69_spill] sm:$0xff] }
 0x9c9   :  { %v4844_v3 = vmul.f32 -1.442695, %v4076_v2  ;;  %v4080_v6 = vadd.f32 %v4028_v60, %v11231_v48  ;;  %v4030_v45 = vpop.f32.mrb[55].mxu0  ;;  %v4073_v38 = vpop.f32.mrb[55].mxu1  ;;  %v4082_v43 = vadd.f32 %v4071_v33, %v7092_v25  ;;  %v11235_v60 = vld [vmem:[#allocation71_spill] sm:$0xff] }
 0x9ca   :  { %v4846_v1 = vmul.f32 -1.442695, %v4077_v55  ;;  %v4081_v47 = vadd.f32 %v4030_v45, %v7080_v5  ;;  %v4848_v9 = vmul.f32 -1.442695, %v4079_v12  ;;  %v4083_v27 = vadd.f32 %v4073_v38, %v7087_v20  ;;  %v11234_v55 = vld [vmem:[#allocation70_spill] sm:$0xff] }
 0x9cb   :  { %5615 = vpow2.f32 %v4844_v3  ;;  %v4845_v10 = vmul.f32 -1.442695, %v4080_v6  ;;  %v11239_v3 = vld [vmem:[#allocation87_spill] sm:$0xff] }
 0x9cc   :  { %5617 = vpow2.f32 %v4846_v1  ;;  %v4847_v7 = vmul.f32 -1.442695, %v4081_v47  ;;  %v4849_v19 = vmul.f32 -1.442695, %v4083_v27  ;;  %v11240_v47 = vld [vmem:[#allocation75_spill] sm:$0xff]  ;;  %v11242_v27 = vld [vmem:[#allocation77_spill] sm:$0xff] }
 0x9cd   :  { %5619 = vpow2.f32 %v4845_v10  ;;  %v11241_v10 = vld [vmem:[#allocation76_spill] sm:$0xff] }
 0x9ce   :  { %5621 = vpow2.f32 %v4847_v7 }
 0x9cf   :  { %5623 = vtanh.f32 %v4078_v46 }
 0x9d0   :  { %5625 = vpow2.f32 %v4848_v9 }
 0x9d1   :  { %5627 = vtanh.f32 %v4082_v43 }
 0x9d5   :  { %v5616_v61 = vpop.eup %5615 }
 0x9d6   :  { %v5618_v58 = vpop.eup %5617  ;;  %v4090_v26 = vadd.f32 1.0, %v5616_v61 }
 0x9d7   :  { %v4102_v56 = vadd.f32 1.0, %v5618_v58  ;;  %v5620_v15 = vpop.eup %5619 }
 0x9d8   :  { %5629 = vrcp.f32 %v4090_v26  ;;  %v4091_v14 = vadd.f32 1.0, %v5620_v15  ;;  %v5622_v41 = vpop.eup %5621  ;;  %v11245_v15 = vld [vmem:[#allocation80_spill] sm:$0xff] }
 0x9d9   :  { %5631 = vrcp.f32 %v4102_v56  ;;  %v4103_v40 = vadd.f32 1.0, %v5622_v41  ;;  %v5624_v8 = vpop.eup %5623  ;;  %v11244_v56 = vld [vmem:[#allocation79_spill] sm:$0xff]  ;;  %v11247_v41 = vld [vmem:[#allocation88_spill] sm:$0xff] }
 0x9da   :  { %5633 = vpow2.f32 %v4849_v19  ;;  %v5626_v51 = vpop.eup %5625  ;;  %v11243_v19 = vld [vmem:[#allocation78_spill] sm:$0xff] }
 0x9db   :  { %5635 = vrcp.f32 %v4091_v14  ;;  %v5628_v17 = vpop.eup %5627  ;;  %v4116_v30 = vadd.f32 1.0, %v5626_v51  ;;  %v11246_v14 = vld [vmem:[#allocation81_spill] sm:$0xff] }
 0x9dc   :  { %5637 = vrcp.f32 %v4103_v40 }
 0x9dd   :  { %5639 = vrcp.f32 %v4116_v30 }
 0x9e2   :  { %v5630_v23 = vpop.eup %5629 }
 0x9e3   :  { %v5632_v37 = vpop.eup %5631  ;;  %v4124_v18 = vmul.f32 %v5630_v23, %v5624_v8  ;;  %v11249_v8 = vld [vmem:[#allocation83_spill] sm:$0xff]  ;;  %v11252_v23 = vld [vmem:[#allocation85_spill] sm:$0xff] }
 0x9e4   :  { %v5634_v13 = vpop.eup %5633  ;;  %v4122_v22 = vmul.f32 %v5632_v37, %v9740_v16 }
 0x9e5   :  { %v5636_v49 = vpop.eup %5635  ;;  %v4117_v31 = vadd.f32 1.0, %v5634_v13 }
 0x9e6   :  { %v10061_v34 = vadd.f32 %v4124_v18, %v4122_v22  ;;  %v4125_v28 = vmul.f32 %v5636_v49, %v5628_v17  ;;  %v5638_v36 = vpop.eup %5637  ;;  %v11251_v17 = vld [vmem:[#allocation84_spill] sm:$0xff]  ;;  %v11253_v22 = vld [vmem:[#allocation86_spill] sm:$0xff] }
 0x9e7   :  { %v4123_v63 = vmul.f32 %v5638_v36, %v9744_v4  ;;  %v5640_v44 = vpop.eup %5639  ;;  %v11232_v4 = vld [vmem:[#allocation68_spill] sm:$0xff]  ;;  %v11254_v49 = vld [vmem:[#allocation90_spill] sm:$0xff] }
 0x9e8   :  { %5641 = vtanh.f32 %v10061_v34  ;;  %v11256_v36 = vld [vmem:[#allocation92_spill] sm:$0xff] }
 0x9e9   :  { %v10065_v42 = vadd.f32 %v4125_v28, %v4123_v63  ;;  %5643 = vrcp.f32 %v4117_v31  ;;  %v11255_v28 = vld [vmem:[#allocation91_spill] sm:$0xff] }
 0x9eb   :  { %5645 = vtanh.f32 %v10065_v42 }
 0x9f2   :  { %v5642_v59 = vpop.eup %5641 }
 0x9f3   :  { %v5644_v16 = vpop.eup %5643  ;;  %v4130_v53 = vmul.f32 %v5642_v59, %v5640_v44 }
 0x9f5   :  { %v5646_v52 = vpop.eup %5645 }
 0x9f6   :  { %v4131_v2 = vmul.f32 %v5646_v52, %v5644_v16  ;;  %v11257_v52 = vld [vmem:[#allocation93_spill] sm:$0xff] }
 0x9f8   :  { %v4370_v24 = vpack.c.bf16 %v4131_v2, %v4130_v53  ;;  %v11258_v53 = vld [vmem:[#allocation94_spill] sm:$0xff] }
 0x9fa   :  { %4404 = vmatmul.mubr.bf16.vlgmr.msra.gmra.mrb[60].mxu0 %v4370_v24  ;;  %4447 = vmatmul.mubr.bf16.vlgmr.msra.gmra.mrb[60].mxu1 %v4370_v24 }
 0x9fb   :  { %4458 = vmatpush1.bf16.msra.mxu0 %v9750_v54  ;;  %4501 = vmatpush1.bf16.msra.mxu1 %v9756_v21  ;;  %v11236_v54 = vld [vmem:[#allocation72_spill] sm:$0xff]  ;;  %v11237_v21 = vld [vmem:[#allocation73_spill] sm:$0xff] }
 0x9fc   :  { %4459 = vmatprep.subr.bf16.mxu0 %v9762_v35  ;;  %4502 = vmatprep.subr.bf16.mxu1 %v9768_v29  ;;  %v11238_v35 = vld [vmem:[#allocation74_spill] sm:$0xff] }
 0x9fd   :  { %4489 = vmatprep.mubr.bf16.mxu0 %v10562_v57  ;;  %4532 = vmatprep.mubr.bf16.mxu1 %v10562_v57 }
 0x9ff   :  { %4460 = vmatpush1.bf16.msra.mxu0 %v9776_v39  ;;  %4503 = vmatpush1.bf16.msra.mxu1 %v11232_v4 }
 0xa00   :  { %4461 = vmatprep.subr.bf16.mxu0 %v11233_v62  ;;  %4504 = vmatprep.subr.bf16.mxu1 %v11234_v55 }
 0xa03   :  { %4462 = vmatpush1.bf16.msra.mxu0 %v11235_v60  ;;  %4505 = vmatpush1.bf16.msra.mxu1 %v11236_v54 }
 0xa04   :  { %4463 = vmatprep.subr.bf16.mxu0 %v11237_v21  ;;  %4506 = vmatprep.subr.bf16.mxu1 %v11238_v35 }
 0xa06   :  { %v4261_v29 = vpop.f32.mrb[56].mxu0  ;;  %v4304_v33 = vpop.f32.mrb[56].mxu1 }
 0xa07   :  { %v4313_v57 = vadd.f32 %v4261_v29, %v11239_v3  ;;  %v4263_v6 = vpop.f32.mrb[57].mxu0  ;;  %v4306_v39 = vpop.f32.mrb[57].mxu1  ;;  %4464 = vmatpush1.bf16.msra.mxu0 %v11240_v47  ;;  %4507 = vmatpush1.bf16.msra.mxu1 %v11241_v10 }
 0xa08   :  { %v4314_v45 = vadd.f32 %v4263_v6, %v6940_v0  ;;  %v4265_v38 = vpop.f32.mrb[58].mxu0  ;;  %v4308_v1 = vpop.f32.mrb[58].mxu1  ;;  %4465 = vmatprep.subr.bf16.mxu0 %v11242_v27  ;;  %4508 = vmatprep.subr.bf16.mxu1 %v9845_v11  ;;  %v4316_v40 = vadd.f32 %v4306_v39, %v11247_v41  ;;  %v11248_v11 = vld [vmem:[#allocation82_spill] sm:$0xff] }
 0xa09   :  { %v4853_v7 = vmul.f32 -1.442695, %v4313_v57  ;;  %v4317_v12 = vadd.f32 %v4265_v38, %v11239_v3  ;;  %v4267_v46 = vpop.f32.mrb[59].mxu0  ;;  %v4310_v9 = vpop.f32.mrb[59].mxu1 }
 0xa0a   :  { %v4855_v43 = vmul.f32 -1.442695, %v4314_v45  ;;  %v4318_v61 = vadd.f32 %v4267_v46, %v6940_v0  ;;  %v11250_v0 = vld [vmem:[#allocation89_spill] sm:$0xff]  ;;  %v4857_v37 = vmul.f32 -1.442695, %v4316_v40  ;;  %v4320_v18 = vadd.f32 %v4310_v9, %v11247_v41 }
 0xa0b   :  { %5647 = vpow2.f32 %v4853_v7  ;;  %v4854_v58 = vmul.f32 -1.442695, %v4317_v12  ;;  %4466 = vmatpush1.bf16.msra.mxu0 %v11243_v19  ;;  %4509 = vmatpush1.bf16.msra.mxu1 %v11244_v56  ;;  %v4315_v51 = vadd.f32 %v4304_v33, %v11250_v0  ;;  %v4319_v13 = vadd.f32 %v4308_v1, %v11250_v0 }
 0xa0c   :  { %5649 = vpow2.f32 %v4855_v43  ;;  %v4856_v26 = vmul.f32 -1.442695, %v4318_v61  ;;  %4467 = vmatprep.subr.bf16.mxu0 %v11245_v15  ;;  %4510 = vmatprep.subr.bf16.mxu1 %v11246_v14  ;;  %v4858_v44 = vmul.f32 -1.442695, %v4320_v18 }
 0xa0d   :  { %5651 = vpow2.f32 %v4854_v58 }
 0xa0e   :  { %5653 = vpow2.f32 %v4856_v26 }
 0xa0f   :  { %4468 = vmatpush1.bf16.msra.mxu0 %v11248_v11  ;;  %4511 = vmatpush1.bf16.msra.mxu1 %v11249_v8  ;;  %5655 = vtanh.f32 %v4315_v51 }
 0xa10   :  { %4469 = vmatprep.subr.bf16.mxu0 %v11251_v17  ;;  %4512 = vmatprep.subr.bf16.mxu1 %v11252_v23  ;;  %5657 = vpow2.f32 %v4857_v37 }
 0xa11   :  { %5659 = vtanh.f32 %v4319_v13 }
 0xa13   :  { %4470 = vmatpush1.bf16.msra.mxu0 %v11253_v22  ;;  %4513 = vmatpush1.bf16.msra.mxu1 %v11254_v49 }
 0xa14   :  { %4471 = vmatprep.subr.bf16.mxu0 %v11255_v28  ;;  %4514 = vmatprep.subr.bf16.mxu1 %v11256_v36 }
 0xa15   :  { %v5648_v30 = vpop.eup %5647 }
 0xa16   :  { %v5650_v31 = vpop.eup %5649  ;;  %v4327_v63 = vadd.f32 1.0, %v5648_v30 }
 0xa17   :  { %v4339_v59 = vadd.f32 1.0, %v5650_v31  ;;  %v5652_v16 = vpop.eup %5651  ;;  %4472 = vmatpush1.bf16.msra.mxu0 %v11257_v52  ;;  %4515 = vmatpush1.bf16.msra.mxu1 %v11258_v53 }
 0xa18   :  { %5661 = vrcp.f32 %v4327_v63  ;;  %v4328_v2 = vadd.f32 1.0, %v5652_v16  ;;  %v5654_v24 = vpop.eup %5653 }
 0xa19   :  { %5663 = vrcp.f32 %v4339_v59  ;;  %v4340_v4 = vadd.f32 1.0, %v5654_v24  ;;  %v5656_v62 = vpop.eup %5655 }
 0xa1a   :  { %5665 = vpow2.f32 %v4858_v44  ;;  %v5658_v55 = vpop.eup %5657 }
 0xa1b   :  { %5667 = vrcp.f32 %v4328_v2  ;;  %v5660_v60 = vpop.eup %5659  ;;  %v4353_v29 = vadd.f32 1.0, %v5658_v55 }
 0xa1c   :  { %5669 = vrcp.f32 %v4340_v4 }
 0xa1d   :  { %5671 = vrcp.f32 %v4353_v29 }
 0xa22   :  { %v5662_v54 = vpop.eup %5661 }
 0xa23   :  { %v5664_v21 = vpop.eup %5663  ;;  %v4361_v35 = vmul.f32 %v5662_v54, %v5656_v62 }
 0xa24   :  { %v5666_v33 = vpop.eup %5665  ;;  %v4359_v3 = vmul.f32 %v5664_v21, %v9940_v50 }
 0xa25   :  { %v5668_v57 = vpop.eup %5667  ;;  %v4354_v38 = vadd.f32 1.0, %v5666_v33 }
 0xa26   :  { %v4363_v6 = vadd.f32 %v4361_v35, %v4359_v3  ;;  %v4362_v39 = vmul.f32 %v5668_v57, %v5660_v60  ;;  %v5670_v45 = vpop.eup %5669 }
 0xa27   :  { %v4360_v1 = vmul.f32 %v5670_v45, %v9944_v32  ;;  %v5672_v50 = vpop.eup %5671 }
 0xa28   :  { %5673 = vtanh.f32 %v4363_v6  ;;  %4601 = vst [vmem:[%s10151_s8] sm:$0xff] %v4363_v6 }
 0xa29   :  { %v4364_v47 = vadd.f32 %v4362_v39, %v4360_v1  ;;  %5675 = vrcp.f32 %v4354_v38 }
 0xa2b   :  { %5677 = vtanh.f32 %v4364_v47  ;;  %4602 = vst [vmem:[%s10151_s8 + $0x8] sm:$0xff] %v4364_v47 }
 0xa32   :  { %v5674_v10 = vpop.eup %5673 }
 0xa33   :  { %v4367_v7 = vmul.f32 %v5674_v10, %v5672_v50  ;;  %v5676_v12 = vpop.eup %5675 }
 0xa35   :  { %4599 = vst [vmem:[%s10152_s7] sm:$0xff] %v4367_v7  ;;  %v5678_v46 = vpop.eup %5677 }
 0xa36   :  { %v4368_v9 = vmul.f32 %v5678_v46, %v5676_v12 }
 0xa38   :  { %v4369_v27 = vpack.c.bf16 %v4368_v9, %v4367_v7  ;;  %4600 = vst [vmem:[%s10152_s7 + $0x8] sm:$0xff] %v4368_v9 }
 0xa3a   :  { %4490 = vmatmul.mubr.bf16.vlgmr.msra.gmra.mrb[60].mxu0 %v4369_v27  ;;  %4533 = vmatmul.mubr.bf16.vlgmr.msra.gmra.mrb[60].mxu1 %v4369_v27 }
 0xb0d   :  { %v4491_v32 = vpop.f32.mrb[60].mxu0  ;;  %v4534_v43 = vpop.f32.mrb[60].mxu1 }
 0xb0e   :  { %v4543_v61 = vadd.f32 %v4491_v32, %v11231_v48  ;;  %v4493_v58 = vpop.f32.mrb[61].mxu0  ;;  %v4536_v26 = vpop.f32.mrb[61].mxu1  ;;  %v4545_v37 = vadd.f32 %v4534_v43, %v7092_v25 }
 0xb0f   :  { %v4544_v19 = vadd.f32 %v4493_v58, %v7080_v5  ;;  %v4495_v56 = vpop.f32.mrb[62].mxu0  ;;  %v4538_v15 = vpop.f32.mrb[62].mxu1  ;;  %v4546_v23 = vadd.f32 %v4536_v26, %v7087_v20 }
 0xb10   :  { %v4859_v14 = vmul.f32 -1.442695, %v4543_v61  ;;  %v4547_v41 = vadd.f32 %v4495_v56, %v11231_v48  ;;  %v4497_v40 = vpop.f32.mrb[63].mxu0  ;;  %v4540_v11 = vpop.f32.mrb[63].mxu1  ;;  %v4549_v48 = vadd.f32 %v4538_v15, %v7092_v25 }
 0xb11   :  { %v4861_v8 = vmul.f32 -1.442695, %v4544_v19  ;;  %v4548_v0 = vadd.f32 %v4497_v40, %v7080_v5  ;;  %v4863_v18 = vmul.f32 -1.442695, %v4546_v23  ;;  %v4550_v13 = vadd.f32 %v4540_v11, %v7087_v20 }
 0xb12   :  { %5679 = vpow2.f32 %v4859_v14  ;;  %v4860_v51 = vmul.f32 -1.442695, %v4547_v41 }
 0xb13   :  { %5681 = vpow2.f32 %v4861_v8  ;;  %v4862_v17 = vmul.f32 -1.442695, %v4548_v0  ;;  %v4864_v5 = vmul.f32 -1.442695, %v4550_v13 }
 0xb14   :  { %5683 = vpow2.f32 %v4860_v51 }
 0xb15   :  { %5685 = vpow2.f32 %v4862_v17 }
 0xb16   :  { %5687 = vtanh.f32 %v4545_v37 }
 0xb17   :  { %5689 = vpow2.f32 %v4863_v18 }
 0xb18   :  { %5691 = vtanh.f32 %v4549_v48 }
 0xb1c   :  { %v5680_v22 = vpop.eup %5679 }
 0xb1d   :  { %v5682_v49 = vpop.eup %5681  ;;  %v4557_v30 = vadd.f32 1.0, %v5680_v22 }
 0xb1e   :  { %v4569_v28 = vadd.f32 1.0, %v5682_v49  ;;  %v5684_v36 = vpop.eup %5683 }
 0xb1f   :  { %5693 = vrcp.f32 %v4557_v30  ;;  %v4558_v31 = vadd.f32 1.0, %v5684_v36  ;;  %v5686_v63 = vpop.eup %5685 }
 0xb20   :  { %5695 = vrcp.f32 %v4569_v28  ;;  %v4570_v44 = vadd.f32 1.0, %v5686_v63  ;;  %v5688_v20 = vpop.eup %5687 }
 0xb21   :  { %5697 = vpow2.f32 %v4864_v5  ;;  %v5690_v59 = vpop.eup %5689 }
 0xb22   :  { %5699 = vrcp.f32 %v4558_v31  ;;  %v5692_v25 = vpop.eup %5691  ;;  %v4583_v2 = vadd.f32 1.0, %v5690_v59 }
 0xb23   :  { %5701 = vrcp.f32 %v4570_v44 }
 0xb24   :  { %5703 = vrcp.f32 %v4583_v2 }
 0xb29   :  { %v5694_v16 = vpop.eup %5693 }
 0xb2a   :  { %v5696_v52 = vpop.eup %5695  ;;  %v4591_v53 = vmul.f32 %v5694_v16, %v5688_v20 }
 0xb2b   :  { %v5698_v24 = vpop.eup %5697  ;;  %v4589_v4 = vmul.f32 %v5696_v52, %v10061_v34 }
 0xb2c   :  { %v5700_v62 = vpop.eup %5699  ;;  %v4584_v21 = vadd.f32 1.0, %v5698_v24 }
 0xb2d   :  { %v4593_v55 = vadd.f32 %v4591_v53, %v4589_v4  ;;  %v4592_v60 = vmul.f32 %v5700_v62, %v5692_v25  ;;  %v5702_v54 = vpop.eup %5701 }
 0xb2e   :  { %v4590_v35 = vmul.f32 %v5702_v54, %v10065_v42  ;;  %v5704_v34 = vpop.eup %5703 }
 0xb2f   :  { %5705 = vtanh.f32 %v4593_v55  ;;  %4867 = vst [vmem:[%s10151_s8 + $0x10] sm:$0xff] %v4593_v55 }
 0xb30   :  { %v4594_v29 = vadd.f32 %v4592_v60, %v4590_v35  ;;  %5707 = vrcp.f32 %v4584_v21 }
 0xb32   :  { %5709 = vtanh.f32 %v4594_v29  ;;  %4868 = vst [vmem:[%s10151_s8 + $0x18] sm:$0xff] %v4594_v29 }
 0xb39   :  { %v5706_v33 = vpop.eup %5705 }
 0xb3a   :  { %v4597_v3 = vmul.f32 %v5706_v33, %v5704_v34  ;;  %v5708_v57 = vpop.eup %5707 }
 0xb3c   :  { %4865 = vst [vmem:[%s10152_s7 + $0x10] sm:$0xff] %v4597_v3  ;;  %v5710_v6 = vpop.eup %5709 }
 0xb3d   :  { %v4598_v39 = vmul.f32 %v5710_v6, %v5708_v57 }
 0xb3f   :  { %4866 = vst [vmem:[%s10152_s7 + $0x18] sm:$0xff] %v4598_v39 }

</bundles_post_ra>
